<compile_context>
chip_gen: v7x
topology: tpu7x:2x2x1
jax: 0.10.0
libtpu: 0.0.40
codegen_flags: <defaults>
</compile_context>

<pallas_src>
import functools

import jax
import jax.numpy as jnp
from jax.experimental import pallas as pl
from jax.experimental.pallas import tpu as pltpu

# ----------------------------- model config (small, deterministic) -----------------------------
N_SRC = 2
N_FILTERS = 64          # encoder filters (n_filters)
KERNEL_SIZE = 16        # filterbank kernel
STRIDE = 8              # filterbank stride
BN_CHAN = 32
HID_CHAN = 64           # hid_chan_spk == Emb_dim
SKIP_CHAN = 32
CONV_KS = 3
N_BLOCKS_SPK, N_REPEATS_SPK = 2, 1
N_BLOCKS_SEP, N_REPEATS_SEP = 2, 1
EMB_DIM = HID_CHAN


def _round_up(x, m):
    return ((x + m - 1) // m) * m


def _dilations(n_blocks, n_repeats):
    # static architecture constants (NOT stored in params -> no tracer leaks into jnp.pad etc.)
    return tuple(2 ** b for _ in range(n_repeats) for b in range(n_blocks))


# ----------------------------------- generic matmul kernel -----------------------------------
def _mm_kernel(a_ref, b_ref, bias_ref, o_ref, *, act):
    acc = jnp.dot(a_ref[...], b_ref[...], preferred_element_type=jnp.float32)
    acc = acc + bias_ref[...]
    if act == "relu":
        acc = jnp.maximum(acc, 0.0)
    o_ref[...] = acc.astype(o_ref.dtype)


def matmul(a, w, bias=None, act="none", tm_max=512):
    """(M, K) @ (K, N) + bias, optional relu.  Robust M tiling (pads M to a tile multiple)."""
    M, K = a.shape
    _, N = w.shape
    if bias is None:
        bias = jnp.zeros((N,), jnp.float32)
    tm = min(tm_max, _round_up(M, 8))
    Mp = _round_up(M, tm)
    a_p = jnp.pad(a, ((0, Mp - M), (0, 0))) if Mp != M else a
    kern = functools.partial(_mm_kernel, act=act)
    out = pl.pallas_call(
        kern,
        out_shape=jax.ShapeDtypeStruct((Mp, N), jnp.float32),
        grid_spec=pltpu.PrefetchScalarGridSpec(
            num_scalar_prefetch=0,
            grid=(Mp // tm,),
            in_specs=[
                pl.BlockSpec((tm, K), lambda i: (i, 0)),
                pl.BlockSpec((K, N), lambda i: (0, 0)),
                pl.BlockSpec((1, N), lambda i: (0, 0)),
            ],
            out_specs=pl.BlockSpec((tm, N), lambda i: (i, 0)),
        ),
        compiler_params=pltpu.CompilerParams(dimension_semantics=("parallel",)),
    )(a_p, w, bias.reshape(1, N))
    return out[:M] if Mp != M else out


# ----------------------------------- fused TDConvNet stack kernel -----------------------------------
def _gln(x, g, b):
    """Global layer norm over (T, C) of one sample; g/b are (1, C)."""
    mean = jnp.mean(x, axis=(0, 1), keepdims=True)
    var = jnp.mean(jnp.square(x - mean), axis=(0, 1), keepdims=True)
    return g * ((x - mean) * jax.lax.rsqrt(var + 1e-8)) + b


def _stack_kernel(x_ref, cond_ref, ln_g_ref, ln_b_ref, bn_w_ref, bn_b_ref,
                  cw_ref, cb_ref,
                  in_w_ref, in_b_ref, g1_ref, be1_ref, dw_w_ref, dw_b_ref,
                  g2_ref, be2_ref, sr_w_ref, sr_b_ref,
                  alpha_ref, mask_w_ref, mask_b_ref,
                  m_ref,
                  pad_ref,
                  *, dilations, T, skip_chan, halo):
    n_blocks = len(dilations)
    alphas = alpha_ref[...]                                   # (1, 2*NB+1)

    # zero halo buffer (interior is overwritten each block, halos stay 0)
    pad_ref[...] = jnp.zeros(pad_ref.shape, pad_ref.dtype)

    # --- bottleneck: gLN -> 1x1 conv (+ FiLM-style additive centroid conditioning) ---
    x = x_ref[0].astype(jnp.float32)                          # (T, Cin)
    x = _gln(x, ln_g_ref[...], ln_b_ref[...])
    h = jnp.dot(x, bn_w_ref[...], preferred_element_type=jnp.float32) + bn_b_ref[...]
    cproj = jnp.dot(cond_ref[0].astype(jnp.float32), cw_ref[...],
                    preferred_element_type=jnp.float32) + cb_ref[...]    # (1, BN)
    h = h + cproj

    skip_sum = None
    for i, d in enumerate(dilations):
        # 1x1 in-conv
        y = jnp.dot(h, in_w_ref[i], preferred_element_type=jnp.float32) + in_b_ref[i]
        # PReLU + gLN
        a1 = alphas[:, 2 * i:2 * i + 1]
        y = jnp.where(y >= 0.0, y, a1 * y)
        y = _gln(y, g1_ref[i], be1_ref[i])
        # depthwise dilated conv (k=3, 'same'): halo handled with an in-VMEM padded buffer
        pad_ref[pl.ds(halo, T), :] = y
        w3 = dw_w_ref[i]                                      # (3, HID)
        y = (pad_ref[pl.ds(halo - d, T), :] * w3[0:1, :]
             + y * w3[1:2, :]
             + pad_ref[pl.ds(halo + d, T), :] * w3[2:3, :]
             + dw_b_ref[i])
        # PReLU + gLN
        a2 = alphas[:, 2 * i + 1:2 * i + 2]
        y = jnp.where(y >= 0.0, y, a2 * y)
        y = _gln(y, g2_ref[i], be2_ref[i])
        # fused (skip | res) 1x1: single lane-dense (HID, SKIP+BN) matmul
        sr = jnp.dot(y, sr_w_ref[i], preferred_element_type=jnp.float32) + sr_b_ref[i]
        skip = sr[:, :skip_chan]
        res = sr[:, skip_chan:]
        skip_sum = skip if skip_sum is None else skip_sum + skip
        h = h + res

    # --- mask net: PReLU -> 1x1 -> relu ---
    a_out = alphas[:, 2 * n_blocks:2 * n_blocks + 1]
    o = jnp.where(skip_sum >= 0.0, skip_sum, a_out * skip_sum)
    m = jnp.dot(o, mask_w_ref[...], preferred_element_type=jnp.float32) + mask_b_ref[...]
    m_ref[0] = jnp.maximum(m, 0.0).astype(m_ref.dtype)


def run_tdconv_stack(p, x, cond, n_src, out_dim, dilations):
    """Whole TDConvNet trunk as ONE fused pallas_call with grid over the batch axis."""
    Nb, T, Cin = x.shape
    NB = len(dilations)
    BN = p["bottleneck_w"].shape[1]
    HID = p["blocks"][0]["in_w"].shape[1]
    SK = p["blocks"][0]["skip_w"].shape[1]
    NOUT = n_src * out_dim
    HALO = _round_up(max(dilations), 8)         # keep interior store sublane-aligned

    if cond is None:
        E = EMB_DIM
        cond3 = jnp.zeros((Nb, 1, E), jnp.float32)
        cw = jnp.zeros((E, BN), jnp.float32)
        cb = jnp.zeros((1, BN), jnp.float32)
    else:
        E = cond.shape[-1]
        cond3 = cond.reshape(Nb, 1, E).astype(jnp.float32)
        cw = p["cond_w"]
        cb = p["cond_b"].reshape(1, BN)

    blocks = p["blocks"]
    in_w = jnp.stack([b["in_w"] for b in blocks])                         # (NB, BN, HID)
    in_b = jnp.stack([b["in_b"].reshape(1, HID) for b in blocks])         # (NB, 1, HID)
    g1 = jnp.stack([b["g1"].reshape(1, HID) for b in blocks])
    be1 = jnp.stack([b["be1"].reshape(1, HID) for b in blocks])
    dw_w = jnp.stack([b["dw_w"] for b in blocks])                         # (NB, 3, HID)
    dw_b = jnp.stack([b["dw_b"].reshape(1, HID) for b in blocks])
    g2 = jnp.stack([b["g2"].reshape(1, HID) for b in blocks])
    be2 = jnp.stack([b["be2"].reshape(1, HID) for b in blocks])
    sr_w = jnp.stack([jnp.concatenate([b["skip_w"], b["res_w"]], axis=1)
                      for b in blocks])                                   # (NB, HID, SK+BN)
    sr_b = jnp.stack([jnp.concatenate([b["skip_b"], b["res_b"]]).reshape(1, SK + BN)
                      for b in blocks])
    alpha_list = []
    for b in blocks:
        alpha_list += [b["a1"], b["a2"]]
    alpha_list.append(p["out_a"])
    alphas = jnp.stack([jnp.asarray(a, jnp.float32).reshape(()) for a in alpha_list]
                       ).reshape(1, 2 * NB + 1)

    kern = functools.partial(_stack_kernel, dilations=tuple(dilations), T=T,
                             skip_chan=SK, halo=HALO)

    def _fixed(nd):
        return lambda n: (0,) * nd

    out = pl.pallas_call(
        kern,
        out_shape=jax.ShapeDtypeStruct((Nb, T, NOUT), jnp.float32),
        grid_spec=pltpu.PrefetchScalarGridSpec(
            num_scalar_prefetch=0,
            grid=(Nb,),
            in_specs=[
                pl.BlockSpec((1, T, Cin), lambda n: (n, 0, 0)),       # x
                pl.BlockSpec((1, 1, E), lambda n: (n, 0, 0)),         # cond
                pl.BlockSpec((1, Cin), _fixed(2)),                    # ln0 gamma
                pl.BlockSpec((1, Cin), _fixed(2)),                    # ln0 beta
                pl.BlockSpec((Cin, BN), _fixed(2)),                   # bottleneck w
                pl.BlockSpec((1, BN), _fixed(2)),                     # bottleneck b
                pl.BlockSpec((E, BN), _fixed(2)),                     # cond w
                pl.BlockSpec((1, BN), _fixed(2)),                     # cond b
                pl.BlockSpec((NB, BN, HID), _fixed(3)),               # block in_w
                pl.BlockSpec((NB, 1, HID), _fixed(3)),                # block in_b
                pl.BlockSpec((NB, 1, HID), _fixed(3)),                # g1
                pl.BlockSpec((NB, 1, HID), _fixed(3)),                # be1
                pl.BlockSpec((NB, 3, HID), _fixed(3)),                # dw_w
                pl.BlockSpec((NB, 1, HID), _fixed(3)),                # dw_b
                pl.BlockSpec((NB, 1, HID), _fixed(3)),                # g2
                pl.BlockSpec((NB, 1, HID), _fixed(3)),                # be2
                pl.BlockSpec((NB, HID, SK + BN), _fixed(3)),          # fused skip|res w
                pl.BlockSpec((NB, 1, SK + BN), _fixed(3)),            # fused skip|res b
                pl.BlockSpec((1, 2 * NB + 1), _fixed(2)),             # PReLU alphas
                pl.BlockSpec((SK, NOUT), _fixed(2)),                  # mask w
                pl.BlockSpec((1, NOUT), _fixed(2)),                   # mask b
            ],
            out_specs=pl.BlockSpec((1, T, NOUT), lambda n: (n, 0, 0)),
            scratch_shapes=[pltpu.VMEM((T + 2 * HALO, HID), jnp.float32)],
        ),
        compiler_params=pltpu.CompilerParams(dimension_semantics=("parallel",)),
    )(x, cond3, p["ln0_g"].reshape(1, Cin), p["ln0_b"].reshape(1, Cin),
      p["bottleneck_w"], p["bottleneck_b"].reshape(1, BN), cw, cb,
      in_w, in_b, g1, be1, dw_w, dw_b, g2, be2, sr_w, sr_b,
      alphas, p["mask_w"], p["mask_b"].reshape(1, NOUT))

    m = out.reshape(Nb, T, n_src, out_dim)
    return jnp.transpose(m, (0, 2, 1, 3))                               # (Nb, n_src, T, out_dim)


# ----------------------------------- L2 norm kernel -----------------------------------
def _l2norm_kernel(x_ref, o_ref):
    x = x_ref[...].astype(jnp.float32)
    n = jnp.sqrt(jnp.sum(x * x, axis=-1, keepdims=True))
    o_ref[...] = (x / jnp.maximum(n, 1e-12)).astype(o_ref.dtype)


def l2norm(x):
    """F.normalize over last dim; x (N, T, D) — tiny, single block / single launch."""
    N, T, D = x.shape
    return pl.pallas_call(
        _l2norm_kernel,
        out_shape=jax.ShapeDtypeStruct((N, T, D), jnp.float32),
    )(x)


# ----------------------------------- fused mask*enc + decoder matmul -----------------------------------
def _maskdec_kernel(m_ref, e_ref, w_ref, o_ref):
    prod = m_ref[0, 0].astype(jnp.float32) * e_ref[0].astype(jnp.float32)     # (T, C)
    o_ref[0, 0] = jnp.dot(prod, w_ref[...],
                          preferred_element_type=jnp.float32).astype(o_ref.dtype)


def maskdec(mask, enc, dec_w):
    """mask (S, B, T, C) * enc (B, T, C) then @ dec_w (C, K) -> frames (S, B, T, K)."""
    S, B, T, C = mask.shape
    K = dec_w.shape[1]
    return pl.pallas_call(
        _maskdec_kernel,
        out_shape=jax.ShapeDtypeStruct((S, B, T, K), jnp.float32),
        grid_spec=pltpu.PrefetchScalarGridSpec(
            num_scalar_prefetch=0,
            grid=(S, B),
            in_specs=[
                pl.BlockSpec((1, 1, T, C), lambda s, b: (s, b, 0, 0)),
                pl.BlockSpec((1, T, C), lambda s, b: (b, 0, 0)),
                pl.BlockSpec((C, K), lambda s, b: (0, 0)),
            ],
            out_specs=pl.BlockSpec((1, 1, T, K), lambda s, b: (s, b, 0, 0)),
        ),
        compiler_params=pltpu.CompilerParams(dimension_semantics=("parallel", "parallel")),
    )(mask, enc, dec_w)


# ----------------------------------- k-means (JAX glue) -----------------------------------
def kmeans(samples, k, iters=10):
    """Deterministic fixed-iteration Lloyd's k-means on (N, D) samples."""
    N, _ = samples.shape
    init_idx = (jnp.arange(k) * (N // k)).astype(jnp.int32)
    cent0 = samples[init_idx]

    def body(_, cent):
        d2 = jnp.sum((samples[:, None, :] - cent[None, :, :]) ** 2, axis=-1)
        assign = jnp.argmin(d2, axis=-1)
        oh = jax.nn.one_hot(assign, k, dtype=samples.dtype)
        counts = oh.sum(axis=0)[:, None]
        return (oh.T @ samples) / jnp.maximum(counts, 1.0)

    return jax.lax.fori_loop(0, iters, body, cent0)


# ----------------------------------- forward -----------------------------------
def wavesplit_forward(params, mix_wave):
    """Eval path for plain-tensor input -> Decoder(masked_wave), shape (B, 2, L)."""
    B, L = mix_wave.shape
    K, S = KERNEL_SIZE, STRIDE
    assert K == 2 * S, "framing / overlap-add fast path assumes kernel == 2 * stride"
    T = (L - K) // S + 1

    # --- Encoder framing via two shifted reshapes (no gather) + filterbank matmul ---
    a = mix_wave[:, :T * S].reshape(B, T, S)
    b = mix_wave[:, S:(T + 1) * S].reshape(B, T, S)
    frames = jnp.concatenate([a, b], axis=-1)                           # (B, T, K)
    enc = matmul(frames.reshape(B * T, K), params["enc_w"]).reshape(B, T, N_FILTERS)

    # --- SpeakerStack -> speaker vectors (B, n_src, T, EMB), L2-normalized over EMB ---
    dil_spk = _dilations(N_BLOCKS_SPK, N_REPEATS_SPK)
    spk = run_tdconv_stack(params["spk"], enc, None, N_SRC, EMB_DIM, dil_spk)
    spk = l2norm(spk.reshape(B * N_SRC, T, EMB_DIM)).reshape(B, N_SRC, T, EMB_DIM)

    # --- k-means over all (n_src*T) speaker vectors per batch element ---
    samples = spk.reshape(B, N_SRC * T, EMB_DIM)
    cents = jax.vmap(lambda s: kmeans(s, N_SRC))(samples)               # (B, n_src, EMB)
    cents = cents / jnp.maximum(jnp.linalg.norm(cents, axis=-1, keepdims=True), 1e-12)

    # --- SeparationStack: both centroid-conditioned passes BATCHED into one call ---
    enc_rep = jnp.concatenate([enc, enc], axis=0)                       # (2B, T, C) src-major
    cond = jnp.transpose(cents, (1, 0, 2)).reshape(N_SRC * B, EMB_DIM)  # (2B, EMB)
    dil_sep = _dilations(N_BLOCKS_SEP, N_REPEATS_SEP)
    m = run_tdconv_stack(params["sep"], enc_rep, cond, 1, N_FILTERS, dil_sep)   # (2B, 1, T, C)
    mask = m[:, 0].reshape(N_SRC, B, T, N_FILTERS)                      # (2, B, T, C)

    # --- fused mask*enc + decoder (ConvTranspose1d core) matmul ---
    dec_frames = maskdec(mask, enc, params["dec_w"])                    # (2, B, T, K)
    dec_frames = jnp.transpose(dec_frames, (1, 0, 2, 3))                # (B, 2, T, K)

    # --- overlap-add (stride = K/2) via split-halves, no scatter ---
    f1 = dec_frames[..., :S]                                            # (B, 2, T, S)
    f2 = dec_frames[..., S:]
    z = jnp.zeros((B, N_SRC, 1, S), jnp.float32)
    out = (jnp.concatenate([f1, z], axis=2) + jnp.concatenate([z, f2], axis=2))
    return out.reshape(B, N_SRC, (T + 1) * S)                           # (B, 2, L)


# ----------------------------------- parameter init -----------------------------------
def _init_tdconv(key, cin, n_src, out_chan, n_blocks, n_repeats, with_cond):
    keys = iter(jax.random.split(key, 256))

    def w(shape, scale=0.1):
        return jax.random.normal(next(keys), shape, jnp.float32) * scale

    a025 = jnp.array(0.25, jnp.float32)
    p = {
        "ln0_g": jnp.ones((cin,), jnp.float32),
        "ln0_b": jnp.zeros((cin,), jnp.float32),
        "bottleneck_w": w((cin, BN_CHAN)),
        "bottleneck_b": jnp.zeros((BN_CHAN,), jnp.float32),
        "out_a": a025,
        "mask_w": w((SKIP_CHAN, n_src * out_chan)),
        "mask_b": jnp.zeros((n_src * out_chan,), jnp.float32),
    }
    if with_cond:
        p["cond_w"] = w((EMB_DIM, BN_CHAN))
        p["cond_b"] = jnp.zeros((BN_CHAN,), jnp.float32)
    blocks = []
    for _ in range(n_repeats):
        for _b in range(n_blocks):
            # NOTE: dilation is a static architecture constant (see _dilations), not a param leaf.
            blocks.append(dict(
                in_w=w((BN_CHAN, HID_CHAN)), in_b=jnp.zeros((HID_CHAN,), jnp.float32),
                a1=a025, g1=jnp.ones((HID_CHAN,), jnp.float32), be1=jnp.zeros((HID_CHAN,), jnp.float32),
                dw_w=w((CONV_KS, HID_CHAN)), dw_b=jnp.zeros((HID_CHAN,), jnp.float32),
                a2=a025, g2=jnp.ones((HID_CHAN,), jnp.float32), be2=jnp.zeros((HID_CHAN,), jnp.float32),
                skip_w=w((HID_CHAN, SKIP_CHAN)), skip_b=jnp.zeros((SKIP_CHAN,), jnp.float32),
                res_w=w((HID_CHAN, BN_CHAN)), res_b=jnp.zeros((BN_CHAN,), jnp.float32),
            ))
    p["blocks"] = blocks
    return p


def init_params(key):
    k_enc, k_dec, k_spk, k_sep, k_emb = jax.random.split(key, 5)
    return {
        "enc_w": jax.random.normal(k_enc, (KERNEL_SIZE, N_FILTERS), jnp.float32) * 0.1,
        "dec_w": jax.random.normal(k_dec, (N_FILTERS, KERNEL_SIZE), jnp.float32) * 0.1,
        "spk": _init_tdconv(k_spk, N_FILTERS, N_SRC, EMB_DIM, N_BLOCKS_SPK, N_REPEATS_SPK, False),
        "sep": _init_tdconv(k_sep, N_FILTERS, 1, N_FILTERS, N_BLOCKS_SEP, N_REPEATS_SEP, True),
        # Emb_table: only used in the (unimplemented) training branch; kept for shape fidelity.
        "emb_table": jax.random.normal(k_emb, (129, EMB_DIM), jnp.float32),
    }


# ----------------------------------- main -----------------------------------
if __name__ == "__main__":
    key = jax.random.PRNGKey(0)
    pkey, xkey = jax.random.split(key)
    params = init_params(pkey)

    B = 2
    T = 128
    L = (T - 1) * STRIDE + KERNEL_SIZE          # 1032
    mix_wave = jax.random.normal(xkey, (B, L), jnp.float32)

    fwd = jax.jit(wavesplit_forward)
    out = jax.block_until_ready(fwd(params, mix_wave))
    assert out.shape == (B, 2, L), out.shape
    assert bool(jnp.all(jnp.isfinite(out)))
    print("KERNEL_OK")
</pallas_src>

<mosaic_0001>
module attributes {stable_mosaic.version = 11 : i64} {
  func.func @_mm_kernel(%arg0: i32, %arg1: memref<256x16xf32, #tpu.memory_space<vmem>>, %arg2: memref<16x64xf32, #tpu.memory_space<vmem>>, %arg3: memref<1x64xf32, #tpu.memory_space<vmem>>, %arg4: memref<256x64xf32, #tpu.memory_space<vmem>>) attributes {dimension_semantics = [#tpu.dimension_semantics<parallel>], iteration_bounds = array<i64: 1>, scalar_prefetch = 0 : i64, scratch_operands = 0 : i64, tpu.core_type = #tpu.core_type<tc>, window_params = [{transform_indices = @transform_0, window_bounds = array<i64: 256, 16>}, {pipeline_mode = #tpu.pipeline_mode<synchronous>, transform_indices = @transform_1, window_bounds = array<i64: 16, 64>}, {pipeline_mode = #tpu.pipeline_mode<synchronous>, transform_indices = @transform_2, window_bounds = array<i64: 1, 64>}, {transform_indices = @transform_3, window_bounds = array<i64: 256, 64>}]} {
    %c0 = arith.constant 0 : index
    %c0_0 = arith.constant 0 : index
    %0 = vector.load %arg1[%c0, %c0_0] : memref<256x16xf32, #tpu.memory_space<vmem>>, vector<256x16xf32>
    %c0_1 = arith.constant 0 : index
    %c0_2 = arith.constant 0 : index
    %1 = vector.load %arg2[%c0_1, %c0_2] : memref<16x64xf32, #tpu.memory_space<vmem>>, vector<16x64xf32>
    %cst = arith.constant dense<0.000000e+00> : vector<256x64xf32>
    %2 = tpu.matmul %0, %1, %cst {dimension_numbers = #tpu.dot_dimension_numbers<[1], [0], [0], [1], [0, 0, 1, 1], [], []>} : vector<256x16xf32>, vector<16x64xf32>, vector<256x64xf32> -> vector<256x64xf32>
    %c0_3 = arith.constant 0 : index
    %c0_4 = arith.constant 0 : index
    %3 = vector.load %arg3[%c0_3, %c0_4] : memref<1x64xf32, #tpu.memory_space<vmem>>, vector<1x64xf32>
    %4 = vector.broadcast %3 : vector<1x64xf32> to vector<256x64xf32>
    %5 = arith.addf %2, %4 : vector<256x64xf32>
    %c0_5 = arith.constant 0 : index
    %c0_6 = arith.constant 0 : index
    %6 = vector.load %arg4[%c0_5, %c0_6] : memref<256x64xf32, #tpu.memory_space<vmem>>, vector<256x64xf32>
    tpu.vector_store %arg4[%c0_5, %c0_6], %5 {strides = array<i32>} : memref<256x64xf32, #tpu.memory_space<vmem>>, vector<256x64xf32>,
    return
  }
  func.func @transform_0(%arg0: i32) -> (i32, i32) {
    %c0_i32 = arith.constant 0 : i32
    %c0_i32_0 = arith.constant 0 : i32
    return %arg0, %c0_i32 : i32, i32
  }
  func.func @transform_1(%arg0: i32) -> (i32, i32) {
    %c0_i32 = arith.constant 0 : i32
    %c0_i32_0 = arith.constant 0 : i32
    %c0_i32_1 = arith.constant 0 : i32
    return %c0_i32, %c0_i32_0 : i32, i32
  }
  func.func @transform_2(%arg0: i32) -> (i32, i32) {
    %c0_i32 = arith.constant 0 : i32
    %c0_i32_0 = arith.constant 0 : i32
    %c0_i32_1 = arith.constant 0 : i32
    return %c0_i32, %c0_i32_0 : i32, i32
  }
  func.func @transform_3(%arg0: i32) -> (i32, i32) {
    %c0_i32 = arith.constant 0 : i32
    %c0_i32_0 = arith.constant 0 : i32
    return %arg0, %c0_i32 : i32, i32
  }
}

module attributes {stable_mosaic.version = 11 : i64} {
  func.func @_stack_kernel(%arg0: i32, %arg1: memref<1x128x64xf32, #tpu.memory_space<vmem>>, %arg2: memref<1x1x64xf32, #tpu.memory_space<vmem>>, %arg3: memref<1x64xf32, #tpu.memory_space<vmem>>, %arg4: memref<1x64xf32, #tpu.memory_space<vmem>>, %arg5: memref<64x32xf32, #tpu.memory_space<vmem>>, %arg6: memref<1x32xf32, #tpu.memory_space<vmem>>, %arg7: memref<64x32xf32, #tpu.memory_space<vmem>>, %arg8: memref<1x32xf32, #tpu.memory_space<vmem>>, %arg9: memref<2x32x64xf32, #tpu.memory_space<vmem>>, %arg10: memref<2x1x64xf32, #tpu.memory_space<vmem>>, %arg11: memref<2x1x64xf32, #tpu.memory_space<vmem>>, %arg12: memref<2x1x64xf32, #tpu.memory_space<vmem>>, %arg13: memref<2x3x64xf32, #tpu.memory_space<vmem>>, %arg14: memref<2x1x64xf32, #tpu.memory_space<vmem>>, %arg15: memref<2x1x64xf32, #tpu.memory_space<vmem>>, %arg16: memref<2x1x64xf32, #tpu.memory_space<vmem>>, %arg17: memref<2x64x64xf32, #tpu.memory_space<vmem>>, %arg18: memref<2x1x64xf32, #tpu.memory_space<vmem>>, %arg19: memref<1x5xf32, #tpu.memory_space<vmem>>, %arg20: memref<32x128xf32, #tpu.memory_space<vmem>>, %arg21: memref<1x128xf32, #tpu.memory_space<vmem>>, %arg22: memref<1x128x128xf32, #tpu.memory_space<vmem>>, %arg23: memref<144x64xf32, #tpu.memory_space<vmem>>) attributes {dimension_semantics = [#tpu.dimension_semantics<parallel>], iteration_bounds = array<i64: 2>, scalar_prefetch = 0 : i64, scratch_operands = 1 : i64, tpu.core_type = #tpu.core_type<tc>, window_params = [{transform_indices = @transform_0, window_bounds = array<i64: 1, 128, 64>}, {transform_indices = @transform_1, window_bounds = array<i64: 1, 1, 64>}, {pipeline_mode = #tpu.pipeline_mode<synchronous>, transform_indices = @transform_2, window_bounds = array<i64: 1, 64>}, {pipeline_mode = #tpu.pipeline_mode<synchronous>, transform_indices = @transform_3, window_bounds = array<i64: 1, 64>}, {pipeline_mode = #tpu.pipeline_mode<synchronous>, transform_indices = @transform_4, window_bounds = array<i64: 64, 32>}, {pipeline_mode = #tpu.pipeline_mode<synchronous>, transform_indices = @transform_5, window_bounds = array<i64: 1, 32>}, {pipeline_mode = #tpu.pipeline_mode<synchronous>, transform_indices = @transform_6, window_bounds = array<i64: 64, 32>}, {pipeline_mode = #tpu.pipeline_mode<synchronous>, transform_indices = @transform_7, window_bounds = array<i64: 1, 32>}, {pipeline_mode = #tpu.pipeline_mode<synchronous>, transform_indices = @transform_8, window_bounds = array<i64: 2, 32, 64>}, {pipeline_mode = #tpu.pipeline_mode<synchronous>, transform_indices = @transform_9, window_bounds = array<i64: 2, 1, 64>}, {pipeline_mode = #tpu.pipeline_mode<synchronous>, transform_indices = @transform_10, window_bounds = array<i64: 2, 1, 64>}, {pipeline_mode = #tpu.pipeline_mode<synchronous>, transform_indices = @transform_11, window_bounds = array<i64: 2, 1, 64>}, {pipeline_mode = #tpu.pipeline_mode<synchronous>, transform_indices = @transform_12, window_bounds = array<i64: 2, 3, 64>}, {pipeline_mode = #tpu.pipeline_mode<synchronous>, transform_indices = @transform_13, window_bounds = array<i64: 2, 1, 64>}, {pipeline_mode = #tpu.pipeline_mode<synchronous>, transform_indices = @transform_14, window_bounds = array<i64: 2, 1, 64>}, {pipeline_mode = #tpu.pipeline_mode<synchronous>, transform_indices = @transform_15, window_bounds = array<i64: 2, 1, 64>}, {pipeline_mode = #tpu.pipeline_mode<synchronous>, transform_indices = @transform_16, window_bounds = array<i64: 2, 64, 64>}, {pipeline_mode = #tpu.pipeline_mode<synchronous>, transform_indices = @transform_17, window_bounds = array<i64: 2, 1, 64>}, {pipeline_mode = #tpu.pipeline_mode<synchronous>, transform_indices = @transform_18, window_bounds = array<i64: 1, 5>}, {pipeline_mode = #tpu.pipeline_mode<synchronous>, transform_indices = @transform_19, window_bounds = array<i64: 32, 128>}, {pipeline_mode = #tpu.pipeline_mode<synchronous>, transform_indices = @transform_20, window_bounds = array<i64: 1, 128>}, {transform_indices = @transform_21, window_bounds = array<i64: 1, 128, 128>}]} {
    %c0 = arith.constant 0 : index
    %c0_0 = arith.constant 0 : index
    %0 = vector.load %arg19[%c0, %c0_0] : memref<1x5xf32, #tpu.memory_space<vmem>>, vector<1x5xf32>
    %cst = arith.constant 0.000000e+00 : f32
    %1 = vector.broadcast %cst : f32 to vector<144x64xf32>
    %c0_1 = arith.constant 0 : index
    %c0_2 = arith.constant 0 : index
    %2 = vector.load %arg23[%c0_1, %c0_2] : memref<144x64xf32, #tpu.memory_space<vmem>>, vector<144x64xf32>
    tpu.vector_store %arg23[%c0_1, %c0_2], %1 {strides = array<i32>} : memref<144x64xf32, #tpu.memory_space<vmem>>, vector<144x64xf32>,
    %c0_3 = arith.constant 0 : index
    %c0_4 = arith.constant 0 : index
    %c0_5 = arith.constant 0 : index
    %3 = vector.load %arg1[%c0_3, %c0_4, %c0_5] : memref<1x128x64xf32, #tpu.memory_space<vmem>>, vector<1x128x64xf32>
    %4 = vector.shape_cast %3 : vector<1x128x64xf32> to vector<128x64xf32>
    %c0_6 = arith.constant 0 : index
    %c0_7 = arith.constant 0 : index
    %5 = vector.load %arg3[%c0_6, %c0_7] : memref<1x64xf32, #tpu.memory_space<vmem>>, vector<1x64xf32>
    %c0_8 = arith.constant 0 : index
    %c0_9 = arith.constant 0 : index
    %6 = vector.load %arg4[%c0_8, %c0_9] : memref<1x64xf32, #tpu.memory_space<vmem>>, vector<1x64xf32>
    %7 = vector.shape_cast %4 : vector<128x64xf32> to vector<1x128x64xf32>
    %cst_10 = arith.constant dense<0.000000e+00> : vector<1xf32>
    %8 = vector.multi_reduction <add>, %7, %cst_10 [1, 2] : vector<1x128x64xf32> to vector<1xf32>
    %9 = vector.shape_cast %8 : vector<1xf32> to vector<1x1x1xf32>
    %10 = vector.extract %9[0, 0, 0] : f32 from vector<1x1x1xf32>
    %11 = vector.broadcast %10 : f32 to vector<1x1xf32>
    %cst_11 = arith.constant 8.192000e+03 : f32
    %12 = vector.broadcast %cst_11 : f32 to vector<1x1xf32>
    %13 = arith.divf %11, %12 : vector<1x1xf32>
    %14 = vector.broadcast %13 : vector<1x1xf32> to vector<128x64xf32>
    %15 = arith.subf %4, %14 : vector<128x64xf32>
    %16 = arith.mulf %15, %15 : vector<128x64xf32>
    %17 = vector.shape_cast %16 : vector<128x64xf32> to vector<1x128x64xf32>
    %cst_12 = arith.constant dense<0.000000e+00> : vector<1xf32>
    %18 = vector.multi_reduction <add>, %17, %cst_12 [1, 2] : vector<1x128x64xf32> to vector<1xf32>
    %19 = vector.shape_cast %18 : vector<1xf32> to vector<1x1x1xf32>
    %20 = vector.extract %19[0, 0, 0] : f32 from vector<1x1x1xf32>
    %21 = vector.broadcast %20 : f32 to vector<1x1xf32>
    %cst_13 = arith.constant 8.192000e+03 : f32
    %22 = vector.broadcast %cst_13 : f32 to vector<1x1xf32>
    %23 = arith.divf %21, %22 : vector<1x1xf32>
    %24 = vector.broadcast %13 : vector<1x1xf32> to vector<128x64xf32>
    %25 = arith.subf %4, %24 : vector<128x64xf32>
    %cst_14 = arith.constant 9.99999993E-9 : f32
    %26 = vector.broadcast %cst_14 : f32 to vector<1x1xf32>
    %27 = arith.addf %23, %26 : vector<1x1xf32>
    %28 = math.rsqrt %27 : vector<1x1xf32>
    %29 = vector.broadcast %28 : vector<1x1xf32> to vector<128x64xf32>
    %30 = arith.mulf %25, %29 : vector<128x64xf32>
    %31 = vector.broadcast %5 : vector<1x64xf32> to vector<128x64xf32>
    %32 = arith.mulf %31, %30 : vector<128x64xf32>
    %33 = vector.broadcast %6 : vector<1x64xf32> to vector<128x64xf32>
    %34 = arith.addf %32, %33 : vector<128x64xf32>
    %c0_15 = arith.constant 0 : index
    %c0_16 = arith.constant 0 : index
    %35 = vector.load %arg5[%c0_15, %c0_16] : memref<64x32xf32, #tpu.memory_space<vmem>>, vector<64x32xf32>
    %cst_17 = arith.constant dense<0.000000e+00> : vector<128x32xf32>
    %36 = tpu.matmul %34, %35, %cst_17 {dimension_numbers = #tpu.dot_dimension_numbers<[1], [0], [0], [1], [0, 0, 1, 1], [], []>} : vector<128x64xf32>, vector<64x32xf32>, vector<128x32xf32> -> vector<128x32xf32>
    %c0_18 = arith.constant 0 : index
    %c0_19 = arith.constant 0 : index
    %37 = vector.load %arg6[%c0_18, %c0_19] : memref<1x32xf32, #tpu.memory_space<vmem>>, vector<1x32xf32>
    %38 = vector.broadcast %37 : vector<1x32xf32> to vector<128x32xf32>
    %39 = arith.addf %36, %38 : vector<128x32xf32>
    %c0_20 = arith.constant 0 : index
    %c0_21 = arith.constant 0 : index
    %c0_22 = arith.constant 0 : index
    %40 = vector.load %arg2[%c0_20, %c0_21, %c0_22] : memref<1x1x64xf32, #tpu.memory_space<vmem>>, vector<1x1x64xf32>
    %41 = vector.shape_cast %40 : vector<1x1x64xf32> to vector<1x64xf32>
    %c0_23 = arith.constant 0 : index
    %c0_24 = arith.constant 0 : index
    %42 = vector.load %arg7[%c0_23, %c0_24] : memref<64x32xf32, #tpu.memory_space<vmem>>, vector<64x32xf32>
    %cst_25 = arith.constant dense<0.000000e+00> : vector<1x32xf32>
    %43 = tpu.matmul %41, %42, %cst_25 {dimension_numbers = #tpu.dot_dimension_numbers<[1], [0], [0], [1], [0, 0, 1, 1], [], []>} : vector<1x64xf32>, vector<64x32xf32>, vector<1x32xf32> -> vector<1x32xf32>
    %c0_26 = arith.constant 0 : index
    %c0_27 = arith.constant 0 : index
    %44 = vector.load %arg8[%c0_26, %c0_27] : memref<1x32xf32, #tpu.memory_space<vmem>>, vector<1x32xf32>
    %45 = arith.addf %43, %44 : vector<1x32xf32>
    %46 = vector.broadcast %45 : vector<1x32xf32> to vector<128x32xf32>
    %47 = arith.addf %39, %46 : vector<128x32xf32>
    %c0_28 = arith.constant 0 : index
    %c0_29 = arith.constant 0 : index
    %c0_30 = arith.constant 0 : index
    %48 = vector.load %arg9[%c0_28, %c0_29, %c0_30] : memref<2x32x64xf32, #tpu.memory_space<vmem>>, vector<1x32x64xf32>
    %49 = vector.shape_cast %48 : vector<1x32x64xf32> to vector<32x64xf32>
    %cst_31 = arith.constant dense<0.000000e+00> : vector<128x64xf32>
    %50 = tpu.matmul %47, %49, %cst_31 {dimension_numbers = #tpu.dot_dimension_numbers<[1], [0], [0], [1], [0, 0, 1, 1], [], []>} : vector<128x32xf32>, vector<32x64xf32>, vector<128x64xf32> -> vector<128x64xf32>
    %c0_32 = arith.constant 0 : index
    %c0_33 = arith.constant 0 : index
    %c0_34 = arith.constant 0 : index
    %51 = vector.load %arg10[%c0_32, %c0_33, %c0_34] : memref<2x1x64xf32, #tpu.memory_space<vmem>>, vector<1x1x64xf32>
    %52 = vector.shape_cast %51 : vector<1x1x64xf32> to vector<1x64xf32>
    %53 = vector.broadcast %52 : vector<1x64xf32> to vector<128x64xf32>
    %54 = arith.addf %50, %53 : vector<128x64xf32>
    %55 = vector.extract_strided_slice %0 {offsets = [0, 0], sizes = [1, 1], strides = [1, 1]} : vector<1x5xf32> to vector<1x1xf32>
    %cst_35 = arith.constant 0.000000e+00 : f32
    %56 = vector.broadcast %cst_35 : f32 to vector<128x64xf32>
    %57 = arith.cmpf oge, %54, %56 : vector<128x64xf32>
    %58 = vector.broadcast %55 : vector<1x1xf32> to vector<128x64xf32>
    %59 = arith.mulf %58, %54 : vector<128x64xf32>
    %60 = arith.select %57, %54, %59 : vector<128x64xi1>, vector<128x64xf32>
    %c0_36 = arith.constant 0 : index
    %c0_37 = arith.constant 0 : index
    %c0_38 = arith.constant 0 : index
    %61 = vector.load %arg11[%c0_36, %c0_37, %c0_38] : memref<2x1x64xf32, #tpu.memory_space<vmem>>, vector<1x1x64xf32>
    %62 = vector.shape_cast %61 : vector<1x1x64xf32> to vector<1x64xf32>
    %c0_39 = arith.constant 0 : index
    %c0_40 = arith.constant 0 : index
    %c0_41 = arith.constant 0 : index
    %63 = vector.load %arg12[%c0_39, %c0_40, %c0_41] : memref<2x1x64xf32, #tpu.memory_space<vmem>>, vector<1x1x64xf32>
    %64 = vector.shape_cast %63 : vector<1x1x64xf32> to vector<1x64xf32>
    %65 = vector.shape_cast %60 : vector<128x64xf32> to vector<1x128x64xf32>
    %cst_42 = arith.constant dense<0.000000e+00> : vector<1xf32>
    %66 = vector.multi_reduction <add>, %65, %cst_42 [1, 2] : vector<1x128x64xf32> to vector<1xf32>
    %67 = vector.shape_cast %66 : vector<1xf32> to vector<1x1x1xf32>
    %68 = vector.extract %67[0, 0, 0] : f32 from vector<1x1x1xf32>
    %69 = vector.broadcast %68 : f32 to vector<1x1xf32>
    %cst_43 = arith.constant 8.192000e+03 : f32
    %70 = vector.broadcast %cst_43 : f32 to vector<1x1xf32>
    %71 = arith.divf %69, %70 : vector<1x1xf32>
    %72 = vector.broadcast %71 : vector<1x1xf32> to vector<128x64xf32>
    %73 = arith.subf %60, %72 : vector<128x64xf32>
    %74 = arith.mulf %73, %73 : vector<128x64xf32>
    %75 = vector.shape_cast %74 : vector<128x64xf32> to vector<1x128x64xf32>
    %cst_44 = arith.constant dense<0.000000e+00> : vector<1xf32>
    %76 = vector.multi_reduction <add>, %75, %cst_44 [1, 2] : vector<1x128x64xf32> to vector<1xf32>
    %77 = vector.shape_cast %76 : vector<1xf32> to vector<1x1x1xf32>
    %78 = vector.extract %77[0, 0, 0] : f32 from vector<1x1x1xf32>
    %79 = vector.broadcast %78 : f32 to vector<1x1xf32>
    %cst_45 = arith.constant 8.192000e+03 : f32
    %80 = vector.broadcast %cst_45 : f32 to vector<1x1xf32>
    %81 = arith.divf %79, %80 : vector<1x1xf32>
    %82 = vector.broadcast %71 : vector<1x1xf32> to vector<128x64xf32>
    %83 = arith.subf %60, %82 : vector<128x64xf32>
    %cst_46 = arith.constant 9.99999993E-9 : f32
    %84 = vector.broadcast %cst_46 : f32 to vector<1x1xf32>
    %85 = arith.addf %81, %84 : vector<1x1xf32>
    %86 = math.rsqrt %85 : vector<1x1xf32>
    %87 = vector.broadcast %86 : vector<1x1xf32> to vector<128x64xf32>
    %88 = arith.mulf %83, %87 : vector<128x64xf32>
    %89 = vector.broadcast %62 : vector<1x64xf32> to vector<128x64xf32>
    %90 = arith.mulf %89, %88 : vector<128x64xf32>
    %91 = vector.broadcast %64 : vector<1x64xf32> to vector<128x64xf32>
    %92 = arith.addf %90, %91 : vector<128x64xf32>
    %c8 = arith.constant 8 : index
    %c0_47 = arith.constant 0 : index
    %93 = vector.load %arg23[%c8, %c0_47] : memref<144x64xf32, #tpu.memory_space<vmem>>, vector<128x64xf32>
    tpu.vector_store %arg23[%c8, %c0_47], %92 {strides = array<i32>} : memref<144x64xf32, #tpu.memory_space<vmem>>, vector<128x64xf32>,
    %c0_48 = arith.constant 0 : index
    %c0_49 = arith.constant 0 : index
    %c0_50 = arith.constant 0 : index
    %94 = vector.load %arg13[%c0_48, %c0_49, %c0_50] : memref<2x3x64xf32, #tpu.memory_space<vmem>>, vector<1x3x64xf32>
    %95 = vector.shape_cast %94 : vector<1x3x64xf32> to vector<3x64xf32>
    %c7 = arith.constant 7 : index
    %c0_51 = arith.constant 0 : index
    %96 = vector.load %arg23[%c7, %c0_51] : memref<144x64xf32, #tpu.memory_space<vmem>>, vector<128x64xf32>
    %97 = vector.extract_strided_slice %95 {offsets = [0, 0], sizes = [1, 64], strides = [1, 1]} : vector<3x64xf32> to vector<1x64xf32>
    %98 = vector.broadcast %97 : vector<1x64xf32> to vector<128x64xf32>
    %99 = arith.mulf %96, %98 : vector<128x64xf32>
    %100 = vector.extract_strided_slice %95 {offsets = [1, 0], sizes = [1, 64], strides = [1, 1]} : vector<3x64xf32> to vector<1x64xf32>
    %101 = vector.broadcast %100 : vector<1x64xf32> to vector<128x64xf32>
    %102 = arith.mulf %92, %101 : vector<128x64xf32>
    %103 = arith.addf %99, %102 : vector<128x64xf32>
    %c9 = arith.constant 9 : index
    %c0_52 = arith.constant 0 : index
    %104 = vector.load %arg23[%c9, %c0_52] : memref<144x64xf32, #tpu.memory_space<vmem>>, vector<128x64xf32>
    %105 = vector.extract_strided_slice %95 {offsets = [2, 0], sizes = [1, 64], strides = [1, 1]} : vector<3x64xf32> to vector<1x64xf32>
    %106 = vector.broadcast %105 : vector<1x64xf32> to vector<128x64xf32>
    %107 = arith.mulf %104, %106 : vector<128x64xf32>
    %108 = arith.addf %103, %107 : vector<128x64xf32>
    %c0_53 = arith.constant 0 : index
    %c0_54 = arith.constant 0 : index
    %c0_55 = arith.constant 0 : index
    %109 = vector.load %arg14[%c0_53, %c0_54, %c0_55] : memref<2x1x64xf32, #tpu.memory_space<vmem>>, vector<1x1x64xf32>
    %110 = vector.shape_cast %109 : vector<1x1x64xf32> to vector<1x64xf32>
    %111 = vector.broadcast %110 : vector<1x64xf32> to vector<128x64xf32>
    %112 = arith.addf %108, %111 : vector<128x64xf32>
    %113 = vector.extract_strided_slice %0 {offsets = [0, 1], sizes = [1, 1], strides = [1, 1]} : vector<1x5xf32> to vector<1x1xf32>
    %cst_56 = arith.constant 0.000000e+00 : f32
    %114 = vector.broadcast %cst_56 : f32 to vector<128x64xf32>
    %115 = arith.cmpf oge, %112, %114 : vector<128x64xf32>
    %116 = vector.broadcast %113 : vector<1x1xf32> to vector<128x64xf32>
    %117 = arith.mulf %116, %112 : vector<128x64xf32>
    %118 = arith.select %115, %112, %117 : vector<128x64xi1>, vector<128x64xf32>
    %c0_57 = arith.constant 0 : index
    %c0_58 = arith.constant 0 : index
    %c0_59 = arith.constant 0 : index
    %119 = vector.load %arg15[%c0_57, %c0_58, %c0_59] : memref<2x1x64xf32, #tpu.memory_space<vmem>>, vector<1x1x64xf32>
    %120 = vector.shape_cast %119 : vector<1x1x64xf32> to vector<1x64xf32>
    %c0_60 = arith.constant 0 : index
    %c0_61 = arith.constant 0 : index
    %c0_62 = arith.constant 0 : index
    %121 = vector.load %arg16[%c0_60, %c0_61, %c0_62] : memref<2x1x64xf32, #tpu.memory_space<vmem>>, vector<1x1x64xf32>
    %122 = vector.shape_cast %121 : vector<1x1x64xf32> to vector<1x64xf32>
    %123 = vector.shape_cast %118 : vector<128x64xf32> to vector<1x128x64xf32>
    %cst_63 = arith.constant dense<0.000000e+00> : vector<1xf32>
    %124 = vector.multi_reduction <add>, %123, %cst_63 [1, 2] : vector<1x128x64xf32> to vector<1xf32>
    %125 = vector.shape_cast %124 : vector<1xf32> to vector<1x1x1xf32>
    %126 = vector.extract %125[0, 0, 0] : f32 from vector<1x1x1xf32>
    %127 = vector.broadcast %126 : f32 to vector<1x1xf32>
    %cst_64 = arith.constant 8.192000e+03 : f32
    %128 = vector.broadcast %cst_64 : f32 to vector<1x1xf32>
    %129 = arith.divf %127, %128 : vector<1x1xf32>
    %130 = vector.broadcast %129 : vector<1x1xf32> to vector<128x64xf32>
    %131 = arith.subf %118, %130 : vector<128x64xf32>
    %132 = arith.mulf %131, %131 : vector<128x64xf32>
    %133 = vector.shape_cast %132 : vector<128x64xf32> to vector<1x128x64xf32>
    %cst_65 = arith.constant dense<0.000000e+00> : vector<1xf32>
    %134 = vector.multi_reduction <add>, %133, %cst_65 [1, 2] : vector<1x128x64xf32> to vector<1xf32>
    %135 = vector.shape_cast %134 : vector<1xf32> to vector<1x1x1xf32>
    %136 = vector.extract %135[0, 0, 0] : f32 from vector<1x1x1xf32>
    %137 = vector.broadcast %136 : f32 to vector<1x1xf32>
    %cst_66 = arith.constant 8.192000e+03 : f32
    %138 = vector.broadcast %cst_66 : f32 to vector<1x1xf32>
    %139 = arith.divf %137, %138 : vector<1x1xf32>
    %140 = vector.broadcast %129 : vector<1x1xf32> to vector<128x64xf32>
    %141 = arith.subf %118, %140 : vector<128x64xf32>
    %cst_67 = arith.constant 9.99999993E-9 : f32
    %142 = vector.broadcast %cst_67 : f32 to vector<1x1xf32>
    %143 = arith.addf %139, %142 : vector<1x1xf32>
    %144 = math.rsqrt %143 : vector<1x1xf32>
    %145 = vector.broadcast %144 : vector<1x1xf32> to vector<128x64xf32>
    %146 = arith.mulf %141, %145 : vector<128x64xf32>
    %147 = vector.broadcast %120 : vector<1x64xf32> to vector<128x64xf32>
    %148 = arith.mulf %147, %146 : vector<128x64xf32>
    %149 = vector.broadcast %122 : vector<1x64xf32> to vector<128x64xf32>
    %150 = arith.addf %148, %149 : vector<128x64xf32>
    %c0_68 = arith.constant 0 : index
    %c0_69 = arith.constant 0 : index
    %c0_70 = arith.constant 0 : index
    %151 = vector.load %arg17[%c0_68, %c0_69, %c0_70] : memref<2x64x64xf32, #tpu.memory_space<vmem>>, vector<1x64x64xf32>
    %152 = vector.shape_cast %151 : vector<1x64x64xf32> to vector<64x64xf32>
    %cst_71 = arith.constant dense<0.000000e+00> : vector<128x64xf32>
    %153 = tpu.matmul %150, %152, %cst_71 {dimension_numbers = #tpu.dot_dimension_numbers<[1], [0], [0], [1], [0, 0, 1, 1], [], []>} : vector<128x64xf32>, vector<64x64xf32>, vector<128x64xf32> -> vector<128x64xf32>
    %c0_72 = arith.constant 0 : index
    %c0_73 = arith.constant 0 : index
    %c0_74 = arith.constant 0 : index
    %154 = vector.load %arg18[%c0_72, %c0_73, %c0_74] : memref<2x1x64xf32, #tpu.memory_space<vmem>>, vector<1x1x64xf32>
    %155 = vector.shape_cast %154 : vector<1x1x64xf32> to vector<1x64xf32>
    %156 = vector.broadcast %155 : vector<1x64xf32> to vector<128x64xf32>
    %157 = arith.addf %153, %156 : vector<128x64xf32>
    %158 = vector.extract_strided_slice %157 {offsets = [0, 0], sizes = [128, 32], strides = [1, 1]} : vector<128x64xf32> to vector<128x32xf32>
    %159 = vector.extract_strided_slice %157 {offsets = [0, 32], sizes = [128, 32], strides = [1, 1]} : vector<128x64xf32> to vector<128x32xf32>
    %160 = arith.addf %47, %159 : vector<128x32xf32>
    %c1 = arith.constant 1 : index
    %c0_75 = arith.constant 0 : index
    %c0_76 = arith.constant 0 : index
    %161 = vector.load %arg9[%c1, %c0_75, %c0_76] : memref<2x32x64xf32, #tpu.memory_space<vmem>>, vector<1x32x64xf32>
    %162 = vector.shape_cast %161 : vector<1x32x64xf32> to vector<32x64xf32>
    %cst_77 = arith.constant dense<0.000000e+00> : vector<128x64xf32>
    %163 = tpu.matmul %160, %162, %cst_77 {dimension_numbers = #tpu.dot_dimension_numbers<[1], [0], [0], [1], [0, 0, 1, 1], [], []>} : vector<128x32xf32>, vector<32x64xf32>, vector<128x64xf32> -> vector<128x64xf32>
    %c1_78 = arith.constant 1 : index
    %c0_79 = arith.constant 0 : index
    %c0_80 = arith.constant 0 : index
    %164 = vector.load %arg10[%c1_78, %c0_79, %c0_80] : memref<2x1x64xf32, #tpu.memory_space<vmem>>, vector<1x1x64xf32>
    %165 = vector.shape_cast %164 : vector<1x1x64xf32> to vector<1x64xf32>
    %166 = vector.broadcast %165 : vector<1x64xf32> to vector<128x64xf32>
    %167 = arith.addf %163, %166 : vector<128x64xf32>
    %168 = vector.extract_strided_slice %0 {offsets = [0, 2], sizes = [1, 1], strides = [1, 1]} : vector<1x5xf32> to vector<1x1xf32>
    %cst_81 = arith.constant 0.000000e+00 : f32
    %169 = vector.broadcast %cst_81 : f32 to vector<128x64xf32>
    %170 = arith.cmpf oge, %167, %169 : vector<128x64xf32>
    %171 = vector.broadcast %168 : vector<1x1xf32> to vector<128x64xf32>
    %172 = arith.mulf %171, %167 : vector<128x64xf32>
    %173 = arith.select %170, %167, %172 : vector<128x64xi1>, vector<128x64xf32>
    %c1_82 = arith.constant 1 : index
    %c0_83 = arith.constant 0 : index
    %c0_84 = arith.constant 0 : index
    %174 = vector.load %arg11[%c1_82, %c0_83, %c0_84] : memref<2x1x64xf32, #tpu.memory_space<vmem>>, vector<1x1x64xf32>
    %175 = vector.shape_cast %174 : vector<1x1x64xf32> to vector<1x64xf32>
    %c1_85 = arith.constant 1 : index
    %c0_86 = arith.constant 0 : index
    %c0_87 = arith.constant 0 : index
    %176 = vector.load %arg12[%c1_85, %c0_86, %c0_87] : memref<2x1x64xf32, #tpu.memory_space<vmem>>, vector<1x1x64xf32>
    %177 = vector.shape_cast %176 : vector<1x1x64xf32> to vector<1x64xf32>
    %178 = vector.shape_cast %173 : vector<128x64xf32> to vector<1x128x64xf32>
    %cst_88 = arith.constant dense<0.000000e+00> : vector<1xf32>
    %179 = vector.multi_reduction <add>, %178, %cst_88 [1, 2] : vector<1x128x64xf32> to vector<1xf32>
    %180 = vector.shape_cast %179 : vector<1xf32> to vector<1x1x1xf32>
    %181 = vector.extract %180[0, 0, 0] : f32 from vector<1x1x1xf32>
    %182 = vector.broadcast %181 : f32 to vector<1x1xf32>
    %cst_89 = arith.constant 8.192000e+03 : f32
    %183 = vector.broadcast %cst_89 : f32 to vector<1x1xf32>
    %184 = arith.divf %182, %183 : vector<1x1xf32>
    %185 = vector.broadcast %184 : vector<1x1xf32> to vector<128x64xf32>
    %186 = arith.subf %173, %185 : vector<128x64xf32>
    %187 = arith.mulf %186, %186 : vector<128x64xf32>
    %188 = vector.shape_cast %187 : vector<128x64xf32> to vector<1x128x64xf32>
    %cst_90 = arith.constant dense<0.000000e+00> : vector<1xf32>
    %189 = vector.multi_reduction <add>, %188, %cst_90 [1, 2] : vector<1x128x64xf32> to vector<1xf32>
    %190 = vector.shape_cast %189 : vector<1xf32> to vector<1x1x1xf32>
    %191 = vector.extract %190[0, 0, 0] : f32 from vector<1x1x1xf32>
    %192 = vector.broadcast %191 : f32 to vector<1x1xf32>
    %cst_91 = arith.constant 8.192000e+03 : f32
    %193 = vector.broadcast %cst_91 : f32 to vector<1x1xf32>
    %194 = arith.divf %192, %193 : vector<1x1xf32>
    %195 = vector.broadcast %184 : vector<1x1xf32> to vector<128x64xf32>
    %196 = arith.subf %173, %195 : vector<128x64xf32>
    %cst_92 = arith.constant 9.99999993E-9 : f32
    %197 = vector.broadcast %cst_92 : f32 to vector<1x1xf32>
    %198 = arith.addf %194, %197 : vector<1x1xf32>
    %199 = math.rsqrt %198 : vector<1x1xf32>
    %200 = vector.broadcast %199 : vector<1x1xf32> to vector<128x64xf32>
    %201 = arith.mulf %196, %200 : vector<128x64xf32>
    %202 = vector.broadcast %175 : vector<1x64xf32> to vector<128x64xf32>
    %203 = arith.mulf %202, %201 : vector<128x64xf32>
    %204 = vector.broadcast %177 : vector<1x64xf32> to vector<128x64xf32>
    %205 = arith.addf %203, %204 : vector<128x64xf32>
    %c8_93 = arith.constant 8 : index
    %c0_94 = arith.constant 0 : index
    %206 = vector.load %arg23[%c8_93, %c0_94] : memref<144x64xf32, #tpu.memory_space<vmem>>, vector<128x64xf32>
    tpu.vector_store %arg23[%c8_93, %c0_94], %205 {strides = array<i32>} : memref<144x64xf32, #tpu.memory_space<vmem>>, vector<128x64xf32>,
    %c1_95 = arith.constant 1 : index
    %c0_96 = arith.constant 0 : index
    %c0_97 = arith.constant 0 : index
    %207 = vector.load %arg13[%c1_95, %c0_96, %c0_97] : memref<2x3x64xf32, #tpu.memory_space<vmem>>, vector<1x3x64xf32>
    %208 = vector.shape_cast %207 : vector<1x3x64xf32> to vector<3x64xf32>
    %c6 = arith.constant 6 : index
    %c0_98 = arith.constant 0 : index
    %209 = vector.load %arg23[%c6, %c0_98] : memref<144x64xf32, #tpu.memory_space<vmem>>, vector<128x64xf32>
    %210 = vector.extract_strided_slice %208 {offsets = [0, 0], sizes = [1, 64], strides = [1, 1]} : vector<3x64xf32> to vector<1x64xf32>
    %211 = vector.broadcast %210 : vector<1x64xf32> to vector<128x64xf32>
    %212 = arith.mulf %209, %211 : vector<128x64xf32>
    %213 = vector.extract_strided_slice %208 {offsets = [1, 0], sizes = [1, 64], strides = [1, 1]} : vector<3x64xf32> to vector<1x64xf32>
    %214 = vector.broadcast %213 : vector<1x64xf32> to vector<128x64xf32>
    %215 = arith.mulf %205, %214 : vector<128x64xf32>
    %216 = arith.addf %212, %215 : vector<128x64xf32>
    %c10 = arith.constant 10 : index
    %c0_99 = arith.constant 0 : index
    %217 = vector.load %arg23[%c10, %c0_99] : memref<144x64xf32, #tpu.memory_space<vmem>>, vector<128x64xf32>
    %218 = vector.extract_strided_slice %208 {offsets = [2, 0], sizes = [1, 64], strides = [1, 1]} : vector<3x64xf32> to vector<1x64xf32>
    %219 = vector.broadcast %218 : vector<1x64xf32> to vector<128x64xf32>
    %220 = arith.mulf %217, %219 : vector<128x64xf32>
    %221 = arith.addf %216, %220 : vector<128x64xf32>
    %c1_100 = arith.constant 1 : index
    %c0_101 = arith.constant 0 : index
    %c0_102 = arith.constant 0 : index
    %222 = vector.load %arg14[%c1_100, %c0_101, %c0_102] : memref<2x1x64xf32, #tpu.memory_space<vmem>>, vector<1x1x64xf32>
    %223 = vector.shape_cast %222 : vector<1x1x64xf32> to vector<1x64xf32>
    %224 = vector.broadcast %223 : vector<1x64xf32> to vector<128x64xf32>
    %225 = arith.addf %221, %224 : vector<128x64xf32>
    %226 = vector.extract_strided_slice %0 {offsets = [0, 3], sizes = [1, 1], strides = [1, 1]} : vector<1x5xf32> to vector<1x1xf32>
    %cst_103 = arith.constant 0.000000e+00 : f32
    %227 = vector.broadcast %cst_103 : f32 to vector<128x64xf32>
    %228 = arith.cmpf oge, %225, %227 : vector<128x64xf32>
    %229 = vector.broadcast %226 : vector<1x1xf32> to vector<128x64xf32>
    %230 = arith.mulf %229, %225 : vector<128x64xf32>
    %231 = arith.select %228, %225, %230 : vector<128x64xi1>, vector<128x64xf32>
    %c1_104 = arith.constant 1 : index
    %c0_105 = arith.constant 0 : index
    %c0_106 = arith.constant 0 : index
    %232 = vector.load %arg15[%c1_104, %c0_105, %c0_106] : memref<2x1x64xf32, #tpu.memory_space<vmem>>, vector<1x1x64xf32>
    %233 = vector.shape_cast %232 : vector<1x1x64xf32> to vector<1x64xf32>
    %c1_107 = arith.constant 1 : index
    %c0_108 = arith.constant 0 : index
    %c0_109 = arith.constant 0 : index
    %234 = vector.load %arg16[%c1_107, %c0_108, %c0_109] : memref<2x1x64xf32, #tpu.memory_space<vmem>>, vector<1x1x64xf32>
    %235 = vector.shape_cast %234 : vector<1x1x64xf32> to vector<1x64xf32>
    %236 = vector.shape_cast %231 : vector<128x64xf32> to vector<1x128x64xf32>
    %cst_110 = arith.constant dense<0.000000e+00> : vector<1xf32>
    %237 = vector.multi_reduction <add>, %236, %cst_110 [1, 2] : vector<1x128x64xf32> to vector<1xf32>
    %238 = vector.shape_cast %237 : vector<1xf32> to vector<1x1x1xf32>
    %239 = vector.extract %238[0, 0, 0] : f32 from vector<1x1x1xf32>
    %240 = vector.broadcast %239 : f32 to vector<1x1xf32>
    %cst_111 = arith.constant 8.192000e+03 : f32
    %241 = vector.broadcast %cst_111 : f32 to vector<1x1xf32>
    %242 = arith.divf %240, %241 : vector<1x1xf32>
    %243 = vector.broadcast %242 : vector<1x1xf32> to vector<128x64xf32>
    %244 = arith.subf %231, %243 : vector<128x64xf32>
    %245 = arith.mulf %244, %244 : vector<128x64xf32>
    %246 = vector.shape_cast %245 : vector<128x64xf32> to vector<1x128x64xf32>
    %cst_112 = arith.constant dense<0.000000e+00> : vector<1xf32>
    %247 = vector.multi_reduction <add>, %246, %cst_112 [1, 2] : vector<1x128x64xf32> to vector<1xf32>
    %248 = vector.shape_cast %247 : vector<1xf32> to vector<1x1x1xf32>
    %249 = vector.extract %248[0, 0, 0] : f32 from vector<1x1x1xf32>
    %250 = vector.broadcast %249 : f32 to vector<1x1xf32>
    %cst_113 = arith.constant 8.192000e+03 : f32
    %251 = vector.broadcast %cst_113 : f32 to vector<1x1xf32>
    %252 = arith.divf %250, %251 : vector<1x1xf32>
    %253 = vector.broadcast %242 : vector<1x1xf32> to vector<128x64xf32>
    %254 = arith.subf %231, %253 : vector<128x64xf32>
    %cst_114 = arith.constant 9.99999993E-9 : f32
    %255 = vector.broadcast %cst_114 : f32 to vector<1x1xf32>
    %256 = arith.addf %252, %255 : vector<1x1xf32>
    %257 = math.rsqrt %256 : vector<1x1xf32>
    %258 = vector.broadcast %257 : vector<1x1xf32> to vector<128x64xf32>
    %259 = arith.mulf %254, %258 : vector<128x64xf32>
    %260 = vector.broadcast %233 : vector<1x64xf32> to vector<128x64xf32>
    %261 = arith.mulf %260, %259 : vector<128x64xf32>
    %262 = vector.broadcast %235 : vector<1x64xf32> to vector<128x64xf32>
    %263 = arith.addf %261, %262 : vector<128x64xf32>
    %c1_115 = arith.constant 1 : index
    %c0_116 = arith.constant 0 : index
    %c0_117 = arith.constant 0 : index
    %264 = vector.load %arg17[%c1_115, %c0_116, %c0_117] : memref<2x64x64xf32, #tpu.memory_space<vmem>>, vector<1x64x64xf32>
    %265 = vector.shape_cast %264 : vector<1x64x64xf32> to vector<64x64xf32>
    %cst_118 = arith.constant dense<0.000000e+00> : vector<128x64xf32>
    %266 = tpu.matmul %263, %265, %cst_118 {dimension_numbers = #tpu.dot_dimension_numbers<[1], [0], [0], [1], [0, 0, 1, 1], [], []>} : vector<128x64xf32>, vector<64x64xf32>, vector<128x64xf32> -> vector<128x64xf32>
    %c1_119 = arith.constant 1 : index
    %c0_120 = arith.constant 0 : index
    %c0_121 = arith.constant 0 : index
    %267 = vector.load %arg18[%c1_119, %c0_120, %c0_121] : memref<2x1x64xf32, #tpu.memory_space<vmem>>, vector<1x1x64xf32>
    %268 = vector.shape_cast %267 : vector<1x1x64xf32> to vector<1x64xf32>
    %269 = vector.broadcast %268 : vector<1x64xf32> to vector<128x64xf32>
    %270 = arith.addf %266, %269 : vector<128x64xf32>
    %271 = vector.extract_strided_slice %270 {offsets = [0, 0], sizes = [128, 32], strides = [1, 1]} : vector<128x64xf32> to vector<128x32xf32>
    %272 = arith.addf %158, %271 : vector<128x32xf32>
    %273 = vector.extract_strided_slice %0 {offsets = [0, 4], sizes = [1, 1], strides = [1, 1]} : vector<1x5xf32> to vector<1x1xf32>
    %cst_122 = arith.constant 0.000000e+00 : f32
    %274 = vector.broadcast %cst_122 : f32 to vector<128x32xf32>
    %275 = arith.cmpf oge, %272, %274 : vector<128x32xf32>
    %276 = vector.broadcast %273 : vector<1x1xf32> to vector<128x32xf32>
    %277 = arith.mulf %276, %272 : vector<128x32xf32>
    %278 = arith.select %275, %272, %277 : vector<128x32xi1>, vector<128x32xf32>
    %c0_123 = arith.constant 0 : index
    %c0_124 = arith.constant 0 : index
    %279 = vector.load %arg20[%c0_123, %c0_124] : memref<32x128xf32, #tpu.memory_space<vmem>>, vector<32x128xf32>
    %cst_125 = arith.constant dense<0.000000e+00> : vector<128x128xf32>
    %280 = tpu.matmul %278, %279, %cst_125 {dimension_numbers = #tpu.dot_dimension_numbers<[1], [0], [0], [1], [0, 0, 1, 1], [], []>} : vector<128x32xf32>, vector<32x128xf32>, vector<128x128xf32> -> vector<128x128xf32>
    %c0_126 = arith.constant 0 : index
    %c0_127 = arith.constant 0 : index
    %281 = vector.load %arg21[%c0_126, %c0_127] : memref<1x128xf32, #tpu.memory_space<vmem>>, vector<1x128xf32>
    %282 = vector.broadcast %281 : vector<1x128xf32> to vector<128x128xf32>
    %283 = arith.addf %280, %282 : vector<128x128xf32>
    %cst_128 = arith.constant 0.000000e+00 : f32
    %284 = vector.broadcast %cst_128 : f32 to vector<128x128xf32>
    %285 = arith.maximumf %283, %284 : vector<128x128xf32>
    %c0_129 = arith.constant 0 : index
    %c0_130 = arith.constant 0 : index
    %c0_131 = arith.constant 0 : index
    %286 = vector.load %arg22[%c0_129, %c0_130, %c0_131] : memref<1x128x128xf32, #tpu.memory_space<vmem>>, vector<1x128x128xf32>
    %287 = vector.shape_cast %286 : vector<1x128x128xf32> to vector<128x128xf32>
    %288 = vector.shape_cast %285 : vector<128x128xf32> to vector<1x128x128xf32>
    tpu.vector_store %arg22[%c0_129, %c0_130, %c0_131], %288 {strides = array<i32>} : memref<1x128x128xf32, #tpu.memory_space<vmem>>, vector<1x128x128xf32>,
    return
  }
  func.func @transform_0(%arg0: i32) -> (i32, i32, i32) {
    %c0_i32 = arith.constant 0 : i32
    %c0_i32_0 = arith.constant 0 : i32
    %c0_i32_1 = arith.constant 0 : i32
    return %arg0, %c0_i32, %c0_i32_0 : i32, i32, i32
  }
  func.func @transform_1(%arg0: i32) -> (i32, i32, i32) {
    %c0_i32 = arith.constant 0 : i32
    %c0_i32_0 = arith.constant 0 : i32
    %c0_i32_1 = arith.constant 0 : i32
    return %arg0, %c0_i32, %c0_i32_0 : i32, i32, i32
  }
  func.func @transform_2(%arg0: i32) -> (i32, i32) {
    %c0_i32 = arith.constant 0 : i32
    %c0_i32_0 = arith.constant 0 : i32
    %c0_i32_1 = arith.constant 0 : i32
    return %c0_i32, %c0_i32_0 : i32, i32
  }
  func.func @transform_3(%arg0: i32) -> (i32, i32) {
    %c0_i32 = arith.constant 0 : i32
    %c0_i32_0 = arith.constant 0 : i32
    %c0_i32_1 = arith.constant 0 : i32
    return %c0_i32, %c0_i32_0 : i32, i32
  }
  func.func @transform_4(%arg0: i32) -> (i32, i32) {
    %c0_i32 = arith.constant 0 : i32
    %c0_i32_0 = arith.constant 0 : i32
    %c0_i32_1 = arith.constant 0 : i32
    return %c0_i32, %c0_i32_0 : i32, i32
  }
  func.func @transform_5(%arg0: i32) -> (i32, i32) {
    %c0_i32 = arith.constant 0 : i32
    %c0_i32_0 = arith.constant 0 : i32
    %c0_i32_1 = arith.constant 0 : i32
    return %c0_i32, %c0_i32_0 : i32, i32
  }
  func.func @transform_6(%arg0: i32) -> (i32, i32) {
    %c0_i32 = arith.constant 0 : i32
    %c0_i32_0 = arith.constant 0 : i32
    %c0_i32_1 = arith.constant 0 : i32
    return %c0_i32, %c0_i32_0 : i32, i32
  }
  func.func @transform_7(%arg0: i32) -> (i32, i32) {
    %c0_i32 = arith.constant 0 : i32
    %c0_i32_0 = arith.constant 0 : i32
    %c0_i32_1 = arith.constant 0 : i32
    return %c0_i32, %c0_i32_0 : i32, i32
  }
  func.func @transform_8(%arg0: i32) -> (i32, i32, i32) {
    %c0_i32 = arith.constant 0 : i32
    %c0_i32_0 = arith.constant 0 : i32
    %c0_i32_1 = arith.constant 0 : i32
    %c0_i32_2 = arith.constant 0 : i32
    return %c0_i32, %c0_i32_0, %c0_i32_1 : i32, i32, i32
  }
  func.func @transform_9(%arg0: i32) -> (i32, i32, i32) {
    %c0_i32 = arith.constant 0 : i32
    %c0_i32_0 = arith.constant 0 : i32
    %c0_i32_1 = arith.constant 0 : i32
    %c0_i32_2 = arith.constant 0 : i32
    return %c0_i32, %c0_i32_0, %c0_i32_1 : i32, i32, i32
  }
  func.func @transform_10(%arg0: i32) -> (i32, i32, i32) {
    %c0_i32 = arith.constant 0 : i32
    %c0_i32_0 = arith.constant 0 : i32
    %c0_i32_1 = arith.constant 0 : i32
    %c0_i32_2 = arith.constant 0 : i32
    return %c0_i32, %c0_i32_0, %c0_i32_1 : i32, i32, i32
  }
  func.func @transform_11(%arg0: i32) -> (i32, i32, i32) {
    %c0_i32 = arith.constant 0 : i32
    %c0_i32_0 = arith.constant 0 : i32
    %c0_i32_1 = arith.constant 0 : i32
    %c0_i32_2 = arith.constant 0 : i32
    return %c0_i32, %c0_i32_0, %c0_i32_1 : i32, i32, i32
  }
  func.func @transform_12(%arg0: i32) -> (i32, i32, i32) {
    %c0_i32 = arith.constant 0 : i32
    %c0_i32_0 = arith.constant 0 : i32
    %c0_i32_1 = arith.constant 0 : i32
    %c0_i32_2 = arith.constant 0 : i32
    return %c0_i32, %c0_i32_0, %c0_i32_1 : i32, i32, i32
  }
  func.func @transform_13(%arg0: i32) -> (i32, i32, i32) {
    %c0_i32 = arith.constant 0 : i32
    %c0_i32_0 = arith.constant 0 : i32
    %c0_i32_1 = arith.constant 0 : i32
    %c0_i32_2 = arith.constant 0 : i32
    return %c0_i32, %c0_i32_0, %c0_i32_1 : i32, i32, i32
  }
  func.func @transform_14(%arg0: i32) -> (i32, i32, i32) {
    %c0_i32 = arith.constant 0 : i32
    %c0_i32_0 = arith.constant 0 : i32
    %c0_i32_1 = arith.constant 0 : i32
    %c0_i32_2 = arith.constant 0 : i32
    return %c0_i32, %c0_i32_0, %c0_i32_1 : i32, i32, i32
  }
  func.func @transform_15(%arg0: i32) -> (i32, i32, i32) {
    %c0_i32 = arith.constant 0 : i32
    %c0_i32_0 = arith.constant 0 : i32
    %c0_i32_1 = arith.constant 0 : i32
    %c0_i32_2 = arith.constant 0 : i32
    return %c0_i32, %c0_i32_0, %c0_i32_1 : i32, i32, i32
  }
  func.func @transform_16(%arg0: i32) -> (i32, i32, i32) {
    %c0_i32 = arith.constant 0 : i32
    %c0_i32_0 = arith.constant 0 : i32
    %c0_i32_1 = arith.constant 0 : i32
    %c0_i32_2 = arith.constant 0 : i32
    return %c0_i32, %c0_i32_0, %c0_i32_1 : i32, i32, i32
  }
  func.func @transform_17(%arg0: i32) -> (i32, i32, i32) {
    %c0_i32 = arith.constant 0 : i32
    %c0_i32_0 = arith.constant 0 : i32
    %c0_i32_1 = arith.constant 0 : i32
    %c0_i32_2 = arith.constant 0 : i32
    return %c0_i32, %c0_i32_0, %c0_i32_1 : i32, i32, i32
  }
  func.func @transform_18(%arg0: i32) -> (i32, i32) {
    %c0_i32 = arith.constant 0 : i32
    %c0_i32_0 = arith.constant 0 : i32
    %c0_i32_1 = arith.constant 0 : i32
    return %c0_i32, %c0_i32_0 : i32, i32
  }
  func.func @transform_19(%arg0: i32) -> (i32, i32) {
    %c0_i32 = arith.constant 0 : i32
    %c0_i32_0 = arith.constant 0 : i32
    %c0_i32_1 = arith.constant 0 : i32
    return %c0_i32, %c0_i32_0 : i32, i32
  }
  func.func @transform_20(%arg0: i32) -> (i32, i32) {
    %c0_i32 = arith.constant 0 : i32
    %c0_i32_0 = arith.constant 0 : i32
    %c0_i32_1 = arith.constant 0 : i32
    return %c0_i32, %c0_i32_0 : i32, i32
  }
  func.func @transform_21(%arg0: i32) -> (i32, i32, i32) {
    %c0_i32 = arith.constant 0 : i32
    %c0_i32_0 = arith.constant 0 : i32
    %c0_i32_1 = arith.constant 0 : i32
    return %arg0, %c0_i32, %c0_i32_0 : i32, i32, i32
  }
}

module attributes {stable_mosaic.version = 11 : i64} {
  func.func @_l2norm_kernel(%arg0: memref<4x128x64xf32, #tpu.memory_space<vmem>>, %arg1: memref<4x128x64xf32, #tpu.memory_space<vmem>>) attributes {dimension_semantics = [], scalar_prefetch = 0 : i64, scratch_operands = 0 : i64, tpu.core_type = #tpu.core_type<tc>} {
    %c0 = arith.constant 0 : index
    %c0_0 = arith.constant 0 : index
    %c0_1 = arith.constant 0 : index
    %0 = vector.load %arg0[%c0, %c0_0, %c0_1] : memref<4x128x64xf32, #tpu.memory_space<vmem>>, vector<4x128x64xf32>
    %1 = arith.mulf %0, %0 : vector<4x128x64xf32>
    %cst = arith.constant dense<0.000000e+00> : vector<4x128xf32>
    %2 = vector.multi_reduction <add>, %1, %cst [2] : vector<4x128x64xf32> to vector<4x128xf32>
    %3 = vector.shape_cast %2 : vector<4x128xf32> to vector<4x128x1xf32>
    %4 = math.sqrt %3 : vector<4x128x1xf32>
    %cst_2 = arith.constant 9.99999996E-13 : f32
    %5 = vector.broadcast %cst_2 : f32 to vector<4x128x1xf32>
    %6 = arith.maximumf %4, %5 : vector<4x128x1xf32>
    %7 = vector.broadcast %6 : vector<4x128x1xf32> to vector<4x128x64xf32>
    %8 = arith.divf %0, %7 : vector<4x128x64xf32>
    %c0_3 = arith.constant 0 : index
    %c0_4 = arith.constant 0 : index
    %c0_5 = arith.constant 0 : index
    %9 = vector.load %arg1[%c0_3, %c0_4, %c0_5] : memref<4x128x64xf32, #tpu.memory_space<vmem>>, vector<4x128x64xf32>
    tpu.vector_store %arg1[%c0_3, %c0_4, %c0_5], %8 {strides = array<i32>} : memref<4x128x64xf32, #tpu.memory_space<vmem>>, vector<4x128x64xf32>,
    return
  }
}

module attributes {stable_mosaic.version = 11 : i64} {
  func.func @_stack_kernel(%arg0: i32, %arg1: memref<1x128x64xf32, #tpu.memory_space<vmem>>, %arg2: memref<1x1x64xf32, #tpu.memory_space<vmem>>, %arg3: memref<1x64xf32, #tpu.memory_space<vmem>>, %arg4: memref<1x64xf32, #tpu.memory_space<vmem>>, %arg5: memref<64x32xf32, #tpu.memory_space<vmem>>, %arg6: memref<1x32xf32, #tpu.memory_space<vmem>>, %arg7: memref<64x32xf32, #tpu.memory_space<vmem>>, %arg8: memref<1x32xf32, #tpu.memory_space<vmem>>, %arg9: memref<2x32x64xf32, #tpu.memory_space<vmem>>, %arg10: memref<2x1x64xf32, #tpu.memory_space<vmem>>, %arg11: memref<2x1x64xf32, #tpu.memory_space<vmem>>, %arg12: memref<2x1x64xf32, #tpu.memory_space<vmem>>, %arg13: memref<2x3x64xf32, #tpu.memory_space<vmem>>, %arg14: memref<2x1x64xf32, #tpu.memory_space<vmem>>, %arg15: memref<2x1x64xf32, #tpu.memory_space<vmem>>, %arg16: memref<2x1x64xf32, #tpu.memory_space<vmem>>, %arg17: memref<2x64x64xf32, #tpu.memory_space<vmem>>, %arg18: memref<2x1x64xf32, #tpu.memory_space<vmem>>, %arg19: memref<1x5xf32, #tpu.memory_space<vmem>>, %arg20: memref<32x64xf32, #tpu.memory_space<vmem>>, %arg21: memref<1x64xf32, #tpu.memory_space<vmem>>, %arg22: memref<1x128x64xf32, #tpu.memory_space<vmem>>, %arg23: memref<144x64xf32, #tpu.memory_space<vmem>>) attributes {dimension_semantics = [#tpu.dimension_semantics<parallel>], iteration_bounds = array<i64: 4>, scalar_prefetch = 0 : i64, scratch_operands = 1 : i64, tpu.core_type = #tpu.core_type<tc>, window_params = [{transform_indices = @transform_0, window_bounds = array<i64: 1, 128, 64>}, {transform_indices = @transform_1, window_bounds = array<i64: 1, 1, 64>}, {pipeline_mode = #tpu.pipeline_mode<synchronous>, transform_indices = @transform_2, window_bounds = array<i64: 1, 64>}, {pipeline_mode = #tpu.pipeline_mode<synchronous>, transform_indices = @transform_3, window_bounds = array<i64: 1, 64>}, {pipeline_mode = #tpu.pipeline_mode<synchronous>, transform_indices = @transform_4, window_bounds = array<i64: 64, 32>}, {pipeline_mode = #tpu.pipeline_mode<synchronous>, transform_indices = @transform_5, window_bounds = array<i64: 1, 32>}, {pipeline_mode = #tpu.pipeline_mode<synchronous>, transform_indices = @transform_6, window_bounds = array<i64: 64, 32>}, {pipeline_mode = #tpu.pipeline_mode<synchronous>, transform_indices = @transform_7, window_bounds = array<i64: 1, 32>}, {pipeline_mode = #tpu.pipeline_mode<synchronous>, transform_indices = @transform_8, window_bounds = array<i64: 2, 32, 64>}, {pipeline_mode = #tpu.pipeline_mode<synchronous>, transform_indices = @transform_9, window_bounds = array<i64: 2, 1, 64>}, {pipeline_mode = #tpu.pipeline_mode<synchronous>, transform_indices = @transform_10, window_bounds = array<i64: 2, 1, 64>}, {pipeline_mode = #tpu.pipeline_mode<synchronous>, transform_indices = @transform_11, window_bounds = array<i64: 2, 1, 64>}, {pipeline_mode = #tpu.pipeline_mode<synchronous>, transform_indices = @transform_12, window_bounds = array<i64: 2, 3, 64>}, {pipeline_mode = #tpu.pipeline_mode<synchronous>, transform_indices = @transform_13, window_bounds = array<i64: 2, 1, 64>}, {pipeline_mode = #tpu.pipeline_mode<synchronous>, transform_indices = @transform_14, window_bounds = array<i64: 2, 1, 64>}, {pipeline_mode = #tpu.pipeline_mode<synchronous>, transform_indices = @transform_15, window_bounds = array<i64: 2, 1, 64>}, {pipeline_mode = #tpu.pipeline_mode<synchronous>, transform_indices = @transform_16, window_bounds = array<i64: 2, 64, 64>}, {pipeline_mode = #tpu.pipeline_mode<synchronous>, transform_indices = @transform_17, window_bounds = array<i64: 2, 1, 64>}, {pipeline_mode = #tpu.pipeline_mode<synchronous>, transform_indices = @transform_18, window_bounds = array<i64: 1, 5>}, {pipeline_mode = #tpu.pipeline_mode<synchronous>, transform_indices = @transform_19, window_bounds = array<i64: 32, 64>}, {pipeline_mode = #tpu.pipeline_mode<synchronous>, transform_indices = @transform_20, window_bounds = array<i64: 1, 64>}, {transform_indices = @transform_21, window_bounds = array<i64: 1, 128, 64>}]} {
    %c0 = arith.constant 0 : index
    %c0_0 = arith.constant 0 : index
    %0 = vector.load %arg19[%c0, %c0_0] : memref<1x5xf32, #tpu.memory_space<vmem>>, vector<1x5xf32>
    %cst = arith.constant 0.000000e+00 : f32
    %1 = vector.broadcast %cst : f32 to vector<144x64xf32>
    %c0_1 = arith.constant 0 : index
    %c0_2 = arith.constant 0 : index
    %2 = vector.load %arg23[%c0_1, %c0_2] : memref<144x64xf32, #tpu.memory_space<vmem>>, vector<144x64xf32>
    tpu.vector_store %arg23[%c0_1, %c0_2], %1 {strides = array<i32>} : memref<144x64xf32, #tpu.memory_space<vmem>>, vector<144x64xf32>,
    %c0_3 = arith.constant 0 : index
    %c0_4 = arith.constant 0 : index
    %c0_5 = arith.constant 0 : index
    %3 = vector.load %arg1[%c0_3, %c0_4, %c0_5] : memref<1x128x64xf32, #tpu.memory_space<vmem>>, vector<1x128x64xf32>
    %4 = vector.shape_cast %3 : vector<1x128x64xf32> to vector<128x64xf32>
    %c0_6 = arith.constant 0 : index
    %c0_7 = arith.constant 0 : index
    %5 = vector.load %arg3[%c0_6, %c0_7] : memref<1x64xf32, #tpu.memory_space<vmem>>, vector<1x64xf32>
    %c0_8 = arith.constant 0 : index
    %c0_9 = arith.constant 0 : index
    %6 = vector.load %arg4[%c0_8, %c0_9] : memref<1x64xf32, #tpu.memory_space<vmem>>, vector<1x64xf32>
    %7 = vector.shape_cast %4 : vector<128x64xf32> to vector<1x128x64xf32>
    %cst_10 = arith.constant dense<0.000000e+00> : vector<1xf32>
    %8 = vector.multi_reduction <add>, %7, %cst_10 [1, 2] : vector<1x128x64xf32> to vector<1xf32>
    %9 = vector.shape_cast %8 : vector<1xf32> to vector<1x1x1xf32>
    %10 = vector.extract %9[0, 0, 0] : f32 from vector<1x1x1xf32>
    %11 = vector.broadcast %10 : f32 to vector<1x1xf32>
    %cst_11 = arith.constant 8.192000e+03 : f32
    %12 = vector.broadcast %cst_11 : f32 to vector<1x1xf32>
    %13 = arith.divf %11, %12 : vector<1x1xf32>
    %14 = vector.broadcast %13 : vector<1x1xf32> to vector<128x64xf32>
    %15 = arith.subf %4, %14 : vector<128x64xf32>
    %16 = arith.mulf %15, %15 : vector<128x64xf32>
    %17 = vector.shape_cast %16 : vector<128x64xf32> to vector<1x128x64xf32>
    %cst_12 = arith.constant dense<0.000000e+00> : vector<1xf32>
    %18 = vector.multi_reduction <add>, %17, %cst_12 [1, 2] : vector<1x128x64xf32> to vector<1xf32>
    %19 = vector.shape_cast %18 : vector<1xf32> to vector<1x1x1xf32>
    %20 = vector.extract %19[0, 0, 0] : f32 from vector<1x1x1xf32>
    %21 = vector.broadcast %20 : f32 to vector<1x1xf32>
    %cst_13 = arith.constant 8.192000e+03 : f32
    %22 = vector.broadcast %cst_13 : f32 to vector<1x1xf32>
    %23 = arith.divf %21, %22 : vector<1x1xf32>
    %24 = vector.broadcast %13 : vector<1x1xf32> to vector<128x64xf32>
    %25 = arith.subf %4, %24 : vector<128x64xf32>
    %cst_14 = arith.constant 9.99999993E-9 : f32
    %26 = vector.broadcast %cst_14 : f32 to vector<1x1xf32>
    %27 = arith.addf %23, %26 : vector<1x1xf32>
    %28 = math.rsqrt %27 : vector<1x1xf32>
    %29 = vector.broadcast %28 : vector<1x1xf32> to vector<128x64xf32>
    %30 = arith.mulf %25, %29 : vector<128x64xf32>
    %31 = vector.broadcast %5 : vector<1x64xf32> to vector<128x64xf32>
    %32 = arith.mulf %31, %30 : vector<128x64xf32>
    %33 = vector.broadcast %6 : vector<1x64xf32> to vector<128x64xf32>
    %34 = arith.addf %32, %33 : vector<128x64xf32>
    %c0_15 = arith.constant 0 : index
    %c0_16 = arith.constant 0 : index
    %35 = vector.load %arg5[%c0_15, %c0_16] : memref<64x32xf32, #tpu.memory_space<vmem>>, vector<64x32xf32>
    %cst_17 = arith.constant dense<0.000000e+00> : vector<128x32xf32>
    %36 = tpu.matmul %34, %35, %cst_17 {dimension_numbers = #tpu.dot_dimension_numbers<[1], [0], [0], [1], [0, 0, 1, 1], [], []>} : vector<128x64xf32>, vector<64x32xf32>, vector<128x32xf32> -> vector<128x32xf32>
    %c0_18 = arith.constant 0 : index
    %c0_19 = arith.constant 0 : index
    %37 = vector.load %arg6[%c0_18, %c0_19] : memref<1x32xf32, #tpu.memory_space<vmem>>, vector<1x32xf32>
    %38 = vector.broadcast %37 : vector<1x32xf32> to vector<128x32xf32>
    %39 = arith.addf %36, %38 : vector<128x32xf32>
    %c0_20 = arith.constant 0 : index
    %c0_21 = arith.constant 0 : index
    %c0_22 = arith.constant 0 : index
    %40 = vector.load %arg2[%c0_20, %c0_21, %c0_22] : memref<1x1x64xf32, #tpu.memory_space<vmem>>, vector<1x1x64xf32>
    %41 = vector.shape_cast %40 : vector<1x1x64xf32> to vector<1x64xf32>
    %c0_23 = arith.constant 0 : index
    %c0_24 = arith.constant 0 : index
    %42 = vector.load %arg7[%c0_23, %c0_24] : memref<64x32xf32, #tpu.memory_space<vmem>>, vector<64x32xf32>
    %cst_25 = arith.constant dense<0.000000e+00> : vector<1x32xf32>
    %43 = tpu.matmul %41, %42, %cst_25 {dimension_numbers = #tpu.dot_dimension_numbers<[1], [0], [0], [1], [0, 0, 1, 1], [], []>} : vector<1x64xf32>, vector<64x32xf32>, vector<1x32xf32> -> vector<1x32xf32>
    %c0_26 = arith.constant 0 : index
    %c0_27 = arith.constant 0 : index
    %44 = vector.load %arg8[%c0_26, %c0_27] : memref<1x32xf32, #tpu.memory_space<vmem>>, vector<1x32xf32>
    %45 = arith.addf %43, %44 : vector<1x32xf32>
    %46 = vector.broadcast %45 : vector<1x32xf32> to vector<128x32xf32>
    %47 = arith.addf %39, %46 : vector<128x32xf32>
    %c0_28 = arith.constant 0 : index
    %c0_29 = arith.constant 0 : index
    %c0_30 = arith.constant 0 : index
    %48 = vector.load %arg9[%c0_28, %c0_29, %c0_30] : memref<2x32x64xf32, #tpu.memory_space<vmem>>, vector<1x32x64xf32>
    %49 = vector.shape_cast %48 : vector<1x32x64xf32> to vector<32x64xf32>
    %cst_31 = arith.constant dense<0.000000e+00> : vector<128x64xf32>
    %50 = tpu.matmul %47, %49, %cst_31 {dimension_numbers = #tpu.dot_dimension_numbers<[1], [0], [0], [1], [0, 0, 1, 1], [], []>} : vector<128x32xf32>, vector<32x64xf32>, vector<128x64xf32> -> vector<128x64xf32>
    %c0_32 = arith.constant 0 : index
    %c0_33 = arith.constant 0 : index
    %c0_34 = arith.constant 0 : index
    %51 = vector.load %arg10[%c0_32, %c0_33, %c0_34] : memref<2x1x64xf32, #tpu.memory_space<vmem>>, vector<1x1x64xf32>
    %52 = vector.shape_cast %51 : vector<1x1x64xf32> to vector<1x64xf32>
    %53 = vector.broadcast %52 : vector<1x64xf32> to vector<128x64xf32>
    %54 = arith.addf %50, %53 : vector<128x64xf32>
    %55 = vector.extract_strided_slice %0 {offsets = [0, 0], sizes = [1, 1], strides = [1, 1]} : vector<1x5xf32> to vector<1x1xf32>
    %cst_35 = arith.constant 0.000000e+00 : f32
    %56 = vector.broadcast %cst_35 : f32 to vector<128x64xf32>
    %57 = arith.cmpf oge, %54, %56 : vector<128x64xf32>
    %58 = vector.broadcast %55 : vector<1x1xf32> to vector<128x64xf32>
    %59 = arith.mulf %58, %54 : vector<128x64xf32>
    %60 = arith.select %57, %54, %59 : vector<128x64xi1>, vector<128x64xf32>
    %c0_36 = arith.constant 0 : index
    %c0_37 = arith.constant 0 : index
    %c0_38 = arith.constant 0 : index
    %61 = vector.load %arg11[%c0_36, %c0_37, %c0_38] : memref<2x1x64xf32, #tpu.memory_space<vmem>>, vector<1x1x64xf32>
    %62 = vector.shape_cast %61 : vector<1x1x64xf32> to vector<1x64xf32>
    %c0_39 = arith.constant 0 : index
    %c0_40 = arith.constant 0 : index
    %c0_41 = arith.constant 0 : index
    %63 = vector.load %arg12[%c0_39, %c0_40, %c0_41] : memref<2x1x64xf32, #tpu.memory_space<vmem>>, vector<1x1x64xf32>
    %64 = vector.shape_cast %63 : vector<1x1x64xf32> to vector<1x64xf32>
    %65 = vector.shape_cast %60 : vector<128x64xf32> to vector<1x128x64xf32>
    %cst_42 = arith.constant dense<0.000000e+00> : vector<1xf32>
    %66 = vector.multi_reduction <add>, %65, %cst_42 [1, 2] : vector<1x128x64xf32> to vector<1xf32>
    %67 = vector.shape_cast %66 : vector<1xf32> to vector<1x1x1xf32>
    %68 = vector.extract %67[0, 0, 0] : f32 from vector<1x1x1xf32>
    %69 = vector.broadcast %68 : f32 to vector<1x1xf32>
    %cst_43 = arith.constant 8.192000e+03 : f32
    %70 = vector.broadcast %cst_43 : f32 to vector<1x1xf32>
    %71 = arith.divf %69, %70 : vector<1x1xf32>
    %72 = vector.broadcast %71 : vector<1x1xf32> to vector<128x64xf32>
    %73 = arith.subf %60, %72 : vector<128x64xf32>
    %74 = arith.mulf %73, %73 : vector<128x64xf32>
    %75 = vector.shape_cast %74 : vector<128x64xf32> to vector<1x128x64xf32>
    %cst_44 = arith.constant dense<0.000000e+00> : vector<1xf32>
    %76 = vector.multi_reduction <add>, %75, %cst_44 [1, 2] : vector<1x128x64xf32> to vector<1xf32>
    %77 = vector.shape_cast %76 : vector<1xf32> to vector<1x1x1xf32>
    %78 = vector.extract %77[0, 0, 0] : f32 from vector<1x1x1xf32>
    %79 = vector.broadcast %78 : f32 to vector<1x1xf32>
    %cst_45 = arith.constant 8.192000e+03 : f32
    %80 = vector.broadcast %cst_45 : f32 to vector<1x1xf32>
    %81 = arith.divf %79, %80 : vector<1x1xf32>
    %82 = vector.broadcast %71 : vector<1x1xf32> to vector<128x64xf32>
    %83 = arith.subf %60, %82 : vector<128x64xf32>
    %cst_46 = arith.constant 9.99999993E-9 : f32
    %84 = vector.broadcast %cst_46 : f32 to vector<1x1xf32>
    %85 = arith.addf %81, %84 : vector<1x1xf32>
    %86 = math.rsqrt %85 : vector<1x1xf32>
    %87 = vector.broadcast %86 : vector<1x1xf32> to vector<128x64xf32>
    %88 = arith.mulf %83, %87 : vector<128x64xf32>
    %89 = vector.broadcast %62 : vector<1x64xf32> to vector<128x64xf32>
    %90 = arith.mulf %89, %88 : vector<128x64xf32>
    %91 = vector.broadcast %64 : vector<1x64xf32> to vector<128x64xf32>
    %92 = arith.addf %90, %91 : vector<128x64xf32>
    %c8 = arith.constant 8 : index
    %c0_47 = arith.constant 0 : index
    %93 = vector.load %arg23[%c8, %c0_47] : memref<144x64xf32, #tpu.memory_space<vmem>>, vector<128x64xf32>
    tpu.vector_store %arg23[%c8, %c0_47], %92 {strides = array<i32>} : memref<144x64xf32, #tpu.memory_space<vmem>>, vector<128x64xf32>,
    %c0_48 = arith.constant 0 : index
    %c0_49 = arith.constant 0 : index
    %c0_50 = arith.constant 0 : index
    %94 = vector.load %arg13[%c0_48, %c0_49, %c0_50] : memref<2x3x64xf32, #tpu.memory_space<vmem>>, vector<1x3x64xf32>
    %95 = vector.shape_cast %94 : vector<1x3x64xf32> to vector<3x64xf32>
    %c7 = arith.constant 7 : index
    %c0_51 = arith.constant 0 : index
    %96 = vector.load %arg23[%c7, %c0_51] : memref<144x64xf32, #tpu.memory_space<vmem>>, vector<128x64xf32>
    %97 = vector.extract_strided_slice %95 {offsets = [0, 0], sizes = [1, 64], strides = [1, 1]} : vector<3x64xf32> to vector<1x64xf32>
    %98 = vector.broadcast %97 : vector<1x64xf32> to vector<128x64xf32>
    %99 = arith.mulf %96, %98 : vector<128x64xf32>
    %100 = vector.extract_strided_slice %95 {offsets = [1, 0], sizes = [1, 64], strides = [1, 1]} : vector<3x64xf32> to vector<1x64xf32>
    %101 = vector.broadcast %100 : vector<1x64xf32> to vector<128x64xf32>
    %102 = arith.mulf %92, %101 : vector<128x64xf32>
    %103 = arith.addf %99, %102 : vector<128x64xf32>
    %c9 = arith.constant 9 : index
    %c0_52 = arith.constant 0 : index
    %104 = vector.load %arg23[%c9, %c0_52] : memref<144x64xf32, #tpu.memory_space<vmem>>, vector<128x64xf32>
    %105 = vector.extract_strided_slice %95 {offsets = [2, 0], sizes = [1, 64], strides = [1, 1]} : vector<3x64xf32> to vector<1x64xf32>
    %106 = vector.broadcast %105 : vector<1x64xf32> to vector<128x64xf32>
    %107 = arith.mulf %104, %106 : vector<128x64xf32>
    %108 = arith.addf %103, %107 : vector<128x64xf32>
    %c0_53 = arith.constant 0 : index
    %c0_54 = arith.constant 0 : index
    %c0_55 = arith.constant 0 : index
    %109 = vector.load %arg14[%c0_53, %c0_54, %c0_55] : memref<2x1x64xf32, #tpu.memory_space<vmem>>, vector<1x1x64xf32>
    %110 = vector.shape_cast %109 : vector<1x1x64xf32> to vector<1x64xf32>
    %111 = vector.broadcast %110 : vector<1x64xf32> to vector<128x64xf32>
    %112 = arith.addf %108, %111 : vector<128x64xf32>
    %113 = vector.extract_strided_slice %0 {offsets = [0, 1], sizes = [1, 1], strides = [1, 1]} : vector<1x5xf32> to vector<1x1xf32>
    %cst_56 = arith.constant 0.000000e+00 : f32
    %114 = vector.broadcast %cst_56 : f32 to vector<128x64xf32>
    %115 = arith.cmpf oge, %112, %114 : vector<128x64xf32>
    %116 = vector.broadcast %113 : vector<1x1xf32> to vector<128x64xf32>
    %117 = arith.mulf %116, %112 : vector<128x64xf32>
    %118 = arith.select %115, %112, %117 : vector<128x64xi1>, vector<128x64xf32>
    %c0_57 = arith.constant 0 : index
    %c0_58 = arith.constant 0 : index
    %c0_59 = arith.constant 0 : index
    %119 = vector.load %arg15[%c0_57, %c0_58, %c0_59] : memref<2x1x64xf32, #tpu.memory_space<vmem>>, vector<1x1x64xf32>
    %120 = vector.shape_cast %119 : vector<1x1x64xf32> to vector<1x64xf32>
    %c0_60 = arith.constant 0 : index
    %c0_61 = arith.constant 0 : index
    %c0_62 = arith.constant 0 : index
    %121 = vector.load %arg16[%c0_60, %c0_61, %c0_62] : memref<2x1x64xf32, #tpu.memory_space<vmem>>, vector<1x1x64xf32>
    %122 = vector.shape_cast %121 : vector<1x1x64xf32> to vector<1x64xf32>
    %123 = vector.shape_cast %118 : vector<128x64xf32> to vector<1x128x64xf32>
    %cst_63 = arith.constant dense<0.000000e+00> : vector<1xf32>
    %124 = vector.multi_reduction <add>, %123, %cst_63 [1, 2] : vector<1x128x64xf32> to vector<1xf32>
    %125 = vector.shape_cast %124 : vector<1xf32> to vector<1x1x1xf32>
    %126 = vector.extract %125[0, 0, 0] : f32 from vector<1x1x1xf32>
    %127 = vector.broadcast %126 : f32 to vector<1x1xf32>
    %cst_64 = arith.constant 8.192000e+03 : f32
    %128 = vector.broadcast %cst_64 : f32 to vector<1x1xf32>
    %129 = arith.divf %127, %128 : vector<1x1xf32>
    %130 = vector.broadcast %129 : vector<1x1xf32> to vector<128x64xf32>
    %131 = arith.subf %118, %130 : vector<128x64xf32>
    %132 = arith.mulf %131, %131 : vector<128x64xf32>
    %133 = vector.shape_cast %132 : vector<128x64xf32> to vector<1x128x64xf32>
    %cst_65 = arith.constant dense<0.000000e+00> : vector<1xf32>
    %134 = vector.multi_reduction <add>, %133, %cst_65 [1, 2] : vector<1x128x64xf32> to vector<1xf32>
    %135 = vector.shape_cast %134 : vector<1xf32> to vector<1x1x1xf32>
    %136 = vector.extract %135[0, 0, 0] : f32 from vector<1x1x1xf32>
    %137 = vector.broadcast %136 : f32 to vector<1x1xf32>
    %cst_66 = arith.constant 8.192000e+03 : f32
    %138 = vector.broadcast %cst_66 : f32 to vector<1x1xf32>
    %139 = arith.divf %137, %138 : vector<1x1xf32>
    %140 = vector.broadcast %129 : vector<1x1xf32> to vector<128x64xf32>
    %141 = arith.subf %118, %140 : vector<128x64xf32>
    %cst_67 = arith.constant 9.99999993E-9 : f32
    %142 = vector.broadcast %cst_67 : f32 to vector<1x1xf32>
    %143 = arith.addf %139, %142 : vector<1x1xf32>
    %144 = math.rsqrt %143 : vector<1x1xf32>
    %145 = vector.broadcast %144 : vector<1x1xf32> to vector<128x64xf32>
    %146 = arith.mulf %141, %145 : vector<128x64xf32>
    %147 = vector.broadcast %120 : vector<1x64xf32> to vector<128x64xf32>
    %148 = arith.mulf %147, %146 : vector<128x64xf32>
    %149 = vector.broadcast %122 : vector<1x64xf32> to vector<128x64xf32>
    %150 = arith.addf %148, %149 : vector<128x64xf32>
    %c0_68 = arith.constant 0 : index
    %c0_69 = arith.constant 0 : index
    %c0_70 = arith.constant 0 : index
    %151 = vector.load %arg17[%c0_68, %c0_69, %c0_70] : memref<2x64x64xf32, #tpu.memory_space<vmem>>, vector<1x64x64xf32>
    %152 = vector.shape_cast %151 : vector<1x64x64xf32> to vector<64x64xf32>
    %cst_71 = arith.constant dense<0.000000e+00> : vector<128x64xf32>
    %153 = tpu.matmul %150, %152, %cst_71 {dimension_numbers = #tpu.dot_dimension_numbers<[1], [0], [0], [1], [0, 0, 1, 1], [], []>} : vector<128x64xf32>, vector<64x64xf32>, vector<128x64xf32> -> vector<128x64xf32>
    %c0_72 = arith.constant 0 : index
    %c0_73 = arith.constant 0 : index
    %c0_74 = arith.constant 0 : index
    %154 = vector.load %arg18[%c0_72, %c0_73, %c0_74] : memref<2x1x64xf32, #tpu.memory_space<vmem>>, vector<1x1x64xf32>
    %155 = vector.shape_cast %154 : vector<1x1x64xf32> to vector<1x64xf32>
    %156 = vector.broadcast %155 : vector<1x64xf32> to vector<128x64xf32>
    %157 = arith.addf %153, %156 : vector<128x64xf32>
    %158 = vector.extract_strided_slice %157 {offsets = [0, 0], sizes = [128, 32], strides = [1, 1]} : vector<128x64xf32> to vector<128x32xf32>
    %159 = vector.extract_strided_slice %157 {offsets = [0, 32], sizes = [128, 32], strides = [1, 1]} : vector<128x64xf32> to vector<128x32xf32>
    %160 = arith.addf %47, %159 : vector<128x32xf32>
    %c1 = arith.constant 1 : index
    %c0_75 = arith.constant 0 : index
    %c0_76 = arith.constant 0 : index
    %161 = vector.load %arg9[%c1, %c0_75, %c0_76] : memref<2x32x64xf32, #tpu.memory_space<vmem>>, vector<1x32x64xf32>
    %162 = vector.shape_cast %161 : vector<1x32x64xf32> to vector<32x64xf32>
    %cst_77 = arith.constant dense<0.000000e+00> : vector<128x64xf32>
    %163 = tpu.matmul %160, %162, %cst_77 {dimension_numbers = #tpu.dot_dimension_numbers<[1], [0], [0], [1], [0, 0, 1, 1], [], []>} : vector<128x32xf32>, vector<32x64xf32>, vector<128x64xf32> -> vector<128x64xf32>
    %c1_78 = arith.constant 1 : index
    %c0_79 = arith.constant 0 : index
    %c0_80 = arith.constant 0 : index
    %164 = vector.load %arg10[%c1_78, %c0_79, %c0_80] : memref<2x1x64xf32, #tpu.memory_space<vmem>>, vector<1x1x64xf32>
    %165 = vector.shape_cast %164 : vector<1x1x64xf32> to vector<1x64xf32>
    %166 = vector.broadcast %165 : vector<1x64xf32> to vector<128x64xf32>
    %167 = arith.addf %163, %166 : vector<128x64xf32>
    %168 = vector.extract_strided_slice %0 {offsets = [0, 2], sizes = [1, 1], strides = [1, 1]} : vector<1x5xf32> to vector<1x1xf32>
    %cst_81 = arith.constant 0.000000e+00 : f32
    %169 = vector.broadcast %cst_81 : f32 to vector<128x64xf32>
    %170 = arith.cmpf oge, %167, %169 : vector<128x64xf32>
    %171 = vector.broadcast %168 : vector<1x1xf32> to vector<128x64xf32>
    %172 = arith.mulf %171, %167 : vector<128x64xf32>
    %173 = arith.select %170, %167, %172 : vector<128x64xi1>, vector<128x64xf32>
    %c1_82 = arith.constant 1 : index
    %c0_83 = arith.constant 0 : index
    %c0_84 = arith.constant 0 : index
    %174 = vector.load %arg11[%c1_82, %c0_83, %c0_84] : memref<2x1x64xf32, #tpu.memory_space<vmem>>, vector<1x1x64xf32>
    %175 = vector.shape_cast %174 : vector<1x1x64xf32> to vector<1x64xf32>
    %c1_85 = arith.constant 1 : index
    %c0_86 = arith.constant 0 : index
    %c0_87 = arith.constant 0 : index
    %176 = vector.load %arg12[%c1_85, %c0_86, %c0_87] : memref<2x1x64xf32, #tpu.memory_space<vmem>>, vector<1x1x64xf32>
    %177 = vector.shape_cast %176 : vector<1x1x64xf32> to vector<1x64xf32>
    %178 = vector.shape_cast %173 : vector<128x64xf32> to vector<1x128x64xf32>
    %cst_88 = arith.constant dense<0.000000e+00> : vector<1xf32>
    %179 = vector.multi_reduction <add>, %178, %cst_88 [1, 2] : vector<1x128x64xf32> to vector<1xf32>
    %180 = vector.shape_cast %179 : vector<1xf32> to vector<1x1x1xf32>
    %181 = vector.extract %180[0, 0, 0] : f32 from vector<1x1x1xf32>
    %182 = vector.broadcast %181 : f32 to vector<1x1xf32>
    %cst_89 = arith.constant 8.192000e+03 : f32
    %183 = vector.broadcast %cst_89 : f32 to vector<1x1xf32>
    %184 = arith.divf %182, %183 : vector<1x1xf32>
    %185 = vector.broadcast %184 : vector<1x1xf32> to vector<128x64xf32>
    %186 = arith.subf %173, %185 : vector<128x64xf32>
    %187 = arith.mulf %186, %186 : vector<128x64xf32>
    %188 = vector.shape_cast %187 : vector<128x64xf32> to vector<1x128x64xf32>
    %cst_90 = arith.constant dense<0.000000e+00> : vector<1xf32>
    %189 = vector.multi_reduction <add>, %188, %cst_90 [1, 2] : vector<1x128x64xf32> to vector<1xf32>
    %190 = vector.shape_cast %189 : vector<1xf32> to vector<1x1x1xf32>
    %191 = vector.extract %190[0, 0, 0] : f32 from vector<1x1x1xf32>
    %192 = vector.broadcast %191 : f32 to vector<1x1xf32>
    %cst_91 = arith.constant 8.192000e+03 : f32
    %193 = vector.broadcast %cst_91 : f32 to vector<1x1xf32>
    %194 = arith.divf %192, %193 : vector<1x1xf32>
    %195 = vector.broadcast %184 : vector<1x1xf32> to vector<128x64xf32>
    %196 = arith.subf %173, %195 : vector<128x64xf32>
    %cst_92 = arith.constant 9.99999993E-9 : f32
    %197 = vector.broadcast %cst_92 : f32 to vector<1x1xf32>
    %198 = arith.addf %194, %197 : vector<1x1xf32>
    %199 = math.rsqrt %198 : vector<1x1xf32>
    %200 = vector.broadcast %199 : vector<1x1xf32> to vector<128x64xf32>
    %201 = arith.mulf %196, %200 : vector<128x64xf32>
    %202 = vector.broadcast %175 : vector<1x64xf32> to vector<128x64xf32>
    %203 = arith.mulf %202, %201 : vector<128x64xf32>
    %204 = vector.broadcast %177 : vector<1x64xf32> to vector<128x64xf32>
    %205 = arith.addf %203, %204 : vector<128x64xf32>
    %c8_93 = arith.constant 8 : index
    %c0_94 = arith.constant 0 : index
    %206 = vector.load %arg23[%c8_93, %c0_94] : memref<144x64xf32, #tpu.memory_space<vmem>>, vector<128x64xf32>
    tpu.vector_store %arg23[%c8_93, %c0_94], %205 {strides = array<i32>} : memref<144x64xf32, #tpu.memory_space<vmem>>, vector<128x64xf32>,
    %c1_95 = arith.constant 1 : index
    %c0_96 = arith.constant 0 : index
    %c0_97 = arith.constant 0 : index
    %207 = vector.load %arg13[%c1_95, %c0_96, %c0_97] : memref<2x3x64xf32, #tpu.memory_space<vmem>>, vector<1x3x64xf32>
    %208 = vector.shape_cast %207 : vector<1x3x64xf32> to vector<3x64xf32>
    %c6 = arith.constant 6 : index
    %c0_98 = arith.constant 0 : index
    %209 = vector.load %arg23[%c6, %c0_98] : memref<144x64xf32, #tpu.memory_space<vmem>>, vector<128x64xf32>
    %210 = vector.extract_strided_slice %208 {offsets = [0, 0], sizes = [1, 64], strides = [1, 1]} : vector<3x64xf32> to vector<1x64xf32>
    %211 = vector.broadcast %210 : vector<1x64xf32> to vector<128x64xf32>
    %212 = arith.mulf %209, %211 : vector<128x64xf32>
    %213 = vector.extract_strided_slice %208 {offsets = [1, 0], sizes = [1, 64], strides = [1, 1]} : vector<3x64xf32> to vector<1x64xf32>
    %214 = vector.broadcast %213 : vector<1x64xf32> to vector<128x64xf32>
    %215 = arith.mulf %205, %214 : vector<128x64xf32>
    %216 = arith.addf %212, %215 : vector<128x64xf32>
    %c10 = arith.constant 10 : index
    %c0_99 = arith.constant 0 : index
    %217 = vector.load %arg23[%c10, %c0_99] : memref<144x64xf32, #tpu.memory_space<vmem>>, vector<128x64xf32>
    %218 = vector.extract_strided_slice %208 {offsets = [2, 0], sizes = [1, 64], strides = [1, 1]} : vector<3x64xf32> to vector<1x64xf32>
    %219 = vector.broadcast %218 : vector<1x64xf32> to vector<128x64xf32>
    %220 = arith.mulf %217, %219 : vector<128x64xf32>
    %221 = arith.addf %216, %220 : vector<128x64xf32>
    %c1_100 = arith.constant 1 : index
    %c0_101 = arith.constant 0 : index
    %c0_102 = arith.constant 0 : index
    %222 = vector.load %arg14[%c1_100, %c0_101, %c0_102] : memref<2x1x64xf32, #tpu.memory_space<vmem>>, vector<1x1x64xf32>
    %223 = vector.shape_cast %222 : vector<1x1x64xf32> to vector<1x64xf32>
    %224 = vector.broadcast %223 : vector<1x64xf32> to vector<128x64xf32>
    %225 = arith.addf %221, %224 : vector<128x64xf32>
    %226 = vector.extract_strided_slice %0 {offsets = [0, 3], sizes = [1, 1], strides = [1, 1]} : vector<1x5xf32> to vector<1x1xf32>
    %cst_103 = arith.constant 0.000000e+00 : f32
    %227 = vector.broadcast %cst_103 : f32 to vector<128x64xf32>
    %228 = arith.cmpf oge, %225, %227 : vector<128x64xf32>
    %229 = vector.broadcast %226 : vector<1x1xf32> to vector<128x64xf32>
    %230 = arith.mulf %229, %225 : vector<128x64xf32>
    %231 = arith.select %228, %225, %230 : vector<128x64xi1>, vector<128x64xf32>
    %c1_104 = arith.constant 1 : index
    %c0_105 = arith.constant 0 : index
    %c0_106 = arith.constant 0 : index
    %232 = vector.load %arg15[%c1_104, %c0_105, %c0_106] : memref<2x1x64xf32, #tpu.memory_space<vmem>>, vector<1x1x64xf32>
    %233 = vector.shape_cast %232 : vector<1x1x64xf32> to vector<1x64xf32>
    %c1_107 = arith.constant 1 : index
    %c0_108 = arith.constant 0 : index
    %c0_109 = arith.constant 0 : index
    %234 = vector.load %arg16[%c1_107, %c0_108, %c0_109] : memref<2x1x64xf32, #tpu.memory_space<vmem>>, vector<1x1x64xf32>
    %235 = vector.shape_cast %234 : vector<1x1x64xf32> to vector<1x64xf32>
    %236 = vector.shape_cast %231 : vector<128x64xf32> to vector<1x128x64xf32>
    %cst_110 = arith.constant dense<0.000000e+00> : vector<1xf32>
    %237 = vector.multi_reduction <add>, %236, %cst_110 [1, 2] : vector<1x128x64xf32> to vector<1xf32>
    %238 = vector.shape_cast %237 : vector<1xf32> to vector<1x1x1xf32>
    %239 = vector.extract %238[0, 0, 0] : f32 from vector<1x1x1xf32>
    %240 = vector.broadcast %239 : f32 to vector<1x1xf32>
    %cst_111 = arith.constant 8.192000e+03 : f32
    %241 = vector.broadcast %cst_111 : f32 to vector<1x1xf32>
    %242 = arith.divf %240, %241 : vector<1x1xf32>
    %243 = vector.broadcast %242 : vector<1x1xf32> to vector<128x64xf32>
    %244 = arith.subf %231, %243 : vector<128x64xf32>
    %245 = arith.mulf %244, %244 : vector<128x64xf32>
    %246 = vector.shape_cast %245 : vector<128x64xf32> to vector<1x128x64xf32>
    %cst_112 = arith.constant dense<0.000000e+00> : vector<1xf32>
    %247 = vector.multi_reduction <add>, %246, %cst_112 [1, 2] : vector<1x128x64xf32> to vector<1xf32>
    %248 = vector.shape_cast %247 : vector<1xf32> to vector<1x1x1xf32>
    %249 = vector.extract %248[0, 0, 0] : f32 from vector<1x1x1xf32>
    %250 = vector.broadcast %249 : f32 to vector<1x1xf32>
    %cst_113 = arith.constant 8.192000e+03 : f32
    %251 = vector.broadcast %cst_113 : f32 to vector<1x1xf32>
    %252 = arith.divf %250, %251 : vector<1x1xf32>
    %253 = vector.broadcast %242 : vector<1x1xf32> to vector<128x64xf32>
    %254 = arith.subf %231, %253 : vector<128x64xf32>
    %cst_114 = arith.constant 9.99999993E-9 : f32
    %255 = vector.broadcast %cst_114 : f32 to vector<1x1xf32>
    %256 = arith.addf %252, %255 : vector<1x1xf32>
    %257 = math.rsqrt %256 : vector<1x1xf32>
    %258 = vector.broadcast %257 : vector<1x1xf32> to vector<128x64xf32>
    %259 = arith.mulf %254, %258 : vector<128x64xf32>
    %260 = vector.broadcast %233 : vector<1x64xf32> to vector<128x64xf32>
    %261 = arith.mulf %260, %259 : vector<128x64xf32>
    %262 = vector.broadcast %235 : vector<1x64xf32> to vector<128x64xf32>
    %263 = arith.addf %261, %262 : vector<128x64xf32>
    %c1_115 = arith.constant 1 : index
    %c0_116 = arith.constant 0 : index
    %c0_117 = arith.constant 0 : index
    %264 = vector.load %arg17[%c1_115, %c0_116, %c0_117] : memref<2x64x64xf32, #tpu.memory_space<vmem>>, vector<1x64x64xf32>
    %265 = vector.shape_cast %264 : vector<1x64x64xf32> to vector<64x64xf32>
    %cst_118 = arith.constant dense<0.000000e+00> : vector<128x64xf32>
    %266 = tpu.matmul %263, %265, %cst_118 {dimension_numbers = #tpu.dot_dimension_numbers<[1], [0], [0], [1], [0, 0, 1, 1], [], []>} : vector<128x64xf32>, vector<64x64xf32>, vector<128x64xf32> -> vector<128x64xf32>
    %c1_119 = arith.constant 1 : index
    %c0_120 = arith.constant 0 : index
    %c0_121 = arith.constant 0 : index
    %267 = vector.load %arg18[%c1_119, %c0_120, %c0_121] : memref<2x1x64xf32, #tpu.memory_space<vmem>>, vector<1x1x64xf32>
    %268 = vector.shape_cast %267 : vector<1x1x64xf32> to vector<1x64xf32>
    %269 = vector.broadcast %268 : vector<1x64xf32> to vector<128x64xf32>
    %270 = arith.addf %266, %269 : vector<128x64xf32>
    %271 = vector.extract_strided_slice %270 {offsets = [0, 0], sizes = [128, 32], strides = [1, 1]} : vector<128x64xf32> to vector<128x32xf32>
    %272 = arith.addf %158, %271 : vector<128x32xf32>
    %273 = vector.extract_strided_slice %0 {offsets = [0, 4], sizes = [1, 1], strides = [1, 1]} : vector<1x5xf32> to vector<1x1xf32>
    %cst_122 = arith.constant 0.000000e+00 : f32
    %274 = vector.broadcast %cst_122 : f32 to vector<128x32xf32>
    %275 = arith.cmpf oge, %272, %274 : vector<128x32xf32>
    %276 = vector.broadcast %273 : vector<1x1xf32> to vector<128x32xf32>
    %277 = arith.mulf %276, %272 : vector<128x32xf32>
    %278 = arith.select %275, %272, %277 : vector<128x32xi1>, vector<128x32xf32>
    %c0_123 = arith.constant 0 : index
    %c0_124 = arith.constant 0 : index
    %279 = vector.load %arg20[%c0_123, %c0_124] : memref<32x64xf32, #tpu.memory_space<vmem>>, vector<32x64xf32>
    %cst_125 = arith.constant dense<0.000000e+00> : vector<128x64xf32>
    %280 = tpu.matmul %278, %279, %cst_125 {dimension_numbers = #tpu.dot_dimension_numbers<[1], [0], [0], [1], [0, 0, 1, 1], [], []>} : vector<128x32xf32>, vector<32x64xf32>, vector<128x64xf32> -> vector<128x64xf32>
    %c0_126 = arith.constant 0 : index
    %c0_127 = arith.constant 0 : index
    %281 = vector.load %arg21[%c0_126, %c0_127] : memref<1x64xf32, #tpu.memory_space<vmem>>, vector<1x64xf32>
    %282 = vector.broadcast %281 : vector<1x64xf32> to vector<128x64xf32>
    %283 = arith.addf %280, %282 : vector<128x64xf32>
    %cst_128 = arith.constant 0.000000e+00 : f32
    %284 = vector.broadcast %cst_128 : f32 to vector<128x64xf32>
    %285 = arith.maximumf %283, %284 : vector<128x64xf32>
    %c0_129 = arith.constant 0 : index
    %c0_130 = arith.constant 0 : index
    %c0_131 = arith.constant 0 : index
    %286 = vector.load %arg22[%c0_129, %c0_130, %c0_131] : memref<1x128x64xf32, #tpu.memory_space<vmem>>, vector<1x128x64xf32>
    %287 = vector.shape_cast %286 : vector<1x128x64xf32> to vector<128x64xf32>
    %288 = vector.shape_cast %285 : vector<128x64xf32> to vector<1x128x64xf32>
    tpu.vector_store %arg22[%c0_129, %c0_130, %c0_131], %288 {strides = array<i32>} : memref<1x128x64xf32, #tpu.memory_space<vmem>>, vector<1x128x64xf32>,
    return
  }
  func.func @transform_0(%arg0: i32) -> (i32, i32, i32) {
    %c0_i32 = arith.constant 0 : i32
    %c0_i32_0 = arith.constant 0 : i32
    %c0_i32_1 = arith.constant 0 : i32
    return %arg0, %c0_i32, %c0_i32_0 : i32, i32, i32
  }
  func.func @transform_1(%arg0: i32) -> (i32, i32, i32) {
    %c0_i32 = arith.constant 0 : i32
    %c0_i32_0 = arith.constant 0 : i32
    %c0_i32_1 = arith.constant 0 : i32
    return %arg0, %c0_i32, %c0_i32_0 : i32, i32, i32
  }
  func.func @transform_2(%arg0: i32) -> (i32, i32) {
    %c0_i32 = arith.constant 0 : i32
    %c0_i32_0 = arith.constant 0 : i32
    %c0_i32_1 = arith.constant 0 : i32
    return %c0_i32, %c0_i32_0 : i32, i32
  }
  func.func @transform_3(%arg0: i32) -> (i32, i32) {
    %c0_i32 = arith.constant 0 : i32
    %c0_i32_0 = arith.constant 0 : i32
    %c0_i32_1 = arith.constant 0 : i32
    return %c0_i32, %c0_i32_0 : i32, i32
  }
  func.func @transform_4(%arg0: i32) -> (i32, i32) {
    %c0_i32 = arith.constant 0 : i32
    %c0_i32_0 = arith.constant 0 : i32
    %c0_i32_1 = arith.constant 0 : i32
    return %c0_i32, %c0_i32_0 : i32, i32
  }
  func.func @transform_5(%arg0: i32) -> (i32, i32) {
    %c0_i32 = arith.constant 0 : i32
    %c0_i32_0 = arith.constant 0 : i32
    %c0_i32_1 = arith.constant 0 : i32
    return %c0_i32, %c0_i32_0 : i32, i32
  }
  func.func @transform_6(%arg0: i32) -> (i32, i32) {
    %c0_i32 = arith.constant 0 : i32
    %c0_i32_0 = arith.constant 0 : i32
    %c0_i32_1 = arith.constant 0 : i32
    return %c0_i32, %c0_i32_0 : i32, i32
  }
  func.func @transform_7(%arg0: i32) -> (i32, i32) {
    %c0_i32 = arith.constant 0 : i32
    %c0_i32_0 = arith.constant 0 : i32
    %c0_i32_1 = arith.constant 0 : i32
    return %c0_i32, %c0_i32_0 : i32, i32
  }
  func.func @transform_8(%arg0: i32) -> (i32, i32, i32) {
    %c0_i32 = arith.constant 0 : i32
    %c0_i32_0 = arith.constant 0 : i32
    %c0_i32_1 = arith.constant 0 : i32
    %c0_i32_2 = arith.constant 0 : i32
    return %c0_i32, %c0_i32_0, %c0_i32_1 : i32, i32, i32
  }
  func.func @transform_9(%arg0: i32) -> (i32, i32, i32) {
    %c0_i32 = arith.constant 0 : i32
    %c0_i32_0 = arith.constant 0 : i32
    %c0_i32_1 = arith.constant 0 : i32
    %c0_i32_2 = arith.constant 0 : i32
    return %c0_i32, %c0_i32_0, %c0_i32_1 : i32, i32, i32
  }
  func.func @transform_10(%arg0: i32) -> (i32, i32, i32) {
    %c0_i32 = arith.constant 0 : i32
    %c0_i32_0 = arith.constant 0 : i32
    %c0_i32_1 = arith.constant 0 : i32
    %c0_i32_2 = arith.constant 0 : i32
    return %c0_i32, %c0_i32_0, %c0_i32_1 : i32, i32, i32
  }
  func.func @transform_11(%arg0: i32) -> (i32, i32, i32) {
    %c0_i32 = arith.constant 0 : i32
    %c0_i32_0 = arith.constant 0 : i32
    %c0_i32_1 = arith.constant 0 : i32
    %c0_i32_2 = arith.constant 0 : i32
    return %c0_i32, %c0_i32_0, %c0_i32_1 : i32, i32, i32
  }
  func.func @transform_12(%arg0: i32) -> (i32, i32, i32) {
    %c0_i32 = arith.constant 0 : i32
    %c0_i32_0 = arith.constant 0 : i32
    %c0_i32_1 = arith.constant 0 : i32
    %c0_i32_2 = arith.constant 0 : i32
    return %c0_i32, %c0_i32_0, %c0_i32_1 : i32, i32, i32
  }
  func.func @transform_13(%arg0: i32) -> (i32, i32, i32) {
    %c0_i32 = arith.constant 0 : i32
    %c0_i32_0 = arith.constant 0 : i32
    %c0_i32_1 = arith.constant 0 : i32
    %c0_i32_2 = arith.constant 0 : i32
    return %c0_i32, %c0_i32_0, %c0_i32_1 : i32, i32, i32
  }
  func.func @transform_14(%arg0: i32) -> (i32, i32, i32) {
    %c0_i32 = arith.constant 0 : i32
    %c0_i32_0 = arith.constant 0 : i32
    %c0_i32_1 = arith.constant 0 : i32
    %c0_i32_2 = arith.constant 0 : i32
    return %c0_i32, %c0_i32_0, %c0_i32_1 : i32, i32, i32
  }
  func.func @transform_15(%arg0: i32) -> (i32, i32, i32) {
    %c0_i32 = arith.constant 0 : i32
    %c0_i32_0 = arith.constant 0 : i32
    %c0_i32_1 = arith.constant 0 : i32
    %c0_i32_2 = arith.constant 0 : i32
    return %c0_i32, %c0_i32_0, %c0_i32_1 : i32, i32, i32
  }
  func.func @transform_16(%arg0: i32) -> (i32, i32, i32) {
    %c0_i32 = arith.constant 0 : i32
    %c0_i32_0 = arith.constant 0 : i32
    %c0_i32_1 = arith.constant 0 : i32
    %c0_i32_2 = arith.constant 0 : i32
    return %c0_i32, %c0_i32_0, %c0_i32_1 : i32, i32, i32
  }
  func.func @transform_17(%arg0: i32) -> (i32, i32, i32) {
    %c0_i32 = arith.constant 0 : i32
    %c0_i32_0 = arith.constant 0 : i32
    %c0_i32_1 = arith.constant 0 : i32
    %c0_i32_2 = arith.constant 0 : i32
    return %c0_i32, %c0_i32_0, %c0_i32_1 : i32, i32, i32
  }
  func.func @transform_18(%arg0: i32) -> (i32, i32) {
    %c0_i32 = arith.constant 0 : i32
    %c0_i32_0 = arith.constant 0 : i32
    %c0_i32_1 = arith.constant 0 : i32
    return %c0_i32, %c0_i32_0 : i32, i32
  }
  func.func @transform_19(%arg0: i32) -> (i32, i32) {
    %c0_i32 = arith.constant 0 : i32
    %c0_i32_0 = arith.constant 0 : i32
    %c0_i32_1 = arith.constant 0 : i32
    return %c0_i32, %c0_i32_0 : i32, i32
  }
  func.func @transform_20(%arg0: i32) -> (i32, i32) {
    %c0_i32 = arith.constant 0 : i32
    %c0_i32_0 = arith.constant 0 : i32
    %c0_i32_1 = arith.constant 0 : i32
    return %c0_i32, %c0_i32_0 : i32, i32
  }
  func.func @transform_21(%arg0: i32) -> (i32, i32, i32) {
    %c0_i32 = arith.constant 0 : i32
    %c0_i32_0 = arith.constant 0 : i32
    %c0_i32_1 = arith.constant 0 : i32
    return %arg0, %c0_i32, %c0_i32_0 : i32, i32, i32
  }
}

module attributes {stable_mosaic.version = 11 : i64} {
  func.func @_maskdec_kernel(%arg0: i32, %arg1: i32, %arg2: memref<1x1x128x64xf32, #tpu.memory_space<vmem>>, %arg3: memref<1x128x64xf32, #tpu.memory_space<vmem>>, %arg4: memref<64x16xf32, #tpu.memory_space<vmem>>, %arg5: memref<1x1x128x16xf32, #tpu.memory_space<vmem>>) attributes {dimension_semantics = [#tpu.dimension_semantics<parallel>, #tpu.dimension_semantics<parallel>], iteration_bounds = array<i64: 2, 2>, scalar_prefetch = 0 : i64, scratch_operands = 0 : i64, tpu.core_type = #tpu.core_type<tc>, window_params = [{transform_indices = @transform_0, window_bounds = array<i64: 1, 1, 128, 64>}, {transform_indices = @transform_1, window_bounds = array<i64: 1, 128, 64>}, {pipeline_mode = #tpu.pipeline_mode<synchronous>, transform_indices = @transform_2, window_bounds = array<i64: 64, 16>}, {transform_indices = @transform_3, window_bounds = array<i64: 1, 1, 128, 16>}]} {
    %c0 = arith.constant 0 : index
    %c0_0 = arith.constant 0 : index
    %c0_1 = arith.constant 0 : index
    %c0_2 = arith.constant 0 : index
    %0 = vector.load %arg2[%c0, %c0_0, %c0_1, %c0_2] : memref<1x1x128x64xf32, #tpu.memory_space<vmem>>, vector<1x1x128x64xf32>
    %1 = vector.shape_cast %0 : vector<1x1x128x64xf32> to vector<128x64xf32>
    %c0_3 = arith.constant 0 : index
    %c0_4 = arith.constant 0 : index
    %c0_5 = arith.constant 0 : index
    %2 = vector.load %arg3[%c0_3, %c0_4, %c0_5] : memref<1x128x64xf32, #tpu.memory_space<vmem>>, vector<1x128x64xf32>
    %3 = vector.shape_cast %2 : vector<1x128x64xf32> to vector<128x64xf32>
    %4 = arith.mulf %1, %3 : vector<128x64xf32>
    %c0_6 = arith.constant 0 : index
    %c0_7 = arith.constant 0 : index
    %5 = vector.load %arg4[%c0_6, %c0_7] : memref<64x16xf32, #tpu.memory_space<vmem>>, vector<64x16xf32>
    %cst = arith.constant dense<0.000000e+00> : vector<128x16xf32>
    %6 = tpu.matmul %4, %5, %cst {dimension_numbers = #tpu.dot_dimension_numbers<[1], [0], [0], [1], [0, 0, 1, 1], [], []>} : vector<128x64xf32>, vector<64x16xf32>, vector<128x16xf32> -> vector<128x16xf32>
    %c0_8 = arith.constant 0 : index
    %c0_9 = arith.constant 0 : index
    %c0_10 = arith.constant 0 : index
    %c0_11 = arith.constant 0 : index
    %7 = vector.load %arg5[%c0_8, %c0_9, %c0_10, %c0_11] : memref<1x1x128x16xf32, #tpu.memory_space<vmem>>, vector<1x1x128x16xf32>
    %8 = vector.shape_cast %7 : vector<1x1x128x16xf32> to vector<128x16xf32>
    %9 = vector.shape_cast %6 : vector<128x16xf32> to vector<1x1x128x16xf32>
    tpu.vector_store %arg5[%c0_8, %c0_9, %c0_10, %c0_11], %9 {strides = array<i32>} : memref<1x1x128x16xf32, #tpu.memory_space<vmem>>, vector<1x1x128x16xf32>,
    return
  }
  func.func @transform_0(%arg0: i32, %arg1: i32) -> (i32, i32, i32, i32) {
    %c0_i32 = arith.constant 0 : i32
    %c0_i32_0 = arith.constant 0 : i32
    %c0_i32_1 = arith.constant 0 : i32
    return %arg0, %arg1, %c0_i32, %c0_i32_0 : i32, i32, i32, i32
  }
  func.func @transform_1(%arg0: i32, %arg1: i32) -> (i32, i32, i32) {
    %c0_i32 = arith.constant 0 : i32
    %c0_i32_0 = arith.constant 0 : i32
    %c0_i32_1 = arith.constant 0 : i32
    return %arg1, %c0_i32, %c0_i32_0 : i32, i32, i32
  }
  func.func @transform_2(%arg0: i32, %arg1: i32) -> (i32, i32) {
    %c0_i32 = arith.constant 0 : i32
    %c0_i32_0 = arith.constant 0 : i32
    %c0_i32_1 = arith.constant 0 : i32
    return %c0_i32, %c0_i32_0 : i32, i32
  }
  func.func @transform_3(%arg0: i32, %arg1: i32) -> (i32, i32, i32, i32) {
    %c0_i32 = arith.constant 0 : i32
    %c0_i32_0 = arith.constant 0 : i32
    %c0_i32_1 = arith.constant 0 : i32
    return %arg0, %arg1, %c0_i32, %c0_i32_0 : i32, i32, i32, i32
  }
}

</mosaic_0001>

<bundles_post_ra>
// kernel: wavesplit_forward.5
= control target key start
LH: loop header
LB: loop body
LE: loop exit
PB: predicated region body
PF: predicated region fallthrough
CT: control target
= control target key end

     0   :  { %vm55_vm0 = vcmask 130048   ;;  %vm377_vm1 = vcmask 523264   ;;  %s858_s1 = inlined_call_operand.vmem [shape: f32[16,64], index: 1, kind: input, shape index: {}]   ;;  %s859_s0 = inlined_call_operand.vmem [shape: f32[256,16], index: 0, kind: input, shape index: {}]   ;;  %s860_s2 = inlined_call_operand.vmem [shape: f32[1,64], index: 2, kind: input, shape index: {}]   ;;  %s861_s3 = inlined_call_operand.vmem [shape: f32[256,64], index: 3, kind: output, shape index: {}]  }
   0x1   :  { %v46_v0 = vld [vmem:[%s858_s1] sm:$0xff]  ;;  %v47_v1 = vld [vmem:[%s858_s1 + $0x8] sm:$0xff]  ;;  %v16_v7 = vld [vmem:[%s859_s0 + $0x10] sm:$0xff] }
   0x2   :  { %v14_v2 = vld [vmem:[%s859_s0] sm:$0xff]  ;;  %v533_v3 = vpack.c.bf16 %v47_v1, %v46_v0  ;;  %v15_v5 = vld [vmem:[%s859_s0 + $0x8] sm:$0xff]  ;;  %v32_v8 = vld [vmem:[%s859_s0 + $0x90] sm:$0xff] }
   0x3   :  { %485 = vmatprep.mubr.msk.f32.mxu0 %vm55_vm0, %v14_v2  ;;  %v30_v4 = vld [vmem:[%s859_s0 + $0x80] sm:$0xff]  ;;  %v31_v6 = vld [vmem:[%s859_s0 + $0x88] sm:$0xff]  ;;  %v17_v9 = vld [vmem:[%s859_s0 + $0x18] sm:$0xff] }
   0x4   :  { %509 = vmatprep.mubr.msk.f32.mxu1 %vm55_vm0, %v30_v4  ;;  %534 = vmatprep.subr.bf16.mxu0 %v533_v3  ;;  %v33_v10 = vld [vmem:[%s859_s0 + $0x98] sm:$0xff]  ;;  %v18_v11 = vld [vmem:[%s859_s0 + $0x20] sm:$0xff]  ;;  %v19_v13 = vld [vmem:[%s859_s0 + $0x28] sm:$0xff] }
   0x5   :  { %537 = vmatprep.subr.bf16.mxu1 %v533_v3  ;;  %536 = vmatpush3.bf16.msra.mxu0 %v533_v3  ;;  %v34_v12 = vld [vmem:[%s859_s0 + $0xa0] sm:$0xff]  ;;  %v35_v14 = vld [vmem:[%s859_s0 + $0xa8] sm:$0xff]  ;;  %v20_v15 = vld [vmem:[%s859_s0 + $0x30] sm:$0xff] }
   0x6   :  { %538 = vmatpush3.bf16.msra.mxu1 %v533_v3  ;;  %v36_v16 = vld [vmem:[%s859_s0 + $0xb0] sm:$0xff]  ;;  %v21_v17 = vld [vmem:[%s859_s0 + $0x38] sm:$0xff]  ;;  %v22_v19 = vld [vmem:[%s859_s0 + $0x40] sm:$0xff] }
   0x7   :  { %v37_v18 = vld [vmem:[%s859_s0 + $0xb8] sm:$0xff]  ;;  %v38_v20 = vld [vmem:[%s859_s0 + $0xc0] sm:$0xff]  ;;  %v23_v21 = vld [vmem:[%s859_s0 + $0x48] sm:$0xff] }
   0x8   :  { %486 = vmatmul.mubr.msk.f32.vlgmr.msra.gmra.mrb[0].mxu0 %vm55_vm0, %v15_v5  ;;  %v39_v22 = vld [vmem:[%s859_s0 + $0xc8] sm:$0xff]  ;;  %v24_v23 = vld [vmem:[%s859_s0 + $0x50] sm:$0xff]  ;;  %v25_v25 = vld [vmem:[%s859_s0 + $0x58] sm:$0xff] }
   0x9   :  { %510 = vmatmul.mubr.msk.f32.vlgmr.msra.gmra.mrb[0].mxu1 %vm55_vm0, %v31_v6  ;;  %488 = vmatprep.mubr.msk.f32.mxu0 %vm55_vm0, %v16_v7  ;;  %v40_v24 = vld [vmem:[%s859_s0 + $0xd0] sm:$0xff]  ;;  %v41_v26 = vld [vmem:[%s859_s0 + $0xd8] sm:$0xff]  ;;  %v26_v27 = vld [vmem:[%s859_s0 + $0x60] sm:$0xff] }
   0xa   :  { %512 = vmatprep.mubr.msk.f32.mxu1 %vm55_vm0, %v32_v8  ;;  %v42_v28 = vld [vmem:[%s859_s0 + $0xe0] sm:$0xff]  ;;  %v27_v29 = vld [vmem:[%s859_s0 + $0x68] sm:$0xff]  ;;  %v28_v31 = vld [vmem:[%s859_s0 + $0x70] sm:$0xff] }
   0xb   :  { %v43_v30 = vld [vmem:[%s859_s0 + $0xe8] sm:$0xff]  ;;  %v44_v32 = vld [vmem:[%s859_s0 + $0xf0] sm:$0xff]  ;;  %v29_v33 = vld [vmem:[%s859_s0 + $0x78] sm:$0xff] }
   0xc   :  { %489 = vmatmul.mubr.msk.f32.gmra.mrb[2].mxu0 %vm55_vm0, %v17_v9  ;;  %v45_v34 = vld [vmem:[%s859_s0 + $0xf8] sm:$0xff]  ;;  %v696_v35 = vld [vmem:[%s860_s2] ss:$0 sm:$0xff] }
   0xd   :  { %513 = vmatmul.mubr.msk.f32.gmra.mrb[2].mxu1 %vm55_vm0, %v33_v10  ;;  %491 = vmatprep.mubr.msk.f32.mxu0 %vm55_vm0, %v18_v11 }
   0xe   :  { %515 = vmatprep.mubr.msk.f32.mxu1 %vm55_vm0, %v34_v12 }
  0x10   :  { %492 = vmatmul.mubr.msk.f32.gmra.mrb[4].mxu0 %vm55_vm0, %v19_v13 }
  0x11   :  { %516 = vmatmul.mubr.msk.f32.gmra.mrb[4].mxu1 %vm55_vm0, %v35_v14  ;;  %494 = vmatprep.mubr.msk.f32.mxu0 %vm55_vm0, %v20_v15 }
  0x12   :  { %518 = vmatprep.mubr.msk.f32.mxu1 %vm55_vm0, %v36_v16 }
  0x14   :  { %495 = vmatmul.mubr.msk.f32.gmra.mrb[6].mxu0 %vm55_vm0, %v21_v17 }
  0x15   :  { %519 = vmatmul.mubr.msk.f32.gmra.mrb[6].mxu1 %vm55_vm0, %v37_v18  ;;  %497 = vmatprep.mubr.msk.f32.mxu0 %vm55_vm0, %v22_v19 }
  0x16   :  { %521 = vmatprep.mubr.msk.f32.mxu1 %vm55_vm0, %v38_v20 }
  0x18   :  { %498 = vmatmul.mubr.msk.f32.gmra.mrb[8].mxu0 %vm55_vm0, %v23_v21 }
  0x19   :  { %522 = vmatmul.mubr.msk.f32.gmra.mrb[8].mxu1 %vm55_vm0, %v39_v22  ;;  %500 = vmatprep.mubr.msk.f32.mxu0 %vm55_vm0, %v24_v23 }
  0x1a   :  { %524 = vmatprep.mubr.msk.f32.mxu1 %vm55_vm0, %v40_v24 }
  0x1c   :  { %501 = vmatmul.mubr.msk.f32.gmra.mrb[10].mxu0 %vm55_vm0, %v25_v25 }
  0x1d   :  { %525 = vmatmul.mubr.msk.f32.gmra.mrb[10].mxu1 %vm55_vm0, %v41_v26  ;;  %503 = vmatprep.mubr.msk.f32.mxu0 %vm55_vm0, %v26_v27 }
  0x1e   :  { %527 = vmatprep.mubr.msk.f32.mxu1 %vm55_vm0, %v42_v28 }
  0x20   :  { %504 = vmatmul.mubr.msk.f32.gmra.mrb[12].mxu0 %vm55_vm0, %v27_v29 }
  0x21   :  { %528 = vmatmul.mubr.msk.f32.gmra.mrb[12].mxu1 %vm55_vm0, %v43_v30  ;;  %506 = vmatprep.mubr.msk.f32.mxu0 %vm55_vm0, %v28_v31 }
  0x22   :  { %530 = vmatprep.mubr.msk.f32.mxu1 %vm55_vm0, %v44_v32 }
  0x24   :  { %507 = vmatmul.mubr.msk.f32.gmra.mrb[14].mxu0 %vm55_vm0, %v29_v33 }
  0x25   :  { %531 = vmatmul.mubr.msk.f32.gmra.mrb[14].mxu1 %vm55_vm0, %v45_v34 }
  0xdb   :  { %v487_v36 = vpop.f32.mrb[0].mxu0 }
  0xdc   :  { %v511_v37 = vpop.f32.mrb[0].mxu1  ;;  %v224_v38 = vadd.f32 %v487_v36, %v696_v35  ;;  %v218_v40 = vpop.f32.mrb[1].mxu0 }
  0xdd   :  { %v304_v39 = vadd.f32 %v511_v37, %v696_v35  ;;  %v298_v41 = vpop.f32.mrb[1].mxu1  ;;  %v219_v42 = vadd.f32 %v696_v35, %v218_v40 }
  0xde   :  { %v299_v43 = vadd.f32 %v696_v35, %v298_v41  ;;  %379 = vst.msk [vmem:[%s861_s3 + $0x8] sm:$0xff] %vm377_vm1, %v224_v38 }
  0xdf   :  { %395 = vst.msk [vmem:[%s861_s3 + $0x88] sm:$0xff] %vm377_vm1, %v304_v39  ;;  %378 = vst.msk [vmem:[%s861_s3] sm:$0xff] %vm377_vm1, %v219_v42  ;;  %v490_v44 = vpop.f32.mrb[2].mxu0 }
  0xe0   :  { %394 = vst.msk [vmem:[%s861_s3 + $0x80] sm:$0xff] %vm377_vm1, %v299_v43  ;;  %v514_v45 = vpop.f32.mrb[2].mxu1  ;;  %v234_v46 = vadd.f32 %v490_v44, %v696_v35  ;;  %v228_v48 = vpop.f32.mrb[3].mxu0 }
  0xe1   :  { %v314_v47 = vadd.f32 %v514_v45, %v696_v35  ;;  %v308_v49 = vpop.f32.mrb[3].mxu1  ;;  %v229_v50 = vadd.f32 %v696_v35, %v228_v48 }
  0xe2   :  { %v309_v51 = vadd.f32 %v696_v35, %v308_v49  ;;  %381 = vst.msk [vmem:[%s861_s3 + $0x18] sm:$0xff] %vm377_vm1, %v234_v46 }
  0xe3   :  { %397 = vst.msk [vmem:[%s861_s3 + $0x98] sm:$0xff] %vm377_vm1, %v314_v47  ;;  %380 = vst.msk [vmem:[%s861_s3 + $0x10] sm:$0xff] %vm377_vm1, %v229_v50  ;;  %v493_v52 = vpop.f32.mrb[4].mxu0 }
  0xe4   :  { %396 = vst.msk [vmem:[%s861_s3 + $0x90] sm:$0xff] %vm377_vm1, %v309_v51  ;;  %v517_v53 = vpop.f32.mrb[4].mxu1  ;;  %v244_v54 = vadd.f32 %v493_v52, %v696_v35  ;;  %v238_v56 = vpop.f32.mrb[5].mxu0 }
  0xe5   :  { %v324_v55 = vadd.f32 %v517_v53, %v696_v35  ;;  %v318_v57 = vpop.f32.mrb[5].mxu1  ;;  %v239_v58 = vadd.f32 %v696_v35, %v238_v56 }
  0xe6   :  { %v319_v59 = vadd.f32 %v696_v35, %v318_v57  ;;  %383 = vst.msk [vmem:[%s861_s3 + $0x28] sm:$0xff] %vm377_vm1, %v244_v54 }
  0xe7   :  { %399 = vst.msk [vmem:[%s861_s3 + $0xa8] sm:$0xff] %vm377_vm1, %v324_v55  ;;  %382 = vst.msk [vmem:[%s861_s3 + $0x20] sm:$0xff] %vm377_vm1, %v239_v58  ;;  %v496_v60 = vpop.f32.mrb[6].mxu0 }
  0xe8   :  { %398 = vst.msk [vmem:[%s861_s3 + $0xa0] sm:$0xff] %vm377_vm1, %v319_v59  ;;  %v520_v61 = vpop.f32.mrb[6].mxu1  ;;  %v254_v62 = vadd.f32 %v496_v60, %v696_v35  ;;  %v248_v0 = vpop.f32.mrb[7].mxu0 }
  0xe9   :  { %v334_v63 = vadd.f32 %v520_v61, %v696_v35  ;;  %v328_v1 = vpop.f32.mrb[7].mxu1  ;;  %v249_v2 = vadd.f32 %v696_v35, %v248_v0 }
  0xea   :  { %v329_v3 = vadd.f32 %v696_v35, %v328_v1  ;;  %385 = vst.msk [vmem:[%s861_s3 + $0x38] sm:$0xff] %vm377_vm1, %v254_v62 }
  0xeb   :  { %401 = vst.msk [vmem:[%s861_s3 + $0xb8] sm:$0xff] %vm377_vm1, %v334_v63  ;;  %384 = vst.msk [vmem:[%s861_s3 + $0x30] sm:$0xff] %vm377_vm1, %v249_v2  ;;  %v499_v4 = vpop.f32.mrb[8].mxu0 }
  0xec   :  { %400 = vst.msk [vmem:[%s861_s3 + $0xb0] sm:$0xff] %vm377_vm1, %v329_v3  ;;  %v523_v5 = vpop.f32.mrb[8].mxu1  ;;  %v264_v6 = vadd.f32 %v499_v4, %v696_v35  ;;  %v258_v8 = vpop.f32.mrb[9].mxu0 }
  0xed   :  { %v344_v7 = vadd.f32 %v523_v5, %v696_v35  ;;  %v338_v9 = vpop.f32.mrb[9].mxu1  ;;  %v259_v10 = vadd.f32 %v696_v35, %v258_v8 }
  0xee   :  { %v339_v11 = vadd.f32 %v696_v35, %v338_v9  ;;  %387 = vst.msk [vmem:[%s861_s3 + $0x48] sm:$0xff] %vm377_vm1, %v264_v6 }
  0xef   :  { %403 = vst.msk [vmem:[%s861_s3 + $0xc8] sm:$0xff] %vm377_vm1, %v344_v7  ;;  %386 = vst.msk [vmem:[%s861_s3 + $0x40] sm:$0xff] %vm377_vm1, %v259_v10  ;;  %v502_v12 = vpop.f32.mrb[10].mxu0 }
  0xf0   :  { %402 = vst.msk [vmem:[%s861_s3 + $0xc0] sm:$0xff] %vm377_vm1, %v339_v11  ;;  %v526_v13 = vpop.f32.mrb[10].mxu1  ;;  %v274_v14 = vadd.f32 %v502_v12, %v696_v35  ;;  %v268_v16 = vpop.f32.mrb[11].mxu0 }
  0xf1   :  { %v354_v15 = vadd.f32 %v526_v13, %v696_v35  ;;  %v348_v17 = vpop.f32.mrb[11].mxu1  ;;  %v269_v18 = vadd.f32 %v696_v35, %v268_v16 }
  0xf2   :  { %v349_v19 = vadd.f32 %v696_v35, %v348_v17  ;;  %389 = vst.msk [vmem:[%s861_s3 + $0x58] sm:$0xff] %vm377_vm1, %v274_v14 }
  0xf3   :  { %405 = vst.msk [vmem:[%s861_s3 + $0xd8] sm:$0xff] %vm377_vm1, %v354_v15  ;;  %388 = vst.msk [vmem:[%s861_s3 + $0x50] sm:$0xff] %vm377_vm1, %v269_v18  ;;  %v505_v20 = vpop.f32.mrb[12].mxu0 }
  0xf4   :  { %404 = vst.msk [vmem:[%s861_s3 + $0xd0] sm:$0xff] %vm377_vm1, %v349_v19  ;;  %v529_v21 = vpop.f32.mrb[12].mxu1  ;;  %v284_v22 = vadd.f32 %v505_v20, %v696_v35  ;;  %v278_v24 = vpop.f32.mrb[13].mxu0 }
  0xf5   :  { %v364_v23 = vadd.f32 %v529_v21, %v696_v35  ;;  %v358_v25 = vpop.f32.mrb[13].mxu1  ;;  %v279_v26 = vadd.f32 %v696_v35, %v278_v24 }
  0xf6   :  { %v359_v27 = vadd.f32 %v696_v35, %v358_v25  ;;  %391 = vst.msk [vmem:[%s861_s3 + $0x68] sm:$0xff] %vm377_vm1, %v284_v22 }
  0xf7   :  { %407 = vst.msk [vmem:[%s861_s3 + $0xe8] sm:$0xff] %vm377_vm1, %v364_v23  ;;  %390 = vst.msk [vmem:[%s861_s3 + $0x60] sm:$0xff] %vm377_vm1, %v279_v26  ;;  %v508_v28 = vpop.f32.mrb[14].mxu0 }
  0xf8   :  { %406 = vst.msk [vmem:[%s861_s3 + $0xe0] sm:$0xff] %vm377_vm1, %v359_v27  ;;  %v532_v29 = vpop.f32.mrb[14].mxu1  ;;  %v294_v30 = vadd.f32 %v508_v28, %v696_v35  ;;  %v288_v32 = vpop.f32.mrb[15].mxu0 }
  0xf9   :  { %v374_v31 = vadd.f32 %v532_v29, %v696_v35  ;;  %v368_v33 = vpop.f32.mrb[15].mxu1  ;;  %v289_v34 = vadd.f32 %v696_v35, %v288_v32 }
  0xfa   :  { %v369_v36 = vadd.f32 %v696_v35, %v368_v33  ;;  %393 = vst.msk [vmem:[%s861_s3 + $0x78] sm:$0xff] %vm377_vm1, %v294_v30 }
  0xfb   :  { %409 = vst.msk [vmem:[%s861_s3 + $0xf8] sm:$0xff] %vm377_vm1, %v374_v31  ;;  %392 = vst.msk [vmem:[%s861_s3 + $0x70] sm:$0xff] %vm377_vm1, %v289_v34 }
  0xfc   :  { %408 = vst.msk [vmem:[%s861_s3 + $0xf0] sm:$0xff] %vm377_vm1, %v369_v36 }

// kernel: wavesplit_forward.7
= control target key start
LH: loop header
LB: loop body
LE: loop exit
PB: predicated region body
PF: predicated region fallthrough
CT: control target
= control target key end

     0   :  { %vm136_vm0 = vcmask 523264   ;;  %s2742_s0 = inlined_call_operand.vmem [shape: f32[4,128,64], index: 0, kind: input, shape index: {}]   ;;  %s2743_s1 = inlined_call_operand.vmem [shape: f32[4,128,64], index: 1, kind: output, shape index: {}]  }
   0x1   :  { %v1353_v0 = vld [vmem:[%s2742_s0 + $0x10] sm:$0xff]  ;;  %v1358_v1 = vld [vmem:[%s2742_s0] sm:$0xff]  ;;  %v1363_v2 = vld [vmem:[%s2742_s0 + $0x18] sm:$0xff] }
   0x2   :  { %v74_v3 = vmul.f32 %v1353_v0, %v1353_v0  ;;  %v72_v4 = vmul.f32 %v1358_v1, %v1358_v1  ;;  %v75_v5 = vmul.f32 %v1363_v2, %v1363_v2  ;;  %v1374_v6 = vld [vmem:[%s2742_s0 + $0x8] sm:$0xff]  ;;  %v1386_v9 = vld [vmem:[%s2742_s0 + $0x20] sm:$0xff]  ;;  %v1399_v16 = vld [vmem:[%s2742_s0 + $0x38] sm:$0xff] }
   0x3   :  { %v73_v7 = vmul.f32 %v1374_v6, %v1374_v6  ;;  %v1381_v8 = vld [vmem:[%s2742_s0 + $0x28] sm:$0xff]  ;;  %v76_v15 = vmul.f32 %v1386_v9, %v1386_v9  ;;  %v1404_v17 = vld [vmem:[%s2742_s0 + $0x30] sm:$0xff]  ;;  %v79_v20 = vmul.f32 %v1399_v16, %v1399_v16  ;;  %v1420_v23 = vld [vmem:[%s2742_s0 + $0x40] sm:$0xff] }
   0x4   :  { %v143_v10 = vsel %vm136_vm0, %v74_v3, 0.0  ;;  %v137_v11 = vsel %vm136_vm0, %v72_v4, 0.0  ;;  %v146_v12 = vsel %vm136_vm0, %v75_v5, 0.0  ;;  %v77_v14 = vmul.f32 %v1381_v8, %v1381_v8  ;;  %v1415_v22 = vld [vmem:[%s2742_s0 + $0x48] sm:$0xff]  ;;  %v1431_v28 = vld [vmem:[%s2742_s0 + $0x58] sm:$0xff]  ;;  %v1436_v29 = vld [vmem:[%s2742_s0 + $0x50] sm:$0xff] }
   0x5   :  { %144 = vadd.xlane.f32.xlu1 %v143_v10  ;;  %138 = vadd.xlane.f32.xlu0 %v137_v11  ;;  %v140_v13 = vsel %vm136_vm0, %v73_v7, 0.0  ;;  %v149_v19 = vsel %vm136_vm0, %v76_v15, 0.0  ;;  %v78_v21 = vmul.f32 %v1404_v17, %v1404_v17  ;;  %v158_v24 = vsel %vm136_vm0, %v79_v20, 0.0  ;;  %v1447_v34 = vld [vmem:[%s2742_s0 + $0x68] sm:$0xff]  ;;  %v1452_v35 = vld [vmem:[%s2742_s0 + $0x60] sm:$0xff]  ;;  %v1463_v40 = vld [vmem:[%s2742_s0 + $0x78] sm:$0xff] }
   0x6   :  { %v152_v18 = vsel %vm136_vm0, %v77_v14, 0.0  ;;  %v81_v26 = vmul.f32 %v1415_v22, %v1415_v22  ;;  %v80_v27 = vmul.f32 %v1420_v23, %v1420_v23  ;;  %v83_v32 = vmul.f32 %v1431_v28, %v1431_v28  ;;  %v1468_v41 = vld [vmem:[%s2742_s0 + $0x70] sm:$0xff]  ;;  %v1479_v46 = vld [vmem:[%s2742_s0 + $0x88] sm:$0xff]  ;;  %v24_v47 = vld [vmem:[%s2742_s0 + $0x80] sm:$0xff] }
   0x7   :  { %v155_v25 = vsel %vm136_vm0, %v78_v21, 0.0  ;;  %v82_v33 = vmul.f32 %v1436_v29, %v1436_v29  ;;  %v85_v38 = vmul.f32 %v1447_v34, %v1447_v34  ;;  %v84_v39 = vmul.f32 %v1452_v35, %v1452_v35  ;;  %v27_v52 = vld [vmem:[%s2742_s0 + $0x98] sm:$0xff]  ;;  %v26_v53 = vld [vmem:[%s2742_s0 + $0x90] sm:$0xff]  ;;  %v29_v58 = vld [vmem:[%s2742_s0 + $0xa8] sm:$0xff] }
   0x8   :  { %v164_v30 = vsel %vm136_vm0, %v81_v26, 0.0  ;;  %v161_v31 = vsel %vm136_vm0, %v80_v27, 0.0  ;;  %v170_v36 = vsel %vm136_vm0, %v83_v32, 0.0  ;;  %v87_v44 = vmul.f32 %v1463_v40, %v1463_v40  ;;  %v28_v59 = vld [vmem:[%s2742_s0 + $0xa0] sm:$0xff]  ;;  %v31_v3 = vld [vmem:[%s2742_s0 + $0xb8] sm:$0xff]  ;;  %v30_v4 = vld [vmem:[%s2742_s0 + $0xb0] sm:$0xff] }
   0x9   :  { %147 = vadd.xlane.f32.xlu1 %v146_v12  ;;  %141 = vadd.xlane.f32.xlu0 %v140_v13  ;;  %v167_v37 = vsel %vm136_vm0, %v82_v33, 0.0  ;;  %v176_v42 = vsel %vm136_vm0, %v85_v38, 0.0  ;;  %v173_v43 = vsel %vm136_vm0, %v84_v39, 0.0  ;;  %v86_v45 = vmul.f32 %v1468_v41, %v1468_v41  ;;  %v33_v12 = vld [vmem:[%s2742_s0 + $0xc8] sm:$0xff]  ;;  %v32_v13 = vld [vmem:[%s2742_s0 + $0xc0] sm:$0xff]  ;;  %v35_v20 = vld [vmem:[%s2742_s0 + $0xd8] sm:$0xff] }
   0xa   :  { %v182_v48 = vsel %vm136_vm0, %v87_v44, 0.0  ;;  %v89_v50 = vmul.f32 %v1479_v46, %v1479_v46  ;;  %v88_v51 = vmul.f32 %v24_v47, %v24_v47  ;;  %v91_v56 = vmul.f32 %v27_v52, %v27_v52  ;;  %v34_v21 = vld [vmem:[%s2742_s0 + $0xd0] sm:$0xff]  ;;  %v39_v38 = vld [vmem:[%s2742_s0 + $0xf8] sm:$0xff]  ;;  %v41_v47 = vld [vmem:[%s2742_s0 + $0x108] sm:$0xff] }
   0xb   :  { %v179_v49 = vsel %vm136_vm0, %v86_v45, 0.0  ;;  %v90_v57 = vmul.f32 %v26_v53, %v26_v53  ;;  %v93_v62 = vmul.f32 %v29_v58, %v29_v58  ;;  %v92_v63 = vmul.f32 %v28_v59, %v28_v59  ;;  %v38_v39 = vld [vmem:[%s2742_s0 + $0xf0] sm:$0xff]  ;;  %v43_v53 = vld [vmem:[%s2742_s0 + $0x118] sm:$0xff]  ;;  %v45_v59 = vld [vmem:[%s2742_s0 + $0x128] sm:$0xff] }
   0xc   :  { %v188_v54 = vsel %vm136_vm0, %v89_v50, 0.0  ;;  %v185_v55 = vsel %vm136_vm0, %v88_v51, 0.0  ;;  %v194_v60 = vsel %vm136_vm0, %v91_v56, 0.0  ;;  %v95_v10 = vmul.f32 %v31_v3, %v31_v3 }
   0xd   :  { %153 = vadd.xlane.f32.xlu1 %v152_v18  ;;  %150 = vadd.xlane.f32.xlu0 %v149_v19  ;;  %v191_v61 = vsel %vm136_vm0, %v90_v57, 0.0  ;;  %v200_v5 = vsel %vm136_vm0, %v93_v62, 0.0  ;;  %v197_v7 = vsel %vm136_vm0, %v92_v63, 0.0  ;;  %v94_v11 = vmul.f32 %v30_v4, %v30_v4  ;;  %v47_v4 = vld [vmem:[%s2742_s0 + $0x138] sm:$0xff] }
   0xe   :  { %v206_v14 = vsel %vm136_vm0, %v95_v10, 0.0  ;;  %v97_v18 = vmul.f32 %v33_v12, %v33_v12  ;;  %v96_v19 = vmul.f32 %v32_v13, %v32_v13  ;;  %v99_v26 = vmul.f32 %v35_v20, %v35_v20  ;;  %v49_v13 = vld [vmem:[%s2742_s0 + $0x148] sm:$0xff] }
   0xf   :  { %v203_v15 = vsel %vm136_vm0, %v94_v11, 0.0  ;;  %v98_v27 = vmul.f32 %v34_v21, %v34_v21  ;;  %v103_v44 = vmul.f32 %v39_v38, %v39_v38  ;;  %v102_v45 = vmul.f32 %v38_v39, %v38_v39  ;;  %v51_v21 = vld [vmem:[%s2742_s0 + $0x158] sm:$0xff] }
  0x10   :  { %v218_v32 = vsel %vm136_vm0, %v99_v26, 0.0  ;;  %v105_v51 = vmul.f32 %v41_v47, %v41_v47  ;;  %v107_v57 = vmul.f32 %v43_v53, %v43_v53  ;;  %v109_v63 = vmul.f32 %v45_v59, %v45_v59  ;;  %v55_v39 = vld [vmem:[%s2742_s0 + $0x178] sm:$0xff] }
  0x11   :  { %159 = vadd.xlane.f32.xlu1 %v158_v24  ;;  %156 = vadd.xlane.f32.xlu0 %v155_v25  ;;  %v212_v24 = vsel %vm136_vm0, %v97_v18, 0.0  ;;  %v209_v25 = vsel %vm136_vm0, %v96_v19, 0.0  ;;  %v215_v33 = vsel %vm136_vm0, %v98_v27, 0.0  ;;  %v227_v50 = vsel %vm136_vm0, %v102_v45, 0.0 }
  0x12   :  { %v111_v11 = vmul.f32 %v47_v4, %v47_v4  ;;  %v113_v19 = vmul.f32 %v49_v13, %v49_v13  ;;  %v115_v27 = vmul.f32 %v51_v21, %v51_v21  ;;  %v119_v45 = vmul.f32 %v55_v39, %v55_v39 }
  0x15   :  { %165 = vadd.xlane.f32.xlu1 %v164_v30  ;;  %162 = vadd.xlane.f32.xlu0 %v161_v31  ;;  %v37_v30 = vld [vmem:[%s2742_s0 + $0xe8] sm:$0xff]  ;;  %v36_v31 = vld [vmem:[%s2742_s0 + $0xe0] sm:$0xff] }
  0x19   :  { %171 = vadd.xlane.f32.xlu1 %v170_v36  ;;  %168 = vadd.xlane.f32.xlu0 %v167_v37  ;;  %v101_v36 = vmul.f32 %v37_v30, %v37_v30  ;;  %v100_v37 = vmul.f32 %v36_v31, %v36_v31  ;;  %v53_v31 = vld [vmem:[%s2742_s0 + $0x168] sm:$0xff] }
  0x1d   :  { %177 = vadd.xlane.f32.xlu1 %v176_v42  ;;  %174 = vadd.xlane.f32.xlu0 %v173_v43  ;;  %v224_v42 = vsel %vm136_vm0, %v101_v36, 0.0  ;;  %v221_v43 = vsel %vm136_vm0, %v100_v37, 0.0  ;;  %v117_v37 = vmul.f32 %v53_v31, %v53_v31 }
  0x21   :  { %183 = vadd.xlane.f32.xlu1 %v182_v48  ;;  %180 = vadd.xlane.f32.xlu0 %v179_v49  ;;  %v40_v48 = vld [vmem:[%s2742_s0 + $0x100] sm:$0xff]  ;;  %v230_v49 = vsel %vm136_vm0, %v103_v44, 0.0 }
  0x22   :  { %v104_v52 = vmul.f32 %v40_v48, %v40_v48  ;;  %v57_v48 = vld [vmem:[%s2742_s0 + $0x188] sm:$0xff] }
  0x24   :  { %v233_v56 = vsel %vm136_vm0, %v104_v52, 0.0  ;;  %v121_v52 = vmul.f32 %v57_v48, %v57_v48 }
  0x25   :  { %189 = vadd.xlane.f32.xlu1 %v188_v54  ;;  %186 = vadd.xlane.f32.xlu0 %v185_v55  ;;  %v42_v54 = vld [vmem:[%s2742_s0 + $0x110] sm:$0xff]  ;;  %v236_v55 = vsel %vm136_vm0, %v105_v51, 0.0 }
  0x26   :  { %v106_v58 = vmul.f32 %v42_v54, %v42_v54  ;;  %v59_v54 = vld [vmem:[%s2742_s0 + $0x198] sm:$0xff] }
  0x28   :  { %v239_v62 = vsel %vm136_vm0, %v106_v58, 0.0  ;;  %v123_v58 = vmul.f32 %v59_v54, %v59_v54 }
  0x29   :  { %195 = vadd.xlane.f32.xlu1 %v194_v60  ;;  %192 = vadd.xlane.f32.xlu0 %v191_v61  ;;  %v44_v60 = vld [vmem:[%s2742_s0 + $0x120] sm:$0xff]  ;;  %v242_v61 = vsel %vm136_vm0, %v107_v57, 0.0 }
  0x2a   :  { %v108_v3 = vmul.f32 %v44_v60, %v44_v60  ;;  %v61_v60 = vld [vmem:[%s2742_s0 + $0x1a8] sm:$0xff] }
  0x2c   :  { %v245_v10 = vsel %vm136_vm0, %v108_v3, 0.0  ;;  %v125_v3 = vmul.f32 %v61_v60, %v61_v60 }
  0x2d   :  { %201 = vadd.xlane.f32.xlu1 %v200_v5  ;;  %198 = vadd.xlane.f32.xlu0 %v197_v7  ;;  %v46_v5 = vld [vmem:[%s2742_s0 + $0x130] sm:$0xff]  ;;  %v248_v7 = vsel %vm136_vm0, %v109_v63, 0.0 }
  0x2e   :  { %v110_v12 = vmul.f32 %v46_v5, %v46_v5  ;;  %v63_v5 = vld [vmem:[%s2742_s0 + $0x1b8] sm:$0xff] }
  0x30   :  { %v251_v18 = vsel %vm136_vm0, %v110_v12, 0.0  ;;  %v127_v12 = vmul.f32 %v63_v5, %v63_v5 }
  0x31   :  { %207 = vadd.xlane.f32.xlu1 %v206_v14  ;;  %204 = vadd.xlane.f32.xlu0 %v203_v15  ;;  %v48_v14 = vld [vmem:[%s2742_s0 + $0x140] sm:$0xff]  ;;  %v254_v15 = vsel %vm136_vm0, %v111_v11, 0.0 }
  0x32   :  { %v112_v20 = vmul.f32 %v48_v14, %v48_v14  ;;  %v65_v14 = vld [vmem:[%s2742_s0 + $0x1c8] sm:$0xff] }
  0x34   :  { %v257_v26 = vsel %vm136_vm0, %v112_v20, 0.0  ;;  %v129_v20 = vmul.f32 %v65_v14, %v65_v14 }
  0x35   :  { %213 = vadd.xlane.f32.xlu1 %v212_v24  ;;  %210 = vadd.xlane.f32.xlu0 %v209_v25  ;;  %v50_v24 = vld [vmem:[%s2742_s0 + $0x150] sm:$0xff]  ;;  %v260_v25 = vsel %vm136_vm0, %v113_v19, 0.0 }
  0x36   :  { %v114_v30 = vmul.f32 %v50_v24, %v50_v24  ;;  %v67_v24 = vld [vmem:[%s2742_s0 + $0x1d8] sm:$0xff] }
  0x38   :  { %v263_v36 = vsel %vm136_vm0, %v114_v30, 0.0  ;;  %v131_v30 = vmul.f32 %v67_v24, %v67_v24 }
  0x39   :  { %219 = vadd.xlane.f32.xlu1 %v218_v32  ;;  %216 = vadd.xlane.f32.xlu0 %v215_v33  ;;  %v52_v32 = vld [vmem:[%s2742_s0 + $0x160] sm:$0xff]  ;;  %v266_v33 = vsel %vm136_vm0, %v115_v27, 0.0 }
  0x3a   :  { %v116_v38 = vmul.f32 %v52_v32, %v52_v32  ;;  %v69_v32 = vld [vmem:[%s2742_s0 + $0x1e8] sm:$0xff] }
  0x3c   :  { %v269_v44 = vsel %vm136_vm0, %v116_v38, 0.0  ;;  %v133_v38 = vmul.f32 %v69_v32, %v69_v32 }
  0x3d   :  { %225 = vadd.xlane.f32.xlu1 %v224_v42  ;;  %222 = vadd.xlane.f32.xlu0 %v221_v43  ;;  %v54_v42 = vld [vmem:[%s2742_s0 + $0x170] sm:$0xff]  ;;  %v272_v43 = vsel %vm136_vm0, %v117_v37, 0.0 }
  0x3e   :  { %v118_v47 = vmul.f32 %v54_v42, %v54_v42  ;;  %v71_v42 = vld [vmem:[%s2742_s0 + $0x1f8] sm:$0xff] }
  0x40   :  { %v275_v51 = vsel %vm136_vm0, %v118_v47, 0.0  ;;  %v135_v47 = vmul.f32 %v71_v42, %v71_v42 }
  0x41   :  { %231 = vadd.xlane.f32.xlu1 %v230_v49  ;;  %228 = vadd.xlane.f32.xlu0 %v227_v50  ;;  %v56_v49 = vld [vmem:[%s2742_s0 + $0x180] sm:$0xff]  ;;  %v278_v50 = vsel %vm136_vm0, %v119_v45, 0.0 }
  0x42   :  { %v120_v53 = vmul.f32 %v56_v49, %v56_v49  ;;  %v326_v49 = vsel %vm136_vm0, %v135_v47, 0.0 }
  0x44   :  { %v281_v57 = vsel %vm136_vm0, %v120_v53, 0.0 }
  0x45   :  { %237 = vadd.xlane.f32.xlu1 %v236_v55  ;;  %234 = vadd.xlane.f32.xlu0 %v233_v56  ;;  %v58_v55 = vld [vmem:[%s2742_s0 + $0x190] sm:$0xff]  ;;  %v284_v56 = vsel %vm136_vm0, %v121_v52, 0.0 }
  0x46   :  { %v122_v59 = vmul.f32 %v58_v55, %v58_v55 }
  0x48   :  { %v287_v63 = vsel %vm136_vm0, %v122_v59, 0.0 }
  0x49   :  { %243 = vadd.xlane.f32.xlu1 %v242_v61  ;;  %240 = vadd.xlane.f32.xlu0 %v239_v62  ;;  %v60_v61 = vld [vmem:[%s2742_s0 + $0x1a0] sm:$0xff]  ;;  %v290_v62 = vsel %vm136_vm0, %v123_v58, 0.0 }
  0x4a   :  { %v124_v4 = vmul.f32 %v60_v61, %v60_v61 }
  0x4c   :  { %v293_v11 = vsel %vm136_vm0, %v124_v4, 0.0 }
  0x4d   :  { %249 = vadd.xlane.f32.xlu1 %v248_v7  ;;  %246 = vadd.xlane.f32.xlu0 %v245_v10  ;;  %v62_v7 = vld [vmem:[%s2742_s0 + $0x1b0] sm:$0xff]  ;;  %v296_v10 = vsel %vm136_vm0, %v125_v3, 0.0 }
  0x4e   :  { %v126_v13 = vmul.f32 %v62_v7, %v62_v7 }
  0x50   :  { %v299_v19 = vsel %vm136_vm0, %v126_v13, 0.0 }
  0x51   :  { %255 = vadd.xlane.f32.xlu1 %v254_v15  ;;  %252 = vadd.xlane.f32.xlu0 %v251_v18  ;;  %v64_v15 = vld [vmem:[%s2742_s0 + $0x1c0] sm:$0xff]  ;;  %v302_v18 = vsel %vm136_vm0, %v127_v12, 0.0 }
  0x52   :  { %v128_v21 = vmul.f32 %v64_v15, %v64_v15 }
  0x54   :  { %v305_v27 = vsel %vm136_vm0, %v128_v21, 0.0 }
  0x55   :  { %261 = vadd.xlane.f32.xlu1 %v260_v25  ;;  %258 = vadd.xlane.f32.xlu0 %v257_v26  ;;  %v66_v25 = vld [vmem:[%s2742_s0 + $0x1d0] sm:$0xff]  ;;  %v308_v26 = vsel %vm136_vm0, %v129_v20, 0.0 }
  0x56   :  { %v130_v31 = vmul.f32 %v66_v25, %v66_v25 }
  0x58   :  { %v311_v37 = vsel %vm136_vm0, %v130_v31, 0.0 }
  0x59   :  { %267 = vadd.xlane.f32.xlu1 %v266_v33  ;;  %264 = vadd.xlane.f32.xlu0 %v263_v36  ;;  %v68_v33 = vld [vmem:[%s2742_s0 + $0x1e0] sm:$0xff]  ;;  %v314_v36 = vsel %vm136_vm0, %v131_v30, 0.0 }
  0x5a   :  { %v132_v39 = vmul.f32 %v68_v33, %v68_v33 }
  0x5c   :  { %v317_v45 = vsel %vm136_vm0, %v132_v39, 0.0 }
  0x5d   :  { %273 = vadd.xlane.f32.xlu1 %v272_v43  ;;  %270 = vadd.xlane.f32.xlu0 %v269_v44  ;;  %v70_v43 = vld [vmem:[%s2742_s0 + $0x1f0] sm:$0xff]  ;;  %v320_v44 = vsel %vm136_vm0, %v133_v38, 0.0 }
  0x5e   :  { %v134_v48 = vmul.f32 %v70_v43, %v70_v43 }
  0x61   :  { %279 = vadd.xlane.f32.xlu1 %v278_v50  ;;  %276 = vadd.xlane.f32.xlu0 %v275_v51  ;;  %v323_v50 = vsel %vm136_vm0, %v134_v48, 0.0 }
  0x65   :  { %285 = vadd.xlane.f32.xlu1 %v284_v56  ;;  %282 = vadd.xlane.f32.xlu0 %v281_v57 }
  0x69   :  { %291 = vadd.xlane.f32.xlu1 %v290_v62  ;;  %288 = vadd.xlane.f32.xlu0 %v287_v63 }
  0x6d   :  { %297 = vadd.xlane.f32.xlu1 %v296_v10  ;;  %294 = vadd.xlane.f32.xlu0 %v293_v11 }
  0x71   :  { %303 = vadd.xlane.f32.xlu1 %v302_v18  ;;  %300 = vadd.xlane.f32.xlu0 %v299_v19 }
  0x75   :  { %309 = vadd.xlane.f32.xlu1 %v308_v26  ;;  %306 = vadd.xlane.f32.xlu0 %v305_v27 }
  0x79   :  { %315 = vadd.xlane.f32.xlu1 %v314_v36  ;;  %312 = vadd.xlane.f32.xlu0 %v311_v37 }
  0x7d   :  { %321 = vadd.xlane.f32.xlu1 %v320_v44  ;;  %318 = vadd.xlane.f32.xlu0 %v317_v45 }
  0x81   :  { %327 = vadd.xlane.f32.xlu1 %v326_v49  ;;  %324 = vadd.xlane.f32.xlu0 %v323_v50 }
  0x92   :  { %v145_v51 = vpop.xlane.xlu1 %144  ;;  %v139_v52 = vpop.xlane.xlu0 %138 }
  0x93   :  { %1037 = vrsqrt.f32 %v145_v51  ;;  %vm345_vm1 = vcmp.eq.f32.partialorder %v145_v51, inf  ;;  %vm347_vm2 = vcmp.eq.f32.partialorder %v145_v51, 0.0  ;;  %v348_v58 = vand.u32 2147483648, %v145_v51 }
  0x94   :  { %1039 = vrsqrt.f32 %v139_v52  ;;  %vm331_vm3 = vcmp.eq.f32.partialorder %v139_v52, inf  ;;  %vm333_vm4 = vcmp.eq.f32.partialorder %v139_v52, 0.0  ;;  %v334_v61 = vand.u32 2147483648, %v139_v52 }
  0x96   :  { %v148_v53 = vpop.xlane.xlu1 %147  ;;  %v142_v54 = vpop.xlane.xlu0 %141 }
  0x97   :  { %1041 = vrsqrt.f32 %v148_v53  ;;  %vm352_vm5 = vcmp.eq.f32.partialorder %v148_v53, inf  ;;  %vm354_vm6 = vcmp.eq.f32.partialorder %v148_v53, 0.0  ;;  %v355_v5 = vand.u32 2147483648, %v148_v53 }
  0x98   :  { %1043 = vrsqrt.f32 %v142_v54  ;;  %vm338_vm7 = vcmp.eq.f32.partialorder %v142_v54, inf  ;;  %vm340_vm8 = vcmp.eq.f32.partialorder %v142_v54, 0.0  ;;  %v341_v12 = vand.u32 2147483648, %v142_v54 }
  0x9a   :  { %v1674_v55 = vpop.xlane.xlu1 %153  ;;  %v1676_v56 = vpop.xlane.xlu0 %150 }
  0x9b   :  { %1045 = vrsqrt.f32 %v1674_v55  ;;  %vm366_vm9 = vcmp.eq.f32.partialorder %v1674_v55, inf  ;;  %vm368_vm10 = vcmp.eq.f32.partialorder %v1674_v55, 0.0  ;;  %v369_v26 = vand.u32 2147483648, %v1674_v55 }
  0x9c   :  { %1047 = vrsqrt.f32 %v1676_v56  ;;  %vm359_vm11 = vcmp.eq.f32.partialorder %v1676_v56, inf  ;;  %vm361_vm12 = vcmp.eq.f32.partialorder %v1676_v56, 0.0  ;;  %v362_v44 = vand.u32 2147483648, %v1676_v56 }
  0x9d   :  { %v1038_v57 = vpop.eup %1037 }
  0x9e   :  { %v1040_v59 = vpop.eup %1039  ;;  %v344_v60 = vmul.f32 %v1038_v57, %v145_v51  ;;  %v1680_v62 = vpop.xlane.xlu1 %159 }
  0x9f   :  { %v1682_v63 = vpop.xlane.xlu0 %156  ;;  %v330_v3 = vmul.f32 %v1040_v59, %v139_v52  ;;  %1049 = vrsqrt.f32 %v1680_v62  ;;  %vm380_vm13 = vcmp.eq.f32.partialorder %v1680_v62, inf  ;;  %vm382_vm14 = vcmp.eq.f32.partialorder %v1680_v62, 0.0 }
  0xa0   :  { %v346_v4 = vsel %vm345_vm1, %v145_v51, %v344_v60  ;;  %1051 = vrsqrt.f32 %v1682_v63  ;;  %v383_v47 = vand.u32 2147483648, %v1680_v62  ;;  %vm373_vm15 = vcmp.eq.f32.partialorder %v1682_v63, inf }
  0xa1   :  { %v1042_v7 = vpop.eup %1041  ;;  %v349_v10 = vsel %vm347_vm2, %v348_v58, %v346_v4  ;;  %v332_v11 = vsel %vm331_vm3, %v139_v52, %v330_v3  ;;  %vm375_vm1 = vcmp.eq.f32.partialorder %v1682_v63, 0.0  ;;  %v376_v60 = vand.u32 2147483648, %v1682_v63 }
  0xa2   :  { %v1044_v13 = vpop.eup %1043  ;;  %v779_v14 = vmax.f32 %v349_v10, 1e-12  ;;  %v335_v15 = vsel %vm333_vm4, %v334_v61, %v332_v11  ;;  %v351_v18 = vmul.f32 %v1042_v7, %v148_v53  ;;  %v1689_v19 = vpop.xlane.xlu1 %165 }
  0xa3   :  { %v1691_v20 = vpop.xlane.xlu0 %162  ;;  %v777_v21 = vmax.f32 %v335_v15, 1e-12  ;;  %v337_v24 = vmul.f32 %v1044_v13, %v142_v54  ;;  %1053 = vrsqrt.f32 %v1689_v19  ;;  %vm394_vm2 = vcmp.eq.f32.partialorder %v1689_v19, inf }
  0xa4   :  { %1055 = vrcp.f32 %v779_v14  ;;  %v353_v25 = vsel %vm352_vm5, %v148_v53, %v351_v18  ;;  %vm396_vm3 = vcmp.eq.f32.partialorder %v1689_v19, 0.0  ;;  %v397_v18 = vand.u32 2147483648, %v1689_v19 }
  0xa5   :  { %v1046_v27 = vpop.eup %1045  ;;  %1057 = vrcp.f32 %v777_v21  ;;  %v356_v30 = vsel %vm354_vm6, %v355_v5, %v353_v25  ;;  %v339_v31 = vsel %vm338_vm7, %v142_v54, %v337_v24  ;;  %vm387_vm4 = vcmp.eq.f32.partialorder %v1691_v20, inf }
  0xa6   :  { %v1048_v32 = vpop.eup %1047  ;;  %v780_v33 = vmax.f32 %v356_v30, 1e-12  ;;  %v342_v36 = vsel %vm340_vm8, %v341_v12, %v339_v31  ;;  %v365_v37 = vmul.f32 %v1046_v27, %v1674_v55  ;;  %1059 = vrsqrt.f32 %v1691_v20  ;;  %v1704_v38 = vpop.xlane.xlu1 %171 }
  0xa7   :  { %v1706_v39 = vpop.xlane.xlu0 %168  ;;  %v778_v42 = vmax.f32 %v342_v36, 1e-12  ;;  %v358_v43 = vmul.f32 %v1048_v32, %v1676_v56  ;;  %vm389_vm5 = vcmp.eq.f32.partialorder %v1691_v20, 0.0  ;;  %vm408_vm6 = vcmp.eq.f32.partialorder %v1704_v38, inf }
  0xa8   :  { %1061 = vrcp.f32 %v780_v33  ;;  %v367_v45 = vsel %vm366_vm9, %v1674_v55, %v365_v37  ;;  %vm410_vm7 = vcmp.eq.f32.partialorder %v1704_v38, 0.0  ;;  %v411_v36 = vand.u32 2147483648, %v1704_v38 }
  0xa9   :  { %v1050_v48 = vpop.eup %1049  ;;  %1063 = vrcp.f32 %v778_v42  ;;  %v370_v49 = vsel %vm368_vm10, %v369_v26, %v367_v45  ;;  %v360_v50 = vsel %vm359_vm11, %v1676_v56, %v358_v43  ;;  %vm401_vm8 = vcmp.eq.f32.partialorder %v1706_v39, inf }
  0xaa   :  { %v1052_v51 = vpop.eup %1051  ;;  %v782_v52 = vmax.f32 %v370_v49, 1e-12  ;;  %v363_v53 = vsel %vm361_vm12, %v362_v44, %v360_v50  ;;  %v379_v54 = vmul.f32 %v1050_v48, %v1680_v62  ;;  %1065 = vrsqrt.f32 %v1704_v38  ;;  %v1726_v57 = vpop.xlane.xlu1 %177 }
  0xab   :  { %v1728_v58 = vpop.xlane.xlu0 %174  ;;  %v781_v55 = vmax.f32 %v363_v53, 1e-12  ;;  %v372_v59 = vmul.f32 %v1052_v51, %v1682_v63  ;;  %1067 = vrsqrt.f32 %v1706_v39  ;;  %vm403_vm9 = vcmp.eq.f32.partialorder %v1706_v39, 0.0 }
  0xac   :  { %1069 = vrcp.f32 %v782_v52  ;;  %v381_v56 = vsel %vm380_vm13, %v1680_v62, %v379_v54  ;;  %vm422_vm10 = vcmp.eq.f32.partialorder %v1726_v57, inf  ;;  %vm424_vm11 = vcmp.eq.f32.partialorder %v1726_v57, 0.0 }
  0xad   :  { %v1054_v61 = vpop.eup %1053  ;;  %1071 = vrcp.f32 %v781_v55  ;;  %v384_v3 = vsel %vm382_vm14, %v383_v47, %v381_v56  ;;  %v374_v4 = vsel %vm373_vm15, %v1682_v63, %v372_v59  ;;  %v404_v47 = vand.u32 2147483648, %v1706_v39 }
  0xae   :  { %v1056_v5 = vpop.eup %1055  ;;  %v784_v7 = vmax.f32 %v384_v3, 1e-12  ;;  %v377_v10 = vsel %vm375_vm1, %v376_v60, %v374_v4  ;;  %v393_v11 = vmul.f32 %v1054_v61, %v1689_v19  ;;  %1073 = vrsqrt.f32 %v1726_v57  ;;  %v1746_v12 = vpop.xlane.xlu1 %183 }
  0xaf   :  { %v1748_v13 = vpop.xlane.xlu0 %180  ;;  %v1058_v14 = vpop.eup %1057  ;;  %v846_v62 = vmul.f32 %v1056_v5, %v1353_v0  ;;  %v783_v15 = vmax.f32 %v377_v10, 1e-12  ;;  %v425_v56 = vand.u32 2147483648, %v1726_v57  ;;  %vm415_vm12 = vcmp.eq.f32.partialorder %v1728_v58, inf }
  0xb0   :  { %v1060_v63 = vpop.eup %1059  ;;  %v842_v21 = vmul.f32 %v1058_v14, %v1358_v1  ;;  %1075 = vrcp.f32 %v784_v7  ;;  %v395_v24 = vsel %vm394_vm2, %v1689_v19, %v393_v11  ;;  %v390_v1 = vand.u32 2147483648, %v1691_v20 }
  0xb1   :  { %971 = vst.msk [vmem:[%s2743_s1 + $0x10] sm:$0xff] %vm136_vm0, %v846_v62  ;;  %1077 = vrcp.f32 %v783_v15  ;;  %v398_v0 = vsel %vm396_vm3, %v397_v18, %v395_v24  ;;  %v386_v25 = vmul.f32 %v1060_v63, %v1691_v20  ;;  %vm417_vm13 = vcmp.eq.f32.partialorder %v1728_v58, 0.0 }
  0xb2   :  { %v1062_v26 = vpop.eup %1061  ;;  %969 = vst.msk [vmem:[%s2743_s1] sm:$0xff] %vm136_vm0, %v842_v21  ;;  %v786_v27 = vmax.f32 %v398_v0, 1e-12  ;;  %1079 = vrsqrt.f32 %v1728_v58  ;;  %v1773_v30 = vpop.xlane.xlu1 %189  ;;  %v418_v3 = vand.u32 2147483648, %v1728_v58  ;;  %vm436_vm14 = vcmp.eq.f32.partialorder %v1746_v12, inf }
  0xb3   :  { %v1775_v19 = vpop.xlane.xlu0 %186  ;;  %v1064_v31 = vpop.eup %1063  ;;  %v848_v32 = vmul.f32 %v1062_v26, %v1363_v2  ;;  %v388_v33 = vsel %vm387_vm4, %v1691_v20, %v386_v25  ;;  %1081 = vrsqrt.f32 %v1746_v12  ;;  %vm438_vm15 = vcmp.eq.f32.partialorder %v1746_v12, 0.0 }
  0xb4   :  { %v1066_v37 = vpop.eup %1065  ;;  %v844_v42 = vmul.f32 %v1064_v31, %v1374_v6  ;;  %1083 = vrcp.f32 %v786_v27  ;;  %v391_v43 = vsel %vm389_vm5, %v390_v1, %v388_v33  ;;  %v439_v63 = vand.u32 2147483648, %v1746_v12 }
  0xb5   :  { %v1068_v44 = vpop.eup %1067  ;;  %972 = vst.msk [vmem:[%s2743_s1 + $0x18] sm:$0xff] %vm136_vm0, %v848_v32  ;;  %v785_v2 = vmax.f32 %v391_v43, 1e-12  ;;  %v407_v45 = vmul.f32 %v1066_v37, %v1704_v38  ;;  %1085 = vrsqrt.f32 %v1748_v13  ;;  %vm429_vm1 = vcmp.eq.f32.partialorder %v1748_v13, inf }
  0xb6   :  { %v1070_v6 = vpop.eup %1069  ;;  %970 = vst.msk [vmem:[%s2743_s1 + $0x8] sm:$0xff] %vm136_vm0, %v844_v42  ;;  %v400_v20 = vmul.f32 %v1068_v44, %v1706_v39  ;;  %1087 = vrsqrt.f32 %v1773_v30  ;;  %v1802_v48 = vpop.xlane.xlu1 %195  ;;  %vm431_vm2 = vcmp.eq.f32.partialorder %v1748_v13, 0.0  ;;  %v432_v26 = vand.u32 2147483648, %v1748_v13 }
  0xb7   :  { %v1804_v49 = vpop.xlane.xlu0 %192  ;;  %v1072_v50 = vpop.eup %1071  ;;  %v852_v51 = vmul.f32 %v1070_v6, %v1381_v8  ;;  %1089 = vrcp.f32 %v785_v2  ;;  %v409_v52 = vsel %vm408_vm6, %v1704_v38, %v407_v45  ;;  %vm450_vm3 = vcmp.eq.f32.partialorder %v1773_v30, inf }
  0xb8   :  { %v1074_v53 = vpop.eup %1073  ;;  %v850_v54 = vmul.f32 %v1072_v50, %v1386_v9  ;;  %v412_v55 = vsel %vm410_vm7, %v411_v36, %v409_v52  ;;  %v402_v59 = vsel %vm401_vm8, %v1706_v39, %v400_v20  ;;  %1091 = vrsqrt.f32 %v1775_v19 }
  0xb9   :  { %974 = vst.msk [vmem:[%s2743_s1 + $0x28] sm:$0xff] %vm136_vm0, %v852_v51  ;;  %v788_v8 = vmax.f32 %v412_v55, 1e-12  ;;  %v405_v60 = vsel %vm403_vm9, %v404_v47, %v402_v59  ;;  %v421_v9 = vmul.f32 %v1074_v53, %v1726_v57  ;;  %v453_v2 = vand.u32 2147483648, %v1773_v30 }
  0xba   :  { %v1076_v38 = vpop.eup %1075  ;;  %973 = vst.msk [vmem:[%s2743_s1 + $0x20] sm:$0xff] %vm136_vm0, %v850_v54  ;;  %v787_v61 = vmax.f32 %v405_v60, 1e-12  ;;  %v1833_v4 = vpop.xlane.xlu1 %201  ;;  %vm452_vm4 = vcmp.eq.f32.partialorder %v1773_v30, 0.0  ;;  %vm443_vm5 = vcmp.eq.f32.partialorder %v1775_v19, inf  ;;  %vm445_vm6 = vcmp.eq.f32.partialorder %v1775_v19, 0.0 }
  0xbb   :  { %v1835_v39 = vpop.xlane.xlu0 %198  ;;  %v1078_v5 = vpop.eup %1077  ;;  %v856_v7 = vmul.f32 %v1076_v38, %v1399_v16  ;;  %1093 = vrcp.f32 %v788_v8  ;;  %v423_v10 = vsel %vm422_vm10, %v1726_v57, %v421_v9  ;;  %v446_v54 = vand.u32 2147483648, %v1775_v19 }
  0xbc   :  { %v1080_v11 = vpop.eup %1079  ;;  %v854_v14 = vmul.f32 %v1078_v5, %v1404_v17  ;;  %1095 = vrcp.f32 %v787_v61  ;;  %v426_v62 = vsel %vm424_vm11, %v425_v56, %v423_v10  ;;  %vm464_vm7 = vcmp.eq.f32.partialorder %v1802_v48, inf }
  0xbd   :  { %v1082_v15 = vpop.eup %1081  ;;  %976 = vst.msk [vmem:[%s2743_s1 + $0x38] sm:$0xff] %vm136_vm0, %v856_v7  ;;  %v790_v16 = vmax.f32 %v426_v62, 1e-12  ;;  %v414_v18 = vmul.f32 %v1080_v11, %v1728_v58  ;;  %1097 = vrsqrt.f32 %v1802_v48  ;;  %vm466_vm8 = vcmp.eq.f32.partialorder %v1802_v48, 0.0 }
  0xbe   :  { %v1084_v17 = vpop.eup %1083  ;;  %975 = vst.msk [vmem:[%s2743_s1 + $0x30] sm:$0xff] %vm136_vm0, %v854_v14  ;;  %v435_v57 = vmul.f32 %v1082_v15, %v1746_v12  ;;  %1099 = vrsqrt.f32 %v1804_v49  ;;  %v1861_v21 = vpop.xlane.xlu1 %207  ;;  %vm457_vm9 = vcmp.eq.f32.partialorder %v1804_v49, inf  ;;  %v460_v10 = vand.u32 2147483648, %v1804_v49 }
  0xbf   :  { %v1863_v24 = vpop.xlane.xlu0 %204  ;;  %v1086_v0 = vpop.eup %1085  ;;  %v860_v25 = vmul.f32 %v1084_v17, %v1415_v22  ;;  %1101 = vrcp.f32 %v790_v16  ;;  %v416_v1 = vsel %vm415_vm12, %v1728_v58, %v414_v18  ;;  %vm459_vm10 = vcmp.eq.f32.partialorder %v1804_v49, 0.0 }
  0xc0   :  { %v1088_v27 = vpop.eup %1087  ;;  %v419_v31 = vsel %vm417_vm13, %v418_v3, %v416_v1  ;;  %v437_v32 = vsel %vm436_vm14, %v1746_v12, %v435_v57  ;;  %v428_v33 = vmul.f32 %v1086_v0, %v1748_v13  ;;  %1103 = vrsqrt.f32 %v1833_v4 }
  0xc1   :  { %v1090_v22 = vpop.eup %1089  ;;  %978 = vst.msk [vmem:[%s2743_s1 + $0x48] sm:$0xff] %vm136_vm0, %v860_v25  ;;  %v789_v36 = vmax.f32 %v419_v31, 1e-12  ;;  %v440_v37 = vsel %vm438_vm15, %v439_v63, %v437_v32  ;;  %v449_v58 = vmul.f32 %v1088_v27, %v1773_v30  ;;  %vm478_vm11 = vcmp.eq.f32.partialorder %v1833_v4, inf }
  0xc2   :  { %v858_v42 = vmul.f32 %v1090_v22, %v1420_v23  ;;  %v792_v43 = vmax.f32 %v440_v37, 1e-12  ;;  %v430_v44 = vsel %vm429_vm1, %v1748_v13, %v428_v33  ;;  %v1890_v45 = vpop.xlane.xlu1 %213  ;;  %v1092_v23 = vpop.eup %1091  ;;  %vm480_vm12 = vcmp.eq.f32.partialorder %v1833_v4, 0.0 }
  0xc3   :  { %v1892_v6 = vpop.xlane.xlu0 %210  ;;  %1105 = vrcp.f32 %v789_v36  ;;  %v433_v12 = vsel %vm431_vm2, %v432_v26, %v430_v44  ;;  %v451_v20 = vsel %vm450_vm3, %v1773_v30, %v449_v58  ;;  %v442_v53 = vmul.f32 %v1092_v23, %v1775_v19 }
  0xc4   :  { %977 = vst.msk [vmem:[%s2743_s1 + $0x40] sm:$0xff] %vm136_vm0, %v858_v42  ;;  %1107 = vrcp.f32 %v792_v43  ;;  %v791_v47 = vmax.f32 %v433_v12, 1e-12  ;;  %v454_v50 = vsel %vm452_vm4, %v453_v2, %v451_v20  ;;  %vm471_vm13 = vcmp.eq.f32.partialorder %v1835_v39, inf }
  0xc5   :  { %v1094_v51 = vpop.eup %1093  ;;  %v794_v52 = vmax.f32 %v454_v50, 1e-12  ;;  %1109 = vrsqrt.f32 %v1835_v39  ;;  %v444_v60 = vsel %vm443_vm5, %v1775_v19, %v442_v53  ;;  %v467_v19 = vand.u32 2147483648, %v1802_v48 }
  0xc6   :  { %v1096_v13 = vpop.eup %1095  ;;  %v864_v30 = vmul.f32 %v1094_v51, %v1431_v28  ;;  %1111 = vrcp.f32 %v791_v47  ;;  %v1908_v55 = vpop.xlane.xlu1 %219  ;;  %v447_v28 = vsel %vm445_vm6, %v446_v54, %v444_v60  ;;  %vm473_vm14 = vcmp.eq.f32.partialorder %v1835_v39, 0.0 }
  0xc7   :  { %v1910_v59 = vpop.xlane.xlu0 %216  ;;  %v1098_v56 = vpop.eup %1097  ;;  %v862_v8 = vmul.f32 %v1096_v13, %v1436_v29  ;;  %1113 = vrcp.f32 %v794_v52  ;;  %v793_v29 = vmax.f32 %v447_v28, 1e-12  ;;  %v474_v22 = vand.u32 2147483648, %v1835_v39  ;;  %v1293_v52 = vld [vmem:[%s2742_s0 + $0x80] sm:$0xff] }
  0xc8   :  { %v1100_v9 = vpop.eup %1099  ;;  %980 = vst.msk [vmem:[%s2743_s1 + $0x58] sm:$0xff] %vm136_vm0, %v864_v30  ;;  %v463_v38 = vmul.f32 %v1098_v56, %v1802_v48  ;;  %1115 = vrsqrt.f32 %v1861_v21  ;;  %vm492_vm15 = vcmp.eq.f32.partialorder %v1861_v21, inf  ;;  %vm494_vm1 = vcmp.eq.f32.partialorder %v1861_v21, 0.0 }
  0xc9   :  { %v1102_v61 = vpop.eup %1101  ;;  %979 = vst.msk [vmem:[%s2743_s1 + $0x50] sm:$0xff] %vm136_vm0, %v862_v8  ;;  %v456_v3 = vmul.f32 %v1100_v9, %v1804_v49  ;;  %1117 = vrsqrt.f32 %v1863_v24  ;;  %v495_v43 = vand.u32 2147483648, %v1861_v21  ;;  %vm485_vm2 = vcmp.eq.f32.partialorder %v1863_v24, inf }
  0xca   :  { %v868_v5 = vmul.f32 %v1102_v61, %v1447_v34  ;;  %v465_v7 = vsel %vm464_vm7, %v1802_v48, %v463_v38  ;;  %v1933_v11 = vpop.xlane.xlu1 %225  ;;  %v1104_v62 = vpop.eup %1103  ;;  %1119 = vrcp.f32 %v793_v29  ;;  %v481_v48 = vand.u32 2147483648, %v1833_v4 }
  0xcb   :  { %v1935_v14 = vpop.xlane.xlu0 %222  ;;  %v468_v15 = vsel %vm466_vm8, %v467_v19, %v465_v7  ;;  %v458_v16 = vsel %vm457_vm9, %v1804_v49, %v456_v3  ;;  %v477_v63 = vmul.f32 %v1104_v62, %v1833_v4  ;;  %1121 = vrsqrt.f32 %v1890_v45  ;;  %v1295_v7 = vld [vmem:[%s2742_s0 + $0x90] sm:$0xff] }
  0xcc   :  { %982 = vst.msk [vmem:[%s2743_s1 + $0x68] sm:$0xff] %vm136_vm0, %v868_v5  ;;  %v796_v34 = vmax.f32 %v468_v15, 1e-12  ;;  %v461_v18 = vsel %vm459_vm10, %v460_v10, %v458_v16  ;;  %vm487_vm3 = vcmp.eq.f32.partialorder %v1863_v24, 0.0  ;;  %v488_v47 = vand.u32 2147483648, %v1863_v24 }
  0xcd   :  { %v1106_v17 = vpop.eup %1105  ;;  %v795_v57 = vmax.f32 %v461_v18, 1e-12  ;;  %v479_v25 = vsel %vm478_vm11, %v1833_v4, %v477_v63  ;;  %vm506_vm4 = vcmp.eq.f32.partialorder %v1890_v45, inf  ;;  %vm508_vm5 = vcmp.eq.f32.partialorder %v1890_v45, 0.0 }
  0xce   :  { %v1108_v49 = vpop.eup %1107  ;;  %v866_v0 = vmul.f32 %v1106_v17, %v1452_v35  ;;  %1123 = vrcp.f32 %v796_v34  ;;  %v1953_v1 = vpop.xlane.xlu1 %231  ;;  %v482_v32 = vsel %vm480_vm12, %v481_v48, %v479_v25  ;;  %v509_v28 = vand.u32 2147483648, %v1890_v45 }
  0xcf   :  { %v1955_v26 = vpop.xlane.xlu0 %228  ;;  %v1110_v27 = vpop.eup %1109  ;;  %v872_v31 = vmul.f32 %v1108_v49, %v1463_v40  ;;  %1125 = vrcp.f32 %v795_v57  ;;  %v798_v35 = vmax.f32 %v482_v32, 1e-12  ;;  %vm499_vm6 = vcmp.eq.f32.partialorder %v1892_v6, inf  ;;  %v1296_v49 = vld [vmem:[%s2742_s0 + $0xa8] sm:$0xff] }
  0xd0   :  { %v1112_v33 = vpop.eup %1111  ;;  %981 = vst.msk [vmem:[%s2743_s1 + $0x60] sm:$0xff] %vm136_vm0, %v866_v0  ;;  %v470_v4 = vmul.f32 %v1110_v27, %v1835_v39  ;;  %1127 = vrsqrt.f32 %v1892_v6  ;;  %vm501_vm7 = vcmp.eq.f32.partialorder %v1892_v6, 0.0  ;;  %v502_v3 = vand.u32 2147483648, %v1892_v6 }
  0xd1   :  { %v1114_v36 = vpop.eup %1113  ;;  %984 = vst.msk [vmem:[%s2743_s1 + $0x78] sm:$0xff] %vm136_vm0, %v872_v31  ;;  %v870_v40 = vmul.f32 %v1112_v33, %v1468_v41  ;;  %1129 = vrsqrt.f32 %v1908_v55  ;;  %vm520_vm8 = vcmp.eq.f32.partialorder %v1908_v55, inf  ;;  %vm522_vm9 = vcmp.eq.f32.partialorder %v1908_v55, 0.0 }
  0xd2   :  { %v1116_v37 = vpop.eup %1115  ;;  %v876_v58 = vmul.f32 %v1114_v36, %v1479_v46  ;;  %1131 = vrcp.f32 %v798_v35  ;;  %v472_v42 = vsel %vm471_vm13, %v1835_v39, %v470_v4  ;;  %v1979_v44 = vpop.xlane.xlu1 %237  ;;  %v523_v17 = vand.u32 2147483648, %v1908_v55 }
  0xd3   :  { %v1981_v2 = vpop.xlane.xlu0 %234  ;;  %v1118_v41 = vpop.eup %1117  ;;  %983 = vst.msk [vmem:[%s2743_s1 + $0x70] sm:$0xff] %vm136_vm0, %v870_v40  ;;  %v475_v46 = vsel %vm473_vm14, %v474_v22, %v472_v42  ;;  %v491_v12 = vmul.f32 %v1116_v37, %v1861_v21  ;;  %1133 = vrsqrt.f32 %v1910_v59  ;;  %vm513_vm10 = vcmp.eq.f32.partialorder %v1910_v59, inf }
  0xd4   :  { %986 = vst.msk [vmem:[%s2743_s1 + $0x88] sm:$0xff] %vm136_vm0, %v876_v58  ;;  %v797_v20 = vmax.f32 %v475_v46, 1e-12  ;;  %v484_v23 = vmul.f32 %v1118_v41, %v1863_v24  ;;  %v1120_v39 = vpop.eup %1119  ;;  %1135 = vrsqrt.f32 %v1933_v11  ;;  %vm515_vm11 = vcmp.eq.f32.partialorder %v1910_v59, 0.0 }
  0xd5   :  { %v493_v50 = vsel %vm492_vm15, %v1861_v21, %v491_v12  ;;  %v1122_v51 = vpop.eup %1121  ;;  %v874_v53 = vmul.f32 %v1293_v52, %v1120_v39  ;;  %v516_v33 = vand.u32 2147483648, %v1910_v59  ;;  %vm534_vm12 = vcmp.eq.f32.partialorder %v1933_v11, inf }
  0xd6   :  { %1137 = vrcp.f32 %v797_v20  ;;  %v496_v13 = vsel %vm494_vm1, %v495_v43, %v493_v50  ;;  %v486_v30 = vsel %vm485_vm2, %v1863_v24, %v484_v23  ;;  %v2013_v54 = vpop.xlane.xlu1 %243  ;;  %v505_v9 = vmul.f32 %v1122_v51, %v1890_v45  ;;  %v1294_v24 = vld [vmem:[%s2742_s0 + $0x98] sm:$0xff] }
  0xd7   :  { %v2015_v56 = vpop.xlane.xlu0 %240  ;;  %v800_v8 = vmax.f32 %v496_v13, 1e-12  ;;  %v489_v60 = vsel %vm487_vm3, %v488_v47, %v486_v30  ;;  %985 = vst.msk [vmem:[%s2743_s1 + $0x80] sm:$0xff] %vm136_vm0, %v874_v53  ;;  %1139 = vrsqrt.f32 %v1935_v14  ;;  %vm536_vm13 = vcmp.eq.f32.partialorder %v1933_v11, 0.0  ;;  %v1299_v30 = vld [vmem:[%s2742_s0 + $0xb0] sm:$0xff] }
  0xd8   :  { %v1124_v38 = vpop.eup %1123  ;;  %v799_v21 = vmax.f32 %v489_v60, 1e-12  ;;  %v507_v19 = vsel %vm506_vm4, %v1890_v45, %v505_v9  ;;  %v537_v41 = vand.u32 2147483648, %v1933_v11  ;;  %vm527_vm14 = vcmp.eq.f32.partialorder %v1935_v14, inf }
  0xd9   :  { %v1126_v61 = vpop.eup %1125  ;;  %v880_v29 = vmul.f32 %v1294_v24, %v1124_v38  ;;  %1141 = vrcp.f32 %v800_v8  ;;  %v510_v62 = vsel %vm508_vm5, %v509_v28, %v507_v19  ;;  %vm529_vm15 = vcmp.eq.f32.partialorder %v1935_v14, 0.0 }
  0xda   :  { %v1128_v5 = vpop.eup %1127  ;;  %v878_v10 = vmul.f32 %v1295_v7, %v1126_v61  ;;  %1143 = vrcp.f32 %v799_v21  ;;  %v2041_v15 = vpop.xlane.xlu1 %249  ;;  %v802_v34 = vmax.f32 %v510_v62, 1e-12  ;;  %v530_v53 = vand.u32 2147483648, %v1935_v14 }
  0xdb   :  { %v1130_v16 = vpop.eup %1129  ;;  %988 = vst.msk [vmem:[%s2743_s1 + $0x98] sm:$0xff] %vm136_vm0, %v880_v29  ;;  %v498_v18 = vmul.f32 %v1128_v5, %v1892_v6  ;;  %1145 = vrsqrt.f32 %v1953_v1  ;;  %v2058_v57 = vpop.xlane.xlu0 %246  ;;  %vm548_vm1 = vcmp.eq.f32.partialorder %v1953_v1, inf  ;;  %vm550_vm2 = vcmp.eq.f32.partialorder %v1953_v1, 0.0 }
  0xdc   :  { %v1132_v63 = vpop.eup %1131  ;;  %987 = vst.msk [vmem:[%s2743_s1 + $0x90] sm:$0xff] %vm136_vm0, %v878_v10  ;;  %v519_v45 = vmul.f32 %v1130_v16, %v1908_v55  ;;  %1147 = vrsqrt.f32 %v1955_v26  ;;  %v551_v29 = vand.u32 2147483648, %v1953_v1  ;;  %vm541_vm3 = vcmp.eq.f32.partialorder %v1955_v26, inf }
  0xdd   :  { %v1134_v48 = vpop.eup %1133  ;;  %v884_v0 = vmul.f32 %v1296_v49, %v1132_v63  ;;  %1149 = vrcp.f32 %v802_v34  ;;  %v500_v25 = vsel %vm499_vm6, %v1892_v6, %v498_v18  ;;  %v544_v7 = vand.u32 2147483648, %v1955_v26  ;;  %v1301_v49 = vld [vmem:[%s2742_s0 + $0xc0] sm:$0xff] }
  0xde   :  { %v503_v27 = vsel %vm501_vm7, %v502_v3, %v500_v25  ;;  %v521_v31 = vsel %vm520_vm8, %v1908_v55, %v519_v45  ;;  %v512_v32 = vmul.f32 %v1134_v48, %v1910_v59  ;;  %v1136_v35 = vpop.eup %1135  ;;  %1151 = vrsqrt.f32 %v1979_v44  ;;  %v2087_v58 = vpop.xlane.xlu1 %255  ;;  %v1297_v55 = vld [vmem:[%s2742_s0 + $0xa0] sm:$0xff] }
  0xdf   :  { %990 = vst.msk [vmem:[%s2743_s1 + $0xa8] sm:$0xff] %vm136_vm0, %v884_v0  ;;  %v801_v4 = vmax.f32 %v503_v27, 1e-12  ;;  %v524_v22 = vsel %vm522_vm9, %v523_v17, %v521_v31  ;;  %v533_v37 = vmul.f32 %v1136_v35, %v1933_v11  ;;  %v2099_v23 = vpop.xlane.xlu0 %252  ;;  %vm543_vm4 = vcmp.eq.f32.partialorder %v1955_v26, 0.0 }
  0xe0   :  { %v1138_v6 = vpop.eup %1137  ;;  %v804_v36 = vmax.f32 %v524_v22, 1e-12  ;;  %v514_v40 = vsel %vm513_vm10, %v1910_v59, %v512_v32  ;;  %vm562_vm5 = vcmp.eq.f32.partialorder %v1979_v44, inf  ;;  %vm564_vm6 = vcmp.eq.f32.partialorder %v1979_v44, 0.0  ;;  %v1302_v32 = vld [vmem:[%s2742_s0 + $0xd8] sm:$0xff] }
  0xe1   :  { %v882_v42 = vmul.f32 %v1297_v55, %v1138_v6  ;;  %1153 = vrcp.f32 %v801_v4  ;;  %v517_v43 = vsel %vm515_vm11, %v516_v33, %v514_v40  ;;  %v1140_v46 = vpop.eup %1139  ;;  %v535_v20 = vsel %vm534_vm12, %v1933_v11, %v533_v37  ;;  %v1298_v11 = vld [vmem:[%s2742_s0 + $0xb8] sm:$0xff]  ;;  %v1303_v37 = vld [vmem:[%s2742_s0 + $0xd0] sm:$0xff] }
  0xe2   :  { %1155 = vrcp.f32 %v804_v36  ;;  %v803_v12 = vmax.f32 %v517_v43, 1e-12  ;;  %v538_v59 = vsel %vm536_vm13, %v537_v41, %v535_v20  ;;  %v526_v39 = vmul.f32 %v1140_v46, %v1935_v14  ;;  %v2128_v21 = vpop.xlane.xlu1 %261  ;;  %v1304_v20 = vld [vmem:[%s2742_s0 + $0xe8] sm:$0xff] }
  0xe3   :  { %v1142_v47 = vpop.eup %1141  ;;  %989 = vst.msk [vmem:[%s2743_s1 + $0xa0] sm:$0xff] %vm136_vm0, %v882_v42  ;;  %1157 = vrsqrt.f32 %v1981_v2  ;;  %v806_v52 = vmax.f32 %v538_v59, 1e-12  ;;  %v2145_v10 = vpop.xlane.xlu0 %258  ;;  %vm555_vm7 = vcmp.eq.f32.partialorder %v1981_v2, inf  ;;  %vm557_vm8 = vcmp.eq.f32.partialorder %v1981_v2, 0.0 }
  0xe4   :  { %v1144_v50 = vpop.eup %1143  ;;  %v888_v51 = vmul.f32 %v1298_v11, %v1142_v47  ;;  %1159 = vrcp.f32 %v803_v12  ;;  %v528_v60 = vsel %vm527_vm14, %v1935_v14, %v526_v39  ;;  %v1300_v14 = vld [vmem:[%s2742_s0 + $0xc8] sm:$0xff]  ;;  %v558_v6 = vand.u32 2147483648, %v1981_v2 }
  0xe5   :  { %v1146_v13 = vpop.eup %1145  ;;  %v886_v8 = vmul.f32 %v1299_v30, %v1144_v50  ;;  %1161 = vrsqrt.f32 %v2013_v54  ;;  %v531_v28 = vsel %vm529_vm15, %v530_v53, %v528_v60  ;;  %vm576_vm9 = vcmp.eq.f32.partialorder %v2013_v54, inf  ;;  %v1305_v30 = vld [vmem:[%s2742_s0 + $0xe0] sm:$0xff] }
  0xe6   :  { %v1148_v9 = vpop.eup %1147  ;;  %992 = vst.msk [vmem:[%s2743_s1 + $0xb8] sm:$0xff] %vm136_vm0, %v888_v51  ;;  %1163 = vrcp.f32 %v806_v52  ;;  %v547_v38 = vmul.f32 %v1146_v13, %v1953_v1  ;;  %v805_v24 = vmax.f32 %v531_v28, 1e-12  ;;  %v2165_v27 = vpop.xlane.xlu1 %267  ;;  %vm578_vm10 = vcmp.eq.f32.partialorder %v2013_v54, 0.0 }
  0xe7   :  { %v1150_v61 = vpop.eup %1149  ;;  %991 = vst.msk [vmem:[%s2743_s1 + $0xb0] sm:$0xff] %vm136_vm0, %v886_v8  ;;  %v540_v19 = vmul.f32 %v1148_v9, %v1955_v26  ;;  %1165 = vrsqrt.f32 %v2015_v56  ;;  %v2178_v36 = vpop.xlane.xlu0 %264  ;;  %v579_v46 = vand.u32 2147483648, %v2013_v54  ;;  %vm569_vm11 = vcmp.eq.f32.partialorder %v2015_v56, inf }
  0xe8   :  { %v892_v3 = vmul.f32 %v1300_v14, %v1150_v61  ;;  %v549_v5 = vsel %vm548_vm1, %v1953_v1, %v547_v38  ;;  %v1152_v62 = vpop.eup %1151  ;;  %1167 = vrcp.f32 %v805_v24  ;;  %v565_v1 = vand.u32 2147483648, %v1979_v44 }
  0xe9   :  { %v552_v16 = vsel %vm550_vm2, %v551_v29, %v549_v5  ;;  %v542_v34 = vsel %vm541_vm3, %v1955_v26, %v540_v19  ;;  %v561_v45 = vmul.f32 %v1152_v62, %v1979_v44  ;;  %1169 = vrsqrt.f32 %v2041_v15  ;;  %v1306_v19 = vld [vmem:[%s2742_s0 + $0xf8] sm:$0xff]  ;;  %v1307_v62 = vld [vmem:[%s2742_s0 + $0xf0] sm:$0xff] }
  0xea   :  { %994 = vst.msk [vmem:[%s2743_s1 + $0xc8] sm:$0xff] %vm136_vm0, %v892_v3  ;;  %v808_v18 = vmax.f32 %v552_v16, 1e-12  ;;  %v545_v63 = vsel %vm543_vm4, %v544_v7, %v542_v34  ;;  %vm571_vm12 = vcmp.eq.f32.partialorder %v2015_v56, 0.0  ;;  %v2211_v51 = vpop.xlane.xlu1 %273  ;;  %v572_v53 = vand.u32 2147483648, %v2015_v56 }
  0xeb   :  { %v1154_v17 = vpop.eup %1153  ;;  %v807_v48 = vmax.f32 %v545_v63, 1e-12  ;;  %v563_v25 = vsel %vm562_vm5, %v1979_v44, %v561_v45  ;;  %vm590_vm13 = vcmp.eq.f32.partialorder %v2041_v15, inf  ;;  %vm592_vm14 = vcmp.eq.f32.partialorder %v2041_v15, 0.0 }
  0xec   :  { %v1156_v26 = vpop.eup %1155  ;;  %v890_v0 = vmul.f32 %v1301_v49, %v1154_v17  ;;  %1171 = vrcp.f32 %v808_v18  ;;  %v566_v35 = vsel %vm564_vm6, %v565_v1, %v563_v25  ;;  %v593_v61 = vand.u32 2147483648, %v2041_v15 }
  0xed   :  { %v1158_v31 = vpop.eup %1157  ;;  %v896_v33 = vmul.f32 %v1302_v32, %v1156_v26  ;;  %1173 = vrcp.f32 %v807_v48  ;;  %v810_v44 = vmax.f32 %v566_v35, 1e-12  ;;  %vm583_vm15 = vcmp.eq.f32.partialorder %v2058_v57, inf }
  0xee   :  { %v1160_v4 = vpop.eup %1159  ;;  %993 = vst.msk [vmem:[%s2743_s1 + $0xc0] sm:$0xff] %vm136_vm0, %v890_v0  ;;  %v554_v22 = vmul.f32 %v1158_v31, %v1981_v2  ;;  %1175 = vrsqrt.f32 %v2058_v57  ;;  %vm585_vm1 = vcmp.eq.f32.partialorder %v2058_v57, 0.0  ;;  %v586_v5 = vand.u32 2147483648, %v2058_v57  ;;  %v2253_v18 = vpop.xlane.xlu1 %279  ;;  %v1308_v0 = vld [vmem:[%s2742_s0 + $0x108] sm:$0xff] }
  0xef   :  { %v1162_v40 = vpop.eup %1161  ;;  %996 = vst.msk [vmem:[%s2743_s1 + $0xd8] sm:$0xff] %vm136_vm0, %v896_v33  ;;  %v894_v55 = vmul.f32 %v1303_v37, %v1160_v4  ;;  %1177 = vrsqrt.f32 %v2087_v58  ;;  %vm604_vm2 = vcmp.eq.f32.partialorder %v2087_v58, inf  ;;  %vm606_vm3 = vcmp.eq.f32.partialorder %v2087_v58, 0.0 }
  0xf0   :  { %v1164_v42 = vpop.eup %1163  ;;  %1179 = vrcp.f32 %v810_v44  ;;  %v556_v43 = vsel %vm555_vm7, %v1981_v2, %v554_v22  ;;  %v575_v41 = vmul.f32 %v1162_v40, %v2013_v54  ;;  %v607_v1 = vand.u32 2147483648, %v2087_v58 }
  0xf1   :  { %v1166_v12 = vpop.eup %1165  ;;  %995 = vst.msk [vmem:[%s2743_s1 + $0xd0] sm:$0xff] %vm136_vm0, %v894_v55  ;;  %v900_v47 = vmul.f32 %v1304_v20, %v1164_v42  ;;  %v559_v59 = vsel %vm557_vm8, %v558_v6, %v556_v43  ;;  %1181 = vrsqrt.f32 %v2099_v23  ;;  %vm597_vm4 = vcmp.eq.f32.partialorder %v2099_v23, inf }
  0xf2   :  { %v809_v39 = vmax.f32 %v559_v59, 1e-12  ;;  %v577_v50 = vsel %vm576_vm9, %v2013_v54, %v575_v41  ;;  %v568_v11 = vmul.f32 %v1166_v12, %v2015_v56  ;;  %v1168_v52 = vpop.eup %1167  ;;  %1183 = vrsqrt.f32 %v2128_v21  ;;  %v2228_v54 = vpop.xlane.xlu0 %270 }
  0xf3   :  { %998 = vst.msk [vmem:[%s2743_s1 + $0xe8] sm:$0xff] %vm136_vm0, %v900_v47  ;;  %v580_v2 = vsel %vm578_vm10, %v579_v46, %v577_v50  ;;  %v1170_v13 = vpop.eup %1169  ;;  %v898_v8 = vmul.f32 %v1305_v30, %v1168_v52  ;;  %vm599_vm5 = vcmp.eq.f32.partialorder %v2099_v23, 0.0  ;;  %v600_v4 = vand.u32 2147483648, %v2099_v23  ;;  %v2299_v42 = vpop.xlane.xlu1 %285 }
  0xf4   :  { %1185 = vrcp.f32 %v809_v39  ;;  %v812_v60 = vmax.f32 %v580_v2, 1e-12  ;;  %v570_v9 = vsel %vm569_vm11, %v2015_v56, %v568_v11  ;;  %v589_v38 = vmul.f32 %v1170_v13, %v2041_v15 }
  0xf5   :  { %v573_v28 = vsel %vm571_vm12, %v572_v53, %v570_v9  ;;  %997 = vst.msk [vmem:[%s2743_s1 + $0xe0] sm:$0xff] %vm136_vm0, %v898_v8  ;;  %vm618_vm6 = vcmp.eq.f32.partialorder %v2128_v21, inf  ;;  %vm620_vm7 = vcmp.eq.f32.partialorder %v2128_v21, 0.0  ;;  %v621_v46 = vand.u32 2147483648, %v2128_v21 }
  0xf6   :  { %v1172_v24 = vpop.eup %1171  ;;  %1187 = vrcp.f32 %v812_v60  ;;  %v811_v29 = vmax.f32 %v573_v28, 1e-12  ;;  %v591_v3 = vsel %vm590_vm13, %v2041_v15, %v589_v38  ;;  %v2270_v26 = vpop.xlane.xlu0 %276  ;;  %vm611_vm8 = vcmp.eq.f32.partialorder %v2145_v10, inf }
  0xf7   :  { %v1174_v56 = vpop.eup %1173  ;;  %v904_v14 = vmul.f32 %v1306_v19, %v1172_v24  ;;  %1189 = vrsqrt.f32 %v2145_v10  ;;  %v594_v34 = vsel %vm592_vm14, %v593_v61, %v591_v3  ;;  %vm613_vm9 = vcmp.eq.f32.partialorder %v2145_v10, 0.0  ;;  %v2341_v61 = vpop.xlane.xlu1 %291  ;;  %v1312_v19 = vld [vmem:[%s2742_s0 + $0x128] sm:$0xff] }
  0xf8   :  { %v1176_v7 = vpop.eup %1175  ;;  %v902_v16 = vmul.f32 %v1307_v62, %v1174_v56  ;;  %1191 = vrcp.f32 %v811_v29  ;;  %v814_v45 = vmax.f32 %v594_v34, 1e-12  ;;  %v614_v13 = vand.u32 2147483648, %v2145_v10 }
  0xf9   :  { %v1178_v63 = vpop.eup %1177  ;;  %1000 = vst.msk [vmem:[%s2743_s1 + $0xf8] sm:$0xff] %vm136_vm0, %v904_v14  ;;  %v582_v17 = vmul.f32 %v1176_v7, %v2058_v57  ;;  %1193 = vrsqrt.f32 %v2165_v27  ;;  %vm632_vm10 = vcmp.eq.f32.partialorder %v2165_v27, inf  ;;  %vm634_vm11 = vcmp.eq.f32.partialorder %v2165_v27, 0.0 }
  0xfa   :  { %v1180_v48 = vpop.eup %1179  ;;  %999 = vst.msk [vmem:[%s2743_s1 + $0xf0] sm:$0xff] %vm136_vm0, %v902_v16  ;;  %v603_v15 = vmul.f32 %v1178_v63, %v2087_v58  ;;  %1195 = vrsqrt.f32 %v2178_v36  ;;  %v2311_v59 = vpop.xlane.xlu0 %282  ;;  %v635_v38 = vand.u32 2147483648, %v2165_v27  ;;  %vm625_vm12 = vcmp.eq.f32.partialorder %v2178_v36, inf }
  0xfb   :  { %v1182_v49 = vpop.eup %1181  ;;  %v908_v25 = vmul.f32 %v1308_v0, %v1180_v48  ;;  %1197 = vrcp.f32 %v814_v45  ;;  %v584_v31 = vsel %vm583_vm15, %v2058_v57, %v582_v17  ;;  %v628_v7 = vand.u32 2147483648, %v2178_v36 }
  0xfc   :  { %v587_v32 = vsel %vm585_vm1, %v586_v5, %v584_v31  ;;  %v605_v33 = vsel %vm604_vm2, %v2087_v58, %v603_v15  ;;  %v596_v35 = vmul.f32 %v1182_v49, %v2099_v23  ;;  %v1184_v44 = vpop.eup %1183  ;;  %1199 = vrsqrt.f32 %v2211_v51  ;;  %v1309_v58 = vld [vmem:[%s2742_s0 + $0x100] sm:$0xff] }
  0xfd   :  { %1002 = vst.msk [vmem:[%s2743_s1 + $0x108] sm:$0xff] %vm136_vm0, %v908_v25  ;;  %v813_v22 = vmax.f32 %v587_v32, 1e-12  ;;  %v608_v6 = vsel %vm606_vm3, %v607_v1, %v605_v33  ;;  %v617_v55 = vmul.f32 %v1184_v44, %v2128_v21  ;;  %vm627_vm13 = vcmp.eq.f32.partialorder %v2178_v36, 0.0  ;;  %v1313_v1 = vld [vmem:[%s2742_s0 + $0x120] sm:$0xff]  ;;  %v2379_v25 = vpop.xlane.xlu1 %297  ;;  %v1314_v32 = vld [vmem:[%s2742_s0 + $0x138] sm:$0xff] }
  0xfe   :  { %v1186_v57 = vpop.eup %1185  ;;  %v816_v40 = vmax.f32 %v608_v6, 1e-12  ;;  %v598_v37 = vsel %vm597_vm4, %v2099_v23, %v596_v35  ;;  %v1310_v23 = vld [vmem:[%s2742_s0 + $0x118] sm:$0xff]  ;;  %vm646_vm14 = vcmp.eq.f32.partialorder %v2211_v51, inf  ;;  %vm648_vm15 = vcmp.eq.f32.partialorder %v2211_v51, 0.0 }
  0xff   :  { %v906_v43 = vmul.f32 %v1309_v58, %v1186_v57  ;;  %1201 = vrcp.f32 %v813_v22  ;;  %v601_v41 = vsel %vm599_vm5, %v600_v4, %v598_v37  ;;  %v619_v47 = vsel %vm618_vm6, %v2128_v21, %v617_v55  ;;  %v1311_v21 = vld [vmem:[%s2742_s0 + $0x110] sm:$0xff] }
 0x100   :  { %v1188_v12 = vpop.eup %1187  ;;  %1203 = vrcp.f32 %v816_v40  ;;  %v815_v20 = vmax.f32 %v601_v41, 1e-12  ;;  %v622_v11 = vsel %vm620_vm7, %v621_v46, %v619_v47  ;;  %vm639_vm1 = vcmp.eq.f32.partialorder %v2228_v54, inf  ;;  %v1315_v40 = vld [vmem:[%s2742_s0 + $0x130] sm:$0xff] }
 0x101   :  { %v1190_v39 = vpop.eup %1189  ;;  %1001 = vst.msk [vmem:[%s2743_s1 + $0x100] sm:$0xff] %vm136_vm0, %v906_v43  ;;  %v912_v50 = vmul.f32 %v1310_v23, %v1188_v12  ;;  %1205 = vrsqrt.f32 %v2228_v54  ;;  %v818_v2 = vmax.f32 %v622_v11, 1e-12  ;;  %vm641_vm2 = vcmp.eq.f32.partialorder %v2228_v54, 0.0  ;;  %v1316_v12 = vld [vmem:[%s2742_s0 + $0x148] sm:$0xff]  ;;  %v2425_v11 = vpop.xlane.xlu1 %303 }
 0x102   :  { %v1192_v52 = vpop.eup %1191  ;;  %1207 = vrcp.f32 %v815_v20  ;;  %v610_v53 = vmul.f32 %v1190_v39, %v2145_v10  ;;  %v642_v22 = vand.u32 2147483648, %v2228_v54  ;;  %vm660_vm3 = vcmp.eq.f32.partialorder %v2253_v18, inf }
 0x103   :  { %v1194_v30 = vpop.eup %1193  ;;  %1004 = vst.msk [vmem:[%s2743_s1 + $0x118] sm:$0xff] %vm136_vm0, %v912_v50  ;;  %v910_v8 = vmul.f32 %v1311_v21, %v1192_v52  ;;  %1209 = vrsqrt.f32 %v2253_v18  ;;  %vm662_vm4 = vcmp.eq.f32.partialorder %v2253_v18, 0.0  ;;  %v663_v41 = vand.u32 2147483648, %v2253_v18 }
 0x104   :  { %v1196_v60 = vpop.eup %1195  ;;  %1211 = vrcp.f32 %v818_v2  ;;  %v612_v9 = vsel %vm611_vm8, %v2145_v10, %v610_v53  ;;  %v631_v28 = vmul.f32 %v1194_v30, %v2165_v27  ;;  %v2359_v10 = vpop.xlane.xlu0 %288  ;;  %vm653_vm5 = vcmp.eq.f32.partialorder %v2270_v26, inf }
 0x105   :  { %v1198_v24 = vpop.eup %1197  ;;  %1003 = vst.msk [vmem:[%s2743_s1 + $0x110] sm:$0xff] %vm136_vm0, %v910_v8  ;;  %v615_v29 = vsel %vm613_vm9, %v614_v13, %v612_v9  ;;  %v624_v56 = vmul.f32 %v1196_v60, %v2178_v36  ;;  %1213 = vrsqrt.f32 %v2270_v26  ;;  %vm655_vm6 = vcmp.eq.f32.partialorder %v2270_v26, 0.0 }
 0x106   :  { %v916_v14 = vmul.f32 %v1312_v19, %v1198_v24  ;;  %v817_v3 = vmax.f32 %v615_v29, 1e-12  ;;  %v633_v5 = vsel %vm632_vm10, %v2165_v27, %v631_v28  ;;  %v1200_v62 = vpop.eup %1199  ;;  %1215 = vrsqrt.f32 %v2299_v42 }
 0x107   :  { %v636_v16 = vsel %vm634_vm11, %v635_v38, %v633_v5  ;;  %v626_v34 = vsel %vm625_vm12, %v2178_v36, %v624_v56  ;;  %v645_v17 = vmul.f32 %v1200_v62, %v2211_v51  ;;  %v649_v27 = vand.u32 2147483648, %v2211_v51 }
 0x108   :  { %1006 = vst.msk [vmem:[%s2743_s1 + $0x128] sm:$0xff] %vm136_vm0, %v916_v14  ;;  %1217 = vrcp.f32 %v817_v3  ;;  %v820_v63 = vmax.f32 %v636_v16, 1e-12  ;;  %v629_v45 = vsel %vm627_vm13, %v628_v7, %v626_v34  ;;  %v2392_v6 = vpop.xlane.xlu0 %294  ;;  %v656_v2 = vand.u32 2147483648, %v2270_v26  ;;  %v2466_v16 = vpop.xlane.xlu1 %309 }
 0x109   :  { %v1202_v48 = vpop.eup %1201  ;;  %v819_v15 = vmax.f32 %v629_v45, 1e-12  ;;  %v647_v0 = vsel %vm646_vm14, %v2211_v51, %v645_v17  ;;  %vm674_vm7 = vcmp.eq.f32.partialorder %v2299_v42, inf  ;;  %vm676_vm8 = vcmp.eq.f32.partialorder %v2299_v42, 0.0 }
 0x10a   :  { %v1204_v36 = vpop.eup %1203  ;;  %v914_v49 = vmul.f32 %v1313_v1, %v1202_v48  ;;  %1219 = vrcp.f32 %v820_v63  ;;  %v650_v35 = vsel %vm648_vm15, %v649_v27, %v647_v0  ;;  %v677_v28 = vand.u32 2147483648, %v2299_v42 }
 0x10b   :  { %v1206_v31 = vpop.eup %1205  ;;  %v920_v33 = vmul.f32 %v1314_v32, %v1204_v36  ;;  %1221 = vrcp.f32 %v819_v15  ;;  %v822_v51 = vmax.f32 %v650_v35, 1e-12  ;;  %vm667_vm9 = vcmp.eq.f32.partialorder %v2311_v59, inf  ;;  %v1320_v36 = vld [vmem:[%s2742_s0 + $0x168] sm:$0xff] }
 0x10c   :  { %v1208_v4 = vpop.eup %1207  ;;  %1005 = vst.msk [vmem:[%s2743_s1 + $0x120] sm:$0xff] %vm136_vm0, %v914_v49  ;;  %v638_v44 = vmul.f32 %v1206_v31, %v2228_v54  ;;  %1223 = vrsqrt.f32 %v2311_v59  ;;  %v2440_v8 = vpop.xlane.xlu0 %300  ;;  %vm669_vm10 = vcmp.eq.f32.partialorder %v2311_v59, 0.0  ;;  %v670_v62 = vand.u32 2147483648, %v2311_v59 }
 0x10d   :  { %v1210_v57 = vpop.eup %1209  ;;  %1008 = vst.msk [vmem:[%s2743_s1 + $0x138] sm:$0xff] %vm136_vm0, %v920_v33  ;;  %v918_v37 = vmul.f32 %v1315_v40, %v1208_v4  ;;  %1225 = vrsqrt.f32 %v2341_v61  ;;  %vm688_vm11 = vcmp.eq.f32.partialorder %v2341_v61, inf  ;;  %vm690_vm12 = vcmp.eq.f32.partialorder %v2341_v61, 0.0  ;;  %v2513_v40 = vpop.xlane.xlu1 %315 }
 0x10e   :  { %v1212_v55 = vpop.eup %1211  ;;  %1227 = vrcp.f32 %v822_v51  ;;  %v640_v58 = vsel %vm639_vm1, %v2228_v54, %v638_v44  ;;  %v659_v43 = vmul.f32 %v1210_v57, %v2253_v18  ;;  %v691_v48 = vand.u32 2147483648, %v2341_v61 }
 0x10f   :  { %v1214_v46 = vpop.eup %1213  ;;  %1007 = vst.msk [vmem:[%s2743_s1 + $0x130] sm:$0xff] %vm136_vm0, %v918_v37  ;;  %v924_v20 = vmul.f32 %v1316_v12, %v1212_v55  ;;  %v643_v47 = vsel %vm641_vm2, %v642_v22, %v640_v58  ;;  %1229 = vrsqrt.f32 %v2359_v10  ;;  %vm681_vm13 = vcmp.eq.f32.partialorder %v2359_v10, inf }
 0x110   :  { %v821_v39 = vmax.f32 %v643_v47, 1e-12  ;;  %v661_v23 = vsel %vm660_vm3, %v2253_v18, %v659_v43  ;;  %v652_v50 = vmul.f32 %v1214_v46, %v2270_v26  ;;  %v1216_v52 = vpop.eup %1215  ;;  %1231 = vrsqrt.f32 %v2379_v25  ;;  %v1317_v18 = vld [vmem:[%s2742_s0 + $0x140] sm:$0xff]  ;;  %v2483_v15 = vpop.xlane.xlu0 %306 }
 0x111   :  { %1010 = vst.msk [vmem:[%s2743_s1 + $0x148] sm:$0xff] %vm136_vm0, %v924_v20  ;;  %v664_v54 = vsel %vm662_vm4, %v663_v41, %v661_v23  ;;  %v673_v21 = vmul.f32 %v1216_v52, %v2299_v42  ;;  %vm683_vm14 = vcmp.eq.f32.partialorder %v2359_v10, 0.0  ;;  %v684_v33 = vand.u32 2147483648, %v2359_v10 }
 0x112   :  { %v1218_v53 = vpop.eup %1217  ;;  %1233 = vrcp.f32 %v821_v39  ;;  %v824_v13 = vmax.f32 %v664_v54, 1e-12  ;;  %v654_v30 = vsel %vm653_vm5, %v2270_v26, %v652_v50  ;;  %v1318_v26 = vld [vmem:[%s2742_s0 + $0x158] sm:$0xff]  ;;  %vm702_vm15 = vcmp.eq.f32.partialorder %v2379_v25, inf }
 0x113   :  { %v922_v60 = vmul.f32 %v1317_v18, %v1218_v53  ;;  %v657_v9 = vsel %vm655_vm6, %v656_v2, %v654_v30  ;;  %v675_v29 = vsel %vm674_vm7, %v2299_v42, %v673_v21  ;;  %v1319_v42 = vld [vmem:[%s2742_s0 + $0x150] sm:$0xff]  ;;  %vm704_vm1 = vcmp.eq.f32.partialorder %v2379_v25, 0.0 }
 0x114   :  { %v1220_v38 = vpop.eup %1219  ;;  %1235 = vrcp.f32 %v824_v13  ;;  %v823_v24 = vmax.f32 %v657_v9, 1e-12  ;;  %v678_v14 = vsel %vm676_vm8, %v677_v28, %v675_v29  ;;  %v705_v58 = vand.u32 2147483648, %v2379_v25  ;;  %v2525_v12 = vpop.xlane.xlu0 %312  ;;  %v1324_v28 = vld [vmem:[%s2742_s0 + $0x188] sm:$0xff] }
 0x115   :  { %v1222_v56 = vpop.eup %1221  ;;  %1009 = vst.msk [vmem:[%s2743_s1 + $0x140] sm:$0xff] %vm136_vm0, %v922_v60  ;;  %v928_v19 = vmul.f32 %v1318_v26, %v1220_v38  ;;  %1237 = vrsqrt.f32 %v2392_v6  ;;  %v826_v7 = vmax.f32 %v678_v14, 1e-12  ;;  %vm695_vm2 = vcmp.eq.f32.partialorder %v2392_v6, inf  ;;  %v2555_v60 = vpop.xlane.xlu1 %321 }
 0x116   :  { %v1224_v3 = vpop.eup %1223  ;;  %v926_v5 = vmul.f32 %v1319_v42, %v1222_v56  ;;  %1239 = vrcp.f32 %v823_v24  ;;  %vm697_vm3 = vcmp.eq.f32.partialorder %v2392_v6, 0.0  ;;  %v698_v54 = vand.u32 2147483648, %v2392_v6 }
 0x117   :  { %v1226_v34 = vpop.eup %1225  ;;  %1012 = vst.msk [vmem:[%s2743_s1 + $0x158] sm:$0xff] %vm136_vm0, %v928_v19  ;;  %v666_v63 = vmul.f32 %v1224_v3, %v2311_v59  ;;  %1241 = vrsqrt.f32 %v2425_v11  ;;  %vm716_vm4 = vcmp.eq.f32.partialorder %v2425_v11, inf  ;;  %vm718_vm5 = vcmp.eq.f32.partialorder %v2425_v11, 0.0 }
 0x118   :  { %v1228_v45 = vpop.eup %1227  ;;  %1011 = vst.msk [vmem:[%s2743_s1 + $0x150] sm:$0xff] %vm136_vm0, %v926_v5  ;;  %1243 = vrcp.f32 %v826_v7  ;;  %v687_v17 = vmul.f32 %v1226_v34, %v2341_v61  ;;  %v719_v18 = vand.u32 2147483648, %v2425_v11  ;;  %vm709_vm6 = vcmp.eq.f32.partialorder %v2440_v8, inf  ;;  %v2573_v19 = vpop.xlane.xlu0 %318 }
 0x119   :  { %v1230_v27 = vpop.eup %1229  ;;  %v932_v1 = vmul.f32 %v1320_v36, %v1228_v45  ;;  %v668_v49 = vsel %vm667_vm9, %v2311_v59, %v666_v63  ;;  %1245 = vrsqrt.f32 %v2440_v8  ;;  %vm711_vm7 = vcmp.eq.f32.partialorder %v2440_v8, 0.0  ;;  %v1325_v45 = vld [vmem:[%s2742_s0 + $0x180] sm:$0xff] }
 0x11a   :  { %v671_v0 = vsel %vm669_vm10, %v670_v62, %v668_v49  ;;  %v689_v31 = vsel %vm688_vm11, %v2341_v61, %v687_v17  ;;  %v680_v32 = vmul.f32 %v1230_v27, %v2359_v10  ;;  %v1232_v35 = vpop.eup %1231  ;;  %1247 = vrsqrt.f32 %v2466_v16  ;;  %v1321_v61 = vld [vmem:[%s2742_s0 + $0x160] sm:$0xff]  ;;  %v2595_v27 = vpop.xlane.xlu1 %327 }
 0x11b   :  { %1014 = vst.msk [vmem:[%s2743_s1 + $0x168] sm:$0xff] %vm136_vm0, %v932_v1  ;;  %v825_v4 = vmax.f32 %v671_v0, 1e-12  ;;  %v692_v51 = vsel %vm690_vm12, %v691_v48, %v689_v31  ;;  %v701_v57 = vmul.f32 %v1232_v35, %v2379_v25  ;;  %v712_v3 = vand.u32 2147483648, %v2440_v8  ;;  %v1326_v1 = vld [vmem:[%s2742_s0 + $0x198] sm:$0xff] }
 0x11c   :  { %v1234_v59 = vpop.eup %1233  ;;  %v828_v44 = vmax.f32 %v692_v51, 1e-12  ;;  %v682_v22 = vsel %vm681_vm13, %v2359_v10, %v680_v32  ;;  %v1322_v10 = vld [vmem:[%s2742_s0 + $0x178] sm:$0xff]  ;;  %vm730_vm8 = vcmp.eq.f32.partialorder %v2466_v16, inf  ;;  %vm732_vm9 = vcmp.eq.f32.partialorder %v2466_v16, 0.0 }
 0x11d   :  { %v930_v37 = vmul.f32 %v1321_v61, %v1234_v59  ;;  %1249 = vrcp.f32 %v825_v4  ;;  %v685_v55 = vsel %vm683_vm14, %v684_v33, %v682_v22  ;;  %v703_v46 = vsel %vm702_vm15, %v2379_v25, %v701_v57  ;;  %v1323_v25 = vld [vmem:[%s2742_s0 + $0x170] sm:$0xff]  ;;  %v2607_v33 = vpop.xlane.xlu0 %324 }
 0x11e   :  { %v1236_v43 = vpop.eup %1235  ;;  %1251 = vrcp.f32 %v828_v44  ;;  %v827_v41 = vmax.f32 %v685_v55, 1e-12  ;;  %v706_v39 = vsel %vm704_vm1, %v705_v58, %v703_v46  ;;  %v733_v63 = vand.u32 2147483648, %v2466_v16  ;;  %v1327_v4 = vld [vmem:[%s2742_s0 + $0x190] sm:$0xff] }
 0x11f   :  { %v1238_v20 = vpop.eup %1237  ;;  %1013 = vst.msk [vmem:[%s2743_s1 + $0x160] sm:$0xff] %vm136_vm0, %v930_v37  ;;  %v936_v47 = vmul.f32 %v1322_v10, %v1236_v43  ;;  %1253 = vrsqrt.f32 %v2483_v15  ;;  %v830_v50 = vmax.f32 %v706_v39, 1e-12  ;;  %vm723_vm10 = vcmp.eq.f32.partialorder %v2483_v15, inf  ;;  %v1328_v37 = vld [vmem:[%s2742_s0 + $0x1a8] sm:$0xff] }
 0x120   :  { %v1240_v23 = vpop.eup %1239  ;;  %1255 = vrcp.f32 %v827_v41  ;;  %v694_v52 = vmul.f32 %v1238_v20, %v2392_v6  ;;  %vm725_vm11 = vcmp.eq.f32.partialorder %v2483_v15, 0.0  ;;  %v726_v59 = vand.u32 2147483648, %v2483_v15 }
 0x121   :  { %v1242_v2 = vpop.eup %1241  ;;  %1016 = vst.msk [vmem:[%s2743_s1 + $0x178] sm:$0xff] %vm136_vm0, %v936_v47  ;;  %v934_v53 = vmul.f32 %v1323_v25, %v1240_v23  ;;  %1257 = vrsqrt.f32 %v2513_v40  ;;  %vm744_vm12 = vcmp.eq.f32.partialorder %v2513_v40, inf  ;;  %vm746_vm13 = vcmp.eq.f32.partialorder %v2513_v40, 0.0 }
 0x122   :  { %v1244_v13 = vpop.eup %1243  ;;  %1259 = vrcp.f32 %v830_v50  ;;  %v696_v30 = vsel %vm695_vm2, %v2392_v6, %v694_v52  ;;  %v715_v21 = vmul.f32 %v1242_v2, %v2425_v11  ;;  %v747_v43 = vand.u32 2147483648, %v2513_v40 }
 0x123   :  { %v1246_v9 = vpop.eup %1245  ;;  %1015 = vst.msk [vmem:[%s2743_s1 + $0x170] sm:$0xff] %vm136_vm0, %v934_v53  ;;  %v940_v38 = vmul.f32 %v1324_v28, %v1244_v13  ;;  %v699_v24 = vsel %vm697_vm3, %v698_v54, %v696_v30  ;;  %1261 = vrsqrt.f32 %v2525_v12  ;;  %vm737_vm14 = vcmp.eq.f32.partialorder %v2525_v12, inf  ;;  %v1329_v54 = vld [vmem:[%s2742_s0 + $0x1a0] sm:$0xff] }
 0x124   :  { %v829_v29 = vmax.f32 %v699_v24, 1e-12  ;;  %v717_v56 = vsel %vm716_vm4, %v2425_v11, %v715_v21  ;;  %v708_v26 = vmul.f32 %v1246_v9, %v2440_v8  ;;  %v1248_v14 = vpop.eup %1247  ;;  %1263 = vrsqrt.f32 %v2555_v60 }
 0x125   :  { %1018 = vst.msk [vmem:[%s2743_s1 + $0x188] sm:$0xff] %vm136_vm0, %v940_v38  ;;  %v720_v6 = vsel %vm718_vm5, %v719_v18, %v717_v56  ;;  %v729_v7 = vmul.f32 %v1248_v14, %v2466_v16  ;;  %vm739_vm15 = vcmp.eq.f32.partialorder %v2525_v12, 0.0  ;;  %vm758_vm1 = vcmp.eq.f32.partialorder %v2555_v60, inf  ;;  %v1330_v18 = vld [vmem:[%s2742_s0 + $0x1b8] sm:$0xff] }
 0x126   :  { %1265 = vrcp.f32 %v829_v29  ;;  %v832_v42 = vmax.f32 %v720_v6, 1e-12  ;;  %v710_v5 = vsel %vm709_vm6, %v2440_v8, %v708_v26  ;;  %vm760_vm2 = vcmp.eq.f32.partialorder %v2555_v60, 0.0  ;;  %v1331_v26 = vld [vmem:[%s2742_s0 + $0x1b0] sm:$0xff] }
 0x127   :  { %v1250_v62 = vpop.eup %1249  ;;  %v713_v34 = vsel %vm711_vm7, %v712_v3, %v710_v5  ;;  %1267 = vrsqrt.f32 %v2573_v19  ;;  %v731_v8 = vsel %vm730_vm8, %v2466_v16, %v729_v7  ;;  %v761_v53 = vand.u32 2147483648, %v2555_v60 }
 0x128   :  { %v1252_v11 = vpop.eup %1251  ;;  %v938_v17 = vmul.f32 %v1325_v45, %v1250_v62  ;;  %1269 = vrcp.f32 %v832_v42  ;;  %v831_v48 = vmax.f32 %v713_v34, 1e-12  ;;  %v734_v0 = vsel %vm732_vm9, %v733_v63, %v731_v8 }
 0x129   :  { %v1254_v36 = vpop.eup %1253  ;;  %v944_v49 = vmul.f32 %v1326_v1, %v1252_v11  ;;  %v834_v32 = vmax.f32 %v734_v0, 1e-12  ;;  %vm751_vm3 = vcmp.eq.f32.partialorder %v2573_v19, inf  ;;  %v754_v38 = vand.u32 2147483648, %v2573_v19 }
 0x12a   :  { %v1256_v31 = vpop.eup %1255  ;;  %1017 = vst.msk [vmem:[%s2743_s1 + $0x180] sm:$0xff] %vm136_vm0, %v938_v17  ;;  %1271 = vrcp.f32 %v831_v48  ;;  %v722_v16 = vmul.f32 %v1254_v36, %v2483_v15  ;;  %vm753_vm4 = vcmp.eq.f32.partialorder %v2573_v19, 0.0  ;;  %vm772_vm5 = vcmp.eq.f32.partialorder %v2595_v27, inf }
 0x12b   :  { %v1258_v35 = vpop.eup %1257  ;;  %1020 = vst.msk [vmem:[%s2743_s1 + $0x198] sm:$0xff] %vm136_vm0, %v944_v49  ;;  %v942_v51 = vmul.f32 %v1327_v4, %v1256_v31  ;;  %1273 = vrsqrt.f32 %v2595_v27  ;;  %v775_v34 = vand.u32 2147483648, %v2595_v27  ;;  %vm774_vm6 = vcmp.eq.f32.partialorder %v2595_v27, 0.0 }
 0x12c   :  { %v1260_v44 = vpop.eup %1259  ;;  %1275 = vrcp.f32 %v834_v32  ;;  %v724_v22 = vsel %vm723_vm10, %v2483_v15, %v722_v16  ;;  %v743_v57 = vmul.f32 %v1258_v35, %v2513_v40  ;;  %v740_v15 = vand.u32 2147483648, %v2525_v12  ;;  %v1334_v32 = vld [vmem:[%s2742_s0 + $0x1d8] sm:$0xff]  ;;  %v1335_v35 = vld [vmem:[%s2742_s0 + $0x1d0] sm:$0xff] }
 0x12d   :  { %v1262_v61 = vpop.eup %1261  ;;  %1019 = vst.msk [vmem:[%s2743_s1 + $0x190] sm:$0xff] %vm136_vm0, %v942_v51  ;;  %v948_v55 = vmul.f32 %v1328_v37, %v1260_v44  ;;  %v727_v58 = vsel %vm725_vm11, %v726_v59, %v724_v22  ;;  %1277 = vrsqrt.f32 %v2607_v33  ;;  %vm765_vm7 = vcmp.eq.f32.partialorder %v2607_v33, inf  ;;  %v1336_v59 = vld [vmem:[%s2742_s0 + $0x1e8] sm:$0xff] }
 0x12e   :  { %v833_v41 = vmax.f32 %v727_v58, 1e-12  ;;  %v745_v46 = vsel %vm744_vm12, %v2513_v40, %v743_v57  ;;  %v736_v20 = vmul.f32 %v1262_v61, %v2525_v12  ;;  %v1264_v10 = vpop.eup %1263  ;;  %v768_v17 = vand.u32 2147483648, %v2607_v33  ;;  %v1337_v57 = vld [vmem:[%s2742_s0 + $0x1e0] sm:$0xff] }
 0x12f   :  { %1022 = vst.msk [vmem:[%s2743_s1 + $0x1a8] sm:$0xff] %vm136_vm0, %v948_v55  ;;  %v748_v47 = vsel %vm746_vm13, %v747_v43, %v745_v46  ;;  %v757_v50 = vmul.f32 %v1264_v10, %v2555_v60  ;;  %vm767_vm8 = vcmp.eq.f32.partialorder %v2607_v33, 0.0  ;;  %v1338_v55 = vld [vmem:[%s2742_s0 + $0x1f8] sm:$0xff] }
 0x130   :  { %v1266_v39 = vpop.eup %1265  ;;  %1279 = vrcp.f32 %v833_v41  ;;  %v836_v40 = vmax.f32 %v748_v47, 1e-12  ;;  %v738_v23 = vsel %vm737_vm14, %v2525_v12, %v736_v20  ;;  %v1339_v41 = vld [vmem:[%s2742_s0 + $0x1f0] sm:$0xff] }
 0x131   :  { %v1268_v52 = vpop.eup %1267  ;;  %v946_v2 = vmul.f32 %v1329_v54, %v1266_v39  ;;  %v741_v25 = vsel %vm739_vm15, %v740_v15, %v738_v23  ;;  %v759_v21 = vsel %vm758_vm1, %v2555_v60, %v757_v50 }
 0x132   :  { %v1270_v13 = vpop.eup %1269  ;;  %1281 = vrcp.f32 %v836_v40  ;;  %v835_v30 = vmax.f32 %v741_v25, 1e-12  ;;  %v750_v12 = vmul.f32 %v1268_v52, %v2573_v19  ;;  %v762_v28 = vsel %vm760_vm2, %v761_v53, %v759_v21 }
 0x133   :  { %1021 = vst.msk [vmem:[%s2743_s1 + $0x1a0] sm:$0xff] %vm136_vm0, %v946_v2  ;;  %v952_v9 = vmul.f32 %v1330_v18, %v1270_v13  ;;  %v838_v60 = vmax.f32 %v762_v28, 1e-12 }
 0x134   :  { %v1272_v24 = vpop.eup %1271  ;;  %1283 = vrcp.f32 %v835_v30  ;;  %v752_v29 = vsel %vm751_vm3, %v2573_v19, %v750_v12  ;;  %v1332_v19 = vld [vmem:[%s2742_s0 + $0x1c8] sm:$0xff] }
 0x135   :  { %v1274_v56 = vpop.eup %1273  ;;  %1024 = vst.msk [vmem:[%s2743_s1 + $0x1b8] sm:$0xff] %vm136_vm0, %v952_v9  ;;  %v950_v14 = vmul.f32 %v1331_v26, %v1272_v24  ;;  %v755_v6 = vsel %vm753_vm4, %v754_v38, %v752_v29  ;;  %1285 = vrcp.f32 %v838_v60 }
 0x136   :  { %v1276_v3 = vpop.eup %1275  ;;  %v837_v42 = vmax.f32 %v755_v6, 1e-12  ;;  %v771_v5 = vmul.f32 %v1274_v56, %v2595_v27 }
 0x137   :  { %v1278_v7 = vpop.eup %1277  ;;  %1023 = vst.msk [vmem:[%s2743_s1 + $0x1b0] sm:$0xff] %vm136_vm0, %v950_v14  ;;  %v956_v62 = vmul.f32 %v1332_v19, %v1276_v3 }
 0x138   :  { %1287 = vrcp.f32 %v837_v42  ;;  %v773_v63 = vsel %vm772_vm5, %v2595_v27, %v771_v5  ;;  %v764_v11 = vmul.f32 %v1278_v7, %v2607_v33  ;;  %v1333_v27 = vld [vmem:[%s2742_s0 + $0x1c0] sm:$0xff] }
 0x139   :  { %1026 = vst.msk [vmem:[%s2743_s1 + $0x1c8] sm:$0xff] %vm136_vm0, %v956_v62  ;;  %v776_v45 = vsel %vm774_vm6, %v775_v34, %v773_v63 }
 0x13a   :  { %v1280_v48 = vpop.eup %1279  ;;  %v840_v8 = vmax.f32 %v776_v45, 1e-12  ;;  %v766_v36 = vsel %vm765_vm7, %v2607_v33, %v764_v11 }
 0x13b   :  { %v954_v1 = vmul.f32 %v1333_v27, %v1280_v48  ;;  %v769_v49 = vsel %vm767_vm8, %v768_v17, %v766_v36 }
 0x13c   :  { %v1282_v0 = vpop.eup %1281  ;;  %1289 = vrcp.f32 %v840_v8  ;;  %v839_v31 = vmax.f32 %v769_v49, 1e-12 }
 0x13d   :  { %1025 = vst.msk [vmem:[%s2743_s1 + $0x1c0] sm:$0xff] %vm136_vm0, %v954_v1  ;;  %v960_v16 = vmul.f32 %v1334_v32, %v1282_v0 }
 0x13e   :  { %v1284_v33 = vpop.eup %1283  ;;  %1291 = vrcp.f32 %v839_v31 }
 0x13f   :  { %1028 = vst.msk [vmem:[%s2743_s1 + $0x1d8] sm:$0xff] %vm136_vm0, %v960_v16  ;;  %v958_v4 = vmul.f32 %v1335_v35, %v1284_v33  ;;  %v1286_v51 = vpop.eup %1285 }
 0x140   :  { %v964_v44 = vmul.f32 %v1336_v59, %v1286_v51 }
 0x141   :  { %1027 = vst.msk [vmem:[%s2743_s1 + $0x1d0] sm:$0xff] %vm136_vm0, %v958_v4 }
 0x142   :  { %v1288_v22 = vpop.eup %1287  ;;  %1030 = vst.msk [vmem:[%s2743_s1 + $0x1e8] sm:$0xff] %vm136_vm0, %v964_v44 }
 0x143   :  { %v962_v61 = vmul.f32 %v1337_v57, %v1288_v22 }
 0x145   :  { %1029 = vst.msk [vmem:[%s2743_s1 + $0x1e0] sm:$0xff] %vm136_vm0, %v962_v61 }
 0x146   :  { %v1290_v37 = vpop.eup %1289 }
 0x147   :  { %v968_v58 = vmul.f32 %v1338_v55, %v1290_v37 }
 0x148   :  { %v1292_v43 = vpop.eup %1291 }
 0x149   :  { %1032 = vst.msk [vmem:[%s2743_s1 + $0x1f8] sm:$0xff] %vm136_vm0, %v968_v58  ;;  %v966_v46 = vmul.f32 %v1339_v41, %v1292_v43 }
 0x14b   :  { %1031 = vst.msk [vmem:[%s2743_s1 + $0x1f0] sm:$0xff] %vm136_vm0, %v966_v46 }

// kernel: wavesplit_forward.6
= control target key start
LH: loop header
LB: loop body
LE: loop exit
PB: predicated region body
PF: predicated region fallthrough
CT: control target
= control target key end

     0   :  { %s6221_s0 = inlined_call_operand.vmem [shape: f32[2,128,64], index: 0, kind: input, shape index: {}]   ;;  %s6222_s1 = inlined_call_operand.vmem [shape: f32[2,1,64], index: 1, kind: input, shape index: {}]   ;;  %s6223_s2 = inlined_call_operand.vmem [shape: f32[1,64], index: 2, kind: input, shape index: {}]   ;;  %s6224_s3 = inlined_call_operand.vmem [shape: f32[1,64], index: 3, kind: input, shape index: {}]   ;;  %s6225_s4 = inlined_call_operand.vmem [shape: f32[64,32], index: 4, kind: input, shape index: {}]   ;;  %s6226_s5 = inlined_call_operand.vmem [shape: f32[1,32], index: 5, kind: input, shape index: {}]   ;;  %s6227_s6 = inlined_call_operand.vmem [shape: f32[64,32], index: 6, kind: input, shape index: {}]   ;;  %s6228_s7 = inlined_call_operand.vmem [shape: f32[1,32], index: 7, kind: input, shape index: {}]   ;;  %s6229_s8 = inlined_call_operand.vmem [shape: f32[2,32,64], index: 8, kind: input, shape index: {}]   ;;  %s6230_s9 = inlined_call_operand.vmem [shape: f32[2,1,64], index: 9, kind: input, shape index: {}]   ;;  %s6231_s10 = inlined_call_operand.vmem [shape: f32[2,1,64], index: 10, kind: input, shape index: {}]   ;;  %s6232_s11 = inlined_call_operand.vmem [shape: f32[2,1,64], index: 11, kind: input, shape index: {}]   ;;  %s6233_s12 = inlined_call_operand.vmem [shape: f32[2,3,64], index: 12, kind: input, shape index: {}]   ;;  %s6234_s13 = inlined_call_operand.vmem [shape: f32[2,1,64], index: 13, kind: input, shape index: {}]   ;;  %s6235_s14 = inlined_call_operand.vmem [shape: f32[2,1,64], index: 14, kind: input, shape index: {}]   ;;  %s6236_s15 = inlined_call_operand.vmem [shape: f32[2,1,64], index: 15, kind: input, shape index: {}]   ;;  %s6237_s16 = inlined_call_operand.vmem [shape: f32[2,64,64], index: 16, kind: input, shape index: {}]   ;;  %s6238_s17 = inlined_call_operand.vmem [shape: f32[2,1,64], index: 17, kind: input, shape index: {}]   ;;  %s6239_s18 = inlined_call_operand.vmem [shape: f32[1,5], index: 18, kind: input, shape index: {}]   ;;  %s6240_s19 = inlined_call_operand.vmem [shape: f32[32,128], index: 19, kind: input, shape index: {}]   ;;  %s6241_s20 = inlined_call_operand.vmem [shape: f32[1,128], index: 20, kind: input, shape index: {}]   ;;  %s6242_s21 = inlined_call_operand.vmem [shape: f32[2,128,128], index: 21, kind: output, shape index: {}]  }
   0x1   :  { %6249 = sst [smem:[#allocation5_spill]] %s6221_s0 }
   0x2   :  { %6250 = sst [smem:[#allocation6_spill]] %s6222_s1 }
   0x3   :  { %6251 = sst [smem:[#allocation7_spill]] %s6223_s2  ;;  %s4538_s2 = smov 0  }
   0x4   :  { %6252 = sst [smem:[#allocation8_spill]] %s6224_s3 }
   0x5   :  { %6253 = sst [smem:[#allocation9_spill]] %s6225_s4 }
   0x6   :  { %6254 = sst [smem:[#allocation10_spill]] %s6226_s5 }
   0x7 LB: > { %s3743_s25 = sadd.s32 4294967295, %s4417_s2   ;;  %p3747_p0 = scmp.ge.s32.totalorder %s4417_s2, 1  ;;  %s4417_s2 = sphi %s4538_s2, %s31_s2  }
   0x8   : > { %p595_p1 = scmp.lt.s32.totalorder %s4417_s2, 3 }
   0xa   : > { %p596_p2 = pnand %p3747_p0, %p595_p1 }
   0xc   : > { %599 = sbr.rel (%p596_p2) target bundleno = 4050 (0xfd2), region = 104 }
  0x13   : > { %p658_p3 = scmp.lt.s32.totalorder %s3743_s25, 1  ;;  %vm672_vm0 = vcmask 523264   ;;  %s6255_s28 = sld [smem:[#allocation5_spill]]  ;;  %vm4420_vm1 = vmmov 0   ;;  %vm1210_vm2 = vcmask 261120  }
  0x14   : > { %s6256_s24 = sld [smem:[#allocation9_spill]]  ;;  %s6257_s30 = sld [smem:[#allocation6_spill]] }
  0x15   : > { %s6268_s25 = smov (!%p658_p3, %s3743_s25), 1  ;;  %s4424_s22 = smov 96  }
  0x16   : > { %s3890_s26 = sshll.u32 %s6268_s25, 7 }
  0x19   : > { %s4554_s29 = scalar_lea.vmem %s6255_s28, %s3890_s26 }
  0x1a   : > { %v691_v0 = vld [vmem:[%s4554_s29] sm:$0xff]  ;;  %v692_v1 = vld [vmem:[%s4554_s29 + $0x8] sm:$0xff]  ;;  %v693_v2 = vld [vmem:[%s4554_s29 + $0x10] sm:$0xff]  ;;  %s665_s5 = scalar_lea.vmem %s6257_s30, %s6268_s25 }
  0x1b   : > { %v694_v3 = vld [vmem:[%s4554_s29 + $0x18] sm:$0xff]  ;;  %v709_v4 = vsel %vm672_vm0, %v691_v0, 0.0  ;;  %v710_v5 = vsel %vm672_vm0, %v692_v1, 0.0  ;;  %v712_v6 = vsel %vm672_vm0, %v693_v2, 0.0  ;;  %v695_v7 = vld [vmem:[%s4554_s29 + $0x20] sm:$0xff]  ;;  %v696_v10 = vld [vmem:[%s4554_s29 + $0x28] sm:$0xff] }
  0x1c   : > { %v711_v8 = vadd.f32 %v710_v5, %v709_v4  ;;  %v714_v9 = vsel %vm672_vm0, %v694_v3, 0.0  ;;  %v716_v12 = vsel %vm672_vm0, %v695_v7, 0.0  ;;  %v697_v13 = vld [vmem:[%s4554_s29 + $0x30] sm:$0xff]  ;;  %v718_v15 = vsel %vm672_vm0, %v696_v10, 0.0  ;;  %v698_v16 = vld [vmem:[%s4554_s29 + $0x38] sm:$0xff]  ;;  %v699_v19 = vld [vmem:[%s4554_s29 + $0x40] sm:$0xff] }
  0x1d   : > { %v720_v18 = vsel %vm672_vm0, %v697_v13, 0.0  ;;  %v722_v21 = vsel %vm672_vm0, %v698_v16, 0.0  ;;  %v700_v22 = vld [vmem:[%s4554_s29 + $0x48] sm:$0xff]  ;;  %v724_v24 = vsel %vm672_vm0, %v699_v19, 0.0  ;;  %v4576_v25 = vld [vmem:[%s4554_s29 + $0x50] sm:$0xff]  ;;  %v4580_v28 = vld [vmem:[%s4554_s29 + $0x58] sm:$0xff] }
  0x1e   : > { %v713_v11 = vadd.f32 %v712_v6, %v711_v8  ;;  %v726_v27 = vsel %vm672_vm0, %v700_v22, 0.0  ;;  %v728_v30 = vsel %vm672_vm0, %v4576_v25, 0.0  ;;  %v4585_v31 = vld [vmem:[%s4554_s29 + $0x60] sm:$0xff]  ;;  %v730_v33 = vsel %vm672_vm0, %v4580_v28, 0.0  ;;  %v4590_v34 = vld [vmem:[%s4554_s29 + $0x68] sm:$0xff]  ;;  %v4595_v37 = vld [vmem:[%s4554_s29 + $0x70] sm:$0xff] }
  0x1f   : > { %v732_v36 = vsel %vm672_vm0, %v4585_v31, 0.0  ;;  %v734_v39 = vsel %vm672_vm0, %v4590_v34, 0.0  ;;  %v4600_v40 = vld [vmem:[%s4554_s29 + $0x78] sm:$0xff]  ;;  %v736_v42 = vsel %vm672_vm0, %v4595_v37, 0.0 }
  0x20   : > { %v715_v14 = vadd.f32 %v714_v9, %v713_v11  ;;  %v738_v44 = vsel %vm672_vm0, %v4600_v40, 0.0 }
  0x22   : > { %v717_v17 = vadd.f32 %v716_v12, %v715_v14 }
  0x24   : > { %v719_v20 = vadd.f32 %v718_v15, %v717_v17 }
  0x26   : > { %v721_v23 = vadd.f32 %v720_v18, %v719_v20 }
  0x28   : > { %v723_v26 = vadd.f32 %v722_v21, %v721_v23 }
  0x2a   : > { %v725_v29 = vadd.f32 %v724_v24, %v723_v26 }
  0x2c   : > { %v727_v32 = vadd.f32 %v726_v27, %v725_v29 }
  0x2e   : > { %v729_v35 = vadd.f32 %v728_v30, %v727_v32 }
  0x30   : > { %v731_v38 = vadd.f32 %v730_v33, %v729_v35 }
  0x32   : > { %v733_v41 = vadd.f32 %v732_v36, %v731_v38 }
  0x34   : > { %v735_v43 = vadd.f32 %v734_v39, %v733_v41 }
  0x36   : > { %v737_v45 = vadd.f32 %v736_v42, %v735_v43 }
  0x38   : > { %v739_v46 = vadd.f32 %v738_v44, %v737_v45 }
  0x3a   : > { %740 = vadd.xlane.f32.xlu0 %v739_v46 }
  0xc7   : > { %v741_v47 = vpop.xlane.xlu0 %740 }
  0xc8   : > { %v742_v48 = vrot.slane %v741_v47, 4 }
  0xca   : > { %v743_v49 = vadd.f32 %v742_v48, %v741_v47 }
  0xcc   : > { %v744_v50 = vrot.slane %v743_v49, 2 }
  0xce   : > { %v745_v51 = vadd.f32 %v744_v50, %v743_v49 }
  0xd0   : > { %v746_v52 = vrot.slane %v745_v51, 1 }
  0xd2   : > { %v747_v53 = vadd.f32 %v746_v52, %v745_v51 }
  0xd4   : > { %4356 = vpush %v747_v53 }
 0x105   : > { %s4357_s0 = spop %4356 }
 0x106   : > { %v749_v54 = vstv %s4357_s0  ;;  %s6258_s0 = sld [smem:[#allocation7_spill]] }
 0x107   : > { %v751_v55 = vmul.f32 0.00012207031, %v749_v54 }
 0x109   : > { %v4606_v56 = vsub.f32 %v691_v0, %v751_v55  ;;  %v4608_v57 = vsub.f32 %v692_v1, %v751_v55  ;;  %v4610_v58 = vsub.f32 %v693_v2, %v751_v55  ;;  %v4612_v59 = vsub.f32 %v694_v3, %v751_v55 }
 0x10a   : > { %v4618_v62 = vsub.f32 %v695_v7, %v751_v55  ;;  %v4622_v4 = vsub.f32 %v696_v10, %v751_v55  ;;  %v4628_v5 = vsub.f32 %v697_v13, %v751_v55  ;;  %v4633_v9 = vsub.f32 %v698_v16, %v751_v55 }
 0x10b   : > { %v768_v60 = vmul.f32 %v4606_v56, %v4606_v56  ;;  %v769_v61 = vmul.f32 %v4608_v57, %v4608_v57  ;;  %v770_v63 = vmul.f32 %v4610_v58, %v4610_v58  ;;  %v771_v0 = vmul.f32 %v4612_v59, %v4612_v59 }
 0x10c   : > { %v772_v6 = vmul.f32 %v4618_v62, %v4618_v62  ;;  %v773_v10 = vmul.f32 %v4622_v4, %v4622_v4  ;;  %v4638_v14 = vsub.f32 %v699_v19, %v751_v55  ;;  %v774_v13 = vmul.f32 %v4628_v5, %v4628_v5 }
 0x10d   : > { %v784_v1 = vsel %vm672_vm0, %v768_v60, 0.0  ;;  %v785_v2 = vsel %vm672_vm0, %v769_v61, 0.0  ;;  %v787_v7 = vsel %vm672_vm0, %v770_v63, 0.0  ;;  %v789_v11 = vsel %vm672_vm0, %v771_v0, 0.0  ;;  %v1098_v60 = vld [vmem:[%s6227_s6 + $0x8] sm:$0xff]  ;;  %v888_v61 = vld [vmem:[%s6256_s24] sm:$0xff] }
 0x10e   : > { %v786_v3 = vadd.f32 %v785_v2, %v784_v1  ;;  %v791_v15 = vsel %vm672_vm0, %v772_v6, 0.0  ;;  %v4643_v18 = vsub.f32 %v700_v22, %v751_v55  ;;  %v775_v16 = vmul.f32 %v4633_v9, %v4633_v9  ;;  %v889_v1 = vld [vmem:[%s6256_s24 + $0x8] sm:$0xff]  ;;  %v1099_v2 = vld [vmem:[%s6227_s6 + $0x10] sm:$0xff] }
 0x10f   : > { %v793_v20 = vsel %vm672_vm0, %v773_v10, 0.0  ;;  %v4649_v23 = vsub.f32 %v4576_v25, %v751_v55  ;;  %v776_v19 = vmul.f32 %v4638_v14, %v4638_v14  ;;  %v795_v24 = vsel %vm672_vm0, %v774_v13, 0.0  ;;  %v891_v10 = vld [vmem:[%s6256_s24 + $0x18] sm:$0xff]  ;;  %v892_v13 = vld [vmem:[%s6256_s24 + $0x20] sm:$0xff] }
 0x110   : > { %v788_v8 = vadd.f32 %v787_v7, %v786_v3  ;;  %v4655_v27 = vsub.f32 %v4580_v28, %v751_v55  ;;  %v777_v22 = vmul.f32 %v4643_v18, %v4643_v18  ;;  %v797_v29 = vsel %vm672_vm0, %v775_v16, 0.0  ;;  %v1100_v3 = vld [vmem:[%s6227_s6 + $0x18] sm:$0xff]  ;;  %v1102_v16 = vld [vmem:[%s6227_s6 + $0x28] sm:$0xff] }
 0x111   : > { %v4661_v32 = vsub.f32 %v4585_v31, %v751_v55  ;;  %v778_v25 = vmul.f32 %v4649_v23, %v4649_v23  ;;  %v799_v33 = vsel %vm672_vm0, %v776_v19, 0.0  ;;  %v4667_v36 = vsub.f32 %v4590_v34, %v751_v55  ;;  %v894_v19 = vld [vmem:[%s6256_s24 + $0x30] sm:$0xff] }
 0x112   : > { %v790_v12 = vadd.f32 %v789_v11, %v788_v8  ;;  %v779_v28 = vmul.f32 %v4655_v27, %v4655_v27  ;;  %v801_v38 = vsel %vm672_vm0, %v777_v22, 0.0  ;;  %v4673_v41 = vsub.f32 %v4595_v37, %v751_v55  ;;  %v890_v8 = vld [vmem:[%s6256_s24 + $0x10] sm:$0xff]  ;;  %v1104_v22 = vld [vmem:[%s6227_s6 + $0x38] sm:$0xff] }
 0x113   : > { %v780_v31 = vmul.f32 %v4661_v32, %v4661_v32  ;;  %v803_v42 = vsel %vm672_vm0, %v778_v25, 0.0  ;;  %v4679_v44 = vsub.f32 %v4600_v40, %v751_v55  ;;  %v781_v34 = vmul.f32 %v4667_v36, %v4667_v36  ;;  %v1097_v55 = vld [vmem:[%s6227_s6] sm:$0xff] }
 0x114   : > { %v792_v17 = vadd.f32 %v791_v15, %v790_v12  ;;  %v805_v45 = vsel %vm672_vm0, %v779_v28, 0.0  ;;  %v782_v47 = vmul.f32 %v4673_v41, %v4673_v41  ;;  %v4419_v63 = vmov 0.0|0.0   ;;  %v893_v15 = vld [vmem:[%s6256_s24 + $0x28] sm:$0xff]  ;;  %v1096_v25 = vld [vmem:[%s665_s5] sm:$0x1]  ;;  %s6259_s5 = sld [smem:[#allocation8_spill]] }
 0x115   : > { %v807_v37 = vsel %vm672_vm0, %v780_v31, 0.0  ;;  %v783_v49 = vmul.f32 %v4679_v44, %v4679_v44  ;;  %v809_v50 = vsel %vm672_vm0, %v781_v34, 0.0  ;;  %4284 = vmatprep.subr.bf16.mxu1 %v4419_v63  ;;  %v4285_v0 = vpack.c.bf16 %v1098_v60, %v1097_v55  ;;  %v1200_v34 = vld [vmem:[%s6229_s8 + $0x8] sm:$0xff] }
 0x116   : > { %v794_v21 = vadd.f32 %v793_v20, %v792_v17  ;;  %v811_v40 = vsel %vm672_vm0, %v782_v47, 0.0  ;;  %v4421_v6 = vmov 0.0   ;;  %v4268_v7 = vpack.c.bf16 %v889_v1, %v888_v61  ;;  %v1101_v17 = vld [vmem:[%s6227_s6 + $0x20] sm:$0xff] }
 0x117   : > { %v813_v53 = vsel %vm672_vm0, %v783_v49, 0.0  ;;  %4089 = vmatprep.mubr.msk.f32.mxu1 %vm4420_vm1, %v4421_v6  ;;  %673 = vst.msk [vmem:[#allocation2] sm:$0xff] %vm672_vm0, %v4421_v6  ;;  %674 = vst.msk [vmem:[#allocation2 + $0x8] sm:$0xff] %vm672_vm0, %v4421_v6  ;;  %4286 = vmatpush3.bf16.msra.mxu1 %v4285_v0  ;;  %v4288_v11 = vpack.c.bf16 %v1100_v3, %v1099_v2  ;;  %v4272_v12 = vpack.c.bf16 %v891_v10, %v890_v8  ;;  %v3752_v49 = vld [vmem:[%s6258_s0] ss:$0 sm:$0xff] }
 0x118   : > { %v796_v26 = vadd.f32 %v795_v24, %v794_v21  ;;  %675 = vst.msk [vmem:[#allocation2 + $0x10] sm:$0xff] %vm672_vm0, %v4421_v6  ;;  %676 = vst.msk [vmem:[#allocation2 + $0x18] sm:$0xff] %vm672_vm0, %v4421_v6  ;;  %4269 = vmatprep.subr.bf16.mxu0 %v4268_v7  ;;  %4287 = vmatprep.subr.bf16.mxu1 %v4419_v63  ;;  %v4276_v20 = vpack.c.bf16 %v893_v15, %v892_v13  ;;  %v895_v24 = vld [vmem:[%s6256_s24 + $0x38] sm:$0xff] }
 0x119   : > { %677 = vst.msk [vmem:[#allocation2 + $0x20] sm:$0xff] %vm672_vm0, %v4421_v6  ;;  %678 = vst.msk [vmem:[#allocation2 + $0x28] sm:$0xff] %vm672_vm0, %v4421_v6  ;;  %4271 = vmatpush3.bf16.msra.mxu0 %v4268_v7  ;;  %v4291_v21 = vpack.c.bf16 %v1102_v16, %v1101_v17 }
 0x11a   : > { %v798_v30 = vadd.f32 %v797_v29, %v796_v26  ;;  %679 = vst.msk [vmem:[#allocation2 + $0x30] sm:$0xff] %vm672_vm0, %v4421_v6  ;;  %680 = vst.msk [vmem:[#allocation2 + $0x38] sm:$0xff] %vm672_vm0, %v4421_v6  ;;  %4273 = vmatprep.subr.bf16.mxu0 %v4272_v12  ;;  %v1103_v26 = vld [vmem:[%s6227_s6 + $0x30] sm:$0xff]  ;;  %v4280_v29 = vpack.c.bf16 %v895_v24, %v894_v19 }
 0x11b   : > { %681 = vst.msk [vmem:[#allocation2 + $0x40] sm:$0xff] %vm672_vm0, %v4421_v6  ;;  %682 = vst.msk [vmem:[#allocation2 + $0x48] sm:$0xff] %vm672_vm0, %v4421_v6  ;;  %4289 = vmatpush3.bf16.msra.mxu1 %v4288_v11 }
 0x11c   : > { %v800_v35 = vadd.f32 %v799_v33, %v798_v30  ;;  %683 = vst.msk [vmem:[#allocation2 + $0x50] sm:$0xff] %vm672_vm0, %v4421_v6  ;;  %684 = vst.msk [vmem:[#allocation2 + $0x58] sm:$0xff] %vm672_vm0, %v4421_v6  ;;  %4290 = vmatprep.subr.bf16.mxu1 %v4419_v63  ;;  %v4294_v30 = vpack.c.bf16 %v1104_v22, %v1103_v26 }
 0x11d   : > { %685 = vst.msk [vmem:[#allocation2 + $0x60] sm:$0xff] %vm672_vm0, %v4421_v6  ;;  %686 = vst.msk [vmem:[#allocation2 + $0x68] sm:$0xff] %vm672_vm0, %v4421_v6  ;;  %4275 = vmatpush3.bf16.msra.mxu0 %v4272_v12 }
 0x11e   : > { %v802_v39 = vadd.f32 %v801_v38, %v800_v35  ;;  %687 = vst.msk [vmem:[#allocation2 + $0x70] sm:$0xff] %vm672_vm0, %v4421_v6  ;;  %688 = vst.msk [vmem:[#allocation2 + $0x78] sm:$0xff] %vm672_vm0, %v4421_v6  ;;  %4277 = vmatprep.subr.bf16.mxu0 %v4276_v20 }
 0x11f   : > { %689 = vst.msk [vmem:[#allocation2 + $0x80] sm:$0xff] %vm672_vm0, %v4421_v6  ;;  %690 = vst.msk [vmem:[#allocation2 + $0x88] sm:$0xff] %vm672_vm0, %v4421_v6  ;;  %4292 = vmatpush3.bf16.msra.mxu1 %v4291_v21 }
 0x120   : > { %v804_v43 = vadd.f32 %v803_v42, %v802_v39  ;;  %4293 = vmatprep.subr.bf16.mxu1 %v4419_v63 }
 0x121   : > { %4279 = vmatpush3.bf16.msra.mxu0 %v4276_v20 }
 0x122   : > { %v806_v46 = vadd.f32 %v805_v45, %v804_v43  ;;  %4281 = vmatprep.subr.bf16.mxu0 %v4280_v29  ;;  %v1199_v43 = vld [vmem:[%s6229_s8] sm:$0xff] }
 0x123   : > { %4295 = vmatpush3.bf16.msra.mxu1 %v4294_v30  ;;  %v4296_v45 = vpack.c.bf16 %v1200_v34, %v1199_v43  ;;  %v1179_v43 = vlaneseq }
 0x124   : > { %v808_v48 = vadd.f32 %v807_v37, %v806_v46 }
 0x125   : > { %4283 = vmatpush3.bf16.msra.mxu0 %v4280_v29  ;;  %4297 = vmatprep.subr.bf16.mxu1 %v4296_v45  ;;  %v4819_v34 = vshrl.u32 %v1179_v43, 7 }
 0x126   : > { %v810_v51 = vadd.f32 %v809_v50, %v808_v48  ;;  %4090 = vmatmul.mubr.msk.f32.vlgmr.msra.gmra.mrb[0].mxu1 %vm672_vm0, %v1096_v25 }
 0x127   : > { %4299 = vmatpush3.bf16.msra.mxu1 %v4296_v45  ;;  %6260 = vst [vmem:[#allocation3_spill] sm:$0xff] %v4819_v34  ;;  %v1105_v45 = vld [vmem:[%s6228_s7] sm:$0x1] }
 0x128   : > { %v812_v52 = vadd.f32 %v811_v40, %v810_v51 }
 0x12a   : > { %v814_v54 = vadd.f32 %v813_v53, %v812_v52  ;;  %v3753_v52 = vld [vmem:[%s6259_s5] ss:$0 sm:$0xff]  ;;  %s6262_s5 = sld [smem:[#allocation10_spill]] }
 0x12c   : > { %815 = vadd.xlane.f32.xlu0 %v814_v54 }
 0x1b9   : > { %v816_v33 = vpop.xlane.xlu0 %815 }
 0x1ba   : > { %v817_v35 = vrot.slane %v816_v33, 4 }
 0x1bc   : > { %v818_v28 = vadd.f32 %v817_v35, %v816_v33 }
 0x1be   : > { %v819_v38 = vrot.slane %v818_v28, 2 }
 0x1c0   : > { %v820_v39 = vadd.f32 %v819_v38, %v818_v28  ;;  %v1202_v38 = vld [vmem:[%s6229_s8 + $0x18] sm:$0xff] }
 0x1c2   : > { %v821_v31 = vrot.slane %v820_v39, 1 }
 0x1c4   : > { %v822_v42 = vadd.f32 %v821_v31, %v820_v39  ;;  %v4816_v31 = vld [vmem:[%s6239_s18] ss:$0 sm:$0xff] }
 0x1c6   : > { %4358 = vpush %v822_v42  ;;  %v4422_v42 = vmov 0  }
 0x1c7   : > { %4393 = vset.pattern.permute.xlu1 %v4422_v42 }
 0x1c8   : > { %1426 = vperm.xlu1 %4393, %v4816_v31  }
 0x1f7   : > { %s4359_s3 = spop %4358 }
 0x1f8   : > { %v824_v46 = vstv %s4359_s3 }
 0x1f9   : > { %v825_v47 = vmul.f32 0.00012207031, %v824_v46  ;;  %v1175_v35 = vpop.f32.mrb[0].mxu1 }
 0x1fa   : > { %v4091_v28 = vpop.f32.mrb[1].mxu1  ;;  %v1176_v46 = vadd.f32 %v1175_v35, %v1105_v45 }
 0x1fb   : > { %v826_v37 = vadd.f32 1e-08, %v825_v47  ;;  %v4825_v47 = vsub.s32 0, %v4819_v34 }
 0x1fd   : > { %4399 = vrsqrt.f32 %v826_v37  ;;  %6261 = vst [vmem:[#allocation4_spill] sm:$0xff] %v4825_v47  ;;  %v3754_v37 = vld [vmem:[%s6262_s5] ss:$0 sm:$0xff] }
 0x207   : > { %v4400_v48 = vpop.eup %4399 }
 0x208   : > { %v828_v50 = vmul.f32 %v4400_v48, %v4606_v56  ;;  %v829_v51 = vmul.f32 %v4400_v48, %v4608_v57  ;;  %v830_v40 = vmul.f32 %v4400_v48, %v4610_v58  ;;  %v831_v53 = vmul.f32 %v4400_v48, %v4612_v59 }
 0x209   : > { %v832_v61 = vmul.f32 %v4400_v48, %v4618_v62  ;;  %v833_v56 = vmul.f32 %v4400_v48, %v4622_v4  ;;  %v834_v2 = vmul.f32 %v4400_v48, %v4628_v5  ;;  %v835_v6 = vmul.f32 %v4400_v48, %v4633_v9 }
 0x20a   : > { %v850_v54 = vmul.f32 %v3752_v49, %v828_v50  ;;  %v851_v55 = vmul.f32 %v3752_v49, %v829_v51  ;;  %v852_v60 = vmul.f32 %v3752_v49, %v830_v40  ;;  %v853_v1 = vmul.f32 %v3752_v49, %v831_v53 }
 0x20b   : > { %v854_v58 = vmul.f32 %v3752_v49, %v832_v61  ;;  %v855_v3 = vmul.f32 %v3752_v49, %v833_v56  ;;  %v856_v7 = vmul.f32 %v3752_v49, %v834_v2  ;;  %v836_v8 = vmul.f32 %v4400_v48, %v4638_v14 }
 0x20c   : > { %v872_v63 = vadd.f32 %v3753_v52, %v850_v54  ;;  %v873_v0 = vadd.f32 %v3753_v52, %v851_v55  ;;  %v874_v57 = vadd.f32 %v3753_v52, %v852_v60  ;;  %v875_v59 = vadd.f32 %v3753_v52, %v853_v1 }
 0x20d   : > { %v876_v62 = vadd.f32 %v3753_v52, %v854_v58  ;;  %v877_v4 = vadd.f32 %v3753_v52, %v855_v3  ;;  %v857_v10 = vmul.f32 %v3752_v49, %v835_v6  ;;  %v837_v5 = vmul.f32 %v4400_v48, %v4643_v18 }
 0x20e   : > { %4049 = vmatprep.mubr.msk.f32.mxu0 %vm672_vm0, %v872_v63  ;;  %v878_v11 = vadd.f32 %v3753_v52, %v856_v7  ;;  %v858_v12 = vmul.f32 %v3752_v49, %v836_v8  ;;  %v838_v13 = vmul.f32 %v4400_v48, %v4649_v23  ;;  %v839_v14 = vmul.f32 %v4400_v48, %v4655_v27 }
 0x20f   : > { %4050 = vmatmul.mubr.msk.f32.vlgmr.msra.gmra.mrb[0].mxu0 %vm672_vm0, %v873_v0  ;;  %v879_v9 = vadd.f32 %v3753_v52, %v857_v10  ;;  %v859_v15 = vmul.f32 %v3752_v49, %v837_v5  ;;  %v840_v20 = vmul.f32 %v4400_v48, %v4661_v32  ;;  %v841_v23 = vmul.f32 %v4400_v48, %v4667_v36 }
 0x210   : > { %4052 = vmatprep.mubr.msk.f32.mxu0 %vm672_vm0, %v874_v57  ;;  %v880_v17 = vadd.f32 %v3753_v52, %v858_v12  ;;  %v860_v16 = vmul.f32 %v3752_v49, %v838_v13  ;;  %v861_v21 = vmul.f32 %v3752_v49, %v839_v14  ;;  %v842_v26 = vmul.f32 %v4400_v48, %v4673_v41 }
 0x211   : > { %v881_v18 = vadd.f32 %v3753_v52, %v859_v15  ;;  %v862_v24 = vmul.f32 %v3752_v49, %v840_v20  ;;  %v863_v22 = vmul.f32 %v3752_v49, %v841_v23  ;;  %v843_v32 = vmul.f32 %v4400_v48, %v4679_v44  ;;  %v1201_v44 = vld [vmem:[%s6229_s8 + $0x10] sm:$0xff] }
 0x212   : > { %v882_v19 = vadd.f32 %v3753_v52, %v860_v16  ;;  %v883_v27 = vadd.f32 %v3753_v52, %v861_v21  ;;  %v864_v30 = vmul.f32 %v3752_v49, %v842_v26  ;;  %v4300_v39 = vpack.c.bf16 %v1202_v38, %v1201_v44 }
 0x213   : > { %4053 = vmatmul.mubr.msk.f32.gmra.mrb[2].mxu0 %vm672_vm0, %v875_v59  ;;  %v884_v29 = vadd.f32 %v3753_v52, %v862_v24  ;;  %v885_v25 = vadd.f32 %v3753_v52, %v863_v22  ;;  %v865_v36 = vmul.f32 %v3752_v49, %v843_v32  ;;  %v4831_v48 = vrot.slane %v1176_v46, %v4825_v47 }
 0x214   : > { %4055 = vmatprep.mubr.msk.f32.mxu0 %vm672_vm0, %v876_v62  ;;  %v886_v33 = vadd.f32 %v3753_v52, %v864_v30  ;;  %4301 = vmatprep.subr.bf16.mxu1 %v4300_v39 }
 0x215   : > { %v887_v41 = vadd.f32 %v3753_v52, %v865_v36  ;;  %4303 = vmatpush3.bf16.msra.mxu1 %v4300_v39 }
 0x217   : > { %4056 = vmatmul.mubr.msk.f32.gmra.mrb[4].mxu0 %vm672_vm0, %v877_v4 }
 0x218   : > { %4058 = vmatprep.mubr.msk.f32.mxu0 %vm672_vm0, %v878_v11 }
 0x21b   : > { %4059 = vmatmul.mubr.msk.f32.gmra.mrb[6].mxu0 %vm672_vm0, %v879_v9 }
 0x21c   : > { %4061 = vmatprep.mubr.msk.f32.mxu0 %vm672_vm0, %v880_v17 }
 0x21f   : > { %4062 = vmatmul.mubr.msk.f32.gmra.mrb[8].mxu0 %vm672_vm0, %v881_v18 }
 0x220   : > { %4064 = vmatprep.mubr.msk.f32.mxu0 %vm672_vm0, %v882_v19 }
 0x223   : > { %4065 = vmatmul.mubr.msk.f32.gmra.mrb[10].mxu0 %vm672_vm0, %v883_v27 }
 0x224   : > { %4067 = vmatprep.mubr.msk.f32.mxu0 %vm672_vm0, %v884_v29 }
 0x227   : > { %4068 = vmatmul.mubr.msk.f32.gmra.mrb[12].mxu0 %vm672_vm0, %v885_v25 }
 0x228   : > { %4070 = vmatprep.mubr.msk.f32.mxu0 %vm672_vm0, %v886_v33  ;;  %v4916_v33 = vld [vmem:[%s6230_s9] ss:$0 sm:$0xff] }
 0x22b   : > { %4071 = vmatmul.mubr.msk.f32.gmra.mrb[14].mxu0 %vm672_vm0, %v887_v41 }
 0x247   : > { %v4918_v35 = vpop.permute.xlu1 %1426 }
 0x2e2   : > { %v4051_v49 = vpop.f32.mrb[0].mxu0 }
 0x2e3   : > { %v1023_v50 = vadd.f32 %v4051_v49, %v3754_v37  ;;  %v1017_v51 = vpop.f32.mrb[1].mxu0 }
 0x2e4   : > { %v1018_v40 = vadd.f32 %v3754_v37, %v1017_v51 }
 0x2e5   : > { %v4834_v52 = vadd.f32 %v4831_v48, %v1023_v50 }
 0x2e6   : > { %v4837_v53 = vadd.f32 %v4831_v48, %v1018_v40  ;;  %v4054_v54 = vpop.f32.mrb[2].mxu0 }
 0x2e7   : > { %v1033_v55 = vadd.f32 %v4054_v54, %v3754_v37  ;;  %v1027_v60 = vpop.f32.mrb[3].mxu0 }
 0x2e8   : > { %v1028_v61 = vadd.f32 %v3754_v37, %v1027_v60  ;;  %4100 = vmatprep.mubr.msk.f32.mxu1 %vm1210_vm2, %v4837_v53 }
 0x2e9   : > { %v4842_v63 = vadd.f32 %v4831_v48, %v1033_v55  ;;  %4101 = vmatmul.mubr.msk.f32.vlgmr.msra.gmra.mrb[2].mxu1 %vm1210_vm2, %v4834_v52 }
 0x2ea   : > { %v4847_v0 = vadd.f32 %v4831_v48, %v1028_v61  ;;  %v4057_v1 = vpop.f32.mrb[4].mxu0 }
 0x2eb   : > { %v1043_v56 = vadd.f32 %v4057_v1, %v3754_v37  ;;  %v1037_v57 = vpop.f32.mrb[5].mxu0 }
 0x2ec   : > { %v1038_v58 = vadd.f32 %v3754_v37, %v1037_v57  ;;  %4103 = vmatprep.mubr.msk.f32.mxu1 %vm1210_vm2, %v4847_v0 }
 0x2ed   : > { %v4852_v2 = vadd.f32 %v4831_v48, %v1043_v56  ;;  %4104 = vmatmul.mubr.msk.f32.gmra.mrb[4].mxu1 %vm1210_vm2, %v4842_v63 }
 0x2ee   : > { %v4857_v59 = vadd.f32 %v4831_v48, %v1038_v58  ;;  %v4060_v3 = vpop.f32.mrb[6].mxu0 }
 0x2ef   : > { %v1053_v6 = vadd.f32 %v4060_v3, %v3754_v37  ;;  %v1047_v62 = vpop.f32.mrb[7].mxu0 }
 0x2f0   : > { %v1048_v7 = vadd.f32 %v3754_v37, %v1047_v62  ;;  %4106 = vmatprep.mubr.msk.f32.mxu1 %vm1210_vm2, %v4857_v59 }
 0x2f1   : > { %v4862_v8 = vadd.f32 %v4831_v48, %v1053_v6  ;;  %4107 = vmatmul.mubr.msk.f32.gmra.mrb[6].mxu1 %vm1210_vm2, %v4852_v2 }
 0x2f2   : > { %v4867_v4 = vadd.f32 %v4831_v48, %v1048_v7  ;;  %v4063_v10 = vpop.f32.mrb[8].mxu0 }
 0x2f3   : > { %v1063_v5 = vadd.f32 %v4063_v10, %v3754_v37  ;;  %v1057_v11 = vpop.f32.mrb[9].mxu0 }
 0x2f4   : > { %v1058_v12 = vadd.f32 %v3754_v37, %v1057_v11  ;;  %4109 = vmatprep.mubr.msk.f32.mxu1 %vm1210_vm2, %v4867_v4 }
 0x2f5   : > { %v4872_v13 = vadd.f32 %v4831_v48, %v1063_v5  ;;  %4110 = vmatmul.mubr.msk.f32.gmra.mrb[8].mxu1 %vm1210_vm2, %v4862_v8 }
 0x2f6   : > { %v4877_v9 = vadd.f32 %v4831_v48, %v1058_v12  ;;  %v4066_v15 = vpop.f32.mrb[10].mxu0 }
 0x2f7   : > { %v1073_v14 = vadd.f32 %v4066_v15, %v3754_v37  ;;  %v1067_v17 = vpop.f32.mrb[11].mxu0 }
 0x2f8   : > { %v1068_v16 = vadd.f32 %v3754_v37, %v1067_v17  ;;  %4112 = vmatprep.mubr.msk.f32.mxu1 %vm1210_vm2, %v4877_v9 }
 0x2f9   : > { %v4882_v20 = vadd.f32 %v4831_v48, %v1073_v14  ;;  %4113 = vmatmul.mubr.msk.f32.gmra.mrb[10].mxu1 %vm1210_vm2, %v4872_v13 }
 0x2fa   : > { %v4887_v18 = vadd.f32 %v4831_v48, %v1068_v16  ;;  %v4069_v21 = vpop.f32.mrb[12].mxu0 }
 0x2fb   : > { %v1083_v23 = vadd.f32 %v4069_v21, %v3754_v37  ;;  %v1077_v19 = vpop.f32.mrb[13].mxu0 }
 0x2fc   : > { %v1078_v24 = vadd.f32 %v3754_v37, %v1077_v19  ;;  %4115 = vmatprep.mubr.msk.f32.mxu1 %vm1210_vm2, %v4887_v18 }
 0x2fd   : > { %v4892_v26 = vadd.f32 %v4831_v48, %v1083_v23  ;;  %4116 = vmatmul.mubr.msk.f32.gmra.mrb[12].mxu1 %vm1210_vm2, %v4882_v20 }
 0x2fe   : > { %v4897_v27 = vadd.f32 %v4831_v48, %v1078_v24  ;;  %v4072_v22 = vpop.f32.mrb[14].mxu0 }
 0x2ff   : > { %v1093_v32 = vadd.f32 %v4072_v22, %v3754_v37  ;;  %v1087_v29 = vpop.f32.mrb[15].mxu0 }
 0x300   : > { %v1088_v30 = vadd.f32 %v3754_v37, %v1087_v29  ;;  %4118 = vmatprep.mubr.msk.f32.mxu1 %vm1210_vm2, %v4897_v27 }
 0x301   : > { %v4902_v25 = vadd.f32 %v4831_v48, %v1093_v32  ;;  %4119 = vmatmul.mubr.msk.f32.gmra.mrb[14].mxu1 %vm1210_vm2, %v4892_v26 }
 0x302   : > { %v4907_v36 = vadd.f32 %v4831_v48, %v1088_v30 }
 0x304   : > { %4121 = vmatprep.mubr.msk.f32.mxu1 %vm1210_vm2, %v4907_v36 }
 0x305   : > { %4122 = vmatmul.mubr.msk.f32.gmra.mrb[16].mxu1 %vm1210_vm2, %v4902_v25 }
 0x3bc   : > { %v4102_v41 = vpop.f32.mrb[2].mxu1 }
 0x3bd   : > { %v1331_v28 = vadd.f32 %v4102_v41, %v4916_v33  ;;  %v1325_v44 = vpop.f32.mrb[3].mxu1 }
 0x3be   : > { %v1326_v38 = vadd.f32 %v4916_v33, %v1325_v44 }
 0x3bf   : > { %vm1405_vm3 = vcmp.ge.f32.partialorder %v1331_v28, 0.0  ;;  %v1430_v39 = vmul.f32 %v4918_v35, %v1331_v28 }
 0x3c0   : > { %vm1404_vm4 = vcmp.ge.f32.partialorder %v1326_v38, 0.0  ;;  %v4105_v42 = vpop.f32.mrb[4].mxu1  ;;  %v1429_v43 = vmul.f32 %v4918_v35, %v1326_v38 }
 0x3c1   : > { %v1341_v45 = vadd.f32 %v4105_v42, %v4916_v33  ;;  %v1335_v46 = vpop.f32.mrb[5].mxu1  ;;  %v4925_v37 = vsel %vm1405_vm3, %v1331_v28, %v1430_v39 }
 0x3c2   : > { %v1336_v48 = vadd.f32 %v4916_v33, %v1335_v46  ;;  %v4928_v49 = vsel %vm1404_vm4, %v1326_v38, %v1429_v43  ;;  %v1464_v40 = vsel %vm672_vm0, %v4925_v37, 0.0 }
 0x3c3   : > { %vm1407_vm5 = vcmp.ge.f32.partialorder %v1341_v45, 0.0  ;;  %v1432_v50 = vmul.f32 %v4918_v35, %v1341_v45  ;;  %v1463_v51 = vsel %vm672_vm0, %v4928_v49, 0.0 }
 0x3c4   : > { %vm1406_vm6 = vcmp.ge.f32.partialorder %v1336_v48, 0.0  ;;  %v1431_v54 = vmul.f32 %v4918_v35, %v1336_v48  ;;  %v4108_v55 = vpop.f32.mrb[6].mxu1  ;;  %v1465_v57 = vadd.f32 %v1464_v40, %v1463_v51 }
 0x3c5   : > { %v1351_v60 = vadd.f32 %v4108_v55, %v4916_v33  ;;  %v1345_v61 = vpop.f32.mrb[7].mxu1  ;;  %v4937_v1 = vsel %vm1407_vm5, %v1341_v45, %v1432_v50 }
 0x3c6   : > { %v4939_v56 = vsel %vm1406_vm6, %v1336_v48, %v1431_v54  ;;  %v1346_v58 = vadd.f32 %v4916_v33, %v1345_v61  ;;  %v1468_v5 = vsel %vm672_vm0, %v4937_v1, 0.0 }
 0x3c7   : > { %v1466_v3 = vsel %vm672_vm0, %v4939_v56, 0.0  ;;  %vm1409_vm7 = vcmp.ge.f32.partialorder %v1351_v60, 0.0  ;;  %v1434_v6 = vmul.f32 %v4918_v35, %v1351_v60 }
 0x3c8   : > { %v1467_v62 = vadd.f32 %v1466_v3, %v1465_v57  ;;  %vm1408_vm8 = vcmp.ge.f32.partialorder %v1346_v58, 0.0  ;;  %v1433_v7 = vmul.f32 %v4918_v35, %v1346_v58  ;;  %v4111_v10 = vpop.f32.mrb[8].mxu1 }
 0x3c9   : > { %v1361_v11 = vadd.f32 %v4111_v10, %v4916_v33  ;;  %v1355_v12 = vpop.f32.mrb[9].mxu1  ;;  %v4949_v15 = vsel %vm1409_vm7, %v1351_v60, %v1434_v6 }
 0x3ca   : > { %v4951_v14 = vsel %vm1408_vm8, %v1346_v58, %v1433_v7  ;;  %v1469_v17 = vadd.f32 %v1468_v5, %v1467_v62  ;;  %v1356_v16 = vadd.f32 %v4916_v33, %v1355_v12  ;;  %v1472_v32 = vsel %vm672_vm0, %v4949_v15, 0.0 }
 0x3cb   : > { %v1470_v21 = vsel %vm672_vm0, %v4951_v14, 0.0  ;;  %vm1411_vm9 = vcmp.ge.f32.partialorder %v1361_v11, 0.0  ;;  %v1436_v23 = vmul.f32 %v4918_v35, %v1361_v11 }
 0x3cc   : > { %v1471_v19 = vadd.f32 %v1470_v21, %v1469_v17  ;;  %vm1410_vm10 = vcmp.ge.f32.partialorder %v1356_v16, 0.0  ;;  %v1435_v24 = vmul.f32 %v4918_v35, %v1356_v16  ;;  %v4114_v22 = vpop.f32.mrb[10].mxu1 }
 0x3cd   : > { %v1371_v29 = vadd.f32 %v4114_v22, %v4916_v33  ;;  %v1365_v30 = vpop.f32.mrb[11].mxu1  ;;  %v4961_v41 = vsel %vm1411_vm9, %v1361_v11, %v1436_v23 }
 0x3ce   : > { %v4963_v28 = vsel %vm1410_vm10, %v1356_v16, %v1435_v24  ;;  %v1473_v44 = vadd.f32 %v1472_v32, %v1471_v19  ;;  %v1366_v38 = vadd.f32 %v4916_v33, %v1365_v30  ;;  %v1476_v48 = vsel %vm672_vm0, %v4961_v41, 0.0 }
 0x3cf   : > { %v1474_v39 = vsel %vm672_vm0, %v4963_v28, 0.0  ;;  %vm1413_vm11 = vcmp.ge.f32.partialorder %v1371_v29, 0.0  ;;  %v1438_v42 = vmul.f32 %v4918_v35, %v1371_v29 }
 0x3d0   : > { %v1475_v43 = vadd.f32 %v1474_v39, %v1473_v44  ;;  %vm1412_vm12 = vcmp.ge.f32.partialorder %v1366_v38, 0.0  ;;  %v1437_v45 = vmul.f32 %v4918_v35, %v1366_v38  ;;  %v4117_v46 = vpop.f32.mrb[12].mxu1 }
 0x3d1   : > { %v1381_v50 = vadd.f32 %v4117_v46, %v4916_v33  ;;  %v1375_v51 = vpop.f32.mrb[13].mxu1  ;;  %v4973_v40 = vsel %vm1413_vm11, %v1371_v29, %v1438_v42 }
 0x3d2   : > { %v4975_v54 = vsel %vm1412_vm12, %v1366_v38, %v1437_v45  ;;  %v1477_v55 = vadd.f32 %v1476_v48, %v1475_v43  ;;  %v1376_v60 = vadd.f32 %v4916_v33, %v1375_v51  ;;  %v1480_v62 = vsel %vm672_vm0, %v4973_v40, 0.0 }
 0x3d3   : > { %v1478_v61 = vsel %vm672_vm0, %v4975_v54, 0.0  ;;  %vm1415_vm13 = vcmp.ge.f32.partialorder %v1381_v50, 0.0  ;;  %v1440_v57 = vmul.f32 %v4918_v35, %v1381_v50 }
 0x3d4   : > { %v1479_v58 = vadd.f32 %v1478_v61, %v1477_v55  ;;  %vm1414_vm14 = vcmp.ge.f32.partialorder %v1376_v60, 0.0  ;;  %v1439_v3 = vmul.f32 %v4918_v35, %v1376_v60  ;;  %v4120_v6 = vpop.f32.mrb[14].mxu1 }
 0x3d5   : > { %v1391_v7 = vadd.f32 %v4120_v6, %v4916_v33  ;;  %v1385_v10 = vpop.f32.mrb[15].mxu1  ;;  %v4985_v5 = vsel %vm1415_vm13, %v1381_v50, %v1440_v57 }
 0x3d6   : > { %v4987_v11 = vsel %vm1414_vm14, %v1376_v60, %v1439_v3  ;;  %v1481_v12 = vadd.f32 %v1480_v62, %v1479_v58  ;;  %v1386_v17 = vadd.f32 %v4916_v33, %v1385_v10  ;;  %v1484_v22 = vsel %vm672_vm0, %v4985_v5, 0.0 }
 0x3d7   : > { %v1482_v16 = vsel %vm672_vm0, %v4987_v11, 0.0  ;;  %vm1417_vm15 = vcmp.ge.f32.partialorder %v1391_v7, 0.0  ;;  %v1442_v21 = vmul.f32 %v4918_v35, %v1391_v7  ;;  %v4423_v58 = vmov 1  }
 0x3d8   : > { %v1483_v23 = vadd.f32 %v1482_v16, %v1481_v12  ;;  %vm1416_vm1 = vcmp.ge.f32.partialorder %v1386_v17, 0.0  ;;  %v1441_v19 = vmul.f32 %v4918_v35, %v1386_v17  ;;  %v4123_v24 = vpop.f32.mrb[16].mxu1  ;;  %4394 = vset.pattern.permute.xlu0 %v4423_v58 }
 0x3d9   : > { %v1401_v32 = vadd.f32 %v4123_v24, %v4916_v33  ;;  %v1395_v29 = vpop.f32.mrb[17].mxu1  ;;  %v4997_v30 = vsel %vm1417_vm15, %v1391_v7, %v1442_v21 }
 0x3da   : > { %v4999_v44 = vsel %vm1416_vm1, %v1386_v17, %v1441_v19  ;;  %v1485_v38 = vadd.f32 %v1484_v22, %v1483_v23  ;;  %v1396_v39 = vadd.f32 %v4916_v33, %v1395_v29  ;;  %v1488_v48 = vsel %vm672_vm0, %v4997_v30, 0.0 }
 0x3db   : > { %v1486_v42 = vsel %vm672_vm0, %v4999_v44, 0.0  ;;  %vm1419_vm3 = vcmp.ge.f32.partialorder %v1401_v32, 0.0  ;;  %v1444_v43 = vmul.f32 %v4918_v35, %v1401_v32 }
 0x3dc   : > { %v1487_v45 = vadd.f32 %v1486_v42, %v1485_v38  ;;  %vm1418_vm4 = vcmp.ge.f32.partialorder %v1396_v39, 0.0  ;;  %v1443_v46 = vmul.f32 %v4918_v35, %v1396_v39 }
 0x3dd   : > { %v5010_v51 = vsel %vm1419_vm3, %v1401_v32, %v1444_v43 }
 0x3de   : > { %v5008_v50 = vsel %vm1418_vm4, %v1396_v39, %v1443_v46  ;;  %v1489_v55 = vadd.f32 %v1488_v48, %v1487_v45  ;;  %v1492_v61 = vsel %vm672_vm0, %v5010_v51, 0.0 }
 0x3df   : > { %v1490_v33 = vsel %vm672_vm0, %v5008_v50, 0.0 }
 0x3e0   : > { %v1491_v60 = vadd.f32 %v1490_v33, %v1489_v55 }
 0x3e2   : > { %v1493_v57 = vadd.f32 %v1492_v61, %v1491_v60 }
 0x3e4   : > { %1494 = vadd.xlane.f32.xlu1 %v1493_v57 }
 0x471   : > { %v1495_v35 = vpop.xlane.xlu1 %1494 }
 0x472   : > { %v1496_v3 = vrot.slane %v1495_v35, 4 }
 0x474   : > { %v1497_v6 = vadd.f32 %v1496_v3, %v1495_v35 }
 0x476   : > { %v1498_v62 = vrot.slane %v1497_v6, 2 }
 0x478   : > { %v1499_v7 = vadd.f32 %v1498_v62, %v1497_v6 }
 0x47a   : > { %v1500_v10 = vrot.slane %v1499_v7, 1 }
 0x47c   : > { %v1501_v12 = vadd.f32 %v1500_v10, %v1499_v7 }
 0x47e   : > { %4360 = vpush %v1501_v12 }
 0x4af   : > { %s4361_s1 = spop %4360 }
 0x4b0   : > { %v1503_v17 = vstv %s4361_s1 }
 0x4b1   : > { %v1504_v16 = vmul.f32 0.00012207031, %v1503_v17 }
 0x4b3   : > { %v5017_v21 = vsub.f32 %v4928_v49, %v1504_v16  ;;  %v5020_v23 = vsub.f32 %v4925_v37, %v1504_v16  ;;  %v5023_v19 = vsub.f32 %v4939_v56, %v1504_v16  ;;  %v5026_v24 = vsub.f32 %v4937_v1, %v1504_v16 }
 0x4b4   : > { %v5033_v29 = vsub.f32 %v4951_v14, %v1504_v16  ;;  %v5038_v37 = vsub.f32 %v4949_v15, %v1504_v16  ;;  %v5045_v42 = vsub.f32 %v4963_v28, %v1504_v16  ;;  %v5051_v15 = vsub.f32 %v4961_v41, %v1504_v16 }
 0x4b5   : > { %v1521_v22 = vmul.f32 %v5017_v21, %v5017_v21  ;;  %v1522_v32 = vmul.f32 %v5020_v23, %v5020_v23  ;;  %v1523_v49 = vmul.f32 %v5023_v19, %v5023_v19  ;;  %v1524_v56 = vmul.f32 %v5026_v24, %v5026_v24 }
 0x4b6   : > { %v1525_v14 = vmul.f32 %v5033_v29, %v5033_v29  ;;  %v1526_v46 = vmul.f32 %v5038_v37, %v5038_v37  ;;  %v5057_v33 = vsub.f32 %v4975_v54, %v1504_v16  ;;  %v1527_v28 = vmul.f32 %v5045_v42, %v5045_v42 }
 0x4b7   : > { %v1537_v1 = vsel %vm672_vm0, %v1521_v22, 0.0  ;;  %v1538_v38 = vsel %vm672_vm0, %v1522_v32, 0.0  ;;  %v1540_v43 = vsel %vm672_vm0, %v1523_v49, 0.0  ;;  %v1542_v48 = vsel %vm672_vm0, %v1524_v56, 0.0 }
 0x4b8   : > { %v1539_v39 = vadd.f32 %v1538_v38, %v1537_v1  ;;  %v1544_v60 = vsel %vm672_vm0, %v1525_v14, 0.0  ;;  %v5063_v57 = vsub.f32 %v4973_v40, %v1504_v16  ;;  %v1528_v41 = vmul.f32 %v5051_v15, %v5051_v15 }
 0x4b9   : > { %v1546_v58 = vsel %vm672_vm0, %v1526_v46, 0.0  ;;  %v1515_v3 = vsub.f32 %v4987_v11, %v1504_v16  ;;  %v1529_v54 = vmul.f32 %v5057_v33, %v5057_v33  ;;  %v1548_v6 = vsel %vm672_vm0, %v1527_v28, 0.0 }
 0x4ba   : > { %v1541_v45 = vadd.f32 %v1540_v43, %v1539_v39  ;;  %v1516_v7 = vsub.f32 %v4985_v5, %v1504_v16  ;;  %v1530_v40 = vmul.f32 %v5063_v57, %v5063_v57  ;;  %v1550_v10 = vsel %vm672_vm0, %v1528_v41, 0.0 }
 0x4bb   : > { %v1517_v17 = vsub.f32 %v4999_v44, %v1504_v16  ;;  %v1531_v22 = vmul.f32 %v1515_v3, %v1515_v3  ;;  %v1552_v32 = vsel %vm672_vm0, %v1529_v54, 0.0  ;;  %v1518_v49 = vsub.f32 %v4997_v30, %v1504_v16 }
 0x4bc   : > { %v1543_v55 = vadd.f32 %v1542_v48, %v1541_v45  ;;  %v1532_v56 = vmul.f32 %v1516_v7, %v1516_v7  ;;  %v1554_v1 = vsel %vm672_vm0, %v1530_v40, 0.0  ;;  %v1519_v5 = vsub.f32 %v5008_v50, %v1504_v16 }
 0x4bd   : > { %v1533_v39 = vmul.f32 %v1517_v17, %v1517_v17  ;;  %v1556_v14 = vsel %vm672_vm0, %v1531_v22, 0.0  ;;  %v1520_v45 = vsub.f32 %v5010_v51, %v1504_v16  ;;  %v1534_v46 = vmul.f32 %v1518_v49, %v1518_v49 }
 0x4be   : > { %v1545_v61 = vadd.f32 %v1544_v60, %v1543_v55  ;;  %v1558_v44 = vsel %vm672_vm0, %v1532_v56, 0.0  ;;  %v1535_v55 = vmul.f32 %v1519_v5, %v1519_v5 }
 0x4bf   : > { %v1560_v28 = vsel %vm672_vm0, %v1533_v39, 0.0  ;;  %v1536_v60 = vmul.f32 %v1520_v45, %v1520_v45 }
 0x4c0   : > { %v1547_v35 = vadd.f32 %v1546_v58, %v1545_v61  ;;  %v1562_v61 = vsel %vm672_vm0, %v1534_v46, 0.0  ;;  %v1564_v50 = vsel %vm672_vm0, %v1535_v55, 0.0 }
 0x4c2   : > { %v1549_v62 = vadd.f32 %v1548_v6, %v1547_v35  ;;  %v1566_v35 = vsel %vm672_vm0, %v1536_v60, 0.0 }
 0x4c4   : > { %v1551_v12 = vadd.f32 %v1550_v10, %v1549_v62 }
 0x4c6   : > { %v1553_v11 = vadd.f32 %v1552_v32, %v1551_v12 }
 0x4c8   : > { %v1555_v38 = vadd.f32 %v1554_v1, %v1553_v11 }
 0x4ca   : > { %v1557_v43 = vadd.f32 %v1556_v14, %v1555_v38  ;;  %v3790_v14 = vld [vmem:[%s6231_s10] ss:$0 sm:$0xff] }
 0x4cc   : > { %v1559_v48 = vadd.f32 %v1558_v44, %v1557_v43 }
 0x4ce   : > { %v1561_v30 = vadd.f32 %v1560_v28, %v1559_v48 }
 0x4d0   : > { %v1563_v41 = vadd.f32 %v1562_v61, %v1561_v30 }
 0x4d2   : > { %v1565_v58 = vadd.f32 %v1564_v50, %v1563_v41 }
 0x4d4   : > { %v1567_v54 = vadd.f32 %v1566_v35, %v1565_v58 }
 0x4d6   : > { %1568 = vadd.xlane.f32.xlu0 %v1567_v54 }
 0x4ec   : > { %1822 = vperm.xlu0 %4394, %v4816_v31  }
 0x563   : > { %v1569_v51 = vpop.xlane.xlu0 %1568 }
 0x564   : > { %v1570_v16 = vrot.slane %v1569_v51, 4 }
 0x566   : > { %v1571_v6 = vadd.f32 %v1570_v16, %v1569_v51 }
 0x568   : > { %v1572_v62 = vrot.slane %v1571_v6, 2 }
 0x56a   : > { %v1573_v40 = vadd.f32 %v1572_v62, %v1571_v6 }
 0x56c   : > { %v1574_v10 = vrot.slane %v1573_v40, 1 }
 0x56e   : > { %v1575_v12 = vadd.f32 %v1574_v10, %v1573_v40 }
 0x570   : > { %4362 = vpush %v1575_v12 }
 0x5a1   : > { %s4363_s27 = spop %4362 }
 0x5a2   : > { %v1577_v22 = vstv %s4363_s27 }
 0x5a3   : > { %v1578_v32 = vmul.f32 0.00012207031, %v1577_v22 }
 0x5a5   : > { %v1579_v11 = vadd.f32 1e-08, %v1578_v32 }
 0x5a7   : > { %4401 = vrsqrt.f32 %v1579_v11 }
 0x5b1   : > { %v4402_v56 = vpop.eup %4401 }
 0x5b2   : > { %v1581_v1 = vmul.f32 %v4402_v56, %v5017_v21  ;;  %v1582_v38 = vmul.f32 %v4402_v56, %v5020_v23  ;;  %v1583_v31 = vmul.f32 %v4402_v56, %v5023_v19  ;;  %v1584_v39 = vmul.f32 %v4402_v56, %v5026_v24 }
 0x5b3   : > { %v1585_v43 = vmul.f32 %v4402_v56, %v5033_v29  ;;  %v1586_v46 = vmul.f32 %v4402_v56, %v5038_v37  ;;  %v1587_v44 = vmul.f32 %v4402_v56, %v5045_v42  ;;  %v1588_v48 = vmul.f32 %v4402_v56, %v5051_v15  ;;  %v3791_v37 = vld [vmem:[%s6232_s11] ss:$0 sm:$0xff] }
 0x5b4   : > { %v1589_v21 = vmul.f32 %v4402_v56, %v5057_v33  ;;  %v1590_v23 = vmul.f32 %v4402_v56, %v5063_v57  ;;  %v1591_v55 = vmul.f32 %v4402_v56, %v1515_v3  ;;  %v1592_v19 = vmul.f32 %v4402_v56, %v1516_v7 }
 0x5b5   : > { %v1593_v28 = vmul.f32 %v4402_v56, %v1517_v17  ;;  %v1594_v24 = vmul.f32 %v4402_v56, %v1518_v49  ;;  %v1595_v30 = vmul.f32 %v4402_v56, %v1519_v5  ;;  %v1596_v60 = vmul.f32 %v4402_v56, %v1520_v45 }
 0x5b6   : > { %v1603_v61 = vmul.f32 %v3790_v14, %v1581_v1  ;;  %v1604_v41 = vmul.f32 %v3790_v14, %v1582_v38  ;;  %v1605_v50 = vmul.f32 %v3790_v14, %v1583_v31  ;;  %v1606_v29 = vmul.f32 %v3790_v14, %v1584_v39 }
 0x5b7   : > { %v1607_v42 = vmul.f32 %v3790_v14, %v1585_v43  ;;  %v1608_v15 = vmul.f32 %v3790_v14, %v1586_v46  ;;  %v1609_v58 = vmul.f32 %v3790_v14, %v1587_v44  ;;  %v1610_v33 = vmul.f32 %v3790_v14, %v1588_v48  ;;  %v1657_v43 = vld [vmem:[%s6233_s12] sm:$0x7] }
 0x5b8   : > { %v1611_v35 = vmul.f32 %v3790_v14, %v1589_v21  ;;  %v1612_v57 = vmul.f32 %v3790_v14, %v1590_v23  ;;  %v1613_v3 = vmul.f32 %v3790_v14, %v1591_v55  ;;  %v1614_v7 = vmul.f32 %v3790_v14, %v1592_v19 }
 0x5b9   : > { %v1615_v17 = vmul.f32 %v3790_v14, %v1593_v28  ;;  %v1616_v49 = vmul.f32 %v3790_v14, %v1594_v24  ;;  %v1617_v5 = vmul.f32 %v3790_v14, %v1595_v30  ;;  %v1618_v45 = vmul.f32 %v3790_v14, %v1596_v60 }
 0x5ba   : > { %v1625_v54 = vadd.f32 %v3791_v37, %v1603_v61  ;;  %v1626_v51 = vadd.f32 %v3791_v37, %v1604_v41  ;;  %v1627_v16 = vadd.f32 %v3791_v37, %v1605_v50  ;;  %v1628_v6 = vadd.f32 %v3791_v37, %v1606_v29 }
 0x5bb   : > { %v1629_v62 = vadd.f32 %v3791_v37, %v1607_v42  ;;  %v1630_v40 = vadd.f32 %v3791_v37, %v1608_v15  ;;  %v1631_v10 = vadd.f32 %v3791_v37, %v1609_v58  ;;  %v1632_v12 = vadd.f32 %v3791_v37, %v1610_v33 }
 0x5bc   : > { %v1633_v22 = vadd.f32 %v3791_v37, %v1611_v35  ;;  %v1634_v32 = vadd.f32 %v3791_v37, %v1612_v57  ;;  %v1635_v11 = vadd.f32 %v3791_v37, %v1613_v3  ;;  %v1636_v56 = vadd.f32 %v3791_v37, %v1614_v7  ;;  %1641 = vst.msk [vmem:[#allocation2 + $0x8] sm:$0xff] %vm672_vm0, %v1625_v54 }
 0x5bd   : > { %1642 = vst.msk [vmem:[#allocation2 + $0x10] sm:$0xff] %vm672_vm0, %v1626_v51  ;;  %1643 = vst.msk [vmem:[#allocation2 + $0x18] sm:$0xff] %vm672_vm0, %v1627_v16  ;;  %v1637_v1 = vadd.f32 %v3791_v37, %v1615_v17  ;;  %v1638_v38 = vadd.f32 %v3791_v37, %v1616_v49  ;;  %v1639_v31 = vadd.f32 %v3791_v37, %v1617_v5  ;;  %v6245_v14 = vsub.s32 1, %v4819_v34 }
 0x5be   : > { %1644 = vst.msk [vmem:[#allocation2 + $0x20] sm:$0xff] %vm672_vm0, %v1628_v6  ;;  %v1640_v39 = vadd.f32 %v3791_v37, %v1618_v45  ;;  %1645 = vst.msk [vmem:[#allocation2 + $0x28] sm:$0xff] %vm672_vm0, %v1629_v62  ;;  %v5126_v46 = vrot.slane %v1657_v43, %v4825_v47  ;;  %v6244_v23 = vsub.s32 2, %v4819_v34 }
 0x5bf   : > { %1646 = vst.msk [vmem:[#allocation2 + $0x30] sm:$0xff] %vm672_vm0, %v1630_v40  ;;  %1647 = vst.msk [vmem:[#allocation2 + $0x38] sm:$0xff] %vm672_vm0, %v1631_v10  ;;  %v1697_v21 = vrot.slane %v1657_v43, %v6245_v14 }
 0x5c0   : > { %1648 = vst.msk [vmem:[#allocation2 + $0x40] sm:$0xff] %vm672_vm0, %v1632_v12  ;;  %1649 = vst.msk [vmem:[#allocation2 + $0x48] sm:$0xff] %vm672_vm0, %v1633_v22  ;;  %v5135_v60 = vrot.slane %v1657_v43, %v6244_v23 }
 0x5c1   : > { %1650 = vst.msk [vmem:[#allocation2 + $0x50] sm:$0xff] %vm672_vm0, %v1634_v32  ;;  %1651 = vst.msk [vmem:[#allocation2 + $0x58] sm:$0xff] %vm672_vm0, %v1635_v11  ;;  %v1698_v30 = vmul.f32 %v1697_v21, %v1625_v54  ;;  %v1699_v41 = vmul.f32 %v1697_v21, %v1626_v51  ;;  %v1700_v50 = vmul.f32 %v1697_v21, %v1627_v16 }
 0x5c2   : > { %1652 = vst.msk [vmem:[#allocation2 + $0x60] sm:$0xff] %vm672_vm0, %v1636_v56  ;;  %1653 = vst.msk [vmem:[#allocation2 + $0x68] sm:$0xff] %vm672_vm0, %v1637_v1  ;;  %v1701_v29 = vmul.f32 %v1697_v21, %v1628_v6  ;;  %v1702_v42 = vmul.f32 %v1697_v21, %v1629_v62  ;;  %v1703_v15 = vmul.f32 %v1697_v21, %v1630_v40 }
 0x5c3   : > { %1654 = vst.msk [vmem:[#allocation2 + $0x70] sm:$0xff] %vm672_vm0, %v1638_v38  ;;  %1655 = vst.msk [vmem:[#allocation2 + $0x78] sm:$0xff] %vm672_vm0, %v1639_v31  ;;  %v1658_v44 = vld [vmem:[#allocation2 + $0x7] sm:$0xff]  ;;  %v1704_v58 = vmul.f32 %v1697_v21, %v1631_v10  ;;  %v1705_v33 = vmul.f32 %v1697_v21, %v1632_v12  ;;  %v1706_v17 = vmul.f32 %v1697_v21, %v1633_v22 }
 0x5c4   : > { %1656 = vst.msk [vmem:[#allocation2 + $0x80] sm:$0xff] %vm672_vm0, %v1640_v39  ;;  %v1659_v48 = vld [vmem:[#allocation2 + $0xf] sm:$0xff]  ;;  %v1660_v55 = vld [vmem:[#allocation2 + $0x17] sm:$0xff]  ;;  %v1678_v19 = vmul.f32 %v5126_v46, %v1658_v44  ;;  %v1707_v54 = vmul.f32 %v1697_v21, %v1634_v32  ;;  %v1708_v43 = vmul.f32 %v1697_v21, %v1635_v11  ;;  %v1709_v44 = vmul.f32 %v1697_v21, %v1636_v56 }
 0x5c5   : > { %v1679_v28 = vmul.f32 %v5126_v46, %v1659_v48  ;;  %v1661_v24 = vld [vmem:[#allocation2 + $0x1f] sm:$0xff]  ;;  %v1680_v61 = vmul.f32 %v5126_v46, %v1660_v55  ;;  %v1662_v37 = vld [vmem:[#allocation2 + $0x27] sm:$0xff]  ;;  %v1731_v57 = vld [vmem:[#allocation2 + $0x11] sm:$0xff]  ;;  %v5139_v51 = vmul.f32 %v1697_v21, %v1637_v1  ;;  %v1712_v32 = vmul.f32 %v1697_v21, %v1639_v31 }
 0x5c6   : > { %v1730_v35 = vld [vmem:[#allocation2 + $0x9] sm:$0xff]  ;;  %v1681_v7 = vmul.f32 %v5126_v46, %v1661_v24  ;;  %v1714_v49 = vadd.f32 %v1698_v30, %v1678_v19  ;;  %v1664_v45 = vld [vmem:[#allocation2 + $0x37] sm:$0xff]  ;;  %v1682_v10 = vmul.f32 %v5126_v46, %v1662_v37  ;;  %v1751_v55 = vmul.f32 %v5135_v60, %v1731_v57  ;;  %v1733_v56 = vld [vmem:[#allocation2 + $0x21] sm:$0xff] }
 0x5c7   : > { %v1663_v3 = vld [vmem:[#allocation2 + $0x2f] sm:$0xff]  ;;  %v1715_v5 = vadd.f32 %v1699_v41, %v1679_v28  ;;  %v1732_v16 = vld [vmem:[#allocation2 + $0x19] sm:$0xff]  ;;  %v1666_v62 = vld [vmem:[#allocation2 + $0x47] sm:$0xff]  ;;  %v1716_v12 = vadd.f32 %v1700_v50, %v1680_v61  ;;  %v1750_v48 = vmul.f32 %v5135_v60, %v1730_v35  ;;  %v1711_v28 = vmul.f32 %v1697_v21, %v1638_v38 }
 0x5c8   : > { %v1665_v6 = vld [vmem:[#allocation2 + $0x3f] sm:$0xff]  ;;  %v1667_v40 = vld [vmem:[#allocation2 + $0x4f] sm:$0xff]  ;;  %v1668_v22 = vld [vmem:[#allocation2 + $0x57] sm:$0xff]  ;;  %v1683_v19 = vmul.f32 %v5126_v46, %v1663_v3  ;;  %v5145_v11 = vmul.f32 %v1697_v21, %v1640_v39  ;;  %v1717_v41 = vadd.f32 %v1701_v29, %v1681_v7  ;;  %v1752_v23 = vmul.f32 %v5135_v60, %v1732_v16 }
 0x5c9   : > { %v1669_v1 = vld [vmem:[#allocation2 + $0x5f] sm:$0xff]  ;;  %v1670_v24 = vld [vmem:[#allocation2 + $0x67] sm:$0xff]  ;;  %v1766_v37 = vadd.f32 %v1750_v48, %v1714_v49  ;;  %v1767_v61 = vadd.f32 %v1751_v55, %v1715_v5  ;;  %v1684_v50 = vmul.f32 %v5126_v46, %v1664_v45  ;;  %v1685_v35 = vmul.f32 %v5126_v46, %v1665_v6 }
 0x5ca   : > { %v1671_v30 = vld [vmem:[#allocation2 + $0x6f] sm:$0xff]  ;;  %v1686_v57 = vmul.f32 %v5126_v46, %v1666_v62  ;;  %v1687_v38 = vmul.f32 %v5126_v46, %v1667_v40  ;;  %v5155_v39 = vld [vmem:[%s6234_s13] ss:$0 sm:$0xff]  ;;  %v1672_v21 = vld [vmem:[#allocation2 + $0x77] sm:$0xff]  ;;  %v1688_v3 = vmul.f32 %v5126_v46, %v1668_v22  ;;  %v1718_v7 = vadd.f32 %v1702_v42, %v1682_v10  ;;  %v5165_v42 = vpop.permute.xlu0 %1822 }
 0x5cb   : > { %v1734_v31 = vld [vmem:[#allocation2 + $0x29] sm:$0xff]  ;;  %v1673_v29 = vld [vmem:[#allocation2 + $0x7f] sm:$0xff]  ;;  %v1753_v49 = vmul.f32 %v5135_v60, %v1733_v56  ;;  %v1768_v5 = vadd.f32 %v1752_v23, %v1716_v12  ;;  %v1689_v45 = vmul.f32 %v5126_v46, %v1669_v1  ;;  %v1690_v16 = vmul.f32 %v5126_v46, %v1670_v24  ;;  %v1735_v40 = vld [vmem:[#allocation2 + $0x31] sm:$0xff] }
 0x5cc   : > { %v1691_v6 = vmul.f32 %v5126_v46, %v1671_v30  ;;  %v1719_v62 = vadd.f32 %v1703_v15, %v1683_v19  ;;  %v1736_v48 = vld [vmem:[#allocation2 + $0x39] sm:$0xff]  ;;  %v1754_v55 = vmul.f32 %v5135_v60, %v1734_v31  ;;  %v1789_v34 = vadd.f32 %v5155_v39, %v1766_v37  ;;  %v1737_v24 = vld [vmem:[#allocation2 + $0x41] sm:$0xff] }
 0x5cd   : > { %v1769_v14 = vadd.f32 %v1753_v49, %v1717_v41  ;;  %v1790_v22 = vadd.f32 %v5155_v39, %v1767_v61  ;;  %v1692_v23 = vmul.f32 %v5126_v46, %v1672_v21  ;;  %v1693_v10 = vmul.f32 %v5126_v46, %v1673_v29  ;;  %v1738_v49 = vld [vmem:[#allocation2 + $0x49] sm:$0xff] }
 0x5ce   : > { %v1720_v12 = vadd.f32 %v1704_v58, %v1684_v50  ;;  %v1721_v56 = vadd.f32 %v1705_v33, %v1685_v35  ;;  %v1722_v1 = vadd.f32 %v1706_v17, %v1686_v57  ;;  %v1755_v15 = vmul.f32 %v5135_v60, %v1735_v40 }
 0x5cf   : > { %v1770_v19 = vadd.f32 %v1754_v55, %v1718_v7  ;;  %v1791_v30 = vadd.f32 %v5155_v39, %v1768_v5  ;;  %v1723_v41 = vadd.f32 %v1707_v54, %v1687_v38  ;;  %v1724_v31 = vadd.f32 %v1708_v43, %v1688_v3  ;;  %v1739_v54 = vld [vmem:[#allocation2 + $0x51] sm:$0xff]  ;;  %v1740_v43 = vld [vmem:[#allocation2 + $0x59] sm:$0xff]  ;;  %v1742_v55 = vld [vmem:[#allocation2 + $0x69] sm:$0xff] }
 0x5d0   : > { %v1725_v37 = vadd.f32 %v1709_v44, %v1689_v45  ;;  %v1756_v61 = vmul.f32 %v5135_v60, %v1736_v48  ;;  %v1771_v47 = vadd.f32 %v1755_v15, %v1719_v62  ;;  %v1792_v21 = vadd.f32 %v5155_v39, %v1769_v14  ;;  %v1743_v15 = vld [vmem:[#allocation2 + $0x71] sm:$0xff] }
 0x5d1   : > { %v1825_v46 = vmul.f32 %v5165_v42, %v1789_v34  ;;  %v1826_v58 = vmul.f32 %v5165_v42, %v1790_v22  ;;  %v1726_v33 = vadd.f32 %v5139_v51, %v1690_v16  ;;  %v1757_v17 = vmul.f32 %v5135_v60, %v1737_v24 }
 0x5d2   : > { %vm1805_vm5 = vcmp.ge.f32.partialorder %v1789_v34, 0.0  ;;  %vm1806_vm6 = vcmp.ge.f32.partialorder %v1790_v22, 0.0  ;;  %v1727_v50 = vadd.f32 %v1711_v28, %v1691_v6  ;;  %v1772_v44 = vadd.f32 %v1756_v61, %v1720_v12 }
 0x5d3   : > { %v1793_v35 = vadd.f32 %v5155_v39, %v1770_v19  ;;  %v1827_v57 = vmul.f32 %v5165_v42, %v1791_v30  ;;  %v1728_v38 = vadd.f32 %v1712_v32, %v1692_v23  ;;  %v1758_v14 = vmul.f32 %v5135_v60, %v1738_v49  ;;  %v1741_v32 = vld [vmem:[#allocation2 + $0x61] sm:$0xff] }
 0x5d4   : > { %v1773_v29 = vadd.f32 %v1757_v17, %v1721_v56  ;;  %vm1807_vm7 = vcmp.ge.f32.partialorder %v1791_v30, 0.0  ;;  %v1794_v3 = vadd.f32 %v5155_v39, %v1771_v47  ;;  %v1828_v51 = vmul.f32 %v5165_v42, %v1792_v21 }
 0x5d5   : > { %v5182_v7 = vsel %vm1805_vm5, %v1789_v34, %v1825_v46  ;;  %v5184_v5 = vsel %vm1806_vm6, %v1790_v22, %v1826_v58  ;;  %v1729_v28 = vadd.f32 %v5145_v11, %v1693_v10  ;;  %v1759_v45 = vmul.f32 %v5135_v60, %v1739_v54 }
 0x5d6   : > { %v1760_v16 = vmul.f32 %v5135_v60, %v1740_v43  ;;  %vm1808_vm8 = vcmp.ge.f32.partialorder %v1792_v21, 0.0  ;;  %v1774_v6 = vadd.f32 %v1758_v14, %v1722_v1  ;;  %v1795_v62 = vadd.f32 %v5155_v39, %v1772_v44 }
 0x5d7   : > { %v1829_v40 = vmul.f32 %v5165_v42, %v1793_v35  ;;  %v5191_v47 = vsel %vm1807_vm7, %v1791_v30, %v1827_v57  ;;  %v1775_v48 = vadd.f32 %v1759_v45, %v1723_v41  ;;  %vm1809_vm9 = vcmp.ge.f32.partialorder %v1793_v35, 0.0 }
 0x5d8   : > { %v1859_v34 = vsel %vm672_vm0, %v5182_v7, 0.0  ;;  %v1860_v11 = vsel %vm672_vm0, %v5184_v5, 0.0  ;;  %v1796_v22 = vadd.f32 %v5155_v39, %v1773_v29  ;;  %v1830_v23 = vmul.f32 %v5165_v42, %v1794_v3 }
 0x5d9   : > { %v5199_v10 = vsel %vm1808_vm8, %v1792_v21, %v1828_v51  ;;  %v1861_v12 = vadd.f32 %v1860_v11, %v1859_v34  ;;  %v1761_v56 = vmul.f32 %v5135_v60, %v1741_v32  ;;  %v1776_v1 = vadd.f32 %v1760_v16, %v1724_v31  ;;  %v1744_v31 = vld [vmem:[#allocation2 + $0x79] sm:$0xff] }
 0x5da   : > { %vm1810_vm10 = vcmp.ge.f32.partialorder %v1794_v3, 0.0  ;;  %v1862_v24 = vsel %vm672_vm0, %v5191_v47, 0.0  ;;  %v1797_v19 = vadd.f32 %v5155_v39, %v1774_v6  ;;  %v1831_v30 = vmul.f32 %v5165_v42, %v1795_v62 }
 0x5db   : > { %v5206_v41 = vsel %vm1809_vm9, %v1793_v35, %v1829_v40  ;;  %v1863_v61 = vadd.f32 %v1862_v24, %v1861_v12  ;;  %v1762_v49 = vmul.f32 %v5135_v60, %v1742_v55  ;;  %v1777_v21 = vadd.f32 %v1761_v56, %v1725_v37  ;;  %v1745_v37 = vld [vmem:[#allocation2 + $0x81] sm:$0xff] }
 0x5dc   : > { %vm1811_vm11 = vcmp.ge.f32.partialorder %v1795_v62, 0.0  ;;  %v1864_v46 = vsel %vm672_vm0, %v5199_v10, 0.0  ;;  %v1798_v58 = vadd.f32 %v5155_v39, %v1775_v48  ;;  %v1832_v17 = vmul.f32 %v5165_v42, %v1796_v22 }
 0x5dd   : > { %v5213_v54 = vsel %vm1810_vm10, %v1794_v3, %v1830_v23  ;;  %v1865_v43 = vadd.f32 %v1864_v46, %v1863_v61  ;;  %v1763_v44 = vmul.f32 %v5135_v60, %v1743_v15  ;;  %v1778_v35 = vadd.f32 %v1762_v49, %v1726_v33 }
 0x5de   : > { %vm1812_vm12 = vcmp.ge.f32.partialorder %v1796_v22, 0.0  ;;  %v1866_v57 = vsel %vm672_vm0, %v5206_v41, 0.0  ;;  %v1799_v14 = vadd.f32 %v5155_v39, %v1776_v1  ;;  %v1833_v29 = vmul.f32 %v5165_v42, %v1797_v19 }
 0x5df   : > { %v5220_v51 = vsel %vm1811_vm11, %v1795_v62, %v1831_v30  ;;  %v1867_v45 = vadd.f32 %v1866_v57, %v1865_v43  ;;  %v1764_v16 = vmul.f32 %v5135_v60, %v1744_v31  ;;  %v1779_v3 = vadd.f32 %v1763_v44, %v1727_v50 }
 0x5e0   : > { %vm1813_vm13 = vcmp.ge.f32.partialorder %v1797_v19, 0.0  ;;  %v1868_v32 = vsel %vm672_vm0, %v5213_v54, 0.0  ;;  %v1800_v33 = vadd.f32 %v5155_v39, %v1777_v21  ;;  %v1834_v6 = vmul.f32 %v5165_v42, %v1798_v58 }
 0x5e1   : > { %v5227_v40 = vsel %vm1812_vm12, %v1796_v22, %v1832_v17  ;;  %v1869_v48 = vadd.f32 %v1868_v32, %v1867_v45  ;;  %v1765_v34 = vmul.f32 %v5135_v60, %v1745_v37  ;;  %v1780_v11 = vadd.f32 %v1764_v16, %v1728_v38 }
 0x5e2   : > { %vm1814_vm14 = vcmp.ge.f32.partialorder %v1798_v58, 0.0  ;;  %v1870_v62 = vsel %vm672_vm0, %v5220_v51, 0.0  ;;  %v1801_v50 = vadd.f32 %v5155_v39, %v1778_v35  ;;  %v1835_v55 = vmul.f32 %v5165_v42, %v1799_v14 }
 0x5e3   : > { %v5234_v23 = vsel %vm1813_vm13, %v1797_v19, %v1833_v29  ;;  %v1871_v12 = vadd.f32 %v1870_v62, %v1869_v48  ;;  %v1781_v56 = vadd.f32 %v1765_v34, %v1729_v28  ;;  %vm1815_vm15 = vcmp.ge.f32.partialorder %v1799_v14, 0.0 }
 0x5e4   : > { %v1872_v22 = vsel %vm672_vm0, %v5227_v40, 0.0  ;;  %v1802_v1 = vadd.f32 %v5155_v39, %v1779_v3  ;;  %v1836_v60 = vmul.f32 %v5165_v42, %v1800_v33  ;;  %v5240_v38 = vsel %vm1814_vm14, %v1798_v58, %v1834_v6 }
 0x5e5   : > { %v1873_v24 = vadd.f32 %v1872_v22, %v1871_v12  ;;  %vm1816_vm1 = vcmp.ge.f32.partialorder %v1800_v33, 0.0  ;;  %v1874_v15 = vsel %vm672_vm0, %v5234_v23, 0.0  ;;  %v1803_v19 = vadd.f32 %v5155_v39, %v1780_v11 }
 0x5e6   : > { %v1837_v30 = vmul.f32 %v5165_v42, %v1801_v50  ;;  %v5246_v28 = vsel %vm1815_vm15, %v1799_v14, %v1835_v55  ;;  %vm1817_vm3 = vcmp.ge.f32.partialorder %v1801_v50, 0.0  ;;  %v1876_v49 = vsel %vm672_vm0, %v5240_v38, 0.0 }
 0x5e7   : > { %v1875_v61 = vadd.f32 %v1874_v15, %v1873_v24  ;;  %v1804_v21 = vadd.f32 %v5155_v39, %v1781_v56  ;;  %v1838_v46 = vmul.f32 %v5165_v42, %v1802_v1  ;;  %v5252_v31 = vsel %vm1816_vm1, %v1800_v33, %v1836_v60 }
 0x5e8   : > { %vm1818_vm4 = vcmp.ge.f32.partialorder %v1802_v1, 0.0  ;;  %v1878_v17 = vsel %vm672_vm0, %v5246_v28, 0.0  ;;  %v1839_v43 = vmul.f32 %v5165_v42, %v1803_v19  ;;  %v5257_v44 = vsel %vm1817_vm3, %v1801_v50, %v1837_v30 }
 0x5e9   : > { %v1877_v58 = vadd.f32 %v1876_v49, %v1875_v61  ;;  %vm1819_vm5 = vcmp.ge.f32.partialorder %v1803_v19, 0.0  ;;  %v1880_v57 = vsel %vm672_vm0, %v5252_v31, 0.0  ;;  %v1840_v39 = vmul.f32 %v5165_v42, %v1804_v21 }
 0x5ea   : > { %v5262_v37 = vsel %vm1818_vm4, %v1802_v1, %v1838_v46  ;;  %vm1820_vm6 = vcmp.ge.f32.partialorder %v1804_v21, 0.0  ;;  %v1882_v29 = vsel %vm672_vm0, %v5257_v44, 0.0  ;;  %v5266_v45 = vsel %vm1819_vm5, %v1803_v19, %v1839_v43 }
 0x5eb   : > { %v1879_v35 = vadd.f32 %v1878_v17, %v1877_v58  ;;  %v1884_v3 = vsel %vm672_vm0, %v5262_v37, 0.0  ;;  %v5270_v32 = vsel %vm1820_vm6, %v1804_v21, %v1840_v39  ;;  %v1886_v6 = vsel %vm672_vm0, %v5266_v45, 0.0 }
 0x5ec   : > { %v1888_v48 = vsel %vm672_vm0, %v5270_v32, 0.0 }
 0x5ed   : > { %v1881_v14 = vadd.f32 %v1880_v57, %v1879_v35 }
 0x5ef   : > { %v1883_v16 = vadd.f32 %v1882_v29, %v1881_v14 }
 0x5f1   : > { %v1885_v33 = vadd.f32 %v1884_v3, %v1883_v16 }
 0x5f3   : > { %v1887_v42 = vadd.f32 %v1886_v6, %v1885_v33 }
 0x5f5   : > { %v1889_v34 = vadd.f32 %v1888_v48, %v1887_v42 }
 0x5f7   : > { %1890 = vadd.xlane.f32.xlu1 %v1889_v34 }
 0x684   : > { %v1891_v11 = vpop.xlane.xlu1 %1890 }
 0x685   : > { %v1892_v62 = vrot.slane %v1891_v11, 4 }
 0x687   : > { %v1893_v50 = vadd.f32 %v1892_v62, %v1891_v11 }
 0x689   : > { %v1894_v55 = vrot.slane %v1893_v50, 2 }
 0x68b   : > { %v1895_v12 = vadd.f32 %v1894_v55, %v1893_v50 }
 0x68d   : > { %v1896_v56 = vrot.slane %v1895_v12, 1 }
 0x68f   : > { %v1897_v22 = vadd.f32 %v1896_v56, %v1895_v12 }
 0x691   : > { %4364 = vpush %v1897_v22 }
 0x6c2   : > { %s4365_s23 = spop %4364 }
 0x6c3   : > { %v1899_v1 = vstv %s4365_s23 }
 0x6c4   : > { %v1900_v60 = vmul.f32 0.00012207031, %v1899_v1 }
 0x6c6   : > { %v5277_v24 = vsub.f32 %v5182_v7, %v1900_v60  ;;  %v5280_v15 = vsub.f32 %v5184_v5, %v1900_v60  ;;  %v5283_v19 = vsub.f32 %v5191_v47, %v1900_v60  ;;  %v5286_v30 = vsub.f32 %v5199_v10, %v1900_v60 }
 0x6c7   : > { %v5293_v21 = vsub.f32 %v5206_v41, %v1900_v60  ;;  %v5298_v5 = vsub.f32 %v5213_v54, %v1900_v60  ;;  %v5305_v17 = vsub.f32 %v5220_v51, %v1900_v60  ;;  %v5311_v54 = vsub.f32 %v5227_v40, %v1900_v60 }
 0x6c8   : > { %v1917_v61 = vmul.f32 %v5277_v24, %v5277_v24  ;;  %v1918_v49 = vmul.f32 %v5280_v15, %v5280_v15  ;;  %v1919_v7 = vmul.f32 %v5283_v19, %v5283_v19  ;;  %v1920_v47 = vmul.f32 %v5286_v30, %v5286_v30 }
 0x6c9   : > { %v1921_v41 = vmul.f32 %v5293_v21, %v5293_v21  ;;  %v1922_v57 = vmul.f32 %v5298_v5, %v5298_v5  ;;  %v5317_v29 = vsub.f32 %v5234_v23, %v1900_v60  ;;  %v1923_v51 = vmul.f32 %v5305_v17, %v5305_v17 }
 0x6ca   : > { %v1933_v10 = vsel %vm672_vm0, %v1917_v61, 0.0  ;;  %v1934_v46 = vsel %vm672_vm0, %v1918_v49, 0.0  ;;  %v1936_v43 = vsel %vm672_vm0, %v1919_v7, 0.0  ;;  %v1938_v39 = vsel %vm672_vm0, %v1920_v47, 0.0 }
 0x6cb   : > { %v1935_v58 = vadd.f32 %v1934_v46, %v1933_v10  ;;  %v1940_v16 = vsel %vm672_vm0, %v1921_v41, 0.0  ;;  %v5323_v33 = vsub.f32 %v5240_v38, %v1900_v60  ;;  %v1924_v40 = vmul.f32 %v5311_v54, %v5311_v54 }
 0x6cc   : > { %v1942_v6 = vsel %vm672_vm0, %v1922_v57, 0.0  ;;  %v5329_v48 = vsub.f32 %v5246_v28, %v1900_v60  ;;  %v1925_v23 = vmul.f32 %v5317_v29, %v5317_v29  ;;  %v1944_v34 = vsel %vm672_vm0, %v1923_v51, 0.0 }
 0x6cd   : > { %v1937_v35 = vadd.f32 %v1936_v43, %v1935_v58  ;;  %v5335_v62 = vsub.f32 %v5252_v31, %v1900_v60  ;;  %v1926_v38 = vmul.f32 %v5323_v33, %v5323_v33  ;;  %v1946_v50 = vsel %vm672_vm0, %v1924_v40, 0.0  ;;  %v2038_v40 = vld [vmem:[%s6237_s16 + $0x8] sm:$0xff] }
 0x6ce   : > { %v5341_v12 = vsub.f32 %v5257_v44, %v1900_v60  ;;  %v1927_v28 = vmul.f32 %v5329_v48, %v5329_v48  ;;  %v1948_v56 = vsel %vm672_vm0, %v1925_v23, 0.0  ;;  %v5347_v1 = vsub.f32 %v5262_v37, %v1900_v60  ;;  %v2040_v23 = vld [vmem:[%s6237_s16 + $0x18] sm:$0xff] }
 0x6cf   : > { %v1939_v14 = vadd.f32 %v1938_v39, %v1937_v35  ;;  %v1928_v31 = vmul.f32 %v5335_v62, %v5335_v62  ;;  %v1950_v61 = vsel %vm672_vm0, %v1926_v38, 0.0  ;;  %v5353_v7 = vsub.f32 %v5266_v45, %v1900_v60  ;;  %v2042_v38 = vld [vmem:[%s6237_s16 + $0x28] sm:$0xff] }
 0x6d0   : > { %v1929_v44 = vmul.f32 %v5341_v12, %v5341_v12  ;;  %v1952_v47 = vsel %vm672_vm0, %v1927_v28, 0.0  ;;  %v5359_v46 = vsub.f32 %v5270_v32, %v1900_v60  ;;  %v1930_v37 = vmul.f32 %v5347_v1, %v5347_v1  ;;  %v2044_v28 = vld [vmem:[%s6237_s16 + $0x38] sm:$0xff] }
 0x6d1   : > { %v1941_v3 = vadd.f32 %v1940_v16, %v1939_v14  ;;  %v1954_v58 = vsel %vm672_vm0, %v1928_v31, 0.0  ;;  %v1931_v43 = vmul.f32 %v5353_v7, %v5353_v7 }
 0x6d2   : > { %v1956_v45 = vsel %vm672_vm0, %v1929_v44, 0.0  ;;  %v1932_v57 = vmul.f32 %v5359_v46, %v5359_v46  ;;  %v1958_v39 = vsel %vm672_vm0, %v1930_v37, 0.0 }
 0x6d3   : > { %v1943_v42 = vadd.f32 %v1942_v6, %v1941_v3  ;;  %v1960_v32 = vsel %vm672_vm0, %v1931_v43, 0.0  ;;  %v2037_v3 = vld [vmem:[%s6237_s16] sm:$0xff]  ;;  %v2039_v6 = vld [vmem:[%s6237_s16 + $0x10] sm:$0xff] }
 0x6d4   : > { %v1962_v51 = vsel %vm672_vm0, %v1932_v57, 0.0 }
 0x6d5   : > { %v1945_v11 = vadd.f32 %v1944_v34, %v1943_v42  ;;  %v4304_v42 = vpack.c.bf16 %v2038_v40, %v2037_v3  ;;  %v4308_v34 = vpack.c.bf16 %v2040_v23, %v2039_v6 }
 0x6d7   : > { %v1947_v55 = vadd.f32 %v1946_v50, %v1945_v11  ;;  %4305 = vmatprep.subr.bf16.mxu0 %v4304_v42  ;;  %v2041_v11 = vld [vmem:[%s6237_s16 + $0x20] sm:$0xff]  ;;  %v2043_v50 = vld [vmem:[%s6237_s16 + $0x30] sm:$0xff] }
 0x6d8   : > { %4307 = vmatpush3.bf16.msra.mxu0 %v4304_v42 }
 0x6d9   : > { %v1949_v22 = vadd.f32 %v1948_v56, %v1947_v55  ;;  %4309 = vmatprep.subr.bf16.mxu0 %v4308_v34  ;;  %v4312_v55 = vpack.c.bf16 %v2042_v38, %v2041_v11  ;;  %v4316_v56 = vpack.c.bf16 %v2044_v28, %v2043_v50 }
 0x6db   : > { %v1951_v49 = vadd.f32 %v1950_v61, %v1949_v22 }
 0x6dc   : > { %4311 = vmatpush3.bf16.msra.mxu0 %v4308_v34 }
 0x6dd   : > { %v1953_v10 = vadd.f32 %v1952_v47, %v1951_v49  ;;  %4313 = vmatprep.subr.bf16.mxu0 %v4312_v55 }
 0x6df   : > { %v1955_v41 = vadd.f32 %v1954_v58, %v1953_v10 }
 0x6e0   : > { %4315 = vmatpush3.bf16.msra.mxu0 %v4312_v55 }
 0x6e1   : > { %v1957_v35 = vadd.f32 %v1956_v45, %v1955_v41  ;;  %4317 = vmatprep.subr.bf16.mxu0 %v4316_v56  ;;  %v3793_v45 = vld [vmem:[%s6235_s14] ss:$0 sm:$0xff] }
 0x6e3   : > { %v1959_v14 = vadd.f32 %v1958_v39, %v1957_v35 }
 0x6e4   : > { %4319 = vmatpush3.bf16.msra.mxu0 %v4316_v56 }
 0x6e5   : > { %v1961_v60 = vadd.f32 %v1960_v32, %v1959_v14  ;;  %v3794_v14 = vld [vmem:[%s6236_s15] ss:$0 sm:$0xff] }
 0x6e7   : > { %v1963_v16 = vadd.f32 %v1962_v51, %v1961_v60 }
 0x6e9   : > { %1964 = vadd.xlane.f32.xlu1 %v1963_v16 }
 0x776   : > { %v1965_v22 = vpop.xlane.xlu1 %1964 }
 0x777   : > { %v1966_v31 = vrot.slane %v1965_v22, 4 }
 0x779   : > { %v1967_v61 = vadd.f32 %v1966_v31, %v1965_v22 }
 0x77b   : > { %v1968_v49 = vrot.slane %v1967_v61, 2 }
 0x77d   : > { %v1969_v44 = vadd.f32 %v1968_v49, %v1967_v61 }
 0x77f   : > { %v1970_v47 = vrot.slane %v1969_v44, 1 }
 0x781   : > { %v1971_v10 = vadd.f32 %v1970_v47, %v1969_v44 }
 0x783   : > { %4366 = vpush %v1971_v10 }
 0x7b4   : > { %s4367_s0 = spop %4366 }
 0x7b5   : > { %v1973_v37 = vstv %s4367_s0 }
 0x7b6   : > { %v1974_v58 = vmul.f32 0.00012207031, %v1973_v37 }
 0x7b8   : > { %v1975_v41 = vadd.f32 1e-08, %v1974_v58 }
 0x7ba   : > { %4403 = vrsqrt.f32 %v1975_v41 }
 0x7c4   : > { %v4404_v43 = vpop.eup %4403 }
 0x7c5   : > { %v1977_v35 = vmul.f32 %v4404_v43, %v5277_v24  ;;  %v1978_v57 = vmul.f32 %v4404_v43, %v5280_v15  ;;  %v1979_v39 = vmul.f32 %v4404_v43, %v5283_v19  ;;  %v1980_v32 = vmul.f32 %v4404_v43, %v5286_v30 }
 0x7c6   : > { %v1981_v3 = vmul.f32 %v4404_v43, %v5293_v21  ;;  %v1982_v24 = vmul.f32 %v4404_v43, %v5298_v5  ;;  %v1983_v23 = vmul.f32 %v4404_v43, %v5305_v17  ;;  %v1984_v11 = vmul.f32 %v4404_v43, %v5311_v54 }
 0x7c7   : > { %v1999_v60 = vmul.f32 %v3793_v45, %v1977_v35  ;;  %v2000_v51 = vmul.f32 %v3793_v45, %v1978_v57  ;;  %v2001_v16 = vmul.f32 %v3793_v45, %v1979_v39  ;;  %v2002_v42 = vmul.f32 %v3793_v45, %v1980_v32 }
 0x7c8   : > { %v2003_v19 = vmul.f32 %v3793_v45, %v1981_v3  ;;  %v2004_v34 = vmul.f32 %v3793_v45, %v1982_v24  ;;  %v2005_v38 = vmul.f32 %v3793_v45, %v1983_v23  ;;  %v1985_v50 = vmul.f32 %v4404_v43, %v5317_v29 }
 0x7c9   : > { %v2021_v40 = vadd.f32 %v3794_v14, %v1999_v60  ;;  %v2022_v6 = vadd.f32 %v3794_v14, %v2000_v51  ;;  %v2023_v15 = vadd.f32 %v3794_v14, %v2001_v16  ;;  %v2024_v30 = vadd.f32 %v3794_v14, %v2002_v42  ;;  %v3815_v51 = vld [vmem:[%s6229_s8 + $0x38] sm:$0xff]  ;;  %v3795_v16 = vld [vmem:[%s6238_s17] ss:$0 sm:$0xff] }
 0x7ca   : > { %v2025_v21 = vadd.f32 %v3794_v14, %v2003_v19  ;;  %v2026_v5 = vadd.f32 %v3794_v14, %v2004_v34  ;;  %v2006_v55 = vmul.f32 %v3793_v45, %v1984_v11  ;;  %v1986_v17 = vmul.f32 %v4404_v43, %v5323_v33 }
 0x7cb   : > { %4140 = vmatprep.mubr.msk.f32.mxu0 %vm672_vm0, %v2021_v40  ;;  %v2027_v28 = vadd.f32 %v3794_v14, %v2005_v38  ;;  %v2007_v56 = vmul.f32 %v3793_v45, %v1985_v50  ;;  %v1987_v22 = vmul.f32 %v4404_v43, %v5329_v48  ;;  %v1988_v29 = vmul.f32 %v4404_v43, %v5335_v62 }
 0x7cc   : > { %4141 = vmatmul.mubr.msk.f32.vlgmr.msra.gmra.mrb[16].mxu0 %vm672_vm0, %v2022_v6  ;;  %v2028_v54 = vadd.f32 %v3794_v14, %v2006_v55  ;;  %v2008_v31 = vmul.f32 %v3793_v45, %v1986_v17  ;;  %v1989_v44 = vmul.f32 %v4404_v43, %v5341_v12  ;;  %v1990_v48 = vmul.f32 %v4404_v43, %v5347_v1 }
 0x7cd   : > { %4143 = vmatprep.mubr.msk.f32.mxu0 %vm672_vm0, %v2023_v15  ;;  %v2029_v61 = vadd.f32 %v3794_v14, %v2007_v56  ;;  %v2009_v49 = vmul.f32 %v3793_v45, %v1987_v22  ;;  %v2010_v47 = vmul.f32 %v3793_v45, %v1988_v29  ;;  %v1991_v58 = vmul.f32 %v4404_v43, %v5353_v7 }
 0x7ce   : > { %v2030_v33 = vadd.f32 %v3794_v14, %v2008_v31  ;;  %v2011_v37 = vmul.f32 %v3793_v45, %v1989_v44  ;;  %v2012_v41 = vmul.f32 %v3793_v45, %v1990_v48  ;;  %v1992_v12 = vmul.f32 %v4404_v43, %v5359_v46  ;;  %v3812_v46 = vld [vmem:[%s6229_s8 + $0x20] sm:$0xff]  ;;  %v3813_v43 = vld [vmem:[%s6229_s8 + $0x28] sm:$0xff] }
 0x7cf   : > { %v2031_v10 = vadd.f32 %v3794_v14, %v2009_v49  ;;  %v2032_v62 = vadd.f32 %v3794_v14, %v2010_v47  ;;  %v2013_v57 = vmul.f32 %v3793_v45, %v1991_v58  ;;  %v4320_v60 = vpack.c.bf16 %v3813_v43, %v3812_v46 }
 0x7d0   : > { %4144 = vmatmul.mubr.msk.f32.gmra.mrb[18].mxu0 %vm672_vm0, %v2024_v30  ;;  %v2033_v35 = vadd.f32 %v3794_v14, %v2011_v37  ;;  %v2034_v39 = vadd.f32 %v3794_v14, %v2012_v41  ;;  %v2014_v1 = vmul.f32 %v3793_v45, %v1992_v12  ;;  %v3814_v45 = vld [vmem:[%s6229_s8 + $0x30] sm:$0xff]  ;;  %v4425_v47 = vmov 2   ;;  %v5516_v41 = vld [vmem:[%s6239_s18] ss:$0 sm:$0xff] }
 0x7d1   : > { %4146 = vmatprep.mubr.msk.f32.mxu0 %vm672_vm0, %v2025_v21  ;;  %v2035_v32 = vadd.f32 %v3794_v14, %v2013_v57  ;;  %4321 = vmatprep.subr.bf16.mxu1 %v4320_v60 }
 0x7d2   : > { %v2036_v7 = vadd.f32 %v3794_v14, %v2014_v1  ;;  %v4324_v14 = vpack.c.bf16 %v3815_v51, %v3814_v45  ;;  %4323 = vmatpush3.bf16.msra.mxu1 %v4320_v60  ;;  %4395 = vset.pattern.permute.xlu1 %v4425_v47 }
 0x7d4   : > { %4147 = vmatmul.mubr.msk.f32.gmra.mrb[20].mxu0 %vm672_vm0, %v2026_v5  ;;  %4325 = vmatprep.subr.bf16.mxu1 %v4324_v14 }
 0x7d5   : > { %4149 = vmatprep.mubr.msk.f32.mxu0 %vm672_vm0, %v2027_v28 }
 0x7d6   : > { %4327 = vmatpush3.bf16.msra.mxu1 %v4324_v14 }
 0x7d8   : > { %4150 = vmatmul.mubr.msk.f32.gmra.mrb[22].mxu0 %vm672_vm0, %v2028_v54 }
 0x7d9   : > { %4152 = vmatprep.mubr.msk.f32.mxu0 %vm672_vm0, %v2029_v61 }
 0x7dc   : > { %4153 = vmatmul.mubr.msk.f32.gmra.mrb[24].mxu0 %vm672_vm0, %v2030_v33 }
 0x7dd   : > { %4155 = vmatprep.mubr.msk.f32.mxu0 %vm672_vm0, %v2031_v10 }
 0x7e0   : > { %4156 = vmatmul.mubr.msk.f32.gmra.mrb[26].mxu0 %vm672_vm0, %v2032_v62 }
 0x7e1   : > { %4158 = vmatprep.mubr.msk.f32.mxu0 %vm672_vm0, %v2033_v35 }
 0x7e4   : > { %4159 = vmatmul.mubr.msk.f32.gmra.mrb[28].mxu0 %vm672_vm0, %v2034_v39 }
 0x7e5   : > { %4161 = vmatprep.mubr.msk.f32.mxu0 %vm672_vm0, %v2035_v32 }
 0x7e8   : > { %4162 = vmatmul.mubr.msk.f32.gmra.mrb[30].mxu0 %vm672_vm0, %v2036_v7 }
 0x89f   : > { %v4142_v3 = vpop.f32.mrb[16].mxu0 }
 0x8a0   : > { %v5449_v40 = vadd.f32 %v4142_v3, %v3795_v16  ;;  %v2166_v6 = vpop.f32.mrb[17].mxu0 }
 0x8a1   : > { %v5451_v42 = vadd.f32 %v3795_v16, %v2166_v6 }
 0x8a2   : > { %2263 = vrot.lane.b32.xlu0 %v5449_v40, %s4424_s22 }
 0x8a3   : > { %v4145_v24 = vpop.f32.mrb[18].mxu0  ;;  %2261 = vrot.lane.b32.xlu1 %v5451_v42, %s4424_s22 }
 0x8a4   : > { %v2176_v15 = vpop.f32.mrb[19].mxu0  ;;  %v5461_v34 = vadd.f32 %v4145_v24, %v3795_v16 }
 0x8a5   : > { %v5457_v19 = vadd.f32 %v3795_v16, %v2176_v15 }
 0x8a7   : > { %v4148_v23 = vpop.f32.mrb[20].mxu0  ;;  %2265 = vrot.lane.b32.xlu0 %v5457_v19, %s4424_s22 }
 0x8a8   : > { %v2186_v30 = vpop.f32.mrb[21].mxu0  ;;  %v5469_v50 = vadd.f32 %v4148_v23, %v3795_v16 }
 0x8a9   : > { %v5463_v11 = vadd.f32 %v3795_v16, %v2186_v30 }
 0x8ab   : > { %v4151_v21 = vpop.f32.mrb[22].mxu0  ;;  %2267 = vrot.lane.b32.xlu0 %v5461_v34, %s4424_s22  ;;  %2269 = vrot.lane.b32.xlu1 %v5463_v11, %s4424_s22 }
 0x8ac   : > { %v2196_v38 = vpop.f32.mrb[23].mxu0  ;;  %v5477_v28 = vadd.f32 %v4151_v21, %v3795_v16 }
 0x8ad   : > { %v5471_v5 = vadd.f32 %v3795_v16, %v2196_v38 }
 0x8af   : > { %v4154_v55 = vpop.f32.mrb[24].mxu0  ;;  %2271 = vrot.lane.b32.xlu0 %v5469_v50, %s4424_s22  ;;  %2273 = vrot.lane.b32.xlu1 %v5471_v5, %s4424_s22 }
 0x8b0   : > { %v2206_v17 = vpop.f32.mrb[25].mxu0  ;;  %v5485_v31 = vadd.f32 %v4154_v55, %v3795_v16 }
 0x8b1   : > { %v5479_v56 = vadd.f32 %v3795_v16, %v2206_v17 }
 0x8b3   : > { %v4157_v22 = vpop.f32.mrb[26].mxu0  ;;  %2275 = vrot.lane.b32.xlu0 %v5477_v28, %s4424_s22  ;;  %2277 = vrot.lane.b32.xlu1 %v5479_v56, %s4424_s22 }
 0x8b4   : > { %v2216_v54 = vpop.f32.mrb[27].mxu0  ;;  %v5493_v44 = vadd.f32 %v4157_v22, %v3795_v16 }
 0x8b5   : > { %v5487_v29 = vadd.f32 %v3795_v16, %v2216_v54 }
 0x8b7   : > { %v4160_v61 = vpop.f32.mrb[28].mxu0  ;;  %2279 = vrot.lane.b32.xlu0 %v5485_v31, %s4424_s22  ;;  %2281 = vrot.lane.b32.xlu1 %v5487_v29, %s4424_s22 }
 0x8b8   : > { %v2226_v49 = vpop.f32.mrb[29].mxu0  ;;  %v5501_v37 = vadd.f32 %v4160_v61, %v3795_v16 }
 0x8b9   : > { %v5495_v33 = vadd.f32 %v3795_v16, %v2226_v49 }
 0x8bb   : > { %v4163_v48 = vpop.f32.mrb[30].mxu0  ;;  %2283 = vrot.lane.b32.xlu0 %v5493_v44, %s4424_s22  ;;  %2285 = vrot.lane.b32.xlu1 %v5495_v33, %s4424_s22 }
 0x8bc   : > { %v2236_v10 = vpop.f32.mrb[31].mxu0  ;;  %v5509_v62 = vadd.f32 %v4163_v48, %v3795_v16 }
 0x8bd   : > { %v5503_v58 = vadd.f32 %v3795_v16, %v2236_v10 }
 0x8bf   : > { %2287 = vrot.lane.b32.xlu0 %v5501_v37, %s4424_s22  ;;  %2289 = vrot.lane.b32.xlu1 %v5503_v58, %s4424_s22 }
 0x8c3   : > { %2291 = vrot.lane.b32.xlu0 %v5509_v62, %s4424_s22  ;;  %2548 = vperm.xlu1 %4395, %v5516_v41  }
 0x914   : > { %v2264_v12 = vpop.permute.xlu0 %2263 }
 0x915   : > { %v2262_v35 = vpop.permute.xlu1 %2261  ;;  %v2310_v39 = vadd.f32 %v2264_v12, %v4834_v52 }
 0x916   : > { %v2309_v57 = vadd.f32 %v2262_v35, %v4837_v53 }
 0x918   : > { %4172 = vmatprep.mubr.msk.f32.mxu1 %vm1210_vm2, %v2309_v57 }
 0x919   : > { %v2266_v1 = vpop.permute.xlu0 %2265  ;;  %4173 = vmatmul.mubr.msk.f32.vlgmr.msra.gmra.mrb[18].mxu1 %vm1210_vm2, %v2310_v39 }
 0x91a   : > { %v2311_v32 = vadd.f32 %v2266_v1, %v4847_v0 }
 0x91c   : > { %4175 = vmatprep.mubr.msk.f32.mxu1 %vm1210_vm2, %v2311_v32 }
 0x91d   : > { %v2268_v7 = vpop.permute.xlu0 %2267  ;;  %v2270_v46 = vpop.permute.xlu1 %2269 }
 0x91e   : > { %v2312_v43 = vadd.f32 %v2268_v7, %v4842_v63  ;;  %v2313_v45 = vadd.f32 %v2270_v46, %v4857_v59 }
 0x920   : > { %4176 = vmatmul.mubr.msk.f32.gmra.mrb[20].mxu1 %vm1210_vm2, %v2312_v43 }
 0x921   : > { %v2272_v53 = vpop.permute.xlu0 %2271  ;;  %4178 = vmatprep.mubr.msk.f32.mxu1 %vm1210_vm2, %v2313_v45  ;;  %v2274_v52 = vpop.permute.xlu1 %2273 }
 0x922   : > { %v2314_v60 = vadd.f32 %v2272_v53, %v4852_v2  ;;  %v2315_v51 = vadd.f32 %v2274_v52, %v4867_v4 }
 0x924   : > { %4179 = vmatmul.mubr.msk.f32.gmra.mrb[22].mxu1 %vm1210_vm2, %v2314_v60 }
 0x925   : > { %v2276_v0 = vpop.permute.xlu0 %2275  ;;  %4181 = vmatprep.mubr.msk.f32.mxu1 %vm1210_vm2, %v2315_v51  ;;  %v2278_v14 = vpop.permute.xlu1 %2277 }
 0x926   : > { %v2316_v63 = vadd.f32 %v2276_v0, %v4862_v8  ;;  %v2317_v59 = vadd.f32 %v2278_v14, %v4877_v9 }
 0x928   : > { %4182 = vmatmul.mubr.msk.f32.gmra.mrb[24].mxu1 %vm1210_vm2, %v2316_v63 }
 0x929   : > { %v2280_v16 = vpop.permute.xlu0 %2279  ;;  %4184 = vmatprep.mubr.msk.f32.mxu1 %vm1210_vm2, %v2317_v59  ;;  %v2282_v3 = vpop.permute.xlu1 %2281 }
 0x92a   : > { %v2318_v2 = vadd.f32 %v2280_v16, %v4872_v13  ;;  %v2319_v4 = vadd.f32 %v2282_v3, %v4887_v18 }
 0x92c   : > { %4185 = vmatmul.mubr.msk.f32.gmra.mrb[26].mxu1 %vm1210_vm2, %v2318_v2 }
 0x92d   : > { %v2284_v6 = vpop.permute.xlu0 %2283  ;;  %4187 = vmatprep.mubr.msk.f32.mxu1 %vm1210_vm2, %v2319_v4  ;;  %v2286_v24 = vpop.permute.xlu1 %2285 }
 0x92e   : > { %v2320_v8 = vadd.f32 %v2284_v6, %v4882_v20  ;;  %v2321_v9 = vadd.f32 %v2286_v24, %v4897_v27  ;;  %v5554_v20 = vld [vmem:[%s6230_s9 + $0x1] ss:$0 sm:$0xff] }
 0x930   : > { %4188 = vmatmul.mubr.msk.f32.gmra.mrb[28].mxu1 %vm1210_vm2, %v2320_v8 }
 0x931   : > { %v2288_v15 = vpop.permute.xlu0 %2287  ;;  %4190 = vmatprep.mubr.msk.f32.mxu1 %vm1210_vm2, %v2321_v9  ;;  %v2290_v23 = vpop.permute.xlu1 %2289 }
 0x932   : > { %v2322_v13 = vadd.f32 %v2288_v15, %v4892_v26  ;;  %v2323_v18 = vadd.f32 %v2290_v23, %v4907_v36 }
 0x934   : > { %4191 = vmatmul.mubr.msk.f32.gmra.mrb[30].mxu1 %vm1210_vm2, %v2322_v13 }
 0x935   : > { %v2292_v30 = vpop.permute.xlu0 %2291  ;;  %4193 = vmatprep.mubr.msk.f32.mxu1 %vm1210_vm2, %v2323_v18 }
 0x936   : > { %v2324_v21 = vadd.f32 %v2292_v30, %v4902_v25 }
 0x938   : > { %4194 = vmatmul.mubr.msk.f32.gmra.mrb[32].mxu1 %vm1210_vm2, %v2324_v21 }
 0x942   : > { %v5556_v38 = vpop.permute.xlu1 %2548 }
 0x9ec   : > { %v4174_v27 = vpop.f32.mrb[18].mxu1 }
 0x9ed   : > { %v2458_v26 = vadd.f32 %v4174_v27, %v5554_v20  ;;  %v2452_v36 = vpop.f32.mrb[19].mxu1 }
 0x9ee   : > { %v2453_v55 = vadd.f32 %v5554_v20, %v2452_v36 }
 0x9ef   : > { %v2552_v17 = vmul.f32 %v5556_v38, %v2458_v26  ;;  %vm2532_vm7 = vcmp.ge.f32.partialorder %v2458_v26, 0.0 }
 0x9f0   : > { %vm2531_vm8 = vcmp.ge.f32.partialorder %v2453_v55, 0.0  ;;  %v2551_v25 = vmul.f32 %v5556_v38, %v2453_v55 }
 0x9f1   : > { %v5564_v61 = vsel %vm2532_vm7, %v2458_v26, %v2552_v17 }
 0x9f2   : > { %v5562_v54 = vsel %vm2531_vm8, %v2453_v55, %v2551_v25  ;;  %v2588_v35 = vsel %vm672_vm0, %v5564_v61, 0.0 }
 0x9f3   : > { %v4177_v22 = vpop.f32.mrb[20].mxu1  ;;  %v2587_v12 = vsel %vm672_vm0, %v5562_v54, 0.0 }
 0x9f4   : > { %v2468_v49 = vadd.f32 %v4177_v22, %v5554_v20  ;;  %v2462_v47 = vpop.f32.mrb[21].mxu1  ;;  %v2589_v43 = vadd.f32 %v2588_v35, %v2587_v12 }
 0x9f5   : > { %v2463_v48 = vadd.f32 %v5554_v20, %v2462_v47 }
 0x9f6   : > { %vm2534_vm9 = vcmp.ge.f32.partialorder %v2468_v49, 0.0  ;;  %v2554_v10 = vmul.f32 %v5556_v38, %v2468_v49 }
 0x9f7   : > { %vm2533_vm10 = vcmp.ge.f32.partialorder %v2463_v48, 0.0  ;;  %v2553_v57 = vmul.f32 %v5556_v38, %v2463_v48  ;;  %v4180_v39 = vpop.f32.mrb[22].mxu1 }
 0x9f8   : > { %v2478_v1 = vadd.f32 %v4180_v39, %v5554_v20  ;;  %v2472_v32 = vpop.f32.mrb[23].mxu1  ;;  %v5575_v7 = vsel %vm2534_vm9, %v2468_v49, %v2554_v10 }
 0x9f9   : > { %v5577_v46 = vsel %vm2533_vm10, %v2463_v48, %v2553_v57  ;;  %v2473_v45 = vadd.f32 %v5554_v20, %v2472_v32  ;;  %v2592_v14 = vsel %vm672_vm0, %v5575_v7, 0.0 }
 0x9fa   : > { %v2590_v53 = vsel %vm672_vm0, %v5577_v46, 0.0  ;;  %vm2536_vm11 = vcmp.ge.f32.partialorder %v2478_v1, 0.0  ;;  %v2556_v52 = vmul.f32 %v5556_v38, %v2478_v1 }
 0x9fb   : > { %v2591_v60 = vadd.f32 %v2590_v53, %v2589_v43  ;;  %vm2535_vm12 = vcmp.ge.f32.partialorder %v2473_v45, 0.0  ;;  %v2555_v51 = vmul.f32 %v5556_v38, %v2473_v45  ;;  %v4183_v0 = vpop.f32.mrb[24].mxu1 }
 0x9fc   : > { %v2488_v63 = vadd.f32 %v4183_v0, %v5554_v20  ;;  %v2482_v59 = vpop.f32.mrb[25].mxu1  ;;  %v5587_v16 = vsel %vm2536_vm11, %v2478_v1, %v2556_v52 }
 0x9fd   : > { %v5589_v3 = vsel %vm2535_vm12, %v2473_v45, %v2555_v51  ;;  %v2593_v2 = vadd.f32 %v2592_v14, %v2591_v60  ;;  %v2483_v4 = vadd.f32 %v5554_v20, %v2482_v59  ;;  %v2596_v23 = vsel %vm672_vm0, %v5587_v16, 0.0 }
 0x9fe   : > { %v2594_v6 = vsel %vm672_vm0, %v5589_v3, 0.0  ;;  %vm2538_vm13 = vcmp.ge.f32.partialorder %v2488_v63, 0.0  ;;  %v2558_v24 = vmul.f32 %v5556_v38, %v2488_v63 }
 0x9ff   : > { %v2595_v8 = vadd.f32 %v2594_v6, %v2593_v2  ;;  %vm2537_vm14 = vcmp.ge.f32.partialorder %v2483_v4, 0.0  ;;  %v2557_v9 = vmul.f32 %v5556_v38, %v2483_v4  ;;  %v4186_v15 = vpop.f32.mrb[26].mxu1 }
 0xa00   : > { %v2498_v13 = vadd.f32 %v4186_v15, %v5554_v20  ;;  %v2492_v18 = vpop.f32.mrb[27].mxu1  ;;  %v5599_v30 = vsel %vm2538_vm13, %v2488_v63, %v2558_v24 }
 0xa01   : > { %v5601_v21 = vsel %vm2537_vm14, %v2483_v4, %v2557_v9  ;;  %v2597_v27 = vadd.f32 %v2596_v23, %v2595_v8  ;;  %v2493_v26 = vadd.f32 %v5554_v20, %v2492_v18  ;;  %v2600_v49 = vsel %vm672_vm0, %v5599_v30, 0.0 }
 0xa02   : > { %v2598_v36 = vsel %vm672_vm0, %v5601_v21, 0.0  ;;  %vm2540_vm15 = vcmp.ge.f32.partialorder %v2498_v13, 0.0  ;;  %v2560_v55 = vmul.f32 %v5556_v38, %v2498_v13 }
 0xa03   : > { %v2599_v17 = vadd.f32 %v2598_v36, %v2597_v27  ;;  %vm2539_vm1 = vcmp.ge.f32.partialorder %v2493_v26, 0.0  ;;  %v2559_v25 = vmul.f32 %v5556_v38, %v2493_v26  ;;  %v4189_v22 = vpop.f32.mrb[28].mxu1 }
 0xa04   : > { %v2508_v47 = vadd.f32 %v4189_v22, %v5554_v20  ;;  %v2502_v48 = vpop.f32.mrb[29].mxu1  ;;  %v5611_v10 = vsel %vm2540_vm15, %v2498_v13, %v2560_v55 }
 0xa05   : > { %v5613_v12 = vsel %vm2539_vm1, %v2493_v26, %v2559_v25  ;;  %v2601_v35 = vadd.f32 %v2600_v49, %v2599_v17  ;;  %v2503_v57 = vadd.f32 %v5554_v20, %v2502_v48  ;;  %v2604_v53 = vsel %vm672_vm0, %v5611_v10, 0.0 }
 0xa06   : > { %v2602_v39 = vsel %vm672_vm0, %v5613_v12, 0.0  ;;  %vm2542_vm3 = vcmp.ge.f32.partialorder %v2508_v47, 0.0  ;;  %v2562_v1 = vmul.f32 %v5556_v38, %v2508_v47 }
 0xa07   : > { %v2603_v32 = vadd.f32 %v2602_v39, %v2601_v35  ;;  %vm2541_vm4 = vcmp.ge.f32.partialorder %v2503_v57, 0.0  ;;  %v2561_v43 = vmul.f32 %v5556_v38, %v2503_v57  ;;  %v4192_v45 = vpop.f32.mrb[30].mxu1  ;;  %v4426_v39 = vmov 3  }
 0xa08   : > { %v2518_v52 = vadd.f32 %v4192_v45, %v5554_v20  ;;  %v2512_v60 = vpop.f32.mrb[31].mxu1  ;;  %v5623_v51 = vsel %vm2542_vm3, %v2508_v47, %v2562_v1  ;;  %4396 = vset.pattern.permute.xlu0 %v4426_v39 }
 0xa09   : > { %v5625_v0 = vsel %vm2541_vm4, %v2503_v57, %v2561_v43  ;;  %v2605_v14 = vadd.f32 %v2604_v53, %v2603_v32  ;;  %v2513_v63 = vadd.f32 %v5554_v20, %v2512_v60  ;;  %v2608_v8 = vsel %vm672_vm0, %v5623_v51, 0.0 }
 0xa0a   : > { %v2606_v59 = vsel %vm672_vm0, %v5625_v0, 0.0  ;;  %vm2544_vm5 = vcmp.ge.f32.partialorder %v2518_v52, 0.0  ;;  %v2564_v2 = vmul.f32 %v5556_v38, %v2518_v52 }
 0xa0b   : > { %v2607_v4 = vadd.f32 %v2606_v59, %v2605_v14  ;;  %vm2543_vm6 = vcmp.ge.f32.partialorder %v2513_v63, 0.0  ;;  %v2563_v6 = vmul.f32 %v5556_v38, %v2513_v63  ;;  %v4195_v24 = vpop.f32.mrb[32].mxu1 }
 0xa0c   : > { %v2528_v9 = vadd.f32 %v4195_v24, %v5554_v20  ;;  %v2522_v15 = vpop.f32.mrb[33].mxu1  ;;  %v5635_v23 = vsel %vm2544_vm5, %v2518_v52, %v2564_v2 }
 0xa0d   : > { %v5637_v13 = vsel %vm2543_vm6, %v2513_v63, %v2563_v6  ;;  %v2609_v18 = vadd.f32 %v2608_v8, %v2607_v4  ;;  %v2523_v27 = vadd.f32 %v5554_v20, %v2522_v15  ;;  %v2612_v25 = vsel %vm672_vm0, %v5635_v23, 0.0 }
 0xa0e   : > { %v2610_v26 = vsel %vm672_vm0, %v5637_v13, 0.0  ;;  %vm2546_vm7 = vcmp.ge.f32.partialorder %v2528_v9, 0.0  ;;  %v2566_v36 = vmul.f32 %v5556_v38, %v2528_v9 }
 0xa0f   : > { %v2611_v55 = vadd.f32 %v2610_v26, %v2609_v18  ;;  %vm2545_vm8 = vcmp.ge.f32.partialorder %v2523_v27, 0.0  ;;  %v2565_v17 = vmul.f32 %v5556_v38, %v2523_v27 }
 0xa10   : > { %v5648_v49 = vsel %vm2546_vm7, %v2528_v9, %v2566_v36 }
 0xa11   : > { %v5646_v22 = vsel %vm2545_vm8, %v2523_v27, %v2565_v17  ;;  %v2613_v47 = vadd.f32 %v2612_v25, %v2611_v55  ;;  %v2616_v35 = vsel %vm672_vm0, %v5648_v49, 0.0 }
 0xa12   : > { %v2614_v20 = vsel %vm672_vm0, %v5646_v22, 0.0 }
 0xa13   : > { %v2615_v48 = vadd.f32 %v2614_v20, %v2613_v47 }
 0xa15   : > { %v2617_v57 = vadd.f32 %v2616_v35, %v2615_v48 }
 0xa17   : > { %2618 = vadd.xlane.f32.xlu0 %v2617_v57 }
 0xa2d   : > { %2948 = vperm.xlu0 %4396, %v5516_v41  }
 0xaa4   : > { %v2619_v38 = vpop.xlane.xlu0 %2618 }
 0xaa5   : > { %v2620_v1 = vrot.slane %v2619_v38, 4 }
 0xaa7   : > { %v2621_v32 = vadd.f32 %v2620_v1, %v2619_v38 }
 0xaa9   : > { %v2622_v43 = vrot.slane %v2621_v32, 2 }
 0xaab   : > { %v2623_v45 = vadd.f32 %v2622_v43, %v2621_v32 }
 0xaad   : > { %v2624_v53 = vrot.slane %v2623_v45, 1 }
 0xaaf   : > { %v2625_v52 = vadd.f32 %v2624_v53, %v2623_v45 }
 0xab1   : > { %4368 = vpush %v2625_v52 }
 0xae2   : > { %s4369_s28 = spop %4368 }
 0xae3   : > { %v2627_v60 = vstv %s4369_s28 }
 0xae4   : > { %v2628_v14 = vmul.f32 0.00012207031, %v2627_v60 }
 0xae6   : > { %v5656_v63 = vsub.f32 %v5562_v54, %v2628_v14  ;;  %v5659_v59 = vsub.f32 %v5564_v61, %v2628_v14  ;;  %v5662_v2 = vsub.f32 %v5577_v46, %v2628_v14  ;;  %v5665_v41 = vsub.f32 %v5575_v7, %v2628_v14 }
 0xae7   : > { %v5672_v24 = vsub.f32 %v5589_v3, %v2628_v14  ;;  %v5677_v61 = vsub.f32 %v5587_v16, %v2628_v14  ;;  %v5684_v15 = vsub.f32 %v5601_v21, %v2628_v14  ;;  %v5690_v16 = vsub.f32 %v5599_v30, %v2628_v14 }
 0xae8   : > { %v2645_v4 = vmul.f32 %v5656_v63, %v5656_v63  ;;  %v2646_v6 = vmul.f32 %v5659_v59, %v5659_v59  ;;  %v2647_v54 = vmul.f32 %v5662_v2, %v5662_v2  ;;  %v2648_v46 = vmul.f32 %v5665_v41, %v5665_v41 }
 0xae9   : > { %v2649_v3 = vmul.f32 %v5672_v24, %v5672_v24  ;;  %v2650_v26 = vmul.f32 %v5677_v61, %v5677_v61  ;;  %v5696_v17 = vsub.f32 %v5613_v12, %v2628_v14  ;;  %v2651_v21 = vmul.f32 %v5684_v15, %v5684_v15 }
 0xaea   : > { %v2661_v7 = vsel %vm672_vm0, %v2645_v4, 0.0  ;;  %v2662_v8 = vsel %vm672_vm0, %v2646_v6, 0.0  ;;  %v2664_v18 = vsel %vm672_vm0, %v2647_v54, 0.0  ;;  %v2666_v36 = vsel %vm672_vm0, %v2648_v46, 0.0 }
 0xaeb   : > { %v2663_v9 = vadd.f32 %v2662_v8, %v2661_v7  ;;  %v2668_v25 = vsel %vm672_vm0, %v2649_v3, 0.0  ;;  %v5702_v20 = vsub.f32 %v5611_v10, %v2628_v14  ;;  %v2652_v30 = vmul.f32 %v5690_v16, %v5690_v16 }
 0xaec   : > { %v2670_v48 = vsel %vm672_vm0, %v2650_v26, 0.0  ;;  %v2639_v57 = vsub.f32 %v5625_v0, %v2628_v14  ;;  %v2653_v12 = vmul.f32 %v5696_v17, %v5696_v17  ;;  %v2672_v39 = vsel %vm672_vm0, %v2651_v21, 0.0 }
 0xaed   : > { %v2665_v27 = vadd.f32 %v2664_v18, %v2663_v9  ;;  %v2640_v1 = vsub.f32 %v5623_v51, %v2628_v14  ;;  %v2654_v10 = vmul.f32 %v5702_v20, %v5702_v20  ;;  %v2674_v32 = vsel %vm672_vm0, %v2652_v30, 0.0 }
 0xaee   : > { %v2641_v45 = vsub.f32 %v5637_v13, %v2628_v14  ;;  %v2655_v53 = vmul.f32 %v2639_v57, %v2639_v57  ;;  %v2676_v52 = vsel %vm672_vm0, %v2653_v12, 0.0  ;;  %v2642_v60 = vsub.f32 %v5635_v23, %v2628_v14 }
 0xaef   : > { %v2667_v55 = vadd.f32 %v2666_v36, %v2665_v27  ;;  %v2656_v4 = vmul.f32 %v2640_v1, %v2640_v1  ;;  %v2678_v6 = vsel %vm672_vm0, %v2654_v10, 0.0  ;;  %v2643_v51 = vsub.f32 %v5646_v22, %v2628_v14 }
 0xaf0   : > { %v2657_v46 = vmul.f32 %v2641_v45, %v2641_v45  ;;  %v2680_v7 = vsel %vm672_vm0, %v2655_v53, 0.0  ;;  %v2644_v9 = vsub.f32 %v5648_v49, %v2628_v14  ;;  %v2658_v3 = vmul.f32 %v2642_v60, %v2642_v60 }
 0xaf1   : > { %v2669_v47 = vadd.f32 %v2668_v25, %v2667_v55  ;;  %v2682_v13 = vsel %vm672_vm0, %v2656_v4, 0.0  ;;  %v2659_v27 = vmul.f32 %v2643_v51, %v2643_v51 }
 0xaf2   : > { %v2684_v26 = vsel %vm672_vm0, %v2657_v46, 0.0  ;;  %v2660_v36 = vmul.f32 %v2644_v9, %v2644_v9  ;;  %v2686_v55 = vsel %vm672_vm0, %v2658_v3, 0.0 }
 0xaf3   : > { %v2671_v35 = vadd.f32 %v2670_v48, %v2669_v47  ;;  %v2688_v22 = vsel %vm672_vm0, %v2659_v27, 0.0 }
 0xaf4   : > { %v2690_v47 = vsel %vm672_vm0, %v2660_v36, 0.0 }
 0xaf5   : > { %v2673_v38 = vadd.f32 %v2672_v39, %v2671_v35 }
 0xaf7   : > { %v2675_v43 = vadd.f32 %v2674_v32, %v2673_v38 }
 0xaf9   : > { %v2677_v0 = vadd.f32 %v2676_v52, %v2675_v43 }
 0xafb   : > { %v2679_v54 = vadd.f32 %v2678_v6, %v2677_v0 }
 0xafd   : > { %v2681_v8 = vadd.f32 %v2680_v7, %v2679_v54  ;;  %v3836_v54 = vld [vmem:[%s6231_s10 + $0x1] ss:$0 sm:$0xff] }
 0xaff   : > { %v2683_v18 = vadd.f32 %v2682_v13, %v2681_v8 }
 0xb01   : > { %v2685_v23 = vadd.f32 %v2684_v26, %v2683_v18 }
 0xb03   : > { %v2687_v21 = vadd.f32 %v2686_v55, %v2685_v23 }
 0xb05   : > { %v2689_v25 = vadd.f32 %v2688_v22, %v2687_v21 }
 0xb07   : > { %v2691_v30 = vadd.f32 %v2690_v47, %v2689_v25 }
 0xb09   : > { %2692 = vadd.xlane.f32.xlu1 %v2691_v30 }
 0xb96   : > { %v2693_v49 = vpop.xlane.xlu1 %2692 }
 0xb97   : > { %v2694_v14 = vrot.slane %v2693_v49, 4 }
 0xb99   : > { %v2695_v48 = vadd.f32 %v2694_v14, %v2693_v49 }
 0xb9b   : > { %v2696_v35 = vrot.slane %v2695_v48, 2 }
 0xb9d   : > { %v2697_v12 = vadd.f32 %v2696_v35, %v2695_v48 }
 0xb9f   : > { %v2698_v39 = vrot.slane %v2697_v12, 1 }
 0xba1   : > { %v2699_v38 = vadd.f32 %v2698_v39, %v2697_v12 }
 0xba3   : > { %4370 = vpush %v2699_v38 }
 0xbd4   : > { %s4371_s29 = spop %4370 }
 0xbd5   : > { %v2701_v10 = vstv %s4371_s29 }
 0xbd6   : > { %v2702_v32 = vmul.f32 0.00012207031, %v2701_v10 }
 0xbd8   : > { %v2703_v43 = vadd.f32 1e-08, %v2702_v32 }
 0xbda   : > { %4405 = vrsqrt.f32 %v2703_v43 }
 0xbe4   : > { %v4406_v53 = vpop.eup %4405 }
 0xbe5   : > { %v2705_v52 = vmul.f32 %v4406_v53, %v5656_v63  ;;  %v2706_v0 = vmul.f32 %v4406_v53, %v5659_v59  ;;  %v2707_v4 = vmul.f32 %v4406_v53, %v5662_v2  ;;  %v2708_v6 = vmul.f32 %v4406_v53, %v5665_v41 }
 0xbe6   : > { %v2709_v46 = vmul.f32 %v4406_v53, %v5672_v24  ;;  %v2710_v7 = vmul.f32 %v4406_v53, %v5677_v61  ;;  %v2711_v8 = vmul.f32 %v4406_v53, %v5684_v15  ;;  %v2712_v3 = vmul.f32 %v4406_v53, %v5690_v16  ;;  %v3837_v61 = vld [vmem:[%s6232_s11 + $0x1] ss:$0 sm:$0xff] }
 0xbe7   : > { %v2713_v63 = vmul.f32 %v4406_v53, %v5696_v17  ;;  %v2714_v59 = vmul.f32 %v4406_v53, %v5702_v20  ;;  %v2715_v13 = vmul.f32 %v4406_v53, %v2639_v57  ;;  %v2716_v2 = vmul.f32 %v4406_v53, %v2640_v1 }
 0xbe8   : > { %v2717_v18 = vmul.f32 %v4406_v53, %v2641_v45  ;;  %v2718_v41 = vmul.f32 %v4406_v53, %v2642_v60  ;;  %v2719_v27 = vmul.f32 %v4406_v53, %v2643_v51  ;;  %v2720_v26 = vmul.f32 %v4406_v53, %v2644_v9 }
 0xbe9   : > { %v2727_v23 = vmul.f32 %v3836_v54, %v2705_v52  ;;  %v2728_v36 = vmul.f32 %v3836_v54, %v2706_v0  ;;  %v2729_v55 = vmul.f32 %v3836_v54, %v2707_v4  ;;  %v2730_v24 = vmul.f32 %v3836_v54, %v2708_v6  ;;  %v3838_v4 = vld [vmem:[%s6233_s12 + $0x4] sm:$0x7]  ;;  %v6263_v6 = vld [vmem:[#allocation4_spill] sm:$0xff] }
 0xbea   : > { %v2731_v15 = vmul.f32 %v3836_v54, %v2709_v46  ;;  %v2732_v16 = vmul.f32 %v3836_v54, %v2710_v7  ;;  %v2733_v21 = vmul.f32 %v3836_v54, %v2711_v8  ;;  %v2734_v17 = vmul.f32 %v3836_v54, %v2712_v3  ;;  %v6264_v8 = vld [vmem:[#allocation3_spill] sm:$0xff] }
 0xbeb   : > { %v2735_v22 = vmul.f32 %v3836_v54, %v2713_v63  ;;  %v2736_v20 = vmul.f32 %v3836_v54, %v2714_v59  ;;  %v2737_v57 = vmul.f32 %v3836_v54, %v2715_v13  ;;  %v2738_v1 = vmul.f32 %v3836_v54, %v2716_v2 }
 0xbec   : > { %v2739_v45 = vmul.f32 %v3836_v54, %v2717_v18  ;;  %v2740_v60 = vmul.f32 %v3836_v54, %v2718_v41  ;;  %v2741_v51 = vmul.f32 %v3836_v54, %v2719_v27  ;;  %v2742_v9 = vmul.f32 %v3836_v54, %v2720_v26 }
 0xbed   : > { %v2749_v25 = vadd.f32 %v3837_v61, %v2727_v23  ;;  %v2750_v47 = vadd.f32 %v3837_v61, %v2728_v36  ;;  %v2751_v30 = vadd.f32 %v3837_v61, %v2729_v55  ;;  %v2752_v49 = vadd.f32 %v3837_v61, %v2730_v24 }
 0xbee   : > { %v2753_v14 = vadd.f32 %v3837_v61, %v2731_v15  ;;  %v2754_v48 = vadd.f32 %v3837_v61, %v2732_v16  ;;  %v2755_v35 = vadd.f32 %v3837_v61, %v2733_v21  ;;  %v2756_v12 = vadd.f32 %v3837_v61, %v2734_v17 }
 0xbef   : > { %v2757_v39 = vadd.f32 %v3837_v61, %v2735_v22  ;;  %v2758_v38 = vadd.f32 %v3837_v61, %v2736_v20  ;;  %v2759_v10 = vadd.f32 %v3837_v61, %v2737_v57  ;;  %v2760_v32 = vadd.f32 %v3837_v61, %v2738_v1  ;;  %2765 = vst.msk [vmem:[#allocation2 + $0x8] sm:$0xff] %vm672_vm0, %v2749_v25 }
 0xbf0   : > { %2766 = vst.msk [vmem:[#allocation2 + $0x10] sm:$0xff] %vm672_vm0, %v2750_v47  ;;  %2767 = vst.msk [vmem:[#allocation2 + $0x18] sm:$0xff] %vm672_vm0, %v2751_v30  ;;  %v2761_v43 = vadd.f32 %v3837_v61, %v2739_v45  ;;  %v2762_v53 = vadd.f32 %v3837_v61, %v2740_v60  ;;  %v2763_v52 = vadd.f32 %v3837_v61, %v2741_v51  ;;  %v6265_v3 = vsub.s32 1, %v6264_v8 }
 0xbf1   : > { %2768 = vst.msk [vmem:[#allocation2 + $0x20] sm:$0xff] %vm672_vm0, %v2752_v49  ;;  %v2764_v0 = vadd.f32 %v3837_v61, %v2742_v9  ;;  %2769 = vst.msk [vmem:[#allocation2 + $0x28] sm:$0xff] %vm672_vm0, %v2753_v14  ;;  %v5763_v54 = vrot.slane %v3838_v4, %v6263_v6  ;;  %v6266_v27 = vsub.s32 2, %v6264_v8 }
 0xbf2   : > { %2770 = vst.msk [vmem:[#allocation2 + $0x30] sm:$0xff] %vm672_vm0, %v2754_v48  ;;  %2771 = vst.msk [vmem:[#allocation2 + $0x38] sm:$0xff] %vm672_vm0, %v2755_v35  ;;  %v2822_v63 = vrot.slane %v3838_v4, %v6265_v3 }
 0xbf3   : > { %2772 = vst.msk [vmem:[#allocation2 + $0x40] sm:$0xff] %vm672_vm0, %v2756_v12  ;;  %2773 = vst.msk [vmem:[#allocation2 + $0x48] sm:$0xff] %vm672_vm0, %v2757_v39  ;;  %v5771_v26 = vrot.slane %v3838_v4, %v6266_v27 }
 0xbf4   : > { %2774 = vst.msk [vmem:[#allocation2 + $0x50] sm:$0xff] %vm672_vm0, %v2758_v38  ;;  %2775 = vst.msk [vmem:[#allocation2 + $0x58] sm:$0xff] %vm672_vm0, %v2759_v10  ;;  %v2823_v41 = vmul.f32 %v2822_v63, %v2749_v25  ;;  %v2824_v36 = vmul.f32 %v2822_v63, %v2750_v47  ;;  %v2825_v55 = vmul.f32 %v2822_v63, %v2751_v30 }
 0xbf5   : > { %2776 = vst.msk [vmem:[#allocation2 + $0x60] sm:$0xff] %vm672_vm0, %v2760_v32  ;;  %2777 = vst.msk [vmem:[#allocation2 + $0x68] sm:$0xff] %vm672_vm0, %v2761_v43  ;;  %v2826_v24 = vmul.f32 %v2822_v63, %v2752_v49  ;;  %v2827_v15 = vmul.f32 %v2822_v63, %v2753_v14  ;;  %v2828_v16 = vmul.f32 %v2822_v63, %v2754_v48 }
 0xbf6   : > { %2778 = vst.msk [vmem:[#allocation2 + $0x70] sm:$0xff] %vm672_vm0, %v2762_v53  ;;  %2779 = vst.msk [vmem:[#allocation2 + $0x78] sm:$0xff] %vm672_vm0, %v2763_v52  ;;  %v2783_v46 = vld [vmem:[#allocation2 + $0x6] sm:$0xff]  ;;  %v2829_v21 = vmul.f32 %v2822_v63, %v2755_v35  ;;  %v2830_v17 = vmul.f32 %v2822_v63, %v2756_v12  ;;  %v2831_v45 = vmul.f32 %v2822_v63, %v2757_v39 }
 0xbf7   : > { %2780 = vst.msk [vmem:[#allocation2 + $0x80] sm:$0xff] %vm672_vm0, %v2764_v0  ;;  %v2784_v7 = vld [vmem:[#allocation2 + $0xe] sm:$0xff]  ;;  %v2785_v59 = vld [vmem:[#allocation2 + $0x16] sm:$0xff]  ;;  %v2803_v13 = vmul.f32 %v5763_v54, %v2783_v46  ;;  %v2832_v25 = vmul.f32 %v2822_v63, %v2758_v38  ;;  %v2833_v4 = vmul.f32 %v2822_v63, %v2759_v10  ;;  %v2834_v6 = vmul.f32 %v2822_v63, %v2760_v32 }
 0xbf8   : > { %v2804_v2 = vmul.f32 %v5763_v54, %v2784_v7  ;;  %v2786_v18 = vld [vmem:[#allocation2 + $0x1e] sm:$0xff]  ;;  %v2805_v23 = vmul.f32 %v5763_v54, %v2785_v59  ;;  %v2787_v61 = vld [vmem:[#allocation2 + $0x26] sm:$0xff]  ;;  %v2856_v20 = vld [vmem:[#allocation2 + $0x12] sm:$0xff]  ;;  %v5775_v47 = vmul.f32 %v2822_v63, %v2761_v43  ;;  %v2836_v3 = vmul.f32 %v2822_v63, %v2762_v53 }
 0xbf9   : > { %v2855_v22 = vld [vmem:[#allocation2 + $0xa] sm:$0xff]  ;;  %v2806_v1 = vmul.f32 %v5763_v54, %v2786_v18  ;;  %v2839_v60 = vadd.f32 %v2823_v41, %v2803_v13  ;;  %v2789_v9 = vld [vmem:[#allocation2 + $0x36] sm:$0xff]  ;;  %v2807_v35 = vmul.f32 %v5763_v54, %v2787_v61  ;;  %v2876_v7 = vmul.f32 %v5771_v26, %v2856_v20  ;;  %v2858_v32 = vld [vmem:[#allocation2 + $0x22] sm:$0xff] }
 0xbfa   : > { %v2788_v57 = vld [vmem:[#allocation2 + $0x2e] sm:$0xff]  ;;  %v2840_v51 = vadd.f32 %v2824_v36, %v2804_v2  ;;  %v2857_v30 = vld [vmem:[#allocation2 + $0x1a] sm:$0xff]  ;;  %v2791_v14 = vld [vmem:[#allocation2 + $0x46] sm:$0xff]  ;;  %v2841_v12 = vadd.f32 %v2825_v55, %v2805_v23  ;;  %v2875_v46 = vmul.f32 %v5771_v26, %v2855_v22  ;;  %v2837_v38 = vmul.f32 %v2822_v63, %v2763_v52 }
 0xbfb   : > { %v2790_v49 = vld [vmem:[#allocation2 + $0x3e] sm:$0xff]  ;;  %v2792_v48 = vld [vmem:[#allocation2 + $0x4e] sm:$0xff]  ;;  %v2793_v39 = vld [vmem:[#allocation2 + $0x56] sm:$0xff]  ;;  %v2808_v8 = vmul.f32 %v5763_v54, %v2788_v57  ;;  %v5781_v10 = vmul.f32 %v2822_v63, %v2764_v0  ;;  %v2842_v2 = vadd.f32 %v2826_v24, %v2806_v1  ;;  %v2877_v18 = vmul.f32 %v5771_v26, %v2857_v30 }
 0xbfc   : > { %v2794_v43 = vld [vmem:[#allocation2 + $0x5e] sm:$0xff]  ;;  %v2795_v59 = vld [vmem:[#allocation2 + $0x66] sm:$0xff]  ;;  %v2891_v41 = vadd.f32 %v2875_v46, %v2839_v60  ;;  %v2892_v27 = vadd.f32 %v2876_v7, %v2840_v51  ;;  %v2809_v23 = vmul.f32 %v5763_v54, %v2789_v9  ;;  %v2810_v36 = vmul.f32 %v5763_v54, %v2790_v49  ;;  %v2860_v30 = vld [vmem:[#allocation2 + $0x32] sm:$0xff] }
 0xbfd   : > { %v2796_v13 = vld [vmem:[#allocation2 + $0x6e] sm:$0xff]  ;;  %v2811_v55 = vmul.f32 %v5763_v54, %v2791_v14  ;;  %v2812_v53 = vmul.f32 %v5763_v54, %v2792_v48  ;;  %v5791_v0 = vld [vmem:[%s6234_s13 + $0x1] ss:$0 sm:$0xff]  ;;  %v2797_v63 = vld [vmem:[#allocation2 + $0x76] sm:$0xff]  ;;  %v2813_v61 = vmul.f32 %v5763_v54, %v2793_v39  ;;  %v2843_v22 = vadd.f32 %v2827_v15, %v2807_v35  ;;  %v5801_v15 = vpop.permute.xlu0 %2948 }
 0xbfe   : > { %v2859_v52 = vld [vmem:[#allocation2 + $0x2a] sm:$0xff]  ;;  %v2798_v24 = vld [vmem:[#allocation2 + $0x7e] sm:$0xff]  ;;  %v2878_v20 = vmul.f32 %v5771_v26, %v2858_v32  ;;  %v2893_v57 = vadd.f32 %v2877_v18, %v2841_v12  ;;  %v2814_v1 = vmul.f32 %v5763_v54, %v2794_v43  ;;  %v2815_v60 = vmul.f32 %v5763_v54, %v2795_v59 }
 0xbff   : > { %v2816_v51 = vmul.f32 %v5763_v54, %v2796_v13  ;;  %v2844_v9 = vadd.f32 %v2828_v16, %v2808_v8  ;;  %v2861_v49 = vld [vmem:[#allocation2 + $0x3a] sm:$0xff]  ;;  %v2879_v14 = vmul.f32 %v5771_v26, %v2859_v52  ;;  %v2915_v46 = vadd.f32 %v5791_v0, %v2891_v41  ;;  %v2862_v59 = vld [vmem:[#allocation2 + $0x42] sm:$0xff]  ;;  %v2863_v52 = vld [vmem:[#allocation2 + $0x4a] sm:$0xff] }
 0xc00   : > { %v2894_v48 = vadd.f32 %v2878_v20, %v2842_v2  ;;  %v2916_v7 = vadd.f32 %v5791_v0, %v2892_v27  ;;  %v2817_v35 = vmul.f32 %v5763_v54, %v2797_v63  ;;  %v2818_v12 = vmul.f32 %v5763_v54, %v2798_v24 }
 0xc01   : > { %v2845_v39 = vadd.f32 %v2829_v21, %v2809_v23  ;;  %v2846_v32 = vadd.f32 %v2830_v17, %v2810_v36  ;;  %v2847_v43 = vadd.f32 %v2831_v45, %v2811_v55  ;;  %v2880_v16 = vmul.f32 %v5771_v26, %v2860_v30 }
 0xc02   : > { %v2895_v8 = vadd.f32 %v2879_v14, %v2843_v22  ;;  %v2917_v13 = vadd.f32 %v5791_v0, %v2893_v57  ;;  %v2848_v2 = vadd.f32 %v2832_v25, %v2812_v53  ;;  %v2849_v18 = vadd.f32 %v2833_v4, %v2813_v61  ;;  %v2864_v25 = vld [vmem:[#allocation2 + $0x52] sm:$0xff]  ;;  %v2865_v4 = vld [vmem:[#allocation2 + $0x5a] sm:$0xff] }
 0xc03   : > { %v2850_v41 = vadd.f32 %v2834_v6, %v2814_v1  ;;  %v2881_v27 = vmul.f32 %v5771_v26, %v2861_v49  ;;  %v2896_v20 = vadd.f32 %v2880_v16, %v2844_v9  ;;  %v2918_v63 = vadd.f32 %v5791_v0, %v2894_v48 }
 0xc04   : > { %v2951_v54 = vmul.f32 %v5801_v15, %v2915_v46  ;;  %v2952_v21 = vmul.f32 %v5801_v15, %v2916_v7  ;;  %v2851_v17 = vadd.f32 %v5775_v47, %v2815_v60  ;;  %v2882_v45 = vmul.f32 %v5771_v26, %v2862_v59 }
 0xc05   : > { %vm2931_vm9 = vcmp.ge.f32.partialorder %v2915_v46, 0.0  ;;  %vm2932_vm10 = vcmp.ge.f32.partialorder %v2916_v7, 0.0  ;;  %v2852_v23 = vadd.f32 %v2836_v3, %v2816_v51  ;;  %v2897_v6 = vadd.f32 %v2881_v27, %v2845_v39 }
 0xc06   : > { %v2919_v36 = vadd.f32 %v5791_v0, %v2895_v8  ;;  %v2953_v55 = vmul.f32 %v5801_v15, %v2917_v13  ;;  %v2853_v53 = vadd.f32 %v2837_v38, %v2817_v35  ;;  %v2883_v24 = vmul.f32 %v5771_v26, %v2863_v52  ;;  %v2866_v38 = vld [vmem:[#allocation2 + $0x62] sm:$0xff]  ;;  %v2868_v8 = vld [vmem:[#allocation2 + $0x72] sm:$0xff] }
 0xc07   : > { %v2898_v61 = vadd.f32 %v2882_v45, %v2846_v32  ;;  %vm2933_vm11 = vcmp.ge.f32.partialorder %v2917_v13, 0.0  ;;  %v2920_v22 = vadd.f32 %v5791_v0, %v2896_v20  ;;  %v2954_v47 = vmul.f32 %v5801_v15, %v2918_v63 }
 0xc08   : > { %v5818_v57 = vsel %vm2931_vm9, %v2915_v46, %v2951_v54  ;;  %v5820_v1 = vsel %vm2932_vm10, %v2916_v7, %v2952_v21  ;;  %v2854_v3 = vadd.f32 %v5781_v10, %v2818_v12  ;;  %v2884_v60 = vmul.f32 %v5771_v26, %v2864_v25  ;;  %v2867_v7 = vld [vmem:[#allocation2 + $0x6a] sm:$0xff] }
 0xc09   : > { %v2885_v51 = vmul.f32 %v5771_v26, %v2865_v4  ;;  %vm2934_vm12 = vcmp.ge.f32.partialorder %v2918_v63, 0.0  ;;  %v2899_v9 = vadd.f32 %v2883_v24, %v2847_v43  ;;  %v2921_v30 = vadd.f32 %v5791_v0, %v2897_v6 }
 0xc0a   : > { %v2955_v49 = vmul.f32 %v5801_v15, %v2919_v36  ;;  %v5827_v14 = vsel %vm2933_vm11, %v2917_v13, %v2953_v55  ;;  %v2900_v48 = vadd.f32 %v2884_v60, %v2848_v2  ;;  %vm2935_vm13 = vcmp.ge.f32.partialorder %v2919_v36, 0.0 }
 0xc0b   : > { %v2987_v46 = vsel %vm672_vm0, %v5818_v57, 0.0  ;;  %v2988_v10 = vsel %vm672_vm0, %v5820_v1, 0.0  ;;  %v2922_v35 = vadd.f32 %v5791_v0, %v2898_v61  ;;  %v2956_v12 = vmul.f32 %v5801_v15, %v2920_v22 }
 0xc0c   : > { %v5835_v39 = vsel %vm2934_vm12, %v2918_v63, %v2954_v47  ;;  %v2989_v32 = vadd.f32 %v2988_v10, %v2987_v46  ;;  %v2886_v43 = vmul.f32 %v5771_v26, %v2866_v38  ;;  %v2901_v59 = vadd.f32 %v2885_v51, %v2849_v18  ;;  %v2869_v18 = vld [vmem:[#allocation2 + $0x7a] sm:$0xff] }
 0xc0d   : > { %vm2936_vm14 = vcmp.ge.f32.partialorder %v2920_v22, 0.0  ;;  %v2990_v16 = vsel %vm672_vm0, %v5827_v14, 0.0  ;;  %v2923_v13 = vadd.f32 %v5791_v0, %v2899_v9  ;;  %v2957_v2 = vmul.f32 %v5801_v15, %v2921_v30 }
 0xc0e   : > { %v5842_v27 = vsel %vm2935_vm13, %v2919_v36, %v2955_v49  ;;  %v2991_v52 = vadd.f32 %v2990_v16, %v2989_v32  ;;  %v2887_v20 = vmul.f32 %v5771_v26, %v2867_v7  ;;  %v2902_v63 = vadd.f32 %v2886_v43, %v2850_v41  ;;  %v2870_v41 = vld [vmem:[#allocation2 + $0x82] sm:$0xff] }
 0xc0f   : > { %vm2937_vm15 = vcmp.ge.f32.partialorder %v2921_v30, 0.0  ;;  %v2992_v54 = vsel %vm672_vm0, %v5835_v39, 0.0  ;;  %v2924_v21 = vadd.f32 %v5791_v0, %v2900_v48  ;;  %v2958_v45 = vmul.f32 %v5801_v15, %v2922_v35 }
 0xc10   : > { %v5849_v25 = vsel %vm2936_vm14, %v2920_v22, %v2956_v12  ;;  %v2993_v4 = vadd.f32 %v2992_v54, %v2991_v52  ;;  %v2888_v6 = vmul.f32 %v5771_v26, %v2868_v8  ;;  %v2903_v36 = vadd.f32 %v2887_v20, %v2851_v17 }
 0xc11   : > { %vm2938_vm1 = vcmp.ge.f32.partialorder %v2922_v35, 0.0  ;;  %v2994_v55 = vsel %vm672_vm0, %v5842_v27, 0.0  ;;  %v2925_v24 = vadd.f32 %v5791_v0, %v2901_v59  ;;  %v2959_v61 = vmul.f32 %v5801_v15, %v2923_v13 }
 0xc12   : > { %v5856_v47 = vsel %vm2937_vm15, %v2921_v30, %v2957_v2  ;;  %v2995_v60 = vadd.f32 %v2994_v55, %v2993_v4  ;;  %v2889_v51 = vmul.f32 %v5771_v26, %v2869_v18  ;;  %v2904_v22 = vadd.f32 %v2888_v6, %v2852_v23 }
 0xc13   : > { %vm2939_vm3 = vcmp.ge.f32.partialorder %v2923_v13, 0.0  ;;  %v2996_v38 = vsel %vm672_vm0, %v5849_v25, 0.0  ;;  %v2926_v17 = vadd.f32 %v5791_v0, %v2902_v63  ;;  %v2960_v9 = vmul.f32 %v5801_v15, %v2924_v21 }
 0xc14   : > { %v5863_v49 = vsel %vm2938_vm1, %v2922_v35, %v2958_v45  ;;  %v2997_v48 = vadd.f32 %v2996_v38, %v2995_v60  ;;  %v2890_v46 = vmul.f32 %v5771_v26, %v2870_v41  ;;  %v2905_v10 = vadd.f32 %v2889_v51, %v2853_v53 }
 0xc15   : > { %vm2940_vm4 = vcmp.ge.f32.partialorder %v2924_v21, 0.0  ;;  %v2998_v30 = vsel %vm672_vm0, %v5856_v47, 0.0  ;;  %v2927_v23 = vadd.f32 %v5791_v0, %v2903_v36  ;;  %v2961_v7 = vmul.f32 %v5801_v15, %v2925_v24 }
 0xc16   : > { %v5870_v12 = vsel %vm2939_vm3, %v2923_v13, %v2959_v61  ;;  %v2999_v32 = vadd.f32 %v2998_v30, %v2997_v48  ;;  %v2906_v43 = vadd.f32 %v2890_v46, %v2854_v3  ;;  %vm2941_vm5 = vcmp.ge.f32.partialorder %v2925_v24, 0.0 }
 0xc17   : > { %v3000_v35 = vsel %vm672_vm0, %v5863_v49, 0.0  ;;  %v2928_v59 = vadd.f32 %v5791_v0, %v2904_v22  ;;  %v2962_v26 = vmul.f32 %v5801_v15, %v2926_v17  ;;  %v5876_v53 = vsel %vm2940_vm4, %v2924_v21, %v2960_v9 }
 0xc18   : > { %v3001_v16 = vadd.f32 %v3000_v35, %v2999_v32  ;;  %vm2942_vm6 = vcmp.ge.f32.partialorder %v2926_v17, 0.0  ;;  %v3002_v8 = vsel %vm672_vm0, %v5870_v12, 0.0  ;;  %v2929_v13 = vadd.f32 %v5791_v0, %v2905_v10 }
 0xc19   : > { %v2963_v2 = vmul.f32 %v5801_v15, %v2927_v23  ;;  %v5882_v3 = vsel %vm2941_vm5, %v2925_v24, %v2961_v7  ;;  %vm2943_vm7 = vcmp.ge.f32.partialorder %v2927_v23, 0.0  ;;  %v3004_v20 = vsel %vm672_vm0, %v5876_v53, 0.0 }
 0xc1a   : > { %v3003_v52 = vadd.f32 %v3002_v8, %v3001_v16  ;;  %v2930_v63 = vadd.f32 %v5791_v0, %v2906_v43  ;;  %v2964_v54 = vmul.f32 %v5801_v15, %v2928_v59  ;;  %v5888_v18 = vsel %vm2942_vm6, %v2926_v17, %v2962_v26 }
 0xc1b   : > { %vm2944_vm8 = vcmp.ge.f32.partialorder %v2928_v59, 0.0  ;;  %v3006_v45 = vsel %vm672_vm0, %v5882_v3, 0.0  ;;  %v2965_v4 = vmul.f32 %v5801_v15, %v2929_v13  ;;  %v5893_v6 = vsel %vm2943_vm7, %v2927_v23, %v2963_v2 }
 0xc1c   : > { %v3005_v21 = vadd.f32 %v3004_v20, %v3003_v52  ;;  %vm2945_vm9 = vcmp.ge.f32.partialorder %v2929_v13, 0.0  ;;  %v3008_v55 = vsel %vm672_vm0, %v5888_v18, 0.0  ;;  %v2966_v0 = vmul.f32 %v5801_v15, %v2930_v63 }
 0xc1d   : > { %v5898_v41 = vsel %vm2944_vm8, %v2928_v59, %v2964_v54  ;;  %vm2946_vm10 = vcmp.ge.f32.partialorder %v2930_v63, 0.0  ;;  %v3010_v61 = vsel %vm672_vm0, %v5893_v6, 0.0  ;;  %v5902_v60 = vsel %vm2945_vm9, %v2929_v13, %v2965_v4 }
 0xc1e   : > { %v3007_v36 = vadd.f32 %v3006_v45, %v3005_v21  ;;  %v3012_v22 = vsel %vm672_vm0, %v5898_v41, 0.0  ;;  %v5906_v38 = vsel %vm2946_vm10, %v2930_v63, %v2966_v0  ;;  %v3014_v9 = vsel %vm672_vm0, %v5902_v60, 0.0 }
 0xc1f   : > { %v3016_v48 = vsel %vm672_vm0, %v5906_v38, 0.0 }
 0xc20   : > { %v3009_v24 = vadd.f32 %v3008_v55, %v3007_v36 }
 0xc22   : > { %v3011_v51 = vadd.f32 %v3010_v61, %v3009_v24 }
 0xc24   : > { %v3013_v17 = vadd.f32 %v3012_v22, %v3011_v51 }
 0xc26   : > { %v3015_v15 = vadd.f32 %v3014_v9, %v3013_v17 }
 0xc28   : > { %v3017_v46 = vadd.f32 %v3016_v48, %v3015_v15 }
 0xc2a   : > { %3018 = vadd.xlane.f32.xlu1 %v3017_v46 }
 0xcb7   : > { %v3019_v10 = vpop.xlane.xlu1 %3018 }
 0xcb8   : > { %v3020_v30 = vrot.slane %v3019_v10, 4 }
 0xcba   : > { %v3021_v23 = vadd.f32 %v3020_v30, %v3019_v10 }
 0xcbc   : > { %v3022_v7 = vrot.slane %v3021_v23, 2 }
 0xcbe   : > { %v3023_v32 = vadd.f32 %v3022_v7, %v3021_v23 }
 0xcc0   : > { %v3024_v43 = vrot.slane %v3023_v32, 1 }
 0xcc2   : > { %v3025_v35 = vadd.f32 %v3024_v43, %v3023_v32 }
 0xcc4   : > { %4372 = vpush %v3025_v35 }
 0xcf5   : > { %s4373_s3 = spop %4372 }
 0xcf6   : > { %v3027_v59 = vstv %s4373_s3 }
 0xcf7   : > { %v3028_v26 = vmul.f32 0.00012207031, %v3027_v59 }
 0xcf9   : > { %v5913_v16 = vsub.f32 %v5818_v57, %v3028_v26  ;;  %v5916_v8 = vsub.f32 %v5820_v1, %v3028_v26  ;;  %v5919_v13 = vsub.f32 %v5827_v14, %v3028_v26  ;;  %v5922_v2 = vsub.f32 %v5835_v39, %v3028_v26 }
 0xcfa   : > { %v5929_v63 = vsub.f32 %v5842_v27, %v3028_v26  ;;  %v5934_v1 = vsub.f32 %v5849_v25, %v3028_v26  ;;  %v5941_v45 = vsub.f32 %v5856_v47, %v3028_v26  ;;  %v5947_v25 = vsub.f32 %v5863_v49, %v3028_v26 }
 0xcfb   : > { %v3045_v52 = vmul.f32 %v5913_v16, %v5913_v16  ;;  %v3046_v20 = vmul.f32 %v5916_v8, %v5916_v8  ;;  %v3047_v57 = vmul.f32 %v5919_v13, %v5919_v13  ;;  %v3048_v14 = vmul.f32 %v5922_v2, %v5922_v2 }
 0xcfc   : > { %v3049_v27 = vmul.f32 %v5929_v63, %v5929_v63  ;;  %v3050_v55 = vmul.f32 %v5934_v1, %v5934_v1  ;;  %v5953_v61 = vsub.f32 %v5870_v12, %v3028_v26  ;;  %v3051_v47 = vmul.f32 %v5941_v45, %v5941_v45 }
 0xcfd   : > { %v3061_v39 = vsel %vm672_vm0, %v3045_v52, 0.0  ;;  %v3062_v54 = vsel %vm672_vm0, %v3046_v20, 0.0  ;;  %v3064_v4 = vsel %vm672_vm0, %v3047_v57, 0.0  ;;  %v3066_v0 = vsel %vm672_vm0, %v3048_v14, 0.0 }
 0xcfe   : > { %v3063_v21 = vadd.f32 %v3062_v54, %v3061_v39  ;;  %v3068_v51 = vsel %vm672_vm0, %v3049_v27, 0.0  ;;  %v5959_v17 = vsub.f32 %v5876_v53, %v3028_v26  ;;  %v3052_v49 = vmul.f32 %v5947_v25, %v5947_v25 }
 0xcff   : > { %v3070_v9 = vsel %vm672_vm0, %v3050_v55, 0.0  ;;  %v5965_v48 = vsub.f32 %v5882_v3, %v3028_v26  ;;  %v3053_v12 = vmul.f32 %v5953_v61, %v5953_v61  ;;  %v3072_v46 = vsel %vm672_vm0, %v3051_v47, 0.0 }
 0xd00   : > { %v3065_v36 = vadd.f32 %v3064_v4, %v3063_v21  ;;  %v5971_v30 = vsub.f32 %v5888_v18, %v3028_v26  ;;  %v3054_v53 = vmul.f32 %v5959_v17, %v5959_v17  ;;  %v3074_v23 = vsel %vm672_vm0, %v3052_v49, 0.0  ;;  %v3846_v49 = vld [vmem:[%s6237_s16 + $0x48] sm:$0xff] }
 0xd01   : > { %v5977_v32 = vsub.f32 %v5893_v6, %v3028_v26  ;;  %v3055_v3 = vmul.f32 %v5965_v48, %v5965_v48  ;;  %v3076_v43 = vsel %vm672_vm0, %v3053_v12, 0.0  ;;  %v5983_v59 = vsub.f32 %v5898_v41, %v3028_v26  ;;  %v3848_v12 = vld [vmem:[%s6237_s16 + $0x58] sm:$0xff] }
 0xd02   : > { %v3067_v24 = vadd.f32 %v3066_v0, %v3065_v36  ;;  %v3056_v18 = vmul.f32 %v5971_v30, %v5971_v30  ;;  %v3078_v52 = vsel %vm672_vm0, %v3054_v53, 0.0  ;;  %v5989_v57 = vsub.f32 %v5902_v60, %v3028_v26  ;;  %v3850_v53 = vld [vmem:[%s6237_s16 + $0x68] sm:$0xff] }
 0xd03   : > { %v3057_v6 = vmul.f32 %v5977_v32, %v5977_v32  ;;  %v3080_v14 = vsel %vm672_vm0, %v3055_v3, 0.0  ;;  %v5995_v54 = vsub.f32 %v5906_v38, %v3028_v26  ;;  %v3058_v41 = vmul.f32 %v5983_v59, %v5983_v59  ;;  %v3852_v3 = vld [vmem:[%s6237_s16 + $0x78] sm:$0xff] }
 0xd04   : > { %v3069_v22 = vadd.f32 %v3068_v51, %v3067_v24  ;;  %v3082_v21 = vsel %vm672_vm0, %v3056_v18, 0.0  ;;  %v3059_v4 = vmul.f32 %v5989_v57, %v5989_v57  ;;  %v3444_v18 = vld [vmem:[%s6240_s19 + $0x8] sm:$0xff] }
 0xd05   : > { %v3084_v60 = vsel %vm672_vm0, %v3057_v6, 0.0  ;;  %v3060_v55 = vmul.f32 %v5995_v54, %v5995_v54  ;;  %v3086_v0 = vsel %vm672_vm0, %v3058_v41, 0.0 }
 0xd06   : > { %v3071_v15 = vadd.f32 %v3070_v9, %v3069_v22  ;;  %v3088_v38 = vsel %vm672_vm0, %v3059_v4, 0.0  ;;  %v3845_v22 = vld [vmem:[%s6237_s16 + $0x40] sm:$0xff]  ;;  %v3847_v9 = vld [vmem:[%s6237_s16 + $0x50] sm:$0xff] }
 0xd07   : > { %v3090_v47 = vsel %vm672_vm0, %v3060_v55, 0.0 }
 0xd08   : > { %v3073_v10 = vadd.f32 %v3072_v46, %v3071_v15  ;;  %v4328_v15 = vpack.c.bf16 %v3846_v49, %v3845_v22  ;;  %v4332_v46 = vpack.c.bf16 %v3848_v12, %v3847_v9 }
 0xd0a   : > { %v3075_v7 = vadd.f32 %v3074_v23, %v3073_v10  ;;  %4329 = vmatprep.subr.bf16.mxu0 %v4328_v15  ;;  %v3849_v10 = vld [vmem:[%s6237_s16 + $0x60] sm:$0xff]  ;;  %v3851_v23 = vld [vmem:[%s6237_s16 + $0x70] sm:$0xff] }
 0xd0b   : > { %4331 = vmatpush3.bf16.msra.mxu0 %v4328_v15  ;;  %v6058_v15 = vld [vmem:[%s6236_s15 + $0x1] ss:$0 sm:$0xff] }
 0xd0c   : > { %v3077_v35 = vadd.f32 %v3076_v43, %v3075_v7  ;;  %4333 = vmatprep.subr.bf16.mxu0 %v4332_v46  ;;  %v4336_v7 = vpack.c.bf16 %v3850_v53, %v3849_v10  ;;  %v4340_v43 = vpack.c.bf16 %v3852_v3, %v3851_v23 }
 0xd0e   : > { %v3079_v20 = vadd.f32 %v3078_v52, %v3077_v35  ;;  %v3443_v35 = vld [vmem:[%s6240_s19] sm:$0xff]  ;;  %v3445_v52 = vld [vmem:[%s6240_s19 + $0x10] sm:$0xff] }
 0xd0f   : > { %4335 = vmatpush3.bf16.msra.mxu0 %v4332_v46  ;;  %v4344_v6 = vpack.c.bf16 %v3444_v18, %v3443_v35 }
 0xd10   : > { %v3081_v39 = vadd.f32 %v3080_v14, %v3079_v20  ;;  %4337 = vmatprep.subr.bf16.mxu0 %v4336_v7  ;;  %v4427_v20 = vmov 4   ;;  %v3446_v14 = vld [vmem:[%s6240_s19 + $0x18] sm:$0xff] }
 0xd11   : > { %4397 = vset.pattern.permute.xlu1 %v4427_v20  ;;  %4398 = vset.pattern.permute.xlu0 %v4427_v20  ;;  %v4348_v41 = vpack.c.bf16 %v3446_v14, %v3445_v52 }
 0xd12   : > { %v3083_v27 = vadd.f32 %v3082_v21, %v3081_v39  ;;  %v4410_v39 = vld [vmem:[%s6239_s18] ss:$0 sm:$0xff]  ;;  %4352 = vmatprep.subr.bf16.mxu1 %v4344_v6 }
 0xd13   : > { %4339 = vmatpush3.bf16.msra.mxu0 %v4336_v7  ;;  %4354 = vmatpush3.bf16.msra.mxu1 %v4344_v6 }
 0xd14   : > { %v3085_v36 = vadd.f32 %v3084_v60, %v3083_v27  ;;  %4341 = vmatprep.subr.bf16.mxu0 %v4340_v43  ;;  %4353 = vmatprep.subr.bf16.mxu1 %v4348_v41 }
 0xd16   : > { %v3087_v24 = vadd.f32 %v3086_v0, %v3085_v36 }
 0xd17   : > { %4343 = vmatpush3.bf16.msra.mxu0 %v4340_v43  ;;  %4355 = vmatpush3.bf16.msra.mxu1 %v4348_v41 }
 0xd18   : > { %v3089_v26 = vadd.f32 %v3088_v38, %v3087_v24  ;;  %4345 = vmatprep.subr.bf16.mxu0 %v4344_v6 }
 0xd1a   : > { %v3091_v51 = vadd.f32 %v3090_v47, %v3089_v26 }
 0xd1c   : > { %3092 = vadd.xlane.f32.xlu1 %v3091_v51  ;;  %v6050_v51 = vld [vmem:[%s6235_s14 + $0x1] ss:$0 sm:$0xff] }
 0xd2d   : > { %3408 = vperm.xlu1 %4397, %v4410_v39  }
 0xda9   : > { %v3093_v21 = vpop.xlane.xlu1 %3092 }
 0xdaa   : > { %v3094_v27 = vrot.slane %v3093_v21, 4 }
 0xdac   : > { %v3095_v4 = vadd.f32 %v3094_v27, %v3093_v21 }
 0xdae   : > { %v3096_v60 = vrot.slane %v3095_v4, 2 }
 0xdb0   : > { %v3097_v36 = vadd.f32 %v3096_v60, %v3095_v4 }
 0xdb2   : > { %v3098_v55 = vrot.slane %v3097_v36, 1 }
 0xdb4   : > { %v3099_v0 = vadd.f32 %v3098_v55, %v3097_v36 }
 0xdb6   : > { %4374 = vpush %v3099_v0 }
 0xde7   : > { %s4375_s30 = spop %4374 }
 0xde8   : > { %v3101_v24 = vstv %s4375_s30  ;;  %s6200_s30 = scalar_lea.vmem %s6242_s21, %s3890_s26 }
 0xde9   : > { %v3102_v38 = vmul.f32 0.00012207031, %v3101_v24 }
 0xdeb   : > { %v3103_v26 = vadd.f32 1e-08, %v3102_v38 }
 0xded   : > { %4407 = vrsqrt.f32 %v3103_v26 }
 0xdf7   : > { %v4408_v47 = vpop.eup %4407 }
 0xdf8   : > { %v3105_v22 = vmul.f32 %v4408_v47, %v5913_v16  ;;  %v3106_v49 = vmul.f32 %v4408_v47, %v5916_v8  ;;  %v3107_v9 = vmul.f32 %v4408_v47, %v5919_v13  ;;  %v3108_v12 = vmul.f32 %v4408_v47, %v5922_v2 }
 0xdf9   : > { %v3109_v23 = vmul.f32 %v4408_v47, %v5929_v63  ;;  %v3110_v7 = vmul.f32 %v4408_v47, %v5934_v1  ;;  %v3111_v43 = vmul.f32 %v4408_v47, %v5941_v45  ;;  %v3112_v18 = vmul.f32 %v4408_v47, %v5947_v25 }
 0xdfa   : > { %v3127_v46 = vmul.f32 %v6050_v51, %v3105_v22  ;;  %v3128_v10 = vmul.f32 %v6050_v51, %v3106_v49  ;;  %v3129_v53 = vmul.f32 %v6050_v51, %v3107_v9  ;;  %v3130_v13 = vmul.f32 %v6050_v51, %v3108_v12 }
 0xdfb   : > { %v3131_v3 = vmul.f32 %v6050_v51, %v3109_v23  ;;  %v3132_v35 = vmul.f32 %v6050_v51, %v3110_v7  ;;  %v3133_v52 = vmul.f32 %v6050_v51, %v3111_v43  ;;  %v3113_v20 = vmul.f32 %v4408_v47, %v5953_v61 }
 0xdfc   : > { %v3149_v16 = vadd.f32 %v6058_v15, %v3127_v46  ;;  %v3150_v8 = vadd.f32 %v6058_v15, %v3128_v10  ;;  %v3151_v2 = vadd.f32 %v6058_v15, %v3129_v53  ;;  %v3152_v63 = vadd.f32 %v6058_v15, %v3130_v13  ;;  %v6128_v53 = vpop.permute.xlu1 %3408 }
 0xdfd   : > { %v3153_v1 = vadd.f32 %v6058_v15, %v3131_v3  ;;  %v3154_v45 = vadd.f32 %v6058_v15, %v3132_v35  ;;  %v3134_v14 = vmul.f32 %v6050_v51, %v3112_v18  ;;  %v3114_v39 = vmul.f32 %v4408_v47, %v5959_v17 }
 0xdfe   : > { %4212 = vmatprep.mubr.msk.f32.mxu0 %vm672_vm0, %v3149_v16  ;;  %v3155_v25 = vadd.f32 %v6058_v15, %v3133_v52  ;;  %v3115_v21 = vmul.f32 %v4408_v47, %v5965_v48  ;;  %v3116_v4 = vmul.f32 %v4408_v47, %v5971_v30  ;;  %v3118_v55 = vmul.f32 %v4408_v47, %v5983_v59 }
 0xdff   : > { %4213 = vmatmul.mubr.msk.f32.vlgmr.msra.gmra.mrb[32].mxu0 %vm672_vm0, %v3150_v8  ;;  %v3156_v61 = vadd.f32 %v6058_v15, %v3134_v14  ;;  %v3136_v27 = vmul.f32 %v6050_v51, %v3114_v39  ;;  %v3119_v24 = vmul.f32 %v4408_v47, %v5989_v57  ;;  %v3120_v26 = vmul.f32 %v4408_v47, %v5995_v54 }
 0xe00   : > { %4215 = vmatprep.mubr.msk.f32.mxu0 %vm672_vm0, %v3151_v2  ;;  %4347 = vmatpush3.bf16.msra.mxu0 %v4344_v6  ;;  %v3135_v6 = vmul.f32 %v6050_v51, %v3113_v20  ;;  %v3137_v17 = vmul.f32 %v6050_v51, %v3115_v21  ;;  %v3138_v36 = vmul.f32 %v6050_v51, %v3116_v4 }
 0xe01   : > { %4349 = vmatprep.subr.bf16.mxu0 %v4348_v41  ;;  %v3158_v48 = vadd.f32 %v6058_v15, %v3136_v27  ;;  %v3140_v38 = vmul.f32 %v6050_v51, %v3118_v55  ;;  %v3141_v59 = vmul.f32 %v6050_v51, %v3119_v24  ;;  %v3142_v49 = vmul.f32 %v6050_v51, %v3120_v26 }
 0xe02   : > { %v3157_v60 = vadd.f32 %v6058_v15, %v3135_v6  ;;  %v3159_v0 = vadd.f32 %v6058_v15, %v3137_v17 }
 0xe03   : > { %4216 = vmatmul.mubr.msk.f32.gmra.mrb[34].mxu0 %vm672_vm0, %v3152_v63  ;;  %v3162_v57 = vadd.f32 %v6058_v15, %v3140_v38  ;;  %v3163_v9 = vadd.f32 %v6058_v15, %v3141_v59  ;;  %v3164_v54 = vadd.f32 %v6058_v15, %v3142_v49 }
 0xe04   : > { %4218 = vmatprep.mubr.msk.f32.mxu0 %vm672_vm0, %v3153_v1  ;;  %4351 = vmatpush3.bf16.msra.mxu0 %v4348_v41  ;;  %v3117_v41 = vmul.f32 %v4408_v47, %v5977_v32  ;;  %v3160_v32 = vadd.f32 %v6058_v15, %v3138_v36  ;;  %v6124_v47 = vld [vmem:[%s6238_s17 + $0x1] ss:$0 sm:$0xff] }
 0xe06   : > { %v3139_v30 = vmul.f32 %v6050_v51, %v3117_v41 }
 0xe07   : > { %4219 = vmatmul.mubr.msk.f32.gmra.mrb[36].mxu0 %vm672_vm0, %v3154_v45 }
 0xe08   : > { %4221 = vmatprep.mubr.msk.f32.mxu0 %vm672_vm0, %v3155_v25  ;;  %v3161_v22 = vadd.f32 %v6058_v15, %v3139_v30 }
 0xe0b   : > { %4222 = vmatmul.mubr.msk.f32.gmra.mrb[38].mxu0 %vm672_vm0, %v3156_v61 }
 0xe0c   : > { %4224 = vmatprep.mubr.msk.f32.mxu0 %vm672_vm0, %v3157_v60 }
 0xe0f   : > { %4225 = vmatmul.mubr.msk.f32.gmra.mrb[40].mxu0 %vm672_vm0, %v3158_v48 }
 0xe10   : > { %4227 = vmatprep.mubr.msk.f32.mxu0 %vm672_vm0, %v3159_v0 }
 0xe13   : > { %4228 = vmatmul.mubr.msk.f32.gmra.mrb[42].mxu0 %vm672_vm0, %v3160_v32 }
 0xe14   : > { %4230 = vmatprep.mubr.msk.f32.mxu0 %vm672_vm0, %v3161_v22 }
 0xe17   : > { %4231 = vmatmul.mubr.msk.f32.gmra.mrb[44].mxu0 %vm672_vm0, %v3162_v57 }
 0xe18   : > { %4233 = vmatprep.mubr.msk.f32.mxu0 %vm672_vm0, %v3163_v9 }
 0xe1b   : > { %4234 = vmatmul.mubr.msk.f32.gmra.mrb[46].mxu0 %vm672_vm0, %v3164_v54 }
 0xed2   : > { %v4214_v12 = vpop.f32.mrb[32].mxu0 }
 0xed3   : > { %v3302_v46 = vadd.f32 %v4214_v12, %v6124_v47  ;;  %v3296_v10 = vpop.f32.mrb[33].mxu0 }
 0xed4   : > { %v3297_v51 = vadd.f32 %v6124_v47, %v3296_v10 }
 0xed5   : > { %v3376_v23 = vadd.f32 %v3302_v46, %v5449_v40 }
 0xed6   : > { %v3375_v16 = vadd.f32 %v3297_v51, %v5451_v42  ;;  %v4217_v15 = vpop.f32.mrb[34].mxu0 }
 0xed7   : > { %v3312_v8 = vadd.f32 %v4217_v15, %v6124_v47  ;;  %v3306_v13 = vpop.f32.mrb[35].mxu0  ;;  %v3412_v7 = vmul.f32 %v6128_v53, %v3376_v23  ;;  %vm3392_vm0 = vcmp.ge.f32.partialorder %v3376_v23, 0.0 }
 0xed8   : > { %v3307_v2 = vadd.f32 %v6124_v47, %v3306_v13  ;;  %vm3391_vm11 = vcmp.ge.f32.partialorder %v3375_v16, 0.0  ;;  %v3411_v3 = vmul.f32 %v6128_v53, %v3375_v16 }
 0xed9   : > { %v3378_v43 = vadd.f32 %v3312_v8, %v5461_v34  ;;  %v3428_v1 = vsel %vm3392_vm0, %v3376_v23, %v3412_v7 }
 0xeda   : > { %v3377_v63 = vadd.f32 %v3307_v2, %v5457_v19  ;;  %v4220_v35 = vpop.f32.mrb[36].mxu0  ;;  %v3427_v40 = vsel %vm3391_vm11, %v3375_v16, %v3411_v3 }
 0xedb   : > { %v3322_v42 = vadd.f32 %v4220_v35, %v6124_v47  ;;  %v3316_v18 = vpop.f32.mrb[37].mxu0  ;;  %4244 = vmatprep.mubr.msk.f32.mxu0 %vm1210_vm2, %v3427_v40  ;;  %v3414_v52 = vmul.f32 %v6128_v53, %v3378_v43  ;;  %vm3394_vm12 = vcmp.ge.f32.partialorder %v3378_v43, 0.0 }
 0xedc   : > { %v3413_v20 = vmul.f32 %v6128_v53, %v3377_v63  ;;  %v3317_v45 = vadd.f32 %v6124_v47, %v3316_v18  ;;  %4245 = vmatmul.mubr.msk.f32.vlgmr.msra.gmra.mrb[48].mxu0 %vm1210_vm2, %v3428_v1  ;;  %vm3393_vm13 = vcmp.ge.f32.partialorder %v3377_v63, 0.0 }
 0xedd   : > { %v3380_v19 = vadd.f32 %v3322_v42, %v5469_v50  ;;  %v3430_v61 = vsel %vm3394_vm12, %v3378_v43, %v3414_v52 }
 0xede   : > { %v3379_v34 = vadd.f32 %v3317_v45, %v5463_v11  ;;  %v4223_v14 = vpop.f32.mrb[38].mxu0  ;;  %v3429_v39 = vsel %vm3393_vm13, %v3377_v63, %v3413_v20 }
 0xedf   : > { %v3416_v25 = vmul.f32 %v6128_v53, %v3380_v19  ;;  %v3332_v6 = vadd.f32 %v4223_v14, %v6124_v47  ;;  %v3326_v21 = vpop.f32.mrb[39].mxu0  ;;  %4247 = vmatprep.mubr.msk.f32.mxu1 %vm1210_vm2, %v3429_v39  ;;  %vm3396_vm15 = vcmp.ge.f32.partialorder %v3380_v19, 0.0 }
 0xee0   : > { %v3415_v27 = vmul.f32 %v6128_v53, %v3379_v34  ;;  %v3327_v4 = vadd.f32 %v6124_v47, %v3326_v21  ;;  %4248 = vmatmul.mubr.msk.f32.vlgmr.msra.gmra.mrb[34].mxu1 %vm1210_vm2, %v3430_v61  ;;  %vm3395_vm14 = vcmp.ge.f32.partialorder %v3379_v34, 0.0 }
 0xee1   : > { %v3382_v11 = vadd.f32 %v3332_v6, %v5477_v28  ;;  %v3432_v55 = vsel %vm3396_vm15, %v3380_v19, %v3416_v25 }
 0xee2   : > { %v3381_v50 = vadd.f32 %v3327_v4, %v5471_v5  ;;  %v4226_v60 = vpop.f32.mrb[40].mxu0  ;;  %v3431_v17 = vsel %vm3395_vm14, %v3379_v34, %v3415_v27 }
 0xee3   : > { %v3418_v41 = vmul.f32 %v6128_v53, %v3382_v11  ;;  %v3342_v48 = vadd.f32 %v4226_v60, %v6124_v47  ;;  %v3336_v36 = vpop.f32.mrb[41].mxu0  ;;  %4250 = vmatprep.mubr.msk.f32.mxu1 %vm1210_vm2, %v3431_v17  ;;  %vm3398_vm3 = vcmp.ge.f32.partialorder %v3382_v11, 0.0 }
 0xee4   : > { %v3417_v0 = vmul.f32 %v6128_v53, %v3381_v50  ;;  %v3337_v30 = vadd.f32 %v6124_v47, %v3336_v36  ;;  %4251 = vmatmul.mubr.msk.f32.gmra.mrb[36].mxu1 %vm1210_vm2, %v3432_v55  ;;  %vm3397_vm1 = vcmp.ge.f32.partialorder %v3381_v50, 0.0 }
 0xee5   : > { %v3384_v5 = vadd.f32 %v3342_v48, %v5485_v31  ;;  %v3434_v59 = vsel %vm3398_vm3, %v3382_v11, %v3418_v41 }
 0xee6   : > { %v3383_v28 = vadd.f32 %v3337_v30, %v5479_v56  ;;  %v4229_v24 = vpop.f32.mrb[42].mxu0  ;;  %v3433_v32 = vsel %vm3397_vm1, %v3381_v50, %v3417_v0 }
 0xee7   : > { %v3420_v38 = vmul.f32 %v6128_v53, %v3384_v5  ;;  %v3352_v26 = vadd.f32 %v4229_v24, %v6124_v47  ;;  %v3346_v22 = vpop.f32.mrb[43].mxu0  ;;  %4253 = vmatprep.mubr.msk.f32.mxu1 %vm1210_vm2, %v3433_v32  ;;  %vm3400_vm5 = vcmp.ge.f32.partialorder %v3384_v5, 0.0 }
 0xee8   : > { %v3419_v57 = vmul.f32 %v6128_v53, %v3383_v28  ;;  %v3347_v49 = vadd.f32 %v6124_v47, %v3346_v22  ;;  %4254 = vmatmul.mubr.msk.f32.gmra.mrb[38].mxu1 %vm1210_vm2, %v3434_v59  ;;  %vm3399_vm4 = vcmp.ge.f32.partialorder %v3383_v28, 0.0 }
 0xee9   : > { %v3386_v56 = vadd.f32 %v3352_v26, %v5493_v44  ;;  %v3436_v51 = vsel %vm3400_vm5, %v3384_v5, %v3420_v38 }
 0xeea   : > { %v3385_v31 = vadd.f32 %v3347_v49, %v5487_v29  ;;  %v4232_v9 = vpop.f32.mrb[44].mxu0  ;;  %v3435_v54 = vsel %vm3399_vm4, %v3383_v28, %v3419_v57 }
 0xeeb   : > { %v3422_v12 = vmul.f32 %v6128_v53, %v3386_v56  ;;  %v3362_v46 = vadd.f32 %v4232_v9, %v6124_v47  ;;  %v3356_v10 = vpop.f32.mrb[45].mxu0  ;;  %4256 = vmatprep.mubr.msk.f32.mxu1 %vm1210_vm2, %v3435_v54  ;;  %vm3402_vm7 = vcmp.ge.f32.partialorder %v3386_v56, 0.0 }
 0xeec   : > { %v3421_v23 = vmul.f32 %v6128_v53, %v3385_v31  ;;  %v3357_v16 = vadd.f32 %v6124_v47, %v3356_v10  ;;  %4257 = vmatmul.mubr.msk.f32.gmra.mrb[40].mxu1 %vm1210_vm2, %v3436_v51  ;;  %vm3401_vm6 = vcmp.ge.f32.partialorder %v3385_v31, 0.0 }
 0xeed   : > { %v3388_v29 = vadd.f32 %v3362_v46, %v5501_v37  ;;  %v3438_v3 = vsel %vm3402_vm7, %v3386_v56, %v3422_v12 }
 0xeee   : > { %v3387_v44 = vadd.f32 %v3357_v16, %v5495_v33  ;;  %v4235_v15 = vpop.f32.mrb[46].mxu0  ;;  %v3437_v8 = vsel %vm3401_vm6, %v3385_v31, %v3421_v23 }
 0xeef   : > { %v3424_v13 = vmul.f32 %v6128_v53, %v3388_v29  ;;  %v3372_v7 = vadd.f32 %v4235_v15, %v6124_v47  ;;  %v3366_v2 = vpop.f32.mrb[47].mxu0  ;;  %4259 = vmatprep.mubr.msk.f32.mxu1 %vm1210_vm2, %v3437_v8  ;;  %vm3404_vm9 = vcmp.ge.f32.partialorder %v3388_v29, 0.0 }
 0xef0   : > { %v3423_v43 = vmul.f32 %v6128_v53, %v3387_v44  ;;  %v3367_v63 = vadd.f32 %v6124_v47, %v3366_v2  ;;  %4260 = vmatmul.mubr.msk.f32.gmra.mrb[42].mxu1 %vm1210_vm2, %v3438_v3  ;;  %vm3403_vm8 = vcmp.ge.f32.partialorder %v3387_v44, 0.0 }
 0xef1   : > { %v3390_v33 = vadd.f32 %v3372_v7, %v5509_v62  ;;  %v3440_v42 = vsel %vm3404_vm9, %v3388_v29, %v3424_v13 }
 0xef2   : > { %v3389_v37 = vadd.f32 %v3367_v63, %v5503_v58  ;;  %v3439_v35 = vsel %vm3403_vm8, %v3387_v44, %v3423_v43  ;;  %v3871_v58 = vld [vmem:[%s6241_s20] ss:$0 sm:$0xff] }
 0xef3   : > { %v3426_v40 = vmul.f32 %v6128_v53, %v3390_v33  ;;  %4262 = vmatprep.mubr.msk.f32.mxu1 %vm1210_vm2, %v3439_v35  ;;  %vm3406_vm0 = vcmp.ge.f32.partialorder %v3390_v33, 0.0 }
 0xef4   : > { %v3425_v18 = vmul.f32 %v6128_v53, %v3389_v37  ;;  %4263 = vmatmul.mubr.msk.f32.gmra.mrb[44].mxu1 %vm1210_vm2, %v3440_v42  ;;  %vm3405_vm10 = vcmp.ge.f32.partialorder %v3389_v37, 0.0 }
 0xef5   : > { %v3442_v1 = vsel %vm3406_vm0, %v3390_v33, %v3426_v40 }
 0xef6   : > { %v3441_v47 = vsel %vm3405_vm10, %v3389_v37, %v3425_v18 }
 0xef7   : > { %4265 = vmatprep.mubr.msk.f32.mxu1 %vm1210_vm2, %v3441_v47 }
 0xef8   : > { %4266 = vmatmul.mubr.msk.f32.gmra.mrb[46].mxu1 %vm1210_vm2, %v3442_v1 }
 0xfaf   : > { %v4246_v62 = vpop.f32.mrb[48].mxu0 }
 0xfb0   : > { %v3574_v52 = vadd.f32 %v4246_v62, %v3871_v58  ;;  %v3568_v20 = vpop.f32.mrb[49].mxu0 }
 0xfb1   : > { %v3569_v53 = vadd.f32 %v3871_v58, %v3568_v20 }
 0xfb2   : > { %v3648_v45 = vmax.f32 %v3574_v52, 0.0 }
 0xfb3   : > { %v3647_v19 = vmax.f32 %v3569_v53, 0.0  ;;  %v4249_v34 = vpop.f32.mrb[34].mxu1 }
 0xfb4   : > { %3664 = vst [vmem:[%s6200_s30 + $0x8] sm:$0xff] %v3648_v45  ;;  %v3584_v14 = vadd.f32 %v4249_v34, %v3871_v58  ;;  %v3578_v39 = vpop.f32.mrb[35].mxu1 }
 0xfb5   : > { %3663 = vst [vmem:[%s6200_s30] sm:$0xff] %v3647_v19  ;;  %v3579_v25 = vadd.f32 %v3871_v58, %v3578_v39 }
 0xfb6   : > { %v3650_v6 = vmax.f32 %v3584_v14, 0.0 }
 0xfb7   : > { %v3649_v21 = vmax.f32 %v3579_v25, 0.0  ;;  %v4252_v61 = vpop.f32.mrb[36].mxu1 }
 0xfb8   : > { %3666 = vst [vmem:[%s6200_s30 + $0x18] sm:$0xff] %v3650_v6  ;;  %v3594_v27 = vadd.f32 %v4252_v61, %v3871_v58  ;;  %v3588_v4 = vpop.f32.mrb[37].mxu1 }
 0xfb9   : > { %3665 = vst [vmem:[%s6200_s30 + $0x10] sm:$0xff] %v3649_v21  ;;  %v3589_v11 = vadd.f32 %v3871_v58, %v3588_v4 }
 0xfba   : > { %v3652_v50 = vmax.f32 %v3594_v27, 0.0 }
 0xfbb   : > { %v3651_v60 = vmax.f32 %v3589_v11, 0.0  ;;  %v4255_v17 = vpop.f32.mrb[38].mxu1 }
 0xfbc   : > { %3668 = vst [vmem:[%s6200_s30 + $0x28] sm:$0xff] %v3652_v50  ;;  %v3604_v41 = vadd.f32 %v4255_v17, %v3871_v58  ;;  %v3598_v48 = vpop.f32.mrb[39].mxu1 }
 0xfbd   : > { %3667 = vst [vmem:[%s6200_s30 + $0x20] sm:$0xff] %v3651_v60  ;;  %v3599_v36 = vadd.f32 %v3871_v58, %v3598_v48 }
 0xfbe   : > { %v3654_v55 = vmax.f32 %v3604_v41, 0.0 }
 0xfbf   : > { %v3653_v0 = vmax.f32 %v3599_v36, 0.0  ;;  %v4258_v30 = vpop.f32.mrb[40].mxu1 }
 0xfc0   : > { %3670 = vst [vmem:[%s6200_s30 + $0x38] sm:$0xff] %v3654_v55  ;;  %v3614_v5 = vadd.f32 %v4258_v30, %v3871_v58  ;;  %v3608_v28 = vpop.f32.mrb[41].mxu1 }
 0xfc1   : > { %3669 = vst [vmem:[%s6200_s30 + $0x30] sm:$0xff] %v3653_v0  ;;  %v3609_v24 = vadd.f32 %v3871_v58, %v3608_v28 }
 0xfc2   : > { %v3656_v32 = vmax.f32 %v3614_v5, 0.0 }
 0xfc3   : > { %v3655_v38 = vmax.f32 %v3609_v24, 0.0  ;;  %v4261_v26 = vpop.f32.mrb[42].mxu1 }
 0xfc4   : > { %3672 = vst [vmem:[%s6200_s30 + $0x48] sm:$0xff] %v3656_v32  ;;  %v3624_v22 = vadd.f32 %v4261_v26, %v3871_v58  ;;  %v3618_v59 = vpop.f32.mrb[43].mxu1 }
 0xfc5   : > { %3671 = vst [vmem:[%s6200_s30 + $0x40] sm:$0xff] %v3655_v38  ;;  %v3619_v57 = vadd.f32 %v3871_v58, %v3618_v59 }
 0xfc6   : > { %v3658_v49 = vmax.f32 %v3624_v22, 0.0 }
 0xfc7   : > { %v3657_v56 = vmax.f32 %v3619_v57, 0.0  ;;  %v4264_v31 = vpop.f32.mrb[44].mxu1 }
 0xfc8   : > { %3674 = vst [vmem:[%s6200_s30 + $0x58] sm:$0xff] %v3658_v49  ;;  %v3634_v9 = vadd.f32 %v4264_v31, %v3871_v58  ;;  %v3628_v54 = vpop.f32.mrb[45].mxu1 }
 0xfc9   : > { %3673 = vst [vmem:[%s6200_s30 + $0x50] sm:$0xff] %v3657_v56  ;;  %v3629_v12 = vadd.f32 %v3871_v58, %v3628_v54 }
 0xfca   : > { %v3660_v46 = vmax.f32 %v3634_v9, 0.0 }
 0xfcb   : > { %v3659_v10 = vmax.f32 %v3629_v12, 0.0  ;;  %v4267_v51 = vpop.f32.mrb[46].mxu1 }
 0xfcc   : > { %3676 = vst [vmem:[%s6200_s30 + $0x68] sm:$0xff] %v3660_v46  ;;  %v3644_v23 = vadd.f32 %v4267_v51, %v3871_v58  ;;  %v3638_v16 = vpop.f32.mrb[47].mxu1 }
 0xfcd   : > { %3675 = vst [vmem:[%s6200_s30 + $0x60] sm:$0xff] %v3659_v10  ;;  %v3639_v29 = vadd.f32 %v3871_v58, %v3638_v16 }
 0xfce   : > { %v3662_v44 = vmax.f32 %v3644_v23, 0.0 }
 0xfcf   : > { %v3661_v15 = vmax.f32 %v3639_v29, 0.0 }
 0xfd0   : > { %3678 = vst [vmem:[%s6200_s30 + $0x78] sm:$0xff] %v3662_v44 }
 0xfd1   : > { %3677 = vst [vmem:[%s6200_s30 + $0x70] sm:$0xff] %v3661_v15 }
 0xfd2 PF: > { %s31_s2 = sadd.s32 1, %s4417_s2  }
 0xfd3   : > { %p28_p4 = scmp.ge.s32.totalorder %s31_s2, 4  }
 0xfd5   :  { %30 = sbr.rel (!%p28_p4) target bundleno = 7 (0x7), region = 147 }

// kernel: wavesplit_forward.9
= control target key start
LH: loop header
LB: loop body
LE: loop exit
PB: predicated region body
PF: predicated region fallthrough
CT: control target
= control target key end

     0   :  { %s821_s12 = smov 0   ;;  %s823_s13 = smov 0   ;;  %s992_s0 = inlined_call_operand.vmem [shape: f32[2,2,128,64], index: 0, kind: input, shape index: {}]   ;;  %s993_s1 = inlined_call_operand.vmem [shape: f32[2,128,64], index: 1, kind: input, shape index: {}]   ;;  %s994_s2 = inlined_call_operand.vmem [shape: f32[64,16], index: 2, kind: input, shape index: {}]   ;;  %s995_s3 = inlined_call_operand.vmem [shape: f32[2,2,128,16], index: 3, kind: output, shape index: {}]  }
   0x1   :  { %s825_s14 = smov 0   ;;  %s827_s15 = smov 0  }
   0x2   :  { %s829_s16 = smov 0  }
   0x3 LB: > { %s22_s17 = sadd.s32 1, %s791_s14  ;;  %s25_s18 = sadd.s32 1, %s795_s15  ;;  %s799_s16 = sphi %s829_s16, %s13_s16   ;;  %s795_s15 = sphi %s827_s15, %s999_s15   ;;  %s791_s14 = sphi %s825_s14, %s998_s14   ;;  %s787_s13 = sphi %s823_s13, %s997_s13   ;;  %s783_s12 = sphi %s821_s12, %s996_s12  }
   0x4   : > { %p23_p0 = scmp.ge.s32.totalorder %s22_s17, 2  ;;  %p605_p1 = scmp.ge.s32.totalorder %s799_s16, 1 }
   0x5   : > { %p167_p2 = scmp.lt.s32.totalorder %s799_s16, 5 }
   0x6   : > { %s1001_s17 = smov (%p23_p0, %s22_s17), 0  ;;  %s1003_s18 = smov (!%p23_p0, %s25_s18), %s795_s15 }
   0x7   : > { %p168_p3 = pnand %p605_p1, %p167_p2  ;;  %p27_p4 = scmp.ge.s32.totalorder %s1003_s18, 2 }
   0x8   : > { %v275_v0 = vld [vmem:[%s994_s2] sm:$0xff] (!%p168_p3)  ;;  %v276_v1 = vld [vmem:[%s994_s2 + $0x8] sm:$0xff] (!%p168_p3)  ;;  %v277_v2 = vld [vmem:[%s994_s2 + $0x10] sm:$0xff] (!%p168_p3)  ;;  %p204_p5 = scmp.lt.s32.totalorder (!%p168_p3), %s787_s13, 1  ;;  %p206_p6 = scmp.lt.s32.totalorder (!%p168_p3), %s783_s12, 1  ;;  %vm283_vm0 = vcmask (!%p168_p3), 523264  }
   0x9   : > { %s1005_s18 = smov (%p27_p4, %s1003_s18), 0  ;;  %171 = sbr.rel (%p168_p3) target bundleno = 255 (0xff), region = 32 }
   0xa   : > { %v697_v3 = vpack.c.bf16 (!%p168_p3), %v276_v1, %v275_v0  ;;  %v278_v4 = vld [vmem:[%s994_s2 + $0x18] sm:$0xff] (!%p168_p3)  ;;  %v279_v6 = vld [vmem:[%s994_s2 + $0x20] sm:$0xff] (!%p168_p3)  ;;  %v280_v7 = vld [vmem:[%s994_s2 + $0x28] sm:$0xff] (!%p168_p3)  ;;  %vm477_vm1 = vcmask (!%p168_p3), 130048  }
   0xb   : > { %v701_v5 = vpack.c.bf16 (!%p168_p3), %v278_v4, %v277_v2  ;;  %v705_v8 = vpack.c.bf16 (!%p168_p3), %v280_v7, %v279_v6  ;;  %v281_v9 = vld [vmem:[%s994_s2 + $0x30] sm:$0xff] (!%p168_p3)  ;;  %v282_v10 = vld [vmem:[%s994_s2 + $0x38] sm:$0xff] (!%p168_p3) }
   0xc   : > { %698 = vmatprep.subr.bf16.mxu0 (!%p168_p3), %v697_v3  ;;  %713 = vmatprep.subr.bf16.mxu1 (!%p168_p3), %v697_v3  ;;  %v709_v13 = vpack.c.bf16 (!%p168_p3), %v282_v10, %v281_v9 }
   0xd   : > { %700 = vmatpush3.bf16.msra.mxu0 (!%p168_p3), %v697_v3  ;;  %717 = vmatpush3.bf16.msra.mxu1 (!%p168_p3), %v697_v3 }
   0xe   : > { %702 = vmatprep.subr.bf16.mxu0 (!%p168_p3), %v701_v5  ;;  %714 = vmatprep.subr.bf16.mxu1 (!%p168_p3), %v701_v5 }
  0x10   : > { %s1007_s13 = smov (!%p204_p5, %s787_s13), 1  ;;  %s1009_s12 = smov (!%p206_p6, %s783_s12), 1 }
  0x11   : > { %s607_s4 = sshll.u32 %s1007_s13, 5  ;;  %s606_s5 = sshll.u32 %s1009_s12, 4  ;;  %704 = vmatpush3.bf16.msra.mxu0 %v701_v5  ;;  %718 = vmatpush3.bf16.msra.mxu1 %v701_v5 }
  0x12   : > { %s632_s6 = sshll.u32 %s1009_s12, 7  ;;  %s875_s11 = sadd.s32 %s607_s4, %s606_s5  ;;  %706 = vmatprep.subr.bf16.mxu0 %v705_v8  ;;  %715 = vmatprep.subr.bf16.mxu1 %v705_v8 }
  0x13   : > { %s880_s13 = scalar_lea.vmem %s993_s1, %s632_s6  ;;  %s608_s12 = sshll.u32 %s875_s11, 3 }
  0x14   : > { %v243_v11 = vld [vmem:[%s880_s13] sm:$0xff]  ;;  %s890_s23 = scalar_lea.vmem %s992_s0, %s608_s12  ;;  %v244_v18 = vld [vmem:[%s880_s13 + $0x8] sm:$0xff]  ;;  %v245_v22 = vld [vmem:[%s880_s13 + $0x10] sm:$0xff]  ;;  %s943_s26 = scalar_lea.vmem %s995_s3, %s608_s12 }
  0x15   : > { %v251_v12 = vld [vmem:[%s880_s13 + $0x40] sm:$0xff]  ;;  %v252_v19 = vld [vmem:[%s880_s13 + $0x48] sm:$0xff]  ;;  %708 = vmatpush3.bf16.msra.mxu0 %v705_v8  ;;  %719 = vmatpush3.bf16.msra.mxu1 %v705_v8  ;;  %v229_v23 = vld [vmem:[%s890_s23 + $0x10] sm:$0xff] }
  0x16   : > { %v227_v14 = vld [vmem:[%s890_s23] sm:$0xff]  ;;  %v228_v20 = vld [vmem:[%s890_s23 + $0x8] sm:$0xff]  ;;  %710 = vmatprep.subr.bf16.mxu0 %v709_v13  ;;  %716 = vmatprep.subr.bf16.mxu1 %v709_v13  ;;  %v237_v24 = vld [vmem:[%s890_s23 + $0x50] sm:$0xff]  ;;  %v261_v30 = vmul.f32 %v245_v22, %v229_v23 }
  0x17   : > { %v235_v15 = vld [vmem:[%s890_s23 + $0x40] sm:$0xff]  ;;  %v259_v16 = vmul.f32 %v243_v11, %v227_v14  ;;  %v236_v21 = vld [vmem:[%s890_s23 + $0x48] sm:$0xff]  ;;  %v253_v25 = vld [vmem:[%s880_s13 + $0x50] sm:$0xff]  ;;  %v260_v26 = vmul.f32 %v244_v18, %v228_v20 }
  0x18   : > { %v267_v17 = vmul.f32 %v251_v12, %v235_v15  ;;  %v268_v27 = vmul.f32 %v252_v19, %v236_v21  ;;  %v230_v28 = vld [vmem:[%s890_s23 + $0x18] sm:$0xff]  ;;  %v269_v31 = vmul.f32 %v253_v25, %v237_v24  ;;  %v231_v34 = vld [vmem:[%s890_s23 + $0x20] sm:$0xff]  ;;  %v232_v40 = vld [vmem:[%s890_s23 + $0x28] sm:$0xff] }
  0x19   : > { %673 = vmatprep.mubr.msk.f32.mxu0 %vm283_vm0, %v259_v16  ;;  %v246_v29 = vld [vmem:[%s880_s13 + $0x18] sm:$0xff]  ;;  %712 = vmatpush3.bf16.msra.mxu0 %v709_v13  ;;  %v247_v35 = vld [vmem:[%s880_s13 + $0x20] sm:$0xff]  ;;  %v248_v41 = vld [vmem:[%s880_s13 + $0x28] sm:$0xff] }
  0x1a   : > { %685 = vmatprep.mubr.msk.f32.mxu1 %vm283_vm0, %v267_v17  ;;  %720 = vmatpush3.bf16.msra.mxu1 %v709_v13  ;;  %v238_v32 = vld [vmem:[%s890_s23 + $0x58] sm:$0xff]  ;;  %v239_v36 = vld [vmem:[%s890_s23 + $0x60] sm:$0xff]  ;;  %v262_v38 = vmul.f32 %v246_v29, %v230_v28  ;;  %v263_v42 = vmul.f32 %v247_v35, %v231_v34  ;;  %v240_v44 = vld [vmem:[%s890_s23 + $0x68] sm:$0xff]  ;;  %v264_v50 = vmul.f32 %v248_v41, %v232_v40 }
  0x1b   : > { %v254_v33 = vld [vmem:[%s880_s13 + $0x58] sm:$0xff]  ;;  %v255_v37 = vld [vmem:[%s880_s13 + $0x60] sm:$0xff]  ;;  %v256_v45 = vld [vmem:[%s880_s13 + $0x68] sm:$0xff] }
  0x1c   : > { %674 = vmatmul.mubr.msk.f32.vlgmr.msra.gmra.mrb[0].mxu0 %vm283_vm0, %v260_v26  ;;  %v270_v39 = vmul.f32 %v254_v33, %v238_v32  ;;  %v271_v43 = vmul.f32 %v255_v37, %v239_v36  ;;  %v233_v46 = vld [vmem:[%s890_s23 + $0x30] sm:$0xff]  ;;  %v272_v51 = vmul.f32 %v256_v45, %v240_v44  ;;  %v234_v52 = vld [vmem:[%s890_s23 + $0x38] sm:$0xff] }
  0x1d   : > { %686 = vmatmul.mubr.msk.f32.vlgmr.msra.gmra.mrb[0].mxu1 %vm283_vm0, %v268_v27  ;;  %676 = vmatprep.mubr.msk.f32.mxu0 %vm283_vm0, %v261_v30  ;;  %v249_v47 = vld [vmem:[%s880_s13 + $0x30] sm:$0xff]  ;;  %v250_v55 = vld [vmem:[%s880_s13 + $0x38] sm:$0xff] }
  0x1e   : > { %688 = vmatprep.mubr.msk.f32.mxu1 %vm283_vm0, %v269_v31  ;;  %v241_v48 = vld [vmem:[%s890_s23 + $0x70] sm:$0xff]  ;;  %v265_v53 = vmul.f32 %v249_v47, %v233_v46  ;;  %v242_v56 = vld [vmem:[%s890_s23 + $0x78] sm:$0xff]  ;;  %v266_v58 = vmul.f32 %v250_v55, %v234_v52 }
  0x1f   : > { %v257_v49 = vld [vmem:[%s880_s13 + $0x70] sm:$0xff]  ;;  %v258_v57 = vld [vmem:[%s880_s13 + $0x78] sm:$0xff] }
  0x20   : > { %677 = vmatmul.mubr.msk.f32.gmra.mrb[2].mxu0 %vm283_vm0, %v262_v38  ;;  %v273_v54 = vmul.f32 %v257_v49, %v241_v48  ;;  %v274_v59 = vmul.f32 %v258_v57, %v242_v56 }
  0x21   : > { %689 = vmatmul.mubr.msk.f32.gmra.mrb[2].mxu1 %vm283_vm0, %v270_v39  ;;  %679 = vmatprep.mubr.msk.f32.mxu0 %vm283_vm0, %v263_v42 }
  0x22   : > { %691 = vmatprep.mubr.msk.f32.mxu1 %vm283_vm0, %v271_v43 }
  0x24   : > { %680 = vmatmul.mubr.msk.f32.gmra.mrb[4].mxu0 %vm283_vm0, %v264_v50 }
  0x25   : > { %692 = vmatmul.mubr.msk.f32.gmra.mrb[4].mxu1 %vm283_vm0, %v272_v51  ;;  %682 = vmatprep.mubr.msk.f32.mxu0 %vm283_vm0, %v265_v53 }
  0x26   : > { %694 = vmatprep.mubr.msk.f32.mxu1 %vm283_vm0, %v273_v54 }
  0x28   : > { %683 = vmatmul.mubr.msk.f32.gmra.mrb[6].mxu0 %vm283_vm0, %v266_v58 }
  0x29   : > { %695 = vmatmul.mubr.msk.f32.gmra.mrb[6].mxu1 %vm283_vm0, %v274_v59 }
  0xef   : > { %v675_v60 = vpop.f32.mrb[0].mxu0 }
  0xf0   : > { %v687_v61 = vpop.f32.mrb[0].mxu1  ;;  %479 = vst.msk [vmem:[%s943_s26 + $0x8] sm:$0xff] %vm477_vm1, %v675_v60  ;;  %v398_v62 = vpop.f32.mrb[1].mxu0 }
  0xf1   : > { %487 = vst.msk [vmem:[%s943_s26 + $0x48] sm:$0xff] %vm477_vm1, %v687_v61  ;;  %v438_v63 = vpop.f32.mrb[1].mxu1  ;;  %478 = vst.msk [vmem:[%s943_s26] sm:$0xff] %vm477_vm1, %v398_v62 }
  0xf2   : > { %486 = vst.msk [vmem:[%s943_s26 + $0x40] sm:$0xff] %vm477_vm1, %v438_v63 }
  0xf3   : > { %v678_v0 = vpop.f32.mrb[2].mxu0 }
  0xf4   : > { %v690_v1 = vpop.f32.mrb[2].mxu1  ;;  %481 = vst.msk [vmem:[%s943_s26 + $0x18] sm:$0xff] %vm477_vm1, %v678_v0  ;;  %v408_v2 = vpop.f32.mrb[3].mxu0 }
  0xf5   : > { %489 = vst.msk [vmem:[%s943_s26 + $0x58] sm:$0xff] %vm477_vm1, %v690_v1  ;;  %v448_v3 = vpop.f32.mrb[3].mxu1  ;;  %480 = vst.msk [vmem:[%s943_s26 + $0x10] sm:$0xff] %vm477_vm1, %v408_v2 }
  0xf6   : > { %488 = vst.msk [vmem:[%s943_s26 + $0x50] sm:$0xff] %vm477_vm1, %v448_v3 }
  0xf7   : > { %v681_v4 = vpop.f32.mrb[4].mxu0 }
  0xf8   : > { %v693_v5 = vpop.f32.mrb[4].mxu1  ;;  %483 = vst.msk [vmem:[%s943_s26 + $0x28] sm:$0xff] %vm477_vm1, %v681_v4  ;;  %v418_v6 = vpop.f32.mrb[5].mxu0 }
  0xf9   : > { %491 = vst.msk [vmem:[%s943_s26 + $0x68] sm:$0xff] %vm477_vm1, %v693_v5  ;;  %v458_v7 = vpop.f32.mrb[5].mxu1  ;;  %482 = vst.msk [vmem:[%s943_s26 + $0x20] sm:$0xff] %vm477_vm1, %v418_v6 }
  0xfa   : > { %490 = vst.msk [vmem:[%s943_s26 + $0x60] sm:$0xff] %vm477_vm1, %v458_v7 }
  0xfb   : > { %v684_v8 = vpop.f32.mrb[6].mxu0 }
  0xfc   : > { %v696_v9 = vpop.f32.mrb[6].mxu1  ;;  %485 = vst.msk [vmem:[%s943_s26 + $0x38] sm:$0xff] %vm477_vm1, %v684_v8  ;;  %v428_v10 = vpop.f32.mrb[7].mxu0 }
  0xfd   : > { %493 = vst.msk [vmem:[%s943_s26 + $0x78] sm:$0xff] %vm477_vm1, %v696_v9  ;;  %v468_v11 = vpop.f32.mrb[7].mxu1  ;;  %484 = vst.msk [vmem:[%s943_s26 + $0x30] sm:$0xff] %vm477_vm1, %v428_v10 }
  0xfe   : > { %492 = vst.msk [vmem:[%s943_s26 + $0x70] sm:$0xff] %vm477_vm1, %v468_v11 }
  0xff PF: > { %s13_s16 = sadd.s32 1, %s799_s16   ;;  %s996_s12 = smov %s791_s14 }
 0x100   : > { %p10_p7 = scmp.ge.s32.totalorder %s13_s16, 6   ;;  %s997_s13 = smov %s795_s15 }
 0x101   : > { %s998_s14 = smov %s1001_s17  ;;  %s999_s15 = smov %s1005_s18 }
 0x102   :  { %12 = sbr.rel (!%p10_p7) target bundleno = 3 (0x3), region = 65 }

// kernel: wavesplit_forward.8
= control target key start
LH: loop header
LB: loop body
LE: loop exit
PB: predicated region body
PF: predicated region fallthrough
CT: control target
= control target key end

     0   :  { %s6237_s0 = inlined_call_operand.vmem [shape: f32[4,128,64], index: 0, kind: input, shape index: {}]   ;;  %s6238_s1 = inlined_call_operand.vmem [shape: f32[4,1,64], index: 1, kind: input, shape index: {}]   ;;  %s6239_s2 = inlined_call_operand.vmem [shape: f32[1,64], index: 2, kind: input, shape index: {}]   ;;  %s6240_s3 = inlined_call_operand.vmem [shape: f32[1,64], index: 3, kind: input, shape index: {}]   ;;  %s6241_s4 = inlined_call_operand.vmem [shape: f32[64,32], index: 4, kind: input, shape index: {}]   ;;  %s6242_s5 = inlined_call_operand.vmem [shape: f32[1,32], index: 5, kind: input, shape index: {}]   ;;  %s6243_s6 = inlined_call_operand.vmem [shape: f32[64,32], index: 6, kind: input, shape index: {}]   ;;  %s6244_s7 = inlined_call_operand.vmem [shape: f32[1,32], index: 7, kind: input, shape index: {}]   ;;  %s6245_s8 = inlined_call_operand.vmem [shape: f32[2,32,64], index: 8, kind: input, shape index: {}]   ;;  %s6246_s9 = inlined_call_operand.vmem [shape: f32[2,1,64], index: 9, kind: input, shape index: {}]   ;;  %s6247_s10 = inlined_call_operand.vmem [shape: f32[2,1,64], index: 10, kind: input, shape index: {}]   ;;  %s6248_s11 = inlined_call_operand.vmem [shape: f32[2,1,64], index: 11, kind: input, shape index: {}]   ;;  %s6249_s12 = inlined_call_operand.vmem [shape: f32[2,3,64], index: 12, kind: input, shape index: {}]   ;;  %s6250_s13 = inlined_call_operand.vmem [shape: f32[2,1,64], index: 13, kind: input, shape index: {}]   ;;  %s6251_s14 = inlined_call_operand.vmem [shape: f32[2,1,64], index: 14, kind: input, shape index: {}]   ;;  %s6252_s15 = inlined_call_operand.vmem [shape: f32[2,1,64], index: 15, kind: input, shape index: {}]   ;;  %s6253_s16 = inlined_call_operand.vmem [shape: f32[2,64,64], index: 16, kind: input, shape index: {}]   ;;  %s6254_s17 = inlined_call_operand.vmem [shape: f32[2,1,64], index: 17, kind: input, shape index: {}]   ;;  %s6255_s18 = inlined_call_operand.vmem [shape: f32[1,5], index: 18, kind: input, shape index: {}]   ;;  %s6256_s19 = inlined_call_operand.vmem [shape: f32[32,64], index: 19, kind: input, shape index: {}]   ;;  %s6257_s20 = inlined_call_operand.vmem [shape: f32[1,64], index: 20, kind: input, shape index: {}]   ;;  %s6258_s21 = inlined_call_operand.vmem [shape: f32[4,128,64], index: 21, kind: output, shape index: {}]  }
   0x1   :  { %6265 = sst [smem:[#allocation5_spill]] %s6237_s0 }
   0x2   :  { %6266 = sst [smem:[#allocation6_spill]] %s6238_s1 }
   0x3   :  { %6267 = sst [smem:[#allocation7_spill]] %s6239_s2  ;;  %s4538_s2 = smov 0  }
   0x4   :  { %6268 = sst [smem:[#allocation8_spill]] %s6240_s3 }
   0x5   :  { %6269 = sst [smem:[#allocation9_spill]] %s6241_s4 }
   0x6   :  { %6270 = sst [smem:[#allocation10_spill]] %s6242_s5 }
   0x7 LB: > { %s3743_s25 = sadd.s32 4294967295, %s4417_s2   ;;  %p3747_p0 = scmp.ge.s32.totalorder %s4417_s2, 1  ;;  %s4417_s2 = sphi %s4538_s2, %s31_s2  }
   0x8   : > { %p595_p1 = scmp.lt.s32.totalorder %s4417_s2, 5 }
   0xa   : > { %p596_p2 = pnand %p3747_p0, %p595_p1 }
   0xc   : > { %599 = sbr.rel (%p596_p2) target bundleno = 4050 (0xfd2), region = 104 }
  0x13   : > { %p658_p3 = scmp.lt.s32.totalorder %s3743_s25, 3  ;;  %vm672_vm0 = vcmask 523264   ;;  %s6271_s28 = sld [smem:[#allocation5_spill]]  ;;  %vm4420_vm1 = vmmov 0   ;;  %vm1210_vm2 = vcmask 261120  }
  0x14   : > { %s6272_s24 = sld [smem:[#allocation9_spill]]  ;;  %s6273_s30 = sld [smem:[#allocation6_spill]] }
  0x15   : > { %s6284_s25 = smov (!%p658_p3, %s3743_s25), 3  ;;  %s4424_s22 = smov 96  }
  0x16   : > { %s3890_s26 = sshll.u32 %s6284_s25, 7 }
  0x19   : > { %s4554_s29 = scalar_lea.vmem %s6271_s28, %s3890_s26 }
  0x1a   : > { %v691_v0 = vld [vmem:[%s4554_s29] sm:$0xff]  ;;  %v692_v1 = vld [vmem:[%s4554_s29 + $0x8] sm:$0xff]  ;;  %v693_v2 = vld [vmem:[%s4554_s29 + $0x10] sm:$0xff]  ;;  %s665_s5 = scalar_lea.vmem %s6273_s30, %s6284_s25 }
  0x1b   : > { %v694_v3 = vld [vmem:[%s4554_s29 + $0x18] sm:$0xff]  ;;  %v709_v4 = vsel %vm672_vm0, %v691_v0, 0.0  ;;  %v710_v5 = vsel %vm672_vm0, %v692_v1, 0.0  ;;  %v712_v6 = vsel %vm672_vm0, %v693_v2, 0.0  ;;  %v695_v7 = vld [vmem:[%s4554_s29 + $0x20] sm:$0xff]  ;;  %v696_v10 = vld [vmem:[%s4554_s29 + $0x28] sm:$0xff] }
  0x1c   : > { %v711_v8 = vadd.f32 %v710_v5, %v709_v4  ;;  %v714_v9 = vsel %vm672_vm0, %v694_v3, 0.0  ;;  %v716_v12 = vsel %vm672_vm0, %v695_v7, 0.0  ;;  %v697_v13 = vld [vmem:[%s4554_s29 + $0x30] sm:$0xff]  ;;  %v718_v15 = vsel %vm672_vm0, %v696_v10, 0.0  ;;  %v698_v16 = vld [vmem:[%s4554_s29 + $0x38] sm:$0xff]  ;;  %v699_v19 = vld [vmem:[%s4554_s29 + $0x40] sm:$0xff] }
  0x1d   : > { %v720_v18 = vsel %vm672_vm0, %v697_v13, 0.0  ;;  %v722_v21 = vsel %vm672_vm0, %v698_v16, 0.0  ;;  %v700_v22 = vld [vmem:[%s4554_s29 + $0x48] sm:$0xff]  ;;  %v724_v24 = vsel %vm672_vm0, %v699_v19, 0.0  ;;  %v4576_v25 = vld [vmem:[%s4554_s29 + $0x50] sm:$0xff]  ;;  %v4580_v28 = vld [vmem:[%s4554_s29 + $0x58] sm:$0xff] }
  0x1e   : > { %v713_v11 = vadd.f32 %v712_v6, %v711_v8  ;;  %v726_v27 = vsel %vm672_vm0, %v700_v22, 0.0  ;;  %v728_v30 = vsel %vm672_vm0, %v4576_v25, 0.0  ;;  %v4585_v31 = vld [vmem:[%s4554_s29 + $0x60] sm:$0xff]  ;;  %v730_v33 = vsel %vm672_vm0, %v4580_v28, 0.0  ;;  %v4590_v34 = vld [vmem:[%s4554_s29 + $0x68] sm:$0xff]  ;;  %v4595_v37 = vld [vmem:[%s4554_s29 + $0x70] sm:$0xff] }
  0x1f   : > { %v732_v36 = vsel %vm672_vm0, %v4585_v31, 0.0  ;;  %v734_v39 = vsel %vm672_vm0, %v4590_v34, 0.0  ;;  %v4600_v40 = vld [vmem:[%s4554_s29 + $0x78] sm:$0xff]  ;;  %v736_v42 = vsel %vm672_vm0, %v4595_v37, 0.0 }
  0x20   : > { %v715_v14 = vadd.f32 %v714_v9, %v713_v11  ;;  %v738_v44 = vsel %vm672_vm0, %v4600_v40, 0.0 }
  0x22   : > { %v717_v17 = vadd.f32 %v716_v12, %v715_v14 }
  0x24   : > { %v719_v20 = vadd.f32 %v718_v15, %v717_v17 }
  0x26   : > { %v721_v23 = vadd.f32 %v720_v18, %v719_v20 }
  0x28   : > { %v723_v26 = vadd.f32 %v722_v21, %v721_v23 }
  0x2a   : > { %v725_v29 = vadd.f32 %v724_v24, %v723_v26 }
  0x2c   : > { %v727_v32 = vadd.f32 %v726_v27, %v725_v29 }
  0x2e   : > { %v729_v35 = vadd.f32 %v728_v30, %v727_v32 }
  0x30   : > { %v731_v38 = vadd.f32 %v730_v33, %v729_v35 }
  0x32   : > { %v733_v41 = vadd.f32 %v732_v36, %v731_v38 }
  0x34   : > { %v735_v43 = vadd.f32 %v734_v39, %v733_v41 }
  0x36   : > { %v737_v45 = vadd.f32 %v736_v42, %v735_v43 }
  0x38   : > { %v739_v46 = vadd.f32 %v738_v44, %v737_v45 }
  0x3a   : > { %740 = vadd.xlane.f32.xlu0 %v739_v46 }
  0xc7   : > { %v741_v47 = vpop.xlane.xlu0 %740 }
  0xc8   : > { %v742_v48 = vrot.slane %v741_v47, 4 }
  0xca   : > { %v743_v49 = vadd.f32 %v742_v48, %v741_v47 }
  0xcc   : > { %v744_v50 = vrot.slane %v743_v49, 2 }
  0xce   : > { %v745_v51 = vadd.f32 %v744_v50, %v743_v49 }
  0xd0   : > { %v746_v52 = vrot.slane %v745_v51, 1 }
  0xd2   : > { %v747_v53 = vadd.f32 %v746_v52, %v745_v51 }
  0xd4   : > { %4356 = vpush %v747_v53 }
 0x105   : > { %s4357_s0 = spop %4356 }
 0x106   : > { %v749_v54 = vstv %s4357_s0  ;;  %s6274_s0 = sld [smem:[#allocation7_spill]] }
 0x107   : > { %v751_v55 = vmul.f32 0.00012207031, %v749_v54 }
 0x109   : > { %v4606_v56 = vsub.f32 %v691_v0, %v751_v55  ;;  %v4608_v57 = vsub.f32 %v692_v1, %v751_v55  ;;  %v4610_v58 = vsub.f32 %v693_v2, %v751_v55  ;;  %v4612_v59 = vsub.f32 %v694_v3, %v751_v55 }
 0x10a   : > { %v4618_v62 = vsub.f32 %v695_v7, %v751_v55  ;;  %v4622_v4 = vsub.f32 %v696_v10, %v751_v55  ;;  %v4628_v5 = vsub.f32 %v697_v13, %v751_v55  ;;  %v4633_v9 = vsub.f32 %v698_v16, %v751_v55 }
 0x10b   : > { %v768_v60 = vmul.f32 %v4606_v56, %v4606_v56  ;;  %v769_v61 = vmul.f32 %v4608_v57, %v4608_v57  ;;  %v770_v63 = vmul.f32 %v4610_v58, %v4610_v58  ;;  %v771_v0 = vmul.f32 %v4612_v59, %v4612_v59 }
 0x10c   : > { %v772_v6 = vmul.f32 %v4618_v62, %v4618_v62  ;;  %v773_v10 = vmul.f32 %v4622_v4, %v4622_v4  ;;  %v4638_v14 = vsub.f32 %v699_v19, %v751_v55  ;;  %v774_v13 = vmul.f32 %v4628_v5, %v4628_v5 }
 0x10d   : > { %v784_v1 = vsel %vm672_vm0, %v768_v60, 0.0  ;;  %v785_v2 = vsel %vm672_vm0, %v769_v61, 0.0  ;;  %v787_v7 = vsel %vm672_vm0, %v770_v63, 0.0  ;;  %v789_v11 = vsel %vm672_vm0, %v771_v0, 0.0  ;;  %v1098_v60 = vld [vmem:[%s6243_s6 + $0x8] sm:$0xff]  ;;  %v888_v61 = vld [vmem:[%s6272_s24] sm:$0xff] }
 0x10e   : > { %v786_v3 = vadd.f32 %v785_v2, %v784_v1  ;;  %v791_v15 = vsel %vm672_vm0, %v772_v6, 0.0  ;;  %v4643_v18 = vsub.f32 %v700_v22, %v751_v55  ;;  %v775_v16 = vmul.f32 %v4633_v9, %v4633_v9  ;;  %v889_v1 = vld [vmem:[%s6272_s24 + $0x8] sm:$0xff]  ;;  %v1099_v2 = vld [vmem:[%s6243_s6 + $0x10] sm:$0xff] }
 0x10f   : > { %v793_v20 = vsel %vm672_vm0, %v773_v10, 0.0  ;;  %v4649_v23 = vsub.f32 %v4576_v25, %v751_v55  ;;  %v776_v19 = vmul.f32 %v4638_v14, %v4638_v14  ;;  %v795_v24 = vsel %vm672_vm0, %v774_v13, 0.0  ;;  %v891_v10 = vld [vmem:[%s6272_s24 + $0x18] sm:$0xff]  ;;  %v892_v13 = vld [vmem:[%s6272_s24 + $0x20] sm:$0xff] }
 0x110   : > { %v788_v8 = vadd.f32 %v787_v7, %v786_v3  ;;  %v4655_v27 = vsub.f32 %v4580_v28, %v751_v55  ;;  %v777_v22 = vmul.f32 %v4643_v18, %v4643_v18  ;;  %v797_v29 = vsel %vm672_vm0, %v775_v16, 0.0  ;;  %v1100_v3 = vld [vmem:[%s6243_s6 + $0x18] sm:$0xff]  ;;  %v1102_v16 = vld [vmem:[%s6243_s6 + $0x28] sm:$0xff] }
 0x111   : > { %v4661_v32 = vsub.f32 %v4585_v31, %v751_v55  ;;  %v778_v25 = vmul.f32 %v4649_v23, %v4649_v23  ;;  %v799_v33 = vsel %vm672_vm0, %v776_v19, 0.0  ;;  %v4667_v36 = vsub.f32 %v4590_v34, %v751_v55  ;;  %v894_v19 = vld [vmem:[%s6272_s24 + $0x30] sm:$0xff] }
 0x112   : > { %v790_v12 = vadd.f32 %v789_v11, %v788_v8  ;;  %v779_v28 = vmul.f32 %v4655_v27, %v4655_v27  ;;  %v801_v38 = vsel %vm672_vm0, %v777_v22, 0.0  ;;  %v4673_v41 = vsub.f32 %v4595_v37, %v751_v55  ;;  %v890_v8 = vld [vmem:[%s6272_s24 + $0x10] sm:$0xff]  ;;  %v1104_v22 = vld [vmem:[%s6243_s6 + $0x38] sm:$0xff] }
 0x113   : > { %v780_v31 = vmul.f32 %v4661_v32, %v4661_v32  ;;  %v803_v42 = vsel %vm672_vm0, %v778_v25, 0.0  ;;  %v4679_v44 = vsub.f32 %v4600_v40, %v751_v55  ;;  %v781_v34 = vmul.f32 %v4667_v36, %v4667_v36  ;;  %v1097_v55 = vld [vmem:[%s6243_s6] sm:$0xff] }
 0x114   : > { %v792_v17 = vadd.f32 %v791_v15, %v790_v12  ;;  %v805_v45 = vsel %vm672_vm0, %v779_v28, 0.0  ;;  %v782_v47 = vmul.f32 %v4673_v41, %v4673_v41  ;;  %v4419_v63 = vmov 0.0|0.0   ;;  %v893_v15 = vld [vmem:[%s6272_s24 + $0x28] sm:$0xff]  ;;  %v1096_v25 = vld [vmem:[%s665_s5] sm:$0x1]  ;;  %s6275_s5 = sld [smem:[#allocation8_spill]] }
 0x115   : > { %v807_v37 = vsel %vm672_vm0, %v780_v31, 0.0  ;;  %v783_v49 = vmul.f32 %v4679_v44, %v4679_v44  ;;  %v809_v50 = vsel %vm672_vm0, %v781_v34, 0.0  ;;  %4284 = vmatprep.subr.bf16.mxu1 %v4419_v63  ;;  %v4285_v0 = vpack.c.bf16 %v1098_v60, %v1097_v55  ;;  %v1200_v34 = vld [vmem:[%s6245_s8 + $0x8] sm:$0xff] }
 0x116   : > { %v794_v21 = vadd.f32 %v793_v20, %v792_v17  ;;  %v811_v40 = vsel %vm672_vm0, %v782_v47, 0.0  ;;  %v4421_v6 = vmov 0.0   ;;  %v4268_v7 = vpack.c.bf16 %v889_v1, %v888_v61  ;;  %v1101_v17 = vld [vmem:[%s6243_s6 + $0x20] sm:$0xff] }
 0x117   : > { %v813_v53 = vsel %vm672_vm0, %v783_v49, 0.0  ;;  %4089 = vmatprep.mubr.msk.f32.mxu1 %vm4420_vm1, %v4421_v6  ;;  %673 = vst.msk [vmem:[#allocation2] sm:$0xff] %vm672_vm0, %v4421_v6  ;;  %674 = vst.msk [vmem:[#allocation2 + $0x8] sm:$0xff] %vm672_vm0, %v4421_v6  ;;  %4286 = vmatpush3.bf16.msra.mxu1 %v4285_v0  ;;  %v4288_v11 = vpack.c.bf16 %v1100_v3, %v1099_v2  ;;  %v4272_v12 = vpack.c.bf16 %v891_v10, %v890_v8  ;;  %v3752_v49 = vld [vmem:[%s6274_s0] ss:$0 sm:$0xff] }
 0x118   : > { %v796_v26 = vadd.f32 %v795_v24, %v794_v21  ;;  %675 = vst.msk [vmem:[#allocation2 + $0x10] sm:$0xff] %vm672_vm0, %v4421_v6  ;;  %676 = vst.msk [vmem:[#allocation2 + $0x18] sm:$0xff] %vm672_vm0, %v4421_v6  ;;  %4269 = vmatprep.subr.bf16.mxu0 %v4268_v7  ;;  %4287 = vmatprep.subr.bf16.mxu1 %v4419_v63  ;;  %v4276_v20 = vpack.c.bf16 %v893_v15, %v892_v13  ;;  %v895_v24 = vld [vmem:[%s6272_s24 + $0x38] sm:$0xff] }
 0x119   : > { %677 = vst.msk [vmem:[#allocation2 + $0x20] sm:$0xff] %vm672_vm0, %v4421_v6  ;;  %678 = vst.msk [vmem:[#allocation2 + $0x28] sm:$0xff] %vm672_vm0, %v4421_v6  ;;  %4271 = vmatpush3.bf16.msra.mxu0 %v4268_v7  ;;  %v4291_v21 = vpack.c.bf16 %v1102_v16, %v1101_v17 }
 0x11a   : > { %v798_v30 = vadd.f32 %v797_v29, %v796_v26  ;;  %679 = vst.msk [vmem:[#allocation2 + $0x30] sm:$0xff] %vm672_vm0, %v4421_v6  ;;  %680 = vst.msk [vmem:[#allocation2 + $0x38] sm:$0xff] %vm672_vm0, %v4421_v6  ;;  %4273 = vmatprep.subr.bf16.mxu0 %v4272_v12  ;;  %v1103_v26 = vld [vmem:[%s6243_s6 + $0x30] sm:$0xff]  ;;  %v4280_v29 = vpack.c.bf16 %v895_v24, %v894_v19 }
 0x11b   : > { %681 = vst.msk [vmem:[#allocation2 + $0x40] sm:$0xff] %vm672_vm0, %v4421_v6  ;;  %682 = vst.msk [vmem:[#allocation2 + $0x48] sm:$0xff] %vm672_vm0, %v4421_v6  ;;  %4289 = vmatpush3.bf16.msra.mxu1 %v4288_v11 }
 0x11c   : > { %v800_v35 = vadd.f32 %v799_v33, %v798_v30  ;;  %683 = vst.msk [vmem:[#allocation2 + $0x50] sm:$0xff] %vm672_vm0, %v4421_v6  ;;  %684 = vst.msk [vmem:[#allocation2 + $0x58] sm:$0xff] %vm672_vm0, %v4421_v6  ;;  %4290 = vmatprep.subr.bf16.mxu1 %v4419_v63  ;;  %v4294_v30 = vpack.c.bf16 %v1104_v22, %v1103_v26 }
 0x11d   : > { %685 = vst.msk [vmem:[#allocation2 + $0x60] sm:$0xff] %vm672_vm0, %v4421_v6  ;;  %686 = vst.msk [vmem:[#allocation2 + $0x68] sm:$0xff] %vm672_vm0, %v4421_v6  ;;  %4275 = vmatpush3.bf16.msra.mxu0 %v4272_v12 }
 0x11e   : > { %v802_v39 = vadd.f32 %v801_v38, %v800_v35  ;;  %687 = vst.msk [vmem:[#allocation2 + $0x70] sm:$0xff] %vm672_vm0, %v4421_v6  ;;  %688 = vst.msk [vmem:[#allocation2 + $0x78] sm:$0xff] %vm672_vm0, %v4421_v6  ;;  %4277 = vmatprep.subr.bf16.mxu0 %v4276_v20 }
 0x11f   : > { %689 = vst.msk [vmem:[#allocation2 + $0x80] sm:$0xff] %vm672_vm0, %v4421_v6  ;;  %690 = vst.msk [vmem:[#allocation2 + $0x88] sm:$0xff] %vm672_vm0, %v4421_v6  ;;  %4292 = vmatpush3.bf16.msra.mxu1 %v4291_v21 }
 0x120   : > { %v804_v43 = vadd.f32 %v803_v42, %v802_v39  ;;  %4293 = vmatprep.subr.bf16.mxu1 %v4419_v63 }
 0x121   : > { %4279 = vmatpush3.bf16.msra.mxu0 %v4276_v20 }
 0x122   : > { %v806_v46 = vadd.f32 %v805_v45, %v804_v43  ;;  %4281 = vmatprep.subr.bf16.mxu0 %v4280_v29  ;;  %v1199_v43 = vld [vmem:[%s6245_s8] sm:$0xff] }
 0x123   : > { %4295 = vmatpush3.bf16.msra.mxu1 %v4294_v30  ;;  %v4296_v45 = vpack.c.bf16 %v1200_v34, %v1199_v43  ;;  %v1179_v43 = vlaneseq }
 0x124   : > { %v808_v48 = vadd.f32 %v807_v37, %v806_v46 }
 0x125   : > { %4283 = vmatpush3.bf16.msra.mxu0 %v4280_v29  ;;  %4297 = vmatprep.subr.bf16.mxu1 %v4296_v45  ;;  %v4819_v34 = vshrl.u32 %v1179_v43, 7 }
 0x126   : > { %v810_v51 = vadd.f32 %v809_v50, %v808_v48  ;;  %4090 = vmatmul.mubr.msk.f32.vlgmr.msra.gmra.mrb[0].mxu1 %vm672_vm0, %v1096_v25 }
 0x127   : > { %4299 = vmatpush3.bf16.msra.mxu1 %v4296_v45  ;;  %6276 = vst [vmem:[#allocation3_spill] sm:$0xff] %v4819_v34  ;;  %v1105_v45 = vld [vmem:[%s6244_s7] sm:$0x1] }
 0x128   : > { %v812_v52 = vadd.f32 %v811_v40, %v810_v51 }
 0x12a   : > { %v814_v54 = vadd.f32 %v813_v53, %v812_v52  ;;  %v3753_v52 = vld [vmem:[%s6275_s5] ss:$0 sm:$0xff]  ;;  %s6278_s5 = sld [smem:[#allocation10_spill]] }
 0x12c   : > { %815 = vadd.xlane.f32.xlu0 %v814_v54 }
 0x1b9   : > { %v816_v33 = vpop.xlane.xlu0 %815 }
 0x1ba   : > { %v817_v35 = vrot.slane %v816_v33, 4 }
 0x1bc   : > { %v818_v28 = vadd.f32 %v817_v35, %v816_v33 }
 0x1be   : > { %v819_v38 = vrot.slane %v818_v28, 2 }
 0x1c0   : > { %v820_v39 = vadd.f32 %v819_v38, %v818_v28  ;;  %v1202_v38 = vld [vmem:[%s6245_s8 + $0x18] sm:$0xff] }
 0x1c2   : > { %v821_v31 = vrot.slane %v820_v39, 1 }
 0x1c4   : > { %v822_v42 = vadd.f32 %v821_v31, %v820_v39  ;;  %v4816_v31 = vld [vmem:[%s6255_s18] ss:$0 sm:$0xff] }
 0x1c6   : > { %4358 = vpush %v822_v42  ;;  %v4422_v42 = vmov 0  }
 0x1c7   : > { %4393 = vset.pattern.permute.xlu1 %v4422_v42 }
 0x1c8   : > { %1426 = vperm.xlu1 %4393, %v4816_v31  }
 0x1f7   : > { %s4359_s3 = spop %4358 }
 0x1f8   : > { %v824_v46 = vstv %s4359_s3 }
 0x1f9   : > { %v825_v47 = vmul.f32 0.00012207031, %v824_v46  ;;  %v1175_v35 = vpop.f32.mrb[0].mxu1 }
 0x1fa   : > { %v4091_v28 = vpop.f32.mrb[1].mxu1  ;;  %v1176_v46 = vadd.f32 %v1175_v35, %v1105_v45 }
 0x1fb   : > { %v826_v37 = vadd.f32 1e-08, %v825_v47  ;;  %v4825_v47 = vsub.s32 0, %v4819_v34 }
 0x1fd   : > { %4399 = vrsqrt.f32 %v826_v37  ;;  %6277 = vst [vmem:[#allocation4_spill] sm:$0xff] %v4825_v47  ;;  %v3754_v37 = vld [vmem:[%s6278_s5] ss:$0 sm:$0xff] }
 0x207   : > { %v4400_v48 = vpop.eup %4399 }
 0x208   : > { %v828_v50 = vmul.f32 %v4400_v48, %v4606_v56  ;;  %v829_v51 = vmul.f32 %v4400_v48, %v4608_v57  ;;  %v830_v40 = vmul.f32 %v4400_v48, %v4610_v58  ;;  %v831_v53 = vmul.f32 %v4400_v48, %v4612_v59 }
 0x209   : > { %v832_v61 = vmul.f32 %v4400_v48, %v4618_v62  ;;  %v833_v56 = vmul.f32 %v4400_v48, %v4622_v4  ;;  %v834_v2 = vmul.f32 %v4400_v48, %v4628_v5  ;;  %v835_v6 = vmul.f32 %v4400_v48, %v4633_v9 }
 0x20a   : > { %v850_v54 = vmul.f32 %v3752_v49, %v828_v50  ;;  %v851_v55 = vmul.f32 %v3752_v49, %v829_v51  ;;  %v852_v60 = vmul.f32 %v3752_v49, %v830_v40  ;;  %v853_v1 = vmul.f32 %v3752_v49, %v831_v53 }
 0x20b   : > { %v854_v58 = vmul.f32 %v3752_v49, %v832_v61  ;;  %v855_v3 = vmul.f32 %v3752_v49, %v833_v56  ;;  %v856_v7 = vmul.f32 %v3752_v49, %v834_v2  ;;  %v836_v8 = vmul.f32 %v4400_v48, %v4638_v14 }
 0x20c   : > { %v872_v63 = vadd.f32 %v3753_v52, %v850_v54  ;;  %v873_v0 = vadd.f32 %v3753_v52, %v851_v55  ;;  %v874_v57 = vadd.f32 %v3753_v52, %v852_v60  ;;  %v875_v59 = vadd.f32 %v3753_v52, %v853_v1 }
 0x20d   : > { %v876_v62 = vadd.f32 %v3753_v52, %v854_v58  ;;  %v877_v4 = vadd.f32 %v3753_v52, %v855_v3  ;;  %v857_v10 = vmul.f32 %v3752_v49, %v835_v6  ;;  %v837_v5 = vmul.f32 %v4400_v48, %v4643_v18 }
 0x20e   : > { %4049 = vmatprep.mubr.msk.f32.mxu0 %vm672_vm0, %v872_v63  ;;  %v878_v11 = vadd.f32 %v3753_v52, %v856_v7  ;;  %v858_v12 = vmul.f32 %v3752_v49, %v836_v8  ;;  %v838_v13 = vmul.f32 %v4400_v48, %v4649_v23  ;;  %v839_v14 = vmul.f32 %v4400_v48, %v4655_v27 }
 0x20f   : > { %4050 = vmatmul.mubr.msk.f32.vlgmr.msra.gmra.mrb[0].mxu0 %vm672_vm0, %v873_v0  ;;  %v879_v9 = vadd.f32 %v3753_v52, %v857_v10  ;;  %v859_v15 = vmul.f32 %v3752_v49, %v837_v5  ;;  %v840_v20 = vmul.f32 %v4400_v48, %v4661_v32  ;;  %v841_v23 = vmul.f32 %v4400_v48, %v4667_v36 }
 0x210   : > { %4052 = vmatprep.mubr.msk.f32.mxu0 %vm672_vm0, %v874_v57  ;;  %v880_v17 = vadd.f32 %v3753_v52, %v858_v12  ;;  %v860_v16 = vmul.f32 %v3752_v49, %v838_v13  ;;  %v861_v21 = vmul.f32 %v3752_v49, %v839_v14  ;;  %v842_v26 = vmul.f32 %v4400_v48, %v4673_v41 }
 0x211   : > { %v881_v18 = vadd.f32 %v3753_v52, %v859_v15  ;;  %v862_v24 = vmul.f32 %v3752_v49, %v840_v20  ;;  %v863_v22 = vmul.f32 %v3752_v49, %v841_v23  ;;  %v843_v32 = vmul.f32 %v4400_v48, %v4679_v44  ;;  %v1201_v44 = vld [vmem:[%s6245_s8 + $0x10] sm:$0xff] }
 0x212   : > { %v882_v19 = vadd.f32 %v3753_v52, %v860_v16  ;;  %v883_v27 = vadd.f32 %v3753_v52, %v861_v21  ;;  %v864_v30 = vmul.f32 %v3752_v49, %v842_v26  ;;  %v4300_v39 = vpack.c.bf16 %v1202_v38, %v1201_v44 }
 0x213   : > { %4053 = vmatmul.mubr.msk.f32.gmra.mrb[2].mxu0 %vm672_vm0, %v875_v59  ;;  %v884_v29 = vadd.f32 %v3753_v52, %v862_v24  ;;  %v885_v25 = vadd.f32 %v3753_v52, %v863_v22  ;;  %v865_v36 = vmul.f32 %v3752_v49, %v843_v32  ;;  %v4831_v48 = vrot.slane %v1176_v46, %v4825_v47 }
 0x214   : > { %4055 = vmatprep.mubr.msk.f32.mxu0 %vm672_vm0, %v876_v62  ;;  %v886_v33 = vadd.f32 %v3753_v52, %v864_v30  ;;  %4301 = vmatprep.subr.bf16.mxu1 %v4300_v39 }
 0x215   : > { %v887_v41 = vadd.f32 %v3753_v52, %v865_v36  ;;  %4303 = vmatpush3.bf16.msra.mxu1 %v4300_v39 }
 0x217   : > { %4056 = vmatmul.mubr.msk.f32.gmra.mrb[4].mxu0 %vm672_vm0, %v877_v4 }
 0x218   : > { %4058 = vmatprep.mubr.msk.f32.mxu0 %vm672_vm0, %v878_v11 }
 0x21b   : > { %4059 = vmatmul.mubr.msk.f32.gmra.mrb[6].mxu0 %vm672_vm0, %v879_v9 }
 0x21c   : > { %4061 = vmatprep.mubr.msk.f32.mxu0 %vm672_vm0, %v880_v17 }
 0x21f   : > { %4062 = vmatmul.mubr.msk.f32.gmra.mrb[8].mxu0 %vm672_vm0, %v881_v18 }
 0x220   : > { %4064 = vmatprep.mubr.msk.f32.mxu0 %vm672_vm0, %v882_v19 }
 0x223   : > { %4065 = vmatmul.mubr.msk.f32.gmra.mrb[10].mxu0 %vm672_vm0, %v883_v27 }
 0x224   : > { %4067 = vmatprep.mubr.msk.f32.mxu0 %vm672_vm0, %v884_v29 }
 0x227   : > { %4068 = vmatmul.mubr.msk.f32.gmra.mrb[12].mxu0 %vm672_vm0, %v885_v25 }
 0x228   : > { %4070 = vmatprep.mubr.msk.f32.mxu0 %vm672_vm0, %v886_v33  ;;  %v4916_v33 = vld [vmem:[%s6246_s9] ss:$0 sm:$0xff] }
 0x22b   : > { %4071 = vmatmul.mubr.msk.f32.gmra.mrb[14].mxu0 %vm672_vm0, %v887_v41 }
 0x247   : > { %v4918_v35 = vpop.permute.xlu1 %1426 }
 0x2e2   : > { %v4051_v49 = vpop.f32.mrb[0].mxu0 }
 0x2e3   : > { %v1023_v50 = vadd.f32 %v4051_v49, %v3754_v37  ;;  %v1017_v51 = vpop.f32.mrb[1].mxu0 }
 0x2e4   : > { %v1018_v40 = vadd.f32 %v3754_v37, %v1017_v51 }
 0x2e5   : > { %v4834_v52 = vadd.f32 %v4831_v48, %v1023_v50 }
 0x2e6   : > { %v4837_v53 = vadd.f32 %v4831_v48, %v1018_v40  ;;  %v4054_v54 = vpop.f32.mrb[2].mxu0 }
 0x2e7   : > { %v1033_v55 = vadd.f32 %v4054_v54, %v3754_v37  ;;  %v1027_v60 = vpop.f32.mrb[3].mxu0 }
 0x2e8   : > { %v1028_v61 = vadd.f32 %v3754_v37, %v1027_v60  ;;  %4100 = vmatprep.mubr.msk.f32.mxu1 %vm1210_vm2, %v4837_v53 }
 0x2e9   : > { %v4842_v63 = vadd.f32 %v4831_v48, %v1033_v55  ;;  %4101 = vmatmul.mubr.msk.f32.vlgmr.msra.gmra.mrb[2].mxu1 %vm1210_vm2, %v4834_v52 }
 0x2ea   : > { %v4847_v0 = vadd.f32 %v4831_v48, %v1028_v61  ;;  %v4057_v1 = vpop.f32.mrb[4].mxu0 }
 0x2eb   : > { %v1043_v56 = vadd.f32 %v4057_v1, %v3754_v37  ;;  %v1037_v57 = vpop.f32.mrb[5].mxu0 }
 0x2ec   : > { %v1038_v58 = vadd.f32 %v3754_v37, %v1037_v57  ;;  %4103 = vmatprep.mubr.msk.f32.mxu1 %vm1210_vm2, %v4847_v0 }
 0x2ed   : > { %v4852_v2 = vadd.f32 %v4831_v48, %v1043_v56  ;;  %4104 = vmatmul.mubr.msk.f32.gmra.mrb[4].mxu1 %vm1210_vm2, %v4842_v63 }
 0x2ee   : > { %v4857_v59 = vadd.f32 %v4831_v48, %v1038_v58  ;;  %v4060_v3 = vpop.f32.mrb[6].mxu0 }
 0x2ef   : > { %v1053_v6 = vadd.f32 %v4060_v3, %v3754_v37  ;;  %v1047_v62 = vpop.f32.mrb[7].mxu0 }
 0x2f0   : > { %v1048_v7 = vadd.f32 %v3754_v37, %v1047_v62  ;;  %4106 = vmatprep.mubr.msk.f32.mxu1 %vm1210_vm2, %v4857_v59 }
 0x2f1   : > { %v4862_v8 = vadd.f32 %v4831_v48, %v1053_v6  ;;  %4107 = vmatmul.mubr.msk.f32.gmra.mrb[6].mxu1 %vm1210_vm2, %v4852_v2 }
 0x2f2   : > { %v4867_v4 = vadd.f32 %v4831_v48, %v1048_v7  ;;  %v4063_v10 = vpop.f32.mrb[8].mxu0 }
 0x2f3   : > { %v1063_v5 = vadd.f32 %v4063_v10, %v3754_v37  ;;  %v1057_v11 = vpop.f32.mrb[9].mxu0 }
 0x2f4   : > { %v1058_v12 = vadd.f32 %v3754_v37, %v1057_v11  ;;  %4109 = vmatprep.mubr.msk.f32.mxu1 %vm1210_vm2, %v4867_v4 }
 0x2f5   : > { %v4872_v13 = vadd.f32 %v4831_v48, %v1063_v5  ;;  %4110 = vmatmul.mubr.msk.f32.gmra.mrb[8].mxu1 %vm1210_vm2, %v4862_v8 }
 0x2f6   : > { %v4877_v9 = vadd.f32 %v4831_v48, %v1058_v12  ;;  %v4066_v15 = vpop.f32.mrb[10].mxu0 }
 0x2f7   : > { %v1073_v14 = vadd.f32 %v4066_v15, %v3754_v37  ;;  %v1067_v17 = vpop.f32.mrb[11].mxu0 }
 0x2f8   : > { %v1068_v16 = vadd.f32 %v3754_v37, %v1067_v17  ;;  %4112 = vmatprep.mubr.msk.f32.mxu1 %vm1210_vm2, %v4877_v9 }
 0x2f9   : > { %v4882_v20 = vadd.f32 %v4831_v48, %v1073_v14  ;;  %4113 = vmatmul.mubr.msk.f32.gmra.mrb[10].mxu1 %vm1210_vm2, %v4872_v13 }
 0x2fa   : > { %v4887_v18 = vadd.f32 %v4831_v48, %v1068_v16  ;;  %v4069_v21 = vpop.f32.mrb[12].mxu0 }
 0x2fb   : > { %v1083_v23 = vadd.f32 %v4069_v21, %v3754_v37  ;;  %v1077_v19 = vpop.f32.mrb[13].mxu0 }
 0x2fc   : > { %v1078_v24 = vadd.f32 %v3754_v37, %v1077_v19  ;;  %4115 = vmatprep.mubr.msk.f32.mxu1 %vm1210_vm2, %v4887_v18 }
 0x2fd   : > { %v4892_v26 = vadd.f32 %v4831_v48, %v1083_v23  ;;  %4116 = vmatmul.mubr.msk.f32.gmra.mrb[12].mxu1 %vm1210_vm2, %v4882_v20 }
 0x2fe   : > { %v4897_v27 = vadd.f32 %v4831_v48, %v1078_v24  ;;  %v4072_v22 = vpop.f32.mrb[14].mxu0 }
 0x2ff   : > { %v1093_v32 = vadd.f32 %v4072_v22, %v3754_v37  ;;  %v1087_v29 = vpop.f32.mrb[15].mxu0 }
 0x300   : > { %v1088_v30 = vadd.f32 %v3754_v37, %v1087_v29  ;;  %4118 = vmatprep.mubr.msk.f32.mxu1 %vm1210_vm2, %v4897_v27 }
 0x301   : > { %v4902_v25 = vadd.f32 %v4831_v48, %v1093_v32  ;;  %4119 = vmatmul.mubr.msk.f32.gmra.mrb[14].mxu1 %vm1210_vm2, %v4892_v26 }
 0x302   : > { %v4907_v36 = vadd.f32 %v4831_v48, %v1088_v30 }
 0x304   : > { %4121 = vmatprep.mubr.msk.f32.mxu1 %vm1210_vm2, %v4907_v36 }
 0x305   : > { %4122 = vmatmul.mubr.msk.f32.gmra.mrb[16].mxu1 %vm1210_vm2, %v4902_v25 }
 0x3bc   : > { %v4102_v41 = vpop.f32.mrb[2].mxu1 }
 0x3bd   : > { %v1331_v28 = vadd.f32 %v4102_v41, %v4916_v33  ;;  %v1325_v44 = vpop.f32.mrb[3].mxu1 }
 0x3be   : > { %v1326_v38 = vadd.f32 %v4916_v33, %v1325_v44 }
 0x3bf   : > { %vm1405_vm3 = vcmp.ge.f32.partialorder %v1331_v28, 0.0  ;;  %v1430_v39 = vmul.f32 %v4918_v35, %v1331_v28 }
 0x3c0   : > { %vm1404_vm4 = vcmp.ge.f32.partialorder %v1326_v38, 0.0  ;;  %v4105_v42 = vpop.f32.mrb[4].mxu1  ;;  %v1429_v43 = vmul.f32 %v4918_v35, %v1326_v38 }
 0x3c1   : > { %v1341_v45 = vadd.f32 %v4105_v42, %v4916_v33  ;;  %v1335_v46 = vpop.f32.mrb[5].mxu1  ;;  %v4925_v37 = vsel %vm1405_vm3, %v1331_v28, %v1430_v39 }
 0x3c2   : > { %v1336_v48 = vadd.f32 %v4916_v33, %v1335_v46  ;;  %v4928_v49 = vsel %vm1404_vm4, %v1326_v38, %v1429_v43  ;;  %v1464_v40 = vsel %vm672_vm0, %v4925_v37, 0.0 }
 0x3c3   : > { %vm1407_vm5 = vcmp.ge.f32.partialorder %v1341_v45, 0.0  ;;  %v1432_v50 = vmul.f32 %v4918_v35, %v1341_v45  ;;  %v1463_v51 = vsel %vm672_vm0, %v4928_v49, 0.0 }
 0x3c4   : > { %vm1406_vm6 = vcmp.ge.f32.partialorder %v1336_v48, 0.0  ;;  %v1431_v54 = vmul.f32 %v4918_v35, %v1336_v48  ;;  %v4108_v55 = vpop.f32.mrb[6].mxu1  ;;  %v1465_v57 = vadd.f32 %v1464_v40, %v1463_v51 }
 0x3c5   : > { %v1351_v60 = vadd.f32 %v4108_v55, %v4916_v33  ;;  %v1345_v61 = vpop.f32.mrb[7].mxu1  ;;  %v4937_v1 = vsel %vm1407_vm5, %v1341_v45, %v1432_v50 }
 0x3c6   : > { %v4939_v56 = vsel %vm1406_vm6, %v1336_v48, %v1431_v54  ;;  %v1346_v58 = vadd.f32 %v4916_v33, %v1345_v61  ;;  %v1468_v5 = vsel %vm672_vm0, %v4937_v1, 0.0 }
 0x3c7   : > { %v1466_v3 = vsel %vm672_vm0, %v4939_v56, 0.0  ;;  %vm1409_vm7 = vcmp.ge.f32.partialorder %v1351_v60, 0.0  ;;  %v1434_v6 = vmul.f32 %v4918_v35, %v1351_v60 }
 0x3c8   : > { %v1467_v62 = vadd.f32 %v1466_v3, %v1465_v57  ;;  %vm1408_vm8 = vcmp.ge.f32.partialorder %v1346_v58, 0.0  ;;  %v1433_v7 = vmul.f32 %v4918_v35, %v1346_v58  ;;  %v4111_v10 = vpop.f32.mrb[8].mxu1 }
 0x3c9   : > { %v1361_v11 = vadd.f32 %v4111_v10, %v4916_v33  ;;  %v1355_v12 = vpop.f32.mrb[9].mxu1  ;;  %v4949_v15 = vsel %vm1409_vm7, %v1351_v60, %v1434_v6 }
 0x3ca   : > { %v4951_v14 = vsel %vm1408_vm8, %v1346_v58, %v1433_v7  ;;  %v1469_v17 = vadd.f32 %v1468_v5, %v1467_v62  ;;  %v1356_v16 = vadd.f32 %v4916_v33, %v1355_v12  ;;  %v1472_v32 = vsel %vm672_vm0, %v4949_v15, 0.0 }
 0x3cb   : > { %v1470_v21 = vsel %vm672_vm0, %v4951_v14, 0.0  ;;  %vm1411_vm9 = vcmp.ge.f32.partialorder %v1361_v11, 0.0  ;;  %v1436_v23 = vmul.f32 %v4918_v35, %v1361_v11 }
 0x3cc   : > { %v1471_v19 = vadd.f32 %v1470_v21, %v1469_v17  ;;  %vm1410_vm10 = vcmp.ge.f32.partialorder %v1356_v16, 0.0  ;;  %v1435_v24 = vmul.f32 %v4918_v35, %v1356_v16  ;;  %v4114_v22 = vpop.f32.mrb[10].mxu1 }
 0x3cd   : > { %v1371_v29 = vadd.f32 %v4114_v22, %v4916_v33  ;;  %v1365_v30 = vpop.f32.mrb[11].mxu1  ;;  %v4961_v41 = vsel %vm1411_vm9, %v1361_v11, %v1436_v23 }
 0x3ce   : > { %v4963_v28 = vsel %vm1410_vm10, %v1356_v16, %v1435_v24  ;;  %v1473_v44 = vadd.f32 %v1472_v32, %v1471_v19  ;;  %v1366_v38 = vadd.f32 %v4916_v33, %v1365_v30  ;;  %v1476_v48 = vsel %vm672_vm0, %v4961_v41, 0.0 }
 0x3cf   : > { %v1474_v39 = vsel %vm672_vm0, %v4963_v28, 0.0  ;;  %vm1413_vm11 = vcmp.ge.f32.partialorder %v1371_v29, 0.0  ;;  %v1438_v42 = vmul.f32 %v4918_v35, %v1371_v29 }
 0x3d0   : > { %v1475_v43 = vadd.f32 %v1474_v39, %v1473_v44  ;;  %vm1412_vm12 = vcmp.ge.f32.partialorder %v1366_v38, 0.0  ;;  %v1437_v45 = vmul.f32 %v4918_v35, %v1366_v38  ;;  %v4117_v46 = vpop.f32.mrb[12].mxu1 }
 0x3d1   : > { %v1381_v50 = vadd.f32 %v4117_v46, %v4916_v33  ;;  %v1375_v51 = vpop.f32.mrb[13].mxu1  ;;  %v4973_v40 = vsel %vm1413_vm11, %v1371_v29, %v1438_v42 }
 0x3d2   : > { %v4975_v54 = vsel %vm1412_vm12, %v1366_v38, %v1437_v45  ;;  %v1477_v55 = vadd.f32 %v1476_v48, %v1475_v43  ;;  %v1376_v60 = vadd.f32 %v4916_v33, %v1375_v51  ;;  %v1480_v62 = vsel %vm672_vm0, %v4973_v40, 0.0 }
 0x3d3   : > { %v1478_v61 = vsel %vm672_vm0, %v4975_v54, 0.0  ;;  %vm1415_vm13 = vcmp.ge.f32.partialorder %v1381_v50, 0.0  ;;  %v1440_v57 = vmul.f32 %v4918_v35, %v1381_v50 }
 0x3d4   : > { %v1479_v58 = vadd.f32 %v1478_v61, %v1477_v55  ;;  %vm1414_vm14 = vcmp.ge.f32.partialorder %v1376_v60, 0.0  ;;  %v1439_v3 = vmul.f32 %v4918_v35, %v1376_v60  ;;  %v4120_v6 = vpop.f32.mrb[14].mxu1 }
 0x3d5   : > { %v1391_v7 = vadd.f32 %v4120_v6, %v4916_v33  ;;  %v1385_v10 = vpop.f32.mrb[15].mxu1  ;;  %v4985_v5 = vsel %vm1415_vm13, %v1381_v50, %v1440_v57 }
 0x3d6   : > { %v4987_v11 = vsel %vm1414_vm14, %v1376_v60, %v1439_v3  ;;  %v1481_v12 = vadd.f32 %v1480_v62, %v1479_v58  ;;  %v1386_v17 = vadd.f32 %v4916_v33, %v1385_v10  ;;  %v1484_v22 = vsel %vm672_vm0, %v4985_v5, 0.0 }
 0x3d7   : > { %v1482_v16 = vsel %vm672_vm0, %v4987_v11, 0.0  ;;  %vm1417_vm15 = vcmp.ge.f32.partialorder %v1391_v7, 0.0  ;;  %v1442_v21 = vmul.f32 %v4918_v35, %v1391_v7  ;;  %v4423_v58 = vmov 1  }
 0x3d8   : > { %v1483_v23 = vadd.f32 %v1482_v16, %v1481_v12  ;;  %vm1416_vm1 = vcmp.ge.f32.partialorder %v1386_v17, 0.0  ;;  %v1441_v19 = vmul.f32 %v4918_v35, %v1386_v17  ;;  %v4123_v24 = vpop.f32.mrb[16].mxu1  ;;  %4394 = vset.pattern.permute.xlu0 %v4423_v58 }
 0x3d9   : > { %v1401_v32 = vadd.f32 %v4123_v24, %v4916_v33  ;;  %v1395_v29 = vpop.f32.mrb[17].mxu1  ;;  %v4997_v30 = vsel %vm1417_vm15, %v1391_v7, %v1442_v21 }
 0x3da   : > { %v4999_v44 = vsel %vm1416_vm1, %v1386_v17, %v1441_v19  ;;  %v1485_v38 = vadd.f32 %v1484_v22, %v1483_v23  ;;  %v1396_v39 = vadd.f32 %v4916_v33, %v1395_v29  ;;  %v1488_v48 = vsel %vm672_vm0, %v4997_v30, 0.0 }
 0x3db   : > { %v1486_v42 = vsel %vm672_vm0, %v4999_v44, 0.0  ;;  %vm1419_vm3 = vcmp.ge.f32.partialorder %v1401_v32, 0.0  ;;  %v1444_v43 = vmul.f32 %v4918_v35, %v1401_v32 }
 0x3dc   : > { %v1487_v45 = vadd.f32 %v1486_v42, %v1485_v38  ;;  %vm1418_vm4 = vcmp.ge.f32.partialorder %v1396_v39, 0.0  ;;  %v1443_v46 = vmul.f32 %v4918_v35, %v1396_v39 }
 0x3dd   : > { %v5010_v51 = vsel %vm1419_vm3, %v1401_v32, %v1444_v43 }
 0x3de   : > { %v5008_v50 = vsel %vm1418_vm4, %v1396_v39, %v1443_v46  ;;  %v1489_v55 = vadd.f32 %v1488_v48, %v1487_v45  ;;  %v1492_v61 = vsel %vm672_vm0, %v5010_v51, 0.0 }
 0x3df   : > { %v1490_v33 = vsel %vm672_vm0, %v5008_v50, 0.0 }
 0x3e0   : > { %v1491_v60 = vadd.f32 %v1490_v33, %v1489_v55 }
 0x3e2   : > { %v1493_v57 = vadd.f32 %v1492_v61, %v1491_v60 }
 0x3e4   : > { %1494 = vadd.xlane.f32.xlu1 %v1493_v57 }
 0x471   : > { %v1495_v35 = vpop.xlane.xlu1 %1494 }
 0x472   : > { %v1496_v3 = vrot.slane %v1495_v35, 4 }
 0x474   : > { %v1497_v6 = vadd.f32 %v1496_v3, %v1495_v35 }
 0x476   : > { %v1498_v62 = vrot.slane %v1497_v6, 2 }
 0x478   : > { %v1499_v7 = vadd.f32 %v1498_v62, %v1497_v6 }
 0x47a   : > { %v1500_v10 = vrot.slane %v1499_v7, 1 }
 0x47c   : > { %v1501_v12 = vadd.f32 %v1500_v10, %v1499_v7 }
 0x47e   : > { %4360 = vpush %v1501_v12 }
 0x4af   : > { %s4361_s1 = spop %4360 }
 0x4b0   : > { %v1503_v17 = vstv %s4361_s1 }
 0x4b1   : > { %v1504_v16 = vmul.f32 0.00012207031, %v1503_v17 }
 0x4b3   : > { %v5017_v21 = vsub.f32 %v4928_v49, %v1504_v16  ;;  %v5020_v23 = vsub.f32 %v4925_v37, %v1504_v16  ;;  %v5023_v19 = vsub.f32 %v4939_v56, %v1504_v16  ;;  %v5026_v24 = vsub.f32 %v4937_v1, %v1504_v16 }
 0x4b4   : > { %v5033_v29 = vsub.f32 %v4951_v14, %v1504_v16  ;;  %v5038_v37 = vsub.f32 %v4949_v15, %v1504_v16  ;;  %v5045_v42 = vsub.f32 %v4963_v28, %v1504_v16  ;;  %v5051_v15 = vsub.f32 %v4961_v41, %v1504_v16 }
 0x4b5   : > { %v1521_v22 = vmul.f32 %v5017_v21, %v5017_v21  ;;  %v1522_v32 = vmul.f32 %v5020_v23, %v5020_v23  ;;  %v1523_v49 = vmul.f32 %v5023_v19, %v5023_v19  ;;  %v1524_v56 = vmul.f32 %v5026_v24, %v5026_v24 }
 0x4b6   : > { %v1525_v14 = vmul.f32 %v5033_v29, %v5033_v29  ;;  %v1526_v46 = vmul.f32 %v5038_v37, %v5038_v37  ;;  %v5057_v33 = vsub.f32 %v4975_v54, %v1504_v16  ;;  %v1527_v28 = vmul.f32 %v5045_v42, %v5045_v42 }
 0x4b7   : > { %v1537_v1 = vsel %vm672_vm0, %v1521_v22, 0.0  ;;  %v1538_v38 = vsel %vm672_vm0, %v1522_v32, 0.0  ;;  %v1540_v43 = vsel %vm672_vm0, %v1523_v49, 0.0  ;;  %v1542_v48 = vsel %vm672_vm0, %v1524_v56, 0.0 }
 0x4b8   : > { %v1539_v39 = vadd.f32 %v1538_v38, %v1537_v1  ;;  %v1544_v60 = vsel %vm672_vm0, %v1525_v14, 0.0  ;;  %v5063_v57 = vsub.f32 %v4973_v40, %v1504_v16  ;;  %v1528_v41 = vmul.f32 %v5051_v15, %v5051_v15 }
 0x4b9   : > { %v1546_v58 = vsel %vm672_vm0, %v1526_v46, 0.0  ;;  %v1515_v3 = vsub.f32 %v4987_v11, %v1504_v16  ;;  %v1529_v54 = vmul.f32 %v5057_v33, %v5057_v33  ;;  %v1548_v6 = vsel %vm672_vm0, %v1527_v28, 0.0 }
 0x4ba   : > { %v1541_v45 = vadd.f32 %v1540_v43, %v1539_v39  ;;  %v1516_v7 = vsub.f32 %v4985_v5, %v1504_v16  ;;  %v1530_v40 = vmul.f32 %v5063_v57, %v5063_v57  ;;  %v1550_v10 = vsel %vm672_vm0, %v1528_v41, 0.0 }
 0x4bb   : > { %v1517_v17 = vsub.f32 %v4999_v44, %v1504_v16  ;;  %v1531_v22 = vmul.f32 %v1515_v3, %v1515_v3  ;;  %v1552_v32 = vsel %vm672_vm0, %v1529_v54, 0.0  ;;  %v1518_v49 = vsub.f32 %v4997_v30, %v1504_v16 }
 0x4bc   : > { %v1543_v55 = vadd.f32 %v1542_v48, %v1541_v45  ;;  %v1532_v56 = vmul.f32 %v1516_v7, %v1516_v7  ;;  %v1554_v1 = vsel %vm672_vm0, %v1530_v40, 0.0  ;;  %v1519_v5 = vsub.f32 %v5008_v50, %v1504_v16 }
 0x4bd   : > { %v1533_v39 = vmul.f32 %v1517_v17, %v1517_v17  ;;  %v1556_v14 = vsel %vm672_vm0, %v1531_v22, 0.0  ;;  %v1520_v45 = vsub.f32 %v5010_v51, %v1504_v16  ;;  %v1534_v46 = vmul.f32 %v1518_v49, %v1518_v49 }
 0x4be   : > { %v1545_v61 = vadd.f32 %v1544_v60, %v1543_v55  ;;  %v1558_v44 = vsel %vm672_vm0, %v1532_v56, 0.0  ;;  %v1535_v55 = vmul.f32 %v1519_v5, %v1519_v5 }
 0x4bf   : > { %v1560_v28 = vsel %vm672_vm0, %v1533_v39, 0.0  ;;  %v1536_v60 = vmul.f32 %v1520_v45, %v1520_v45 }
 0x4c0   : > { %v1547_v35 = vadd.f32 %v1546_v58, %v1545_v61  ;;  %v1562_v61 = vsel %vm672_vm0, %v1534_v46, 0.0  ;;  %v1564_v50 = vsel %vm672_vm0, %v1535_v55, 0.0 }
 0x4c2   : > { %v1549_v62 = vadd.f32 %v1548_v6, %v1547_v35  ;;  %v1566_v35 = vsel %vm672_vm0, %v1536_v60, 0.0 }
 0x4c4   : > { %v1551_v12 = vadd.f32 %v1550_v10, %v1549_v62 }
 0x4c6   : > { %v1553_v11 = vadd.f32 %v1552_v32, %v1551_v12 }
 0x4c8   : > { %v1555_v38 = vadd.f32 %v1554_v1, %v1553_v11 }
 0x4ca   : > { %v1557_v43 = vadd.f32 %v1556_v14, %v1555_v38  ;;  %v3790_v14 = vld [vmem:[%s6247_s10] ss:$0 sm:$0xff] }
 0x4cc   : > { %v1559_v48 = vadd.f32 %v1558_v44, %v1557_v43 }
 0x4ce   : > { %v1561_v30 = vadd.f32 %v1560_v28, %v1559_v48 }
 0x4d0   : > { %v1563_v41 = vadd.f32 %v1562_v61, %v1561_v30 }
 0x4d2   : > { %v1565_v58 = vadd.f32 %v1564_v50, %v1563_v41 }
 0x4d4   : > { %v1567_v54 = vadd.f32 %v1566_v35, %v1565_v58 }
 0x4d6   : > { %1568 = vadd.xlane.f32.xlu0 %v1567_v54 }
 0x4ec   : > { %1822 = vperm.xlu0 %4394, %v4816_v31  }
 0x563   : > { %v1569_v51 = vpop.xlane.xlu0 %1568 }
 0x564   : > { %v1570_v16 = vrot.slane %v1569_v51, 4 }
 0x566   : > { %v1571_v6 = vadd.f32 %v1570_v16, %v1569_v51 }
 0x568   : > { %v1572_v62 = vrot.slane %v1571_v6, 2 }
 0x56a   : > { %v1573_v40 = vadd.f32 %v1572_v62, %v1571_v6 }
 0x56c   : > { %v1574_v10 = vrot.slane %v1573_v40, 1 }
 0x56e   : > { %v1575_v12 = vadd.f32 %v1574_v10, %v1573_v40 }
 0x570   : > { %4362 = vpush %v1575_v12 }
 0x5a1   : > { %s4363_s27 = spop %4362 }
 0x5a2   : > { %v1577_v22 = vstv %s4363_s27 }
 0x5a3   : > { %v1578_v32 = vmul.f32 0.00012207031, %v1577_v22 }
 0x5a5   : > { %v1579_v11 = vadd.f32 1e-08, %v1578_v32 }
 0x5a7   : > { %4401 = vrsqrt.f32 %v1579_v11 }
 0x5b1   : > { %v4402_v56 = vpop.eup %4401 }
 0x5b2   : > { %v1581_v1 = vmul.f32 %v4402_v56, %v5017_v21  ;;  %v1582_v38 = vmul.f32 %v4402_v56, %v5020_v23  ;;  %v1583_v31 = vmul.f32 %v4402_v56, %v5023_v19  ;;  %v1584_v39 = vmul.f32 %v4402_v56, %v5026_v24 }
 0x5b3   : > { %v1585_v43 = vmul.f32 %v4402_v56, %v5033_v29  ;;  %v1586_v46 = vmul.f32 %v4402_v56, %v5038_v37  ;;  %v1587_v44 = vmul.f32 %v4402_v56, %v5045_v42  ;;  %v1588_v48 = vmul.f32 %v4402_v56, %v5051_v15  ;;  %v3791_v37 = vld [vmem:[%s6248_s11] ss:$0 sm:$0xff] }
 0x5b4   : > { %v1589_v21 = vmul.f32 %v4402_v56, %v5057_v33  ;;  %v1590_v23 = vmul.f32 %v4402_v56, %v5063_v57  ;;  %v1591_v55 = vmul.f32 %v4402_v56, %v1515_v3  ;;  %v1592_v19 = vmul.f32 %v4402_v56, %v1516_v7 }
 0x5b5   : > { %v1593_v28 = vmul.f32 %v4402_v56, %v1517_v17  ;;  %v1594_v24 = vmul.f32 %v4402_v56, %v1518_v49  ;;  %v1595_v30 = vmul.f32 %v4402_v56, %v1519_v5  ;;  %v1596_v60 = vmul.f32 %v4402_v56, %v1520_v45 }
 0x5b6   : > { %v1603_v61 = vmul.f32 %v3790_v14, %v1581_v1  ;;  %v1604_v41 = vmul.f32 %v3790_v14, %v1582_v38  ;;  %v1605_v50 = vmul.f32 %v3790_v14, %v1583_v31  ;;  %v1606_v29 = vmul.f32 %v3790_v14, %v1584_v39 }
 0x5b7   : > { %v1607_v42 = vmul.f32 %v3790_v14, %v1585_v43  ;;  %v1608_v15 = vmul.f32 %v3790_v14, %v1586_v46  ;;  %v1609_v58 = vmul.f32 %v3790_v14, %v1587_v44  ;;  %v1610_v33 = vmul.f32 %v3790_v14, %v1588_v48  ;;  %v1657_v43 = vld [vmem:[%s6249_s12] sm:$0x7] }
 0x5b8   : > { %v1611_v35 = vmul.f32 %v3790_v14, %v1589_v21  ;;  %v1612_v57 = vmul.f32 %v3790_v14, %v1590_v23  ;;  %v1613_v3 = vmul.f32 %v3790_v14, %v1591_v55  ;;  %v1614_v7 = vmul.f32 %v3790_v14, %v1592_v19 }
 0x5b9   : > { %v1615_v17 = vmul.f32 %v3790_v14, %v1593_v28  ;;  %v1616_v49 = vmul.f32 %v3790_v14, %v1594_v24  ;;  %v1617_v5 = vmul.f32 %v3790_v14, %v1595_v30  ;;  %v1618_v45 = vmul.f32 %v3790_v14, %v1596_v60 }
 0x5ba   : > { %v1625_v54 = vadd.f32 %v3791_v37, %v1603_v61  ;;  %v1626_v51 = vadd.f32 %v3791_v37, %v1604_v41  ;;  %v1627_v16 = vadd.f32 %v3791_v37, %v1605_v50  ;;  %v1628_v6 = vadd.f32 %v3791_v37, %v1606_v29 }
 0x5bb   : > { %v1629_v62 = vadd.f32 %v3791_v37, %v1607_v42  ;;  %v1630_v40 = vadd.f32 %v3791_v37, %v1608_v15  ;;  %v1631_v10 = vadd.f32 %v3791_v37, %v1609_v58  ;;  %v1632_v12 = vadd.f32 %v3791_v37, %v1610_v33 }
 0x5bc   : > { %v1633_v22 = vadd.f32 %v3791_v37, %v1611_v35  ;;  %v1634_v32 = vadd.f32 %v3791_v37, %v1612_v57  ;;  %v1635_v11 = vadd.f32 %v3791_v37, %v1613_v3  ;;  %v1636_v56 = vadd.f32 %v3791_v37, %v1614_v7  ;;  %1641 = vst.msk [vmem:[#allocation2 + $0x8] sm:$0xff] %vm672_vm0, %v1625_v54 }
 0x5bd   : > { %1642 = vst.msk [vmem:[#allocation2 + $0x10] sm:$0xff] %vm672_vm0, %v1626_v51  ;;  %1643 = vst.msk [vmem:[#allocation2 + $0x18] sm:$0xff] %vm672_vm0, %v1627_v16  ;;  %v1637_v1 = vadd.f32 %v3791_v37, %v1615_v17  ;;  %v1638_v38 = vadd.f32 %v3791_v37, %v1616_v49  ;;  %v1639_v31 = vadd.f32 %v3791_v37, %v1617_v5  ;;  %v6261_v14 = vsub.s32 1, %v4819_v34 }
 0x5be   : > { %1644 = vst.msk [vmem:[#allocation2 + $0x20] sm:$0xff] %vm672_vm0, %v1628_v6  ;;  %v1640_v39 = vadd.f32 %v3791_v37, %v1618_v45  ;;  %1645 = vst.msk [vmem:[#allocation2 + $0x28] sm:$0xff] %vm672_vm0, %v1629_v62  ;;  %v5126_v46 = vrot.slane %v1657_v43, %v4825_v47  ;;  %v6260_v23 = vsub.s32 2, %v4819_v34 }
 0x5bf   : > { %1646 = vst.msk [vmem:[#allocation2 + $0x30] sm:$0xff] %vm672_vm0, %v1630_v40  ;;  %1647 = vst.msk [vmem:[#allocation2 + $0x38] sm:$0xff] %vm672_vm0, %v1631_v10  ;;  %v1697_v21 = vrot.slane %v1657_v43, %v6261_v14 }
 0x5c0   : > { %1648 = vst.msk [vmem:[#allocation2 + $0x40] sm:$0xff] %vm672_vm0, %v1632_v12  ;;  %1649 = vst.msk [vmem:[#allocation2 + $0x48] sm:$0xff] %vm672_vm0, %v1633_v22  ;;  %v5135_v60 = vrot.slane %v1657_v43, %v6260_v23 }
 0x5c1   : > { %1650 = vst.msk [vmem:[#allocation2 + $0x50] sm:$0xff] %vm672_vm0, %v1634_v32  ;;  %1651 = vst.msk [vmem:[#allocation2 + $0x58] sm:$0xff] %vm672_vm0, %v1635_v11  ;;  %v1698_v30 = vmul.f32 %v1697_v21, %v1625_v54  ;;  %v1699_v41 = vmul.f32 %v1697_v21, %v1626_v51  ;;  %v1700_v50 = vmul.f32 %v1697_v21, %v1627_v16 }
 0x5c2   : > { %1652 = vst.msk [vmem:[#allocation2 + $0x60] sm:$0xff] %vm672_vm0, %v1636_v56  ;;  %1653 = vst.msk [vmem:[#allocation2 + $0x68] sm:$0xff] %vm672_vm0, %v1637_v1  ;;  %v1701_v29 = vmul.f32 %v1697_v21, %v1628_v6  ;;  %v1702_v42 = vmul.f32 %v1697_v21, %v1629_v62  ;;  %v1703_v15 = vmul.f32 %v1697_v21, %v1630_v40 }
 0x5c3   : > { %1654 = vst.msk [vmem:[#allocation2 + $0x70] sm:$0xff] %vm672_vm0, %v1638_v38  ;;  %1655 = vst.msk [vmem:[#allocation2 + $0x78] sm:$0xff] %vm672_vm0, %v1639_v31  ;;  %v1658_v44 = vld [vmem:[#allocation2 + $0x7] sm:$0xff]  ;;  %v1704_v58 = vmul.f32 %v1697_v21, %v1631_v10  ;;  %v1705_v33 = vmul.f32 %v1697_v21, %v1632_v12  ;;  %v1706_v17 = vmul.f32 %v1697_v21, %v1633_v22 }
 0x5c4   : > { %1656 = vst.msk [vmem:[#allocation2 + $0x80] sm:$0xff] %vm672_vm0, %v1640_v39  ;;  %v1659_v48 = vld [vmem:[#allocation2 + $0xf] sm:$0xff]  ;;  %v1660_v55 = vld [vmem:[#allocation2 + $0x17] sm:$0xff]  ;;  %v1678_v19 = vmul.f32 %v5126_v46, %v1658_v44  ;;  %v1707_v54 = vmul.f32 %v1697_v21, %v1634_v32  ;;  %v1708_v43 = vmul.f32 %v1697_v21, %v1635_v11  ;;  %v1709_v44 = vmul.f32 %v1697_v21, %v1636_v56 }
 0x5c5   : > { %v1679_v28 = vmul.f32 %v5126_v46, %v1659_v48  ;;  %v1661_v24 = vld [vmem:[#allocation2 + $0x1f] sm:$0xff]  ;;  %v1680_v61 = vmul.f32 %v5126_v46, %v1660_v55  ;;  %v1662_v37 = vld [vmem:[#allocation2 + $0x27] sm:$0xff]  ;;  %v1731_v57 = vld [vmem:[#allocation2 + $0x11] sm:$0xff]  ;;  %v5139_v51 = vmul.f32 %v1697_v21, %v1637_v1  ;;  %v1712_v32 = vmul.f32 %v1697_v21, %v1639_v31 }
 0x5c6   : > { %v1730_v35 = vld [vmem:[#allocation2 + $0x9] sm:$0xff]  ;;  %v1681_v7 = vmul.f32 %v5126_v46, %v1661_v24  ;;  %v1714_v49 = vadd.f32 %v1698_v30, %v1678_v19  ;;  %v1664_v45 = vld [vmem:[#allocation2 + $0x37] sm:$0xff]  ;;  %v1682_v10 = vmul.f32 %v5126_v46, %v1662_v37  ;;  %v1751_v55 = vmul.f32 %v5135_v60, %v1731_v57  ;;  %v1733_v56 = vld [vmem:[#allocation2 + $0x21] sm:$0xff] }
 0x5c7   : > { %v1663_v3 = vld [vmem:[#allocation2 + $0x2f] sm:$0xff]  ;;  %v1715_v5 = vadd.f32 %v1699_v41, %v1679_v28  ;;  %v1732_v16 = vld [vmem:[#allocation2 + $0x19] sm:$0xff]  ;;  %v1666_v62 = vld [vmem:[#allocation2 + $0x47] sm:$0xff]  ;;  %v1716_v12 = vadd.f32 %v1700_v50, %v1680_v61  ;;  %v1750_v48 = vmul.f32 %v5135_v60, %v1730_v35  ;;  %v1711_v28 = vmul.f32 %v1697_v21, %v1638_v38 }
 0x5c8   : > { %v1665_v6 = vld [vmem:[#allocation2 + $0x3f] sm:$0xff]  ;;  %v1667_v40 = vld [vmem:[#allocation2 + $0x4f] sm:$0xff]  ;;  %v1668_v22 = vld [vmem:[#allocation2 + $0x57] sm:$0xff]  ;;  %v1683_v19 = vmul.f32 %v5126_v46, %v1663_v3  ;;  %v5145_v11 = vmul.f32 %v1697_v21, %v1640_v39  ;;  %v1717_v41 = vadd.f32 %v1701_v29, %v1681_v7  ;;  %v1752_v23 = vmul.f32 %v5135_v60, %v1732_v16 }
 0x5c9   : > { %v1669_v1 = vld [vmem:[#allocation2 + $0x5f] sm:$0xff]  ;;  %v1670_v24 = vld [vmem:[#allocation2 + $0x67] sm:$0xff]  ;;  %v1766_v37 = vadd.f32 %v1750_v48, %v1714_v49  ;;  %v1767_v61 = vadd.f32 %v1751_v55, %v1715_v5  ;;  %v1684_v50 = vmul.f32 %v5126_v46, %v1664_v45  ;;  %v1685_v35 = vmul.f32 %v5126_v46, %v1665_v6 }
 0x5ca   : > { %v1671_v30 = vld [vmem:[#allocation2 + $0x6f] sm:$0xff]  ;;  %v1686_v57 = vmul.f32 %v5126_v46, %v1666_v62  ;;  %v1687_v38 = vmul.f32 %v5126_v46, %v1667_v40  ;;  %v5155_v39 = vld [vmem:[%s6250_s13] ss:$0 sm:$0xff]  ;;  %v1672_v21 = vld [vmem:[#allocation2 + $0x77] sm:$0xff]  ;;  %v1688_v3 = vmul.f32 %v5126_v46, %v1668_v22  ;;  %v1718_v7 = vadd.f32 %v1702_v42, %v1682_v10  ;;  %v5165_v42 = vpop.permute.xlu0 %1822 }
 0x5cb   : > { %v1734_v31 = vld [vmem:[#allocation2 + $0x29] sm:$0xff]  ;;  %v1673_v29 = vld [vmem:[#allocation2 + $0x7f] sm:$0xff]  ;;  %v1753_v49 = vmul.f32 %v5135_v60, %v1733_v56  ;;  %v1768_v5 = vadd.f32 %v1752_v23, %v1716_v12  ;;  %v1689_v45 = vmul.f32 %v5126_v46, %v1669_v1  ;;  %v1690_v16 = vmul.f32 %v5126_v46, %v1670_v24  ;;  %v1735_v40 = vld [vmem:[#allocation2 + $0x31] sm:$0xff] }
 0x5cc   : > { %v1691_v6 = vmul.f32 %v5126_v46, %v1671_v30  ;;  %v1719_v62 = vadd.f32 %v1703_v15, %v1683_v19  ;;  %v1736_v48 = vld [vmem:[#allocation2 + $0x39] sm:$0xff]  ;;  %v1754_v55 = vmul.f32 %v5135_v60, %v1734_v31  ;;  %v1789_v34 = vadd.f32 %v5155_v39, %v1766_v37  ;;  %v1737_v24 = vld [vmem:[#allocation2 + $0x41] sm:$0xff] }
 0x5cd   : > { %v1769_v14 = vadd.f32 %v1753_v49, %v1717_v41  ;;  %v1790_v22 = vadd.f32 %v5155_v39, %v1767_v61  ;;  %v1692_v23 = vmul.f32 %v5126_v46, %v1672_v21  ;;  %v1693_v10 = vmul.f32 %v5126_v46, %v1673_v29  ;;  %v1738_v49 = vld [vmem:[#allocation2 + $0x49] sm:$0xff] }
 0x5ce   : > { %v1720_v12 = vadd.f32 %v1704_v58, %v1684_v50  ;;  %v1721_v56 = vadd.f32 %v1705_v33, %v1685_v35  ;;  %v1722_v1 = vadd.f32 %v1706_v17, %v1686_v57  ;;  %v1755_v15 = vmul.f32 %v5135_v60, %v1735_v40 }
 0x5cf   : > { %v1770_v19 = vadd.f32 %v1754_v55, %v1718_v7  ;;  %v1791_v30 = vadd.f32 %v5155_v39, %v1768_v5  ;;  %v1723_v41 = vadd.f32 %v1707_v54, %v1687_v38  ;;  %v1724_v31 = vadd.f32 %v1708_v43, %v1688_v3  ;;  %v1739_v54 = vld [vmem:[#allocation2 + $0x51] sm:$0xff]  ;;  %v1740_v43 = vld [vmem:[#allocation2 + $0x59] sm:$0xff]  ;;  %v1742_v55 = vld [vmem:[#allocation2 + $0x69] sm:$0xff] }
 0x5d0   : > { %v1725_v37 = vadd.f32 %v1709_v44, %v1689_v45  ;;  %v1756_v61 = vmul.f32 %v5135_v60, %v1736_v48  ;;  %v1771_v47 = vadd.f32 %v1755_v15, %v1719_v62  ;;  %v1792_v21 = vadd.f32 %v5155_v39, %v1769_v14  ;;  %v1743_v15 = vld [vmem:[#allocation2 + $0x71] sm:$0xff] }
 0x5d1   : > { %v1825_v46 = vmul.f32 %v5165_v42, %v1789_v34  ;;  %v1826_v58 = vmul.f32 %v5165_v42, %v1790_v22  ;;  %v1726_v33 = vadd.f32 %v5139_v51, %v1690_v16  ;;  %v1757_v17 = vmul.f32 %v5135_v60, %v1737_v24 }
 0x5d2   : > { %vm1805_vm5 = vcmp.ge.f32.partialorder %v1789_v34, 0.0  ;;  %vm1806_vm6 = vcmp.ge.f32.partialorder %v1790_v22, 0.0  ;;  %v1727_v50 = vadd.f32 %v1711_v28, %v1691_v6  ;;  %v1772_v44 = vadd.f32 %v1756_v61, %v1720_v12 }
 0x5d3   : > { %v1793_v35 = vadd.f32 %v5155_v39, %v1770_v19  ;;  %v1827_v57 = vmul.f32 %v5165_v42, %v1791_v30  ;;  %v1728_v38 = vadd.f32 %v1712_v32, %v1692_v23  ;;  %v1758_v14 = vmul.f32 %v5135_v60, %v1738_v49  ;;  %v1741_v32 = vld [vmem:[#allocation2 + $0x61] sm:$0xff] }
 0x5d4   : > { %v1773_v29 = vadd.f32 %v1757_v17, %v1721_v56  ;;  %vm1807_vm7 = vcmp.ge.f32.partialorder %v1791_v30, 0.0  ;;  %v1794_v3 = vadd.f32 %v5155_v39, %v1771_v47  ;;  %v1828_v51 = vmul.f32 %v5165_v42, %v1792_v21 }
 0x5d5   : > { %v5182_v7 = vsel %vm1805_vm5, %v1789_v34, %v1825_v46  ;;  %v5184_v5 = vsel %vm1806_vm6, %v1790_v22, %v1826_v58  ;;  %v1729_v28 = vadd.f32 %v5145_v11, %v1693_v10  ;;  %v1759_v45 = vmul.f32 %v5135_v60, %v1739_v54 }
 0x5d6   : > { %v1760_v16 = vmul.f32 %v5135_v60, %v1740_v43  ;;  %vm1808_vm8 = vcmp.ge.f32.partialorder %v1792_v21, 0.0  ;;  %v1774_v6 = vadd.f32 %v1758_v14, %v1722_v1  ;;  %v1795_v62 = vadd.f32 %v5155_v39, %v1772_v44 }
 0x5d7   : > { %v1829_v40 = vmul.f32 %v5165_v42, %v1793_v35  ;;  %v5191_v47 = vsel %vm1807_vm7, %v1791_v30, %v1827_v57  ;;  %v1775_v48 = vadd.f32 %v1759_v45, %v1723_v41  ;;  %vm1809_vm9 = vcmp.ge.f32.partialorder %v1793_v35, 0.0 }
 0x5d8   : > { %v1859_v34 = vsel %vm672_vm0, %v5182_v7, 0.0  ;;  %v1860_v11 = vsel %vm672_vm0, %v5184_v5, 0.0  ;;  %v1796_v22 = vadd.f32 %v5155_v39, %v1773_v29  ;;  %v1830_v23 = vmul.f32 %v5165_v42, %v1794_v3 }
 0x5d9   : > { %v5199_v10 = vsel %vm1808_vm8, %v1792_v21, %v1828_v51  ;;  %v1861_v12 = vadd.f32 %v1860_v11, %v1859_v34  ;;  %v1761_v56 = vmul.f32 %v5135_v60, %v1741_v32  ;;  %v1776_v1 = vadd.f32 %v1760_v16, %v1724_v31  ;;  %v1744_v31 = vld [vmem:[#allocation2 + $0x79] sm:$0xff] }
 0x5da   : > { %vm1810_vm10 = vcmp.ge.f32.partialorder %v1794_v3, 0.0  ;;  %v1862_v24 = vsel %vm672_vm0, %v5191_v47, 0.0  ;;  %v1797_v19 = vadd.f32 %v5155_v39, %v1774_v6  ;;  %v1831_v30 = vmul.f32 %v5165_v42, %v1795_v62 }
 0x5db   : > { %v5206_v41 = vsel %vm1809_vm9, %v1793_v35, %v1829_v40  ;;  %v1863_v61 = vadd.f32 %v1862_v24, %v1861_v12  ;;  %v1762_v49 = vmul.f32 %v5135_v60, %v1742_v55  ;;  %v1777_v21 = vadd.f32 %v1761_v56, %v1725_v37  ;;  %v1745_v37 = vld [vmem:[#allocation2 + $0x81] sm:$0xff] }
 0x5dc   : > { %vm1811_vm11 = vcmp.ge.f32.partialorder %v1795_v62, 0.0  ;;  %v1864_v46 = vsel %vm672_vm0, %v5199_v10, 0.0  ;;  %v1798_v58 = vadd.f32 %v5155_v39, %v1775_v48  ;;  %v1832_v17 = vmul.f32 %v5165_v42, %v1796_v22 }
 0x5dd   : > { %v5213_v54 = vsel %vm1810_vm10, %v1794_v3, %v1830_v23  ;;  %v1865_v43 = vadd.f32 %v1864_v46, %v1863_v61  ;;  %v1763_v44 = vmul.f32 %v5135_v60, %v1743_v15  ;;  %v1778_v35 = vadd.f32 %v1762_v49, %v1726_v33 }
 0x5de   : > { %vm1812_vm12 = vcmp.ge.f32.partialorder %v1796_v22, 0.0  ;;  %v1866_v57 = vsel %vm672_vm0, %v5206_v41, 0.0  ;;  %v1799_v14 = vadd.f32 %v5155_v39, %v1776_v1  ;;  %v1833_v29 = vmul.f32 %v5165_v42, %v1797_v19 }
 0x5df   : > { %v5220_v51 = vsel %vm1811_vm11, %v1795_v62, %v1831_v30  ;;  %v1867_v45 = vadd.f32 %v1866_v57, %v1865_v43  ;;  %v1764_v16 = vmul.f32 %v5135_v60, %v1744_v31  ;;  %v1779_v3 = vadd.f32 %v1763_v44, %v1727_v50 }
 0x5e0   : > { %vm1813_vm13 = vcmp.ge.f32.partialorder %v1797_v19, 0.0  ;;  %v1868_v32 = vsel %vm672_vm0, %v5213_v54, 0.0  ;;  %v1800_v33 = vadd.f32 %v5155_v39, %v1777_v21  ;;  %v1834_v6 = vmul.f32 %v5165_v42, %v1798_v58 }
 0x5e1   : > { %v5227_v40 = vsel %vm1812_vm12, %v1796_v22, %v1832_v17  ;;  %v1869_v48 = vadd.f32 %v1868_v32, %v1867_v45  ;;  %v1765_v34 = vmul.f32 %v5135_v60, %v1745_v37  ;;  %v1780_v11 = vadd.f32 %v1764_v16, %v1728_v38 }
 0x5e2   : > { %vm1814_vm14 = vcmp.ge.f32.partialorder %v1798_v58, 0.0  ;;  %v1870_v62 = vsel %vm672_vm0, %v5220_v51, 0.0  ;;  %v1801_v50 = vadd.f32 %v5155_v39, %v1778_v35  ;;  %v1835_v55 = vmul.f32 %v5165_v42, %v1799_v14 }
 0x5e3   : > { %v5234_v23 = vsel %vm1813_vm13, %v1797_v19, %v1833_v29  ;;  %v1871_v12 = vadd.f32 %v1870_v62, %v1869_v48  ;;  %v1781_v56 = vadd.f32 %v1765_v34, %v1729_v28  ;;  %vm1815_vm15 = vcmp.ge.f32.partialorder %v1799_v14, 0.0 }
 0x5e4   : > { %v1872_v22 = vsel %vm672_vm0, %v5227_v40, 0.0  ;;  %v1802_v1 = vadd.f32 %v5155_v39, %v1779_v3  ;;  %v1836_v60 = vmul.f32 %v5165_v42, %v1800_v33  ;;  %v5240_v38 = vsel %vm1814_vm14, %v1798_v58, %v1834_v6 }
 0x5e5   : > { %v1873_v24 = vadd.f32 %v1872_v22, %v1871_v12  ;;  %vm1816_vm1 = vcmp.ge.f32.partialorder %v1800_v33, 0.0  ;;  %v1874_v15 = vsel %vm672_vm0, %v5234_v23, 0.0  ;;  %v1803_v19 = vadd.f32 %v5155_v39, %v1780_v11 }
 0x5e6   : > { %v1837_v30 = vmul.f32 %v5165_v42, %v1801_v50  ;;  %v5246_v28 = vsel %vm1815_vm15, %v1799_v14, %v1835_v55  ;;  %vm1817_vm3 = vcmp.ge.f32.partialorder %v1801_v50, 0.0  ;;  %v1876_v49 = vsel %vm672_vm0, %v5240_v38, 0.0 }
 0x5e7   : > { %v1875_v61 = vadd.f32 %v1874_v15, %v1873_v24  ;;  %v1804_v21 = vadd.f32 %v5155_v39, %v1781_v56  ;;  %v1838_v46 = vmul.f32 %v5165_v42, %v1802_v1  ;;  %v5252_v31 = vsel %vm1816_vm1, %v1800_v33, %v1836_v60 }
 0x5e8   : > { %vm1818_vm4 = vcmp.ge.f32.partialorder %v1802_v1, 0.0  ;;  %v1878_v17 = vsel %vm672_vm0, %v5246_v28, 0.0  ;;  %v1839_v43 = vmul.f32 %v5165_v42, %v1803_v19  ;;  %v5257_v44 = vsel %vm1817_vm3, %v1801_v50, %v1837_v30 }
 0x5e9   : > { %v1877_v58 = vadd.f32 %v1876_v49, %v1875_v61  ;;  %vm1819_vm5 = vcmp.ge.f32.partialorder %v1803_v19, 0.0  ;;  %v1880_v57 = vsel %vm672_vm0, %v5252_v31, 0.0  ;;  %v1840_v39 = vmul.f32 %v5165_v42, %v1804_v21 }
 0x5ea   : > { %v5262_v37 = vsel %vm1818_vm4, %v1802_v1, %v1838_v46  ;;  %vm1820_vm6 = vcmp.ge.f32.partialorder %v1804_v21, 0.0  ;;  %v1882_v29 = vsel %vm672_vm0, %v5257_v44, 0.0  ;;  %v5266_v45 = vsel %vm1819_vm5, %v1803_v19, %v1839_v43 }
 0x5eb   : > { %v1879_v35 = vadd.f32 %v1878_v17, %v1877_v58  ;;  %v1884_v3 = vsel %vm672_vm0, %v5262_v37, 0.0  ;;  %v5270_v32 = vsel %vm1820_vm6, %v1804_v21, %v1840_v39  ;;  %v1886_v6 = vsel %vm672_vm0, %v5266_v45, 0.0 }
 0x5ec   : > { %v1888_v48 = vsel %vm672_vm0, %v5270_v32, 0.0 }
 0x5ed   : > { %v1881_v14 = vadd.f32 %v1880_v57, %v1879_v35 }
 0x5ef   : > { %v1883_v16 = vadd.f32 %v1882_v29, %v1881_v14 }
 0x5f1   : > { %v1885_v33 = vadd.f32 %v1884_v3, %v1883_v16 }
 0x5f3   : > { %v1887_v42 = vadd.f32 %v1886_v6, %v1885_v33 }
 0x5f5   : > { %v1889_v34 = vadd.f32 %v1888_v48, %v1887_v42 }
 0x5f7   : > { %1890 = vadd.xlane.f32.xlu1 %v1889_v34 }
 0x684   : > { %v1891_v11 = vpop.xlane.xlu1 %1890 }
 0x685   : > { %v1892_v62 = vrot.slane %v1891_v11, 4 }
 0x687   : > { %v1893_v50 = vadd.f32 %v1892_v62, %v1891_v11 }
 0x689   : > { %v1894_v55 = vrot.slane %v1893_v50, 2 }
 0x68b   : > { %v1895_v12 = vadd.f32 %v1894_v55, %v1893_v50 }
 0x68d   : > { %v1896_v56 = vrot.slane %v1895_v12, 1 }
 0x68f   : > { %v1897_v22 = vadd.f32 %v1896_v56, %v1895_v12 }
 0x691   : > { %4364 = vpush %v1897_v22 }
 0x6c2   : > { %s4365_s23 = spop %4364 }
 0x6c3   : > { %v1899_v1 = vstv %s4365_s23 }
 0x6c4   : > { %v1900_v60 = vmul.f32 0.00012207031, %v1899_v1 }
 0x6c6   : > { %v5277_v24 = vsub.f32 %v5182_v7, %v1900_v60  ;;  %v5280_v15 = vsub.f32 %v5184_v5, %v1900_v60  ;;  %v5283_v19 = vsub.f32 %v5191_v47, %v1900_v60  ;;  %v5286_v30 = vsub.f32 %v5199_v10, %v1900_v60 }
 0x6c7   : > { %v5293_v21 = vsub.f32 %v5206_v41, %v1900_v60  ;;  %v5298_v5 = vsub.f32 %v5213_v54, %v1900_v60  ;;  %v5305_v17 = vsub.f32 %v5220_v51, %v1900_v60  ;;  %v5311_v54 = vsub.f32 %v5227_v40, %v1900_v60 }
 0x6c8   : > { %v1917_v61 = vmul.f32 %v5277_v24, %v5277_v24  ;;  %v1918_v49 = vmul.f32 %v5280_v15, %v5280_v15  ;;  %v1919_v7 = vmul.f32 %v5283_v19, %v5283_v19  ;;  %v1920_v47 = vmul.f32 %v5286_v30, %v5286_v30 }
 0x6c9   : > { %v1921_v41 = vmul.f32 %v5293_v21, %v5293_v21  ;;  %v1922_v57 = vmul.f32 %v5298_v5, %v5298_v5  ;;  %v5317_v29 = vsub.f32 %v5234_v23, %v1900_v60  ;;  %v1923_v51 = vmul.f32 %v5305_v17, %v5305_v17 }
 0x6ca   : > { %v1933_v10 = vsel %vm672_vm0, %v1917_v61, 0.0  ;;  %v1934_v46 = vsel %vm672_vm0, %v1918_v49, 0.0  ;;  %v1936_v43 = vsel %vm672_vm0, %v1919_v7, 0.0  ;;  %v1938_v39 = vsel %vm672_vm0, %v1920_v47, 0.0 }
 0x6cb   : > { %v1935_v58 = vadd.f32 %v1934_v46, %v1933_v10  ;;  %v1940_v16 = vsel %vm672_vm0, %v1921_v41, 0.0  ;;  %v5323_v33 = vsub.f32 %v5240_v38, %v1900_v60  ;;  %v1924_v40 = vmul.f32 %v5311_v54, %v5311_v54 }
 0x6cc   : > { %v1942_v6 = vsel %vm672_vm0, %v1922_v57, 0.0  ;;  %v5329_v48 = vsub.f32 %v5246_v28, %v1900_v60  ;;  %v1925_v23 = vmul.f32 %v5317_v29, %v5317_v29  ;;  %v1944_v34 = vsel %vm672_vm0, %v1923_v51, 0.0 }
 0x6cd   : > { %v1937_v35 = vadd.f32 %v1936_v43, %v1935_v58  ;;  %v5335_v62 = vsub.f32 %v5252_v31, %v1900_v60  ;;  %v1926_v38 = vmul.f32 %v5323_v33, %v5323_v33  ;;  %v1946_v50 = vsel %vm672_vm0, %v1924_v40, 0.0  ;;  %v2038_v40 = vld [vmem:[%s6253_s16 + $0x8] sm:$0xff] }
 0x6ce   : > { %v5341_v12 = vsub.f32 %v5257_v44, %v1900_v60  ;;  %v1927_v28 = vmul.f32 %v5329_v48, %v5329_v48  ;;  %v1948_v56 = vsel %vm672_vm0, %v1925_v23, 0.0  ;;  %v5347_v1 = vsub.f32 %v5262_v37, %v1900_v60  ;;  %v2040_v23 = vld [vmem:[%s6253_s16 + $0x18] sm:$0xff] }
 0x6cf   : > { %v1939_v14 = vadd.f32 %v1938_v39, %v1937_v35  ;;  %v1928_v31 = vmul.f32 %v5335_v62, %v5335_v62  ;;  %v1950_v61 = vsel %vm672_vm0, %v1926_v38, 0.0  ;;  %v5353_v7 = vsub.f32 %v5266_v45, %v1900_v60  ;;  %v2042_v38 = vld [vmem:[%s6253_s16 + $0x28] sm:$0xff] }
 0x6d0   : > { %v1929_v44 = vmul.f32 %v5341_v12, %v5341_v12  ;;  %v1952_v47 = vsel %vm672_vm0, %v1927_v28, 0.0  ;;  %v5359_v46 = vsub.f32 %v5270_v32, %v1900_v60  ;;  %v1930_v37 = vmul.f32 %v5347_v1, %v5347_v1  ;;  %v2044_v28 = vld [vmem:[%s6253_s16 + $0x38] sm:$0xff] }
 0x6d1   : > { %v1941_v3 = vadd.f32 %v1940_v16, %v1939_v14  ;;  %v1954_v58 = vsel %vm672_vm0, %v1928_v31, 0.0  ;;  %v1931_v43 = vmul.f32 %v5353_v7, %v5353_v7 }
 0x6d2   : > { %v1956_v45 = vsel %vm672_vm0, %v1929_v44, 0.0  ;;  %v1932_v57 = vmul.f32 %v5359_v46, %v5359_v46  ;;  %v1958_v39 = vsel %vm672_vm0, %v1930_v37, 0.0 }
 0x6d3   : > { %v1943_v42 = vadd.f32 %v1942_v6, %v1941_v3  ;;  %v1960_v32 = vsel %vm672_vm0, %v1931_v43, 0.0  ;;  %v2037_v3 = vld [vmem:[%s6253_s16] sm:$0xff]  ;;  %v2039_v6 = vld [vmem:[%s6253_s16 + $0x10] sm:$0xff] }
 0x6d4   : > { %v1962_v51 = vsel %vm672_vm0, %v1932_v57, 0.0 }
 0x6d5   : > { %v1945_v11 = vadd.f32 %v1944_v34, %v1943_v42  ;;  %v4304_v42 = vpack.c.bf16 %v2038_v40, %v2037_v3  ;;  %v4308_v34 = vpack.c.bf16 %v2040_v23, %v2039_v6 }
 0x6d7   : > { %v1947_v55 = vadd.f32 %v1946_v50, %v1945_v11  ;;  %4305 = vmatprep.subr.bf16.mxu0 %v4304_v42  ;;  %v2041_v11 = vld [vmem:[%s6253_s16 + $0x20] sm:$0xff]  ;;  %v2043_v50 = vld [vmem:[%s6253_s16 + $0x30] sm:$0xff] }
 0x6d8   : > { %4307 = vmatpush3.bf16.msra.mxu0 %v4304_v42 }
 0x6d9   : > { %v1949_v22 = vadd.f32 %v1948_v56, %v1947_v55  ;;  %4309 = vmatprep.subr.bf16.mxu0 %v4308_v34  ;;  %v4312_v55 = vpack.c.bf16 %v2042_v38, %v2041_v11  ;;  %v4316_v56 = vpack.c.bf16 %v2044_v28, %v2043_v50 }
 0x6db   : > { %v1951_v49 = vadd.f32 %v1950_v61, %v1949_v22 }
 0x6dc   : > { %4311 = vmatpush3.bf16.msra.mxu0 %v4308_v34 }
 0x6dd   : > { %v1953_v10 = vadd.f32 %v1952_v47, %v1951_v49  ;;  %4313 = vmatprep.subr.bf16.mxu0 %v4312_v55 }
 0x6df   : > { %v1955_v41 = vadd.f32 %v1954_v58, %v1953_v10 }
 0x6e0   : > { %4315 = vmatpush3.bf16.msra.mxu0 %v4312_v55 }
 0x6e1   : > { %v1957_v35 = vadd.f32 %v1956_v45, %v1955_v41  ;;  %4317 = vmatprep.subr.bf16.mxu0 %v4316_v56  ;;  %v3793_v45 = vld [vmem:[%s6251_s14] ss:$0 sm:$0xff] }
 0x6e3   : > { %v1959_v14 = vadd.f32 %v1958_v39, %v1957_v35 }
 0x6e4   : > { %4319 = vmatpush3.bf16.msra.mxu0 %v4316_v56 }
 0x6e5   : > { %v1961_v60 = vadd.f32 %v1960_v32, %v1959_v14  ;;  %v3794_v14 = vld [vmem:[%s6252_s15] ss:$0 sm:$0xff] }
 0x6e7   : > { %v1963_v16 = vadd.f32 %v1962_v51, %v1961_v60 }
 0x6e9   : > { %1964 = vadd.xlane.f32.xlu1 %v1963_v16 }
 0x776   : > { %v1965_v22 = vpop.xlane.xlu1 %1964 }
 0x777   : > { %v1966_v31 = vrot.slane %v1965_v22, 4 }
 0x779   : > { %v1967_v61 = vadd.f32 %v1966_v31, %v1965_v22 }
 0x77b   : > { %v1968_v49 = vrot.slane %v1967_v61, 2 }
 0x77d   : > { %v1969_v44 = vadd.f32 %v1968_v49, %v1967_v61 }
 0x77f   : > { %v1970_v47 = vrot.slane %v1969_v44, 1 }
 0x781   : > { %v1971_v10 = vadd.f32 %v1970_v47, %v1969_v44 }
 0x783   : > { %4366 = vpush %v1971_v10 }
 0x7b4   : > { %s4367_s0 = spop %4366 }
 0x7b5   : > { %v1973_v37 = vstv %s4367_s0 }
 0x7b6   : > { %v1974_v58 = vmul.f32 0.00012207031, %v1973_v37 }
 0x7b8   : > { %v1975_v41 = vadd.f32 1e-08, %v1974_v58 }
 0x7ba   : > { %4403 = vrsqrt.f32 %v1975_v41 }
 0x7c4   : > { %v4404_v43 = vpop.eup %4403 }
 0x7c5   : > { %v1977_v35 = vmul.f32 %v4404_v43, %v5277_v24  ;;  %v1978_v57 = vmul.f32 %v4404_v43, %v5280_v15  ;;  %v1979_v39 = vmul.f32 %v4404_v43, %v5283_v19  ;;  %v1980_v32 = vmul.f32 %v4404_v43, %v5286_v30 }
 0x7c6   : > { %v1981_v3 = vmul.f32 %v4404_v43, %v5293_v21  ;;  %v1982_v24 = vmul.f32 %v4404_v43, %v5298_v5  ;;  %v1983_v23 = vmul.f32 %v4404_v43, %v5305_v17  ;;  %v1984_v11 = vmul.f32 %v4404_v43, %v5311_v54 }
 0x7c7   : > { %v1999_v60 = vmul.f32 %v3793_v45, %v1977_v35  ;;  %v2000_v51 = vmul.f32 %v3793_v45, %v1978_v57  ;;  %v2001_v16 = vmul.f32 %v3793_v45, %v1979_v39  ;;  %v2002_v42 = vmul.f32 %v3793_v45, %v1980_v32 }
 0x7c8   : > { %v2003_v19 = vmul.f32 %v3793_v45, %v1981_v3  ;;  %v2004_v34 = vmul.f32 %v3793_v45, %v1982_v24  ;;  %v2005_v38 = vmul.f32 %v3793_v45, %v1983_v23  ;;  %v1985_v50 = vmul.f32 %v4404_v43, %v5317_v29 }
 0x7c9   : > { %v2021_v40 = vadd.f32 %v3794_v14, %v1999_v60  ;;  %v2022_v6 = vadd.f32 %v3794_v14, %v2000_v51  ;;  %v2023_v15 = vadd.f32 %v3794_v14, %v2001_v16  ;;  %v2024_v30 = vadd.f32 %v3794_v14, %v2002_v42  ;;  %v3815_v51 = vld [vmem:[%s6245_s8 + $0x38] sm:$0xff]  ;;  %v3795_v16 = vld [vmem:[%s6254_s17] ss:$0 sm:$0xff] }
 0x7ca   : > { %v2025_v21 = vadd.f32 %v3794_v14, %v2003_v19  ;;  %v2026_v5 = vadd.f32 %v3794_v14, %v2004_v34  ;;  %v2006_v55 = vmul.f32 %v3793_v45, %v1984_v11  ;;  %v1986_v17 = vmul.f32 %v4404_v43, %v5323_v33 }
 0x7cb   : > { %4140 = vmatprep.mubr.msk.f32.mxu0 %vm672_vm0, %v2021_v40  ;;  %v2027_v28 = vadd.f32 %v3794_v14, %v2005_v38  ;;  %v2007_v56 = vmul.f32 %v3793_v45, %v1985_v50  ;;  %v1987_v22 = vmul.f32 %v4404_v43, %v5329_v48  ;;  %v1988_v29 = vmul.f32 %v4404_v43, %v5335_v62 }
 0x7cc   : > { %4141 = vmatmul.mubr.msk.f32.vlgmr.msra.gmra.mrb[16].mxu0 %vm672_vm0, %v2022_v6  ;;  %v2028_v54 = vadd.f32 %v3794_v14, %v2006_v55  ;;  %v2008_v31 = vmul.f32 %v3793_v45, %v1986_v17  ;;  %v1989_v44 = vmul.f32 %v4404_v43, %v5341_v12  ;;  %v1990_v48 = vmul.f32 %v4404_v43, %v5347_v1 }
 0x7cd   : > { %4143 = vmatprep.mubr.msk.f32.mxu0 %vm672_vm0, %v2023_v15  ;;  %v2029_v61 = vadd.f32 %v3794_v14, %v2007_v56  ;;  %v2009_v49 = vmul.f32 %v3793_v45, %v1987_v22  ;;  %v2010_v47 = vmul.f32 %v3793_v45, %v1988_v29  ;;  %v1991_v58 = vmul.f32 %v4404_v43, %v5353_v7 }
 0x7ce   : > { %v2030_v33 = vadd.f32 %v3794_v14, %v2008_v31  ;;  %v2011_v37 = vmul.f32 %v3793_v45, %v1989_v44  ;;  %v2012_v41 = vmul.f32 %v3793_v45, %v1990_v48  ;;  %v1992_v12 = vmul.f32 %v4404_v43, %v5359_v46  ;;  %v3812_v46 = vld [vmem:[%s6245_s8 + $0x20] sm:$0xff]  ;;  %v3813_v43 = vld [vmem:[%s6245_s8 + $0x28] sm:$0xff] }
 0x7cf   : > { %v2031_v10 = vadd.f32 %v3794_v14, %v2009_v49  ;;  %v2032_v62 = vadd.f32 %v3794_v14, %v2010_v47  ;;  %v2013_v57 = vmul.f32 %v3793_v45, %v1991_v58  ;;  %v4320_v60 = vpack.c.bf16 %v3813_v43, %v3812_v46 }
 0x7d0   : > { %4144 = vmatmul.mubr.msk.f32.gmra.mrb[18].mxu0 %vm672_vm0, %v2024_v30  ;;  %v2033_v35 = vadd.f32 %v3794_v14, %v2011_v37  ;;  %v2034_v39 = vadd.f32 %v3794_v14, %v2012_v41  ;;  %v2014_v1 = vmul.f32 %v3793_v45, %v1992_v12  ;;  %v3814_v45 = vld [vmem:[%s6245_s8 + $0x30] sm:$0xff]  ;;  %v4425_v47 = vmov 2   ;;  %v5516_v41 = vld [vmem:[%s6255_s18] ss:$0 sm:$0xff] }
 0x7d1   : > { %4146 = vmatprep.mubr.msk.f32.mxu0 %vm672_vm0, %v2025_v21  ;;  %v2035_v32 = vadd.f32 %v3794_v14, %v2013_v57  ;;  %4321 = vmatprep.subr.bf16.mxu1 %v4320_v60 }
 0x7d2   : > { %v2036_v7 = vadd.f32 %v3794_v14, %v2014_v1  ;;  %v4324_v14 = vpack.c.bf16 %v3815_v51, %v3814_v45  ;;  %4323 = vmatpush3.bf16.msra.mxu1 %v4320_v60  ;;  %4395 = vset.pattern.permute.xlu1 %v4425_v47 }
 0x7d4   : > { %4147 = vmatmul.mubr.msk.f32.gmra.mrb[20].mxu0 %vm672_vm0, %v2026_v5  ;;  %4325 = vmatprep.subr.bf16.mxu1 %v4324_v14 }
 0x7d5   : > { %4149 = vmatprep.mubr.msk.f32.mxu0 %vm672_vm0, %v2027_v28 }
 0x7d6   : > { %4327 = vmatpush3.bf16.msra.mxu1 %v4324_v14 }
 0x7d8   : > { %4150 = vmatmul.mubr.msk.f32.gmra.mrb[22].mxu0 %vm672_vm0, %v2028_v54 }
 0x7d9   : > { %4152 = vmatprep.mubr.msk.f32.mxu0 %vm672_vm0, %v2029_v61 }
 0x7dc   : > { %4153 = vmatmul.mubr.msk.f32.gmra.mrb[24].mxu0 %vm672_vm0, %v2030_v33 }
 0x7dd   : > { %4155 = vmatprep.mubr.msk.f32.mxu0 %vm672_vm0, %v2031_v10 }
 0x7e0   : > { %4156 = vmatmul.mubr.msk.f32.gmra.mrb[26].mxu0 %vm672_vm0, %v2032_v62 }
 0x7e1   : > { %4158 = vmatprep.mubr.msk.f32.mxu0 %vm672_vm0, %v2033_v35 }
 0x7e4   : > { %4159 = vmatmul.mubr.msk.f32.gmra.mrb[28].mxu0 %vm672_vm0, %v2034_v39 }
 0x7e5   : > { %4161 = vmatprep.mubr.msk.f32.mxu0 %vm672_vm0, %v2035_v32 }
 0x7e8   : > { %4162 = vmatmul.mubr.msk.f32.gmra.mrb[30].mxu0 %vm672_vm0, %v2036_v7 }
 0x89f   : > { %v4142_v3 = vpop.f32.mrb[16].mxu0 }
 0x8a0   : > { %v5449_v40 = vadd.f32 %v4142_v3, %v3795_v16  ;;  %v2166_v6 = vpop.f32.mrb[17].mxu0 }
 0x8a1   : > { %v5451_v42 = vadd.f32 %v3795_v16, %v2166_v6 }
 0x8a2   : > { %2263 = vrot.lane.b32.xlu0 %v5449_v40, %s4424_s22 }
 0x8a3   : > { %v4145_v24 = vpop.f32.mrb[18].mxu0  ;;  %2261 = vrot.lane.b32.xlu1 %v5451_v42, %s4424_s22 }
 0x8a4   : > { %v2176_v15 = vpop.f32.mrb[19].mxu0  ;;  %v5461_v34 = vadd.f32 %v4145_v24, %v3795_v16 }
 0x8a5   : > { %v5457_v19 = vadd.f32 %v3795_v16, %v2176_v15 }
 0x8a7   : > { %v4148_v23 = vpop.f32.mrb[20].mxu0  ;;  %2265 = vrot.lane.b32.xlu0 %v5457_v19, %s4424_s22 }
 0x8a8   : > { %v2186_v30 = vpop.f32.mrb[21].mxu0  ;;  %v5469_v50 = vadd.f32 %v4148_v23, %v3795_v16 }
 0x8a9   : > { %v5463_v11 = vadd.f32 %v3795_v16, %v2186_v30 }
 0x8ab   : > { %v4151_v21 = vpop.f32.mrb[22].mxu0  ;;  %2267 = vrot.lane.b32.xlu0 %v5461_v34, %s4424_s22  ;;  %2269 = vrot.lane.b32.xlu1 %v5463_v11, %s4424_s22 }
 0x8ac   : > { %v2196_v38 = vpop.f32.mrb[23].mxu0  ;;  %v5477_v28 = vadd.f32 %v4151_v21, %v3795_v16 }
 0x8ad   : > { %v5471_v5 = vadd.f32 %v3795_v16, %v2196_v38 }
 0x8af   : > { %v4154_v55 = vpop.f32.mrb[24].mxu0  ;;  %2271 = vrot.lane.b32.xlu0 %v5469_v50, %s4424_s22  ;;  %2273 = vrot.lane.b32.xlu1 %v5471_v5, %s4424_s22 }
 0x8b0   : > { %v2206_v17 = vpop.f32.mrb[25].mxu0  ;;  %v5485_v31 = vadd.f32 %v4154_v55, %v3795_v16 }
 0x8b1   : > { %v5479_v56 = vadd.f32 %v3795_v16, %v2206_v17 }
 0x8b3   : > { %v4157_v22 = vpop.f32.mrb[26].mxu0  ;;  %2275 = vrot.lane.b32.xlu0 %v5477_v28, %s4424_s22  ;;  %2277 = vrot.lane.b32.xlu1 %v5479_v56, %s4424_s22 }
 0x8b4   : > { %v2216_v54 = vpop.f32.mrb[27].mxu0  ;;  %v5493_v44 = vadd.f32 %v4157_v22, %v3795_v16 }
 0x8b5   : > { %v5487_v29 = vadd.f32 %v3795_v16, %v2216_v54 }
 0x8b7   : > { %v4160_v61 = vpop.f32.mrb[28].mxu0  ;;  %2279 = vrot.lane.b32.xlu0 %v5485_v31, %s4424_s22  ;;  %2281 = vrot.lane.b32.xlu1 %v5487_v29, %s4424_s22 }
 0x8b8   : > { %v2226_v49 = vpop.f32.mrb[29].mxu0  ;;  %v5501_v37 = vadd.f32 %v4160_v61, %v3795_v16 }
 0x8b9   : > { %v5495_v33 = vadd.f32 %v3795_v16, %v2226_v49 }
 0x8bb   : > { %v4163_v48 = vpop.f32.mrb[30].mxu0  ;;  %2283 = vrot.lane.b32.xlu0 %v5493_v44, %s4424_s22  ;;  %2285 = vrot.lane.b32.xlu1 %v5495_v33, %s4424_s22 }
 0x8bc   : > { %v2236_v10 = vpop.f32.mrb[31].mxu0  ;;  %v5509_v62 = vadd.f32 %v4163_v48, %v3795_v16 }
 0x8bd   : > { %v5503_v58 = vadd.f32 %v3795_v16, %v2236_v10 }
 0x8bf   : > { %2287 = vrot.lane.b32.xlu0 %v5501_v37, %s4424_s22  ;;  %2289 = vrot.lane.b32.xlu1 %v5503_v58, %s4424_s22 }
 0x8c3   : > { %2291 = vrot.lane.b32.xlu0 %v5509_v62, %s4424_s22  ;;  %2548 = vperm.xlu1 %4395, %v5516_v41  }
 0x914   : > { %v2264_v12 = vpop.permute.xlu0 %2263 }
 0x915   : > { %v2262_v35 = vpop.permute.xlu1 %2261  ;;  %v2310_v39 = vadd.f32 %v2264_v12, %v4834_v52 }
 0x916   : > { %v2309_v57 = vadd.f32 %v2262_v35, %v4837_v53 }
 0x918   : > { %4172 = vmatprep.mubr.msk.f32.mxu1 %vm1210_vm2, %v2309_v57 }
 0x919   : > { %v2266_v1 = vpop.permute.xlu0 %2265  ;;  %4173 = vmatmul.mubr.msk.f32.vlgmr.msra.gmra.mrb[18].mxu1 %vm1210_vm2, %v2310_v39 }
 0x91a   : > { %v2311_v32 = vadd.f32 %v2266_v1, %v4847_v0 }
 0x91c   : > { %4175 = vmatprep.mubr.msk.f32.mxu1 %vm1210_vm2, %v2311_v32 }
 0x91d   : > { %v2268_v7 = vpop.permute.xlu0 %2267  ;;  %v2270_v46 = vpop.permute.xlu1 %2269 }
 0x91e   : > { %v2312_v43 = vadd.f32 %v2268_v7, %v4842_v63  ;;  %v2313_v45 = vadd.f32 %v2270_v46, %v4857_v59 }
 0x920   : > { %4176 = vmatmul.mubr.msk.f32.gmra.mrb[20].mxu1 %vm1210_vm2, %v2312_v43 }
 0x921   : > { %v2272_v53 = vpop.permute.xlu0 %2271  ;;  %4178 = vmatprep.mubr.msk.f32.mxu1 %vm1210_vm2, %v2313_v45  ;;  %v2274_v52 = vpop.permute.xlu1 %2273 }
 0x922   : > { %v2314_v60 = vadd.f32 %v2272_v53, %v4852_v2  ;;  %v2315_v51 = vadd.f32 %v2274_v52, %v4867_v4 }
 0x924   : > { %4179 = vmatmul.mubr.msk.f32.gmra.mrb[22].mxu1 %vm1210_vm2, %v2314_v60 }
 0x925   : > { %v2276_v0 = vpop.permute.xlu0 %2275  ;;  %4181 = vmatprep.mubr.msk.f32.mxu1 %vm1210_vm2, %v2315_v51  ;;  %v2278_v14 = vpop.permute.xlu1 %2277 }
 0x926   : > { %v2316_v63 = vadd.f32 %v2276_v0, %v4862_v8  ;;  %v2317_v59 = vadd.f32 %v2278_v14, %v4877_v9 }
 0x928   : > { %4182 = vmatmul.mubr.msk.f32.gmra.mrb[24].mxu1 %vm1210_vm2, %v2316_v63 }
 0x929   : > { %v2280_v16 = vpop.permute.xlu0 %2279  ;;  %4184 = vmatprep.mubr.msk.f32.mxu1 %vm1210_vm2, %v2317_v59  ;;  %v2282_v3 = vpop.permute.xlu1 %2281 }
 0x92a   : > { %v2318_v2 = vadd.f32 %v2280_v16, %v4872_v13  ;;  %v2319_v4 = vadd.f32 %v2282_v3, %v4887_v18 }
 0x92c   : > { %4185 = vmatmul.mubr.msk.f32.gmra.mrb[26].mxu1 %vm1210_vm2, %v2318_v2 }
 0x92d   : > { %v2284_v6 = vpop.permute.xlu0 %2283  ;;  %4187 = vmatprep.mubr.msk.f32.mxu1 %vm1210_vm2, %v2319_v4  ;;  %v2286_v24 = vpop.permute.xlu1 %2285 }
 0x92e   : > { %v2320_v8 = vadd.f32 %v2284_v6, %v4882_v20  ;;  %v2321_v9 = vadd.f32 %v2286_v24, %v4897_v27  ;;  %v5554_v20 = vld [vmem:[%s6246_s9 + $0x1] ss:$0 sm:$0xff] }
 0x930   : > { %4188 = vmatmul.mubr.msk.f32.gmra.mrb[28].mxu1 %vm1210_vm2, %v2320_v8 }
 0x931   : > { %v2288_v15 = vpop.permute.xlu0 %2287  ;;  %4190 = vmatprep.mubr.msk.f32.mxu1 %vm1210_vm2, %v2321_v9  ;;  %v2290_v23 = vpop.permute.xlu1 %2289 }
 0x932   : > { %v2322_v13 = vadd.f32 %v2288_v15, %v4892_v26  ;;  %v2323_v18 = vadd.f32 %v2290_v23, %v4907_v36 }
 0x934   : > { %4191 = vmatmul.mubr.msk.f32.gmra.mrb[30].mxu1 %vm1210_vm2, %v2322_v13 }
 0x935   : > { %v2292_v30 = vpop.permute.xlu0 %2291  ;;  %4193 = vmatprep.mubr.msk.f32.mxu1 %vm1210_vm2, %v2323_v18 }
 0x936   : > { %v2324_v21 = vadd.f32 %v2292_v30, %v4902_v25 }
 0x938   : > { %4194 = vmatmul.mubr.msk.f32.gmra.mrb[32].mxu1 %vm1210_vm2, %v2324_v21 }
 0x942   : > { %v5556_v38 = vpop.permute.xlu1 %2548 }
 0x9ec   : > { %v4174_v27 = vpop.f32.mrb[18].mxu1 }
 0x9ed   : > { %v2458_v26 = vadd.f32 %v4174_v27, %v5554_v20  ;;  %v2452_v36 = vpop.f32.mrb[19].mxu1 }
 0x9ee   : > { %v2453_v55 = vadd.f32 %v5554_v20, %v2452_v36 }
 0x9ef   : > { %v2552_v17 = vmul.f32 %v5556_v38, %v2458_v26  ;;  %vm2532_vm7 = vcmp.ge.f32.partialorder %v2458_v26, 0.0 }
 0x9f0   : > { %vm2531_vm8 = vcmp.ge.f32.partialorder %v2453_v55, 0.0  ;;  %v2551_v25 = vmul.f32 %v5556_v38, %v2453_v55 }
 0x9f1   : > { %v5564_v61 = vsel %vm2532_vm7, %v2458_v26, %v2552_v17 }
 0x9f2   : > { %v5562_v54 = vsel %vm2531_vm8, %v2453_v55, %v2551_v25  ;;  %v2588_v35 = vsel %vm672_vm0, %v5564_v61, 0.0 }
 0x9f3   : > { %v4177_v22 = vpop.f32.mrb[20].mxu1  ;;  %v2587_v12 = vsel %vm672_vm0, %v5562_v54, 0.0 }
 0x9f4   : > { %v2468_v49 = vadd.f32 %v4177_v22, %v5554_v20  ;;  %v2462_v47 = vpop.f32.mrb[21].mxu1  ;;  %v2589_v43 = vadd.f32 %v2588_v35, %v2587_v12 }
 0x9f5   : > { %v2463_v48 = vadd.f32 %v5554_v20, %v2462_v47 }
 0x9f6   : > { %vm2534_vm9 = vcmp.ge.f32.partialorder %v2468_v49, 0.0  ;;  %v2554_v10 = vmul.f32 %v5556_v38, %v2468_v49 }
 0x9f7   : > { %vm2533_vm10 = vcmp.ge.f32.partialorder %v2463_v48, 0.0  ;;  %v2553_v57 = vmul.f32 %v5556_v38, %v2463_v48  ;;  %v4180_v39 = vpop.f32.mrb[22].mxu1 }
 0x9f8   : > { %v2478_v1 = vadd.f32 %v4180_v39, %v5554_v20  ;;  %v2472_v32 = vpop.f32.mrb[23].mxu1  ;;  %v5575_v7 = vsel %vm2534_vm9, %v2468_v49, %v2554_v10 }
 0x9f9   : > { %v5577_v46 = vsel %vm2533_vm10, %v2463_v48, %v2553_v57  ;;  %v2473_v45 = vadd.f32 %v5554_v20, %v2472_v32  ;;  %v2592_v14 = vsel %vm672_vm0, %v5575_v7, 0.0 }
 0x9fa   : > { %v2590_v53 = vsel %vm672_vm0, %v5577_v46, 0.0  ;;  %vm2536_vm11 = vcmp.ge.f32.partialorder %v2478_v1, 0.0  ;;  %v2556_v52 = vmul.f32 %v5556_v38, %v2478_v1 }
 0x9fb   : > { %v2591_v60 = vadd.f32 %v2590_v53, %v2589_v43  ;;  %vm2535_vm12 = vcmp.ge.f32.partialorder %v2473_v45, 0.0  ;;  %v2555_v51 = vmul.f32 %v5556_v38, %v2473_v45  ;;  %v4183_v0 = vpop.f32.mrb[24].mxu1 }
 0x9fc   : > { %v2488_v63 = vadd.f32 %v4183_v0, %v5554_v20  ;;  %v2482_v59 = vpop.f32.mrb[25].mxu1  ;;  %v5587_v16 = vsel %vm2536_vm11, %v2478_v1, %v2556_v52 }
 0x9fd   : > { %v5589_v3 = vsel %vm2535_vm12, %v2473_v45, %v2555_v51  ;;  %v2593_v2 = vadd.f32 %v2592_v14, %v2591_v60  ;;  %v2483_v4 = vadd.f32 %v5554_v20, %v2482_v59  ;;  %v2596_v23 = vsel %vm672_vm0, %v5587_v16, 0.0 }
 0x9fe   : > { %v2594_v6 = vsel %vm672_vm0, %v5589_v3, 0.0  ;;  %vm2538_vm13 = vcmp.ge.f32.partialorder %v2488_v63, 0.0  ;;  %v2558_v24 = vmul.f32 %v5556_v38, %v2488_v63 }
 0x9ff   : > { %v2595_v8 = vadd.f32 %v2594_v6, %v2593_v2  ;;  %vm2537_vm14 = vcmp.ge.f32.partialorder %v2483_v4, 0.0  ;;  %v2557_v9 = vmul.f32 %v5556_v38, %v2483_v4  ;;  %v4186_v15 = vpop.f32.mrb[26].mxu1 }
 0xa00   : > { %v2498_v13 = vadd.f32 %v4186_v15, %v5554_v20  ;;  %v2492_v18 = vpop.f32.mrb[27].mxu1  ;;  %v5599_v30 = vsel %vm2538_vm13, %v2488_v63, %v2558_v24 }
 0xa01   : > { %v5601_v21 = vsel %vm2537_vm14, %v2483_v4, %v2557_v9  ;;  %v2597_v27 = vadd.f32 %v2596_v23, %v2595_v8  ;;  %v2493_v26 = vadd.f32 %v5554_v20, %v2492_v18  ;;  %v2600_v49 = vsel %vm672_vm0, %v5599_v30, 0.0 }
 0xa02   : > { %v2598_v36 = vsel %vm672_vm0, %v5601_v21, 0.0  ;;  %vm2540_vm15 = vcmp.ge.f32.partialorder %v2498_v13, 0.0  ;;  %v2560_v55 = vmul.f32 %v5556_v38, %v2498_v13 }
 0xa03   : > { %v2599_v17 = vadd.f32 %v2598_v36, %v2597_v27  ;;  %vm2539_vm1 = vcmp.ge.f32.partialorder %v2493_v26, 0.0  ;;  %v2559_v25 = vmul.f32 %v5556_v38, %v2493_v26  ;;  %v4189_v22 = vpop.f32.mrb[28].mxu1 }
 0xa04   : > { %v2508_v47 = vadd.f32 %v4189_v22, %v5554_v20  ;;  %v2502_v48 = vpop.f32.mrb[29].mxu1  ;;  %v5611_v10 = vsel %vm2540_vm15, %v2498_v13, %v2560_v55 }
 0xa05   : > { %v5613_v12 = vsel %vm2539_vm1, %v2493_v26, %v2559_v25  ;;  %v2601_v35 = vadd.f32 %v2600_v49, %v2599_v17  ;;  %v2503_v57 = vadd.f32 %v5554_v20, %v2502_v48  ;;  %v2604_v53 = vsel %vm672_vm0, %v5611_v10, 0.0 }
 0xa06   : > { %v2602_v39 = vsel %vm672_vm0, %v5613_v12, 0.0  ;;  %vm2542_vm3 = vcmp.ge.f32.partialorder %v2508_v47, 0.0  ;;  %v2562_v1 = vmul.f32 %v5556_v38, %v2508_v47 }
 0xa07   : > { %v2603_v32 = vadd.f32 %v2602_v39, %v2601_v35  ;;  %vm2541_vm4 = vcmp.ge.f32.partialorder %v2503_v57, 0.0  ;;  %v2561_v43 = vmul.f32 %v5556_v38, %v2503_v57  ;;  %v4192_v45 = vpop.f32.mrb[30].mxu1  ;;  %v4426_v39 = vmov 3  }
 0xa08   : > { %v2518_v52 = vadd.f32 %v4192_v45, %v5554_v20  ;;  %v2512_v60 = vpop.f32.mrb[31].mxu1  ;;  %v5623_v51 = vsel %vm2542_vm3, %v2508_v47, %v2562_v1  ;;  %4396 = vset.pattern.permute.xlu0 %v4426_v39 }
 0xa09   : > { %v5625_v0 = vsel %vm2541_vm4, %v2503_v57, %v2561_v43  ;;  %v2605_v14 = vadd.f32 %v2604_v53, %v2603_v32  ;;  %v2513_v63 = vadd.f32 %v5554_v20, %v2512_v60  ;;  %v2608_v8 = vsel %vm672_vm0, %v5623_v51, 0.0 }
 0xa0a   : > { %v2606_v59 = vsel %vm672_vm0, %v5625_v0, 0.0  ;;  %vm2544_vm5 = vcmp.ge.f32.partialorder %v2518_v52, 0.0  ;;  %v2564_v2 = vmul.f32 %v5556_v38, %v2518_v52 }
 0xa0b   : > { %v2607_v4 = vadd.f32 %v2606_v59, %v2605_v14  ;;  %vm2543_vm6 = vcmp.ge.f32.partialorder %v2513_v63, 0.0  ;;  %v2563_v6 = vmul.f32 %v5556_v38, %v2513_v63  ;;  %v4195_v24 = vpop.f32.mrb[32].mxu1 }
 0xa0c   : > { %v2528_v9 = vadd.f32 %v4195_v24, %v5554_v20  ;;  %v2522_v15 = vpop.f32.mrb[33].mxu1  ;;  %v5635_v23 = vsel %vm2544_vm5, %v2518_v52, %v2564_v2 }
 0xa0d   : > { %v5637_v13 = vsel %vm2543_vm6, %v2513_v63, %v2563_v6  ;;  %v2609_v18 = vadd.f32 %v2608_v8, %v2607_v4  ;;  %v2523_v27 = vadd.f32 %v5554_v20, %v2522_v15  ;;  %v2612_v25 = vsel %vm672_vm0, %v5635_v23, 0.0 }
 0xa0e   : > { %v2610_v26 = vsel %vm672_vm0, %v5637_v13, 0.0  ;;  %vm2546_vm7 = vcmp.ge.f32.partialorder %v2528_v9, 0.0  ;;  %v2566_v36 = vmul.f32 %v5556_v38, %v2528_v9 }
 0xa0f   : > { %v2611_v55 = vadd.f32 %v2610_v26, %v2609_v18  ;;  %vm2545_vm8 = vcmp.ge.f32.partialorder %v2523_v27, 0.0  ;;  %v2565_v17 = vmul.f32 %v5556_v38, %v2523_v27 }
 0xa10   : > { %v5648_v49 = vsel %vm2546_vm7, %v2528_v9, %v2566_v36 }
 0xa11   : > { %v5646_v22 = vsel %vm2545_vm8, %v2523_v27, %v2565_v17  ;;  %v2613_v47 = vadd.f32 %v2612_v25, %v2611_v55  ;;  %v2616_v35 = vsel %vm672_vm0, %v5648_v49, 0.0 }
 0xa12   : > { %v2614_v20 = vsel %vm672_vm0, %v5646_v22, 0.0 }
 0xa13   : > { %v2615_v48 = vadd.f32 %v2614_v20, %v2613_v47 }
 0xa15   : > { %v2617_v57 = vadd.f32 %v2616_v35, %v2615_v48 }
 0xa17   : > { %2618 = vadd.xlane.f32.xlu0 %v2617_v57 }
 0xa2d   : > { %2948 = vperm.xlu0 %4396, %v5516_v41  }
 0xaa4   : > { %v2619_v38 = vpop.xlane.xlu0 %2618 }
 0xaa5   : > { %v2620_v1 = vrot.slane %v2619_v38, 4 }
 0xaa7   : > { %v2621_v32 = vadd.f32 %v2620_v1, %v2619_v38 }
 0xaa9   : > { %v2622_v43 = vrot.slane %v2621_v32, 2 }
 0xaab   : > { %v2623_v45 = vadd.f32 %v2622_v43, %v2621_v32 }
 0xaad   : > { %v2624_v53 = vrot.slane %v2623_v45, 1 }
 0xaaf   : > { %v2625_v52 = vadd.f32 %v2624_v53, %v2623_v45 }
 0xab1   : > { %4368 = vpush %v2625_v52 }
 0xae2   : > { %s4369_s28 = spop %4368 }
 0xae3   : > { %v2627_v60 = vstv %s4369_s28 }
 0xae4   : > { %v2628_v14 = vmul.f32 0.00012207031, %v2627_v60 }
 0xae6   : > { %v5656_v63 = vsub.f32 %v5562_v54, %v2628_v14  ;;  %v5659_v59 = vsub.f32 %v5564_v61, %v2628_v14  ;;  %v5662_v2 = vsub.f32 %v5577_v46, %v2628_v14  ;;  %v5665_v41 = vsub.f32 %v5575_v7, %v2628_v14 }
 0xae7   : > { %v5672_v24 = vsub.f32 %v5589_v3, %v2628_v14  ;;  %v5677_v61 = vsub.f32 %v5587_v16, %v2628_v14  ;;  %v5684_v15 = vsub.f32 %v5601_v21, %v2628_v14  ;;  %v5690_v16 = vsub.f32 %v5599_v30, %v2628_v14 }
 0xae8   : > { %v2645_v4 = vmul.f32 %v5656_v63, %v5656_v63  ;;  %v2646_v6 = vmul.f32 %v5659_v59, %v5659_v59  ;;  %v2647_v54 = vmul.f32 %v5662_v2, %v5662_v2  ;;  %v2648_v46 = vmul.f32 %v5665_v41, %v5665_v41 }
 0xae9   : > { %v2649_v3 = vmul.f32 %v5672_v24, %v5672_v24  ;;  %v2650_v26 = vmul.f32 %v5677_v61, %v5677_v61  ;;  %v5696_v17 = vsub.f32 %v5613_v12, %v2628_v14  ;;  %v2651_v21 = vmul.f32 %v5684_v15, %v5684_v15 }
 0xaea   : > { %v2661_v7 = vsel %vm672_vm0, %v2645_v4, 0.0  ;;  %v2662_v8 = vsel %vm672_vm0, %v2646_v6, 0.0  ;;  %v2664_v18 = vsel %vm672_vm0, %v2647_v54, 0.0  ;;  %v2666_v36 = vsel %vm672_vm0, %v2648_v46, 0.0 }
 0xaeb   : > { %v2663_v9 = vadd.f32 %v2662_v8, %v2661_v7  ;;  %v2668_v25 = vsel %vm672_vm0, %v2649_v3, 0.0  ;;  %v5702_v20 = vsub.f32 %v5611_v10, %v2628_v14  ;;  %v2652_v30 = vmul.f32 %v5690_v16, %v5690_v16 }
 0xaec   : > { %v2670_v48 = vsel %vm672_vm0, %v2650_v26, 0.0  ;;  %v2639_v57 = vsub.f32 %v5625_v0, %v2628_v14  ;;  %v2653_v12 = vmul.f32 %v5696_v17, %v5696_v17  ;;  %v2672_v39 = vsel %vm672_vm0, %v2651_v21, 0.0 }
 0xaed   : > { %v2665_v27 = vadd.f32 %v2664_v18, %v2663_v9  ;;  %v2640_v1 = vsub.f32 %v5623_v51, %v2628_v14  ;;  %v2654_v10 = vmul.f32 %v5702_v20, %v5702_v20  ;;  %v2674_v32 = vsel %vm672_vm0, %v2652_v30, 0.0 }
 0xaee   : > { %v2641_v45 = vsub.f32 %v5637_v13, %v2628_v14  ;;  %v2655_v53 = vmul.f32 %v2639_v57, %v2639_v57  ;;  %v2676_v52 = vsel %vm672_vm0, %v2653_v12, 0.0  ;;  %v2642_v60 = vsub.f32 %v5635_v23, %v2628_v14 }
 0xaef   : > { %v2667_v55 = vadd.f32 %v2666_v36, %v2665_v27  ;;  %v2656_v4 = vmul.f32 %v2640_v1, %v2640_v1  ;;  %v2678_v6 = vsel %vm672_vm0, %v2654_v10, 0.0  ;;  %v2643_v51 = vsub.f32 %v5646_v22, %v2628_v14 }
 0xaf0   : > { %v2657_v46 = vmul.f32 %v2641_v45, %v2641_v45  ;;  %v2680_v7 = vsel %vm672_vm0, %v2655_v53, 0.0  ;;  %v2644_v9 = vsub.f32 %v5648_v49, %v2628_v14  ;;  %v2658_v3 = vmul.f32 %v2642_v60, %v2642_v60 }
 0xaf1   : > { %v2669_v47 = vadd.f32 %v2668_v25, %v2667_v55  ;;  %v2682_v13 = vsel %vm672_vm0, %v2656_v4, 0.0  ;;  %v2659_v27 = vmul.f32 %v2643_v51, %v2643_v51 }
 0xaf2   : > { %v2684_v26 = vsel %vm672_vm0, %v2657_v46, 0.0  ;;  %v2660_v36 = vmul.f32 %v2644_v9, %v2644_v9  ;;  %v2686_v55 = vsel %vm672_vm0, %v2658_v3, 0.0 }
 0xaf3   : > { %v2671_v35 = vadd.f32 %v2670_v48, %v2669_v47  ;;  %v2688_v22 = vsel %vm672_vm0, %v2659_v27, 0.0 }
 0xaf4   : > { %v2690_v47 = vsel %vm672_vm0, %v2660_v36, 0.0 }
 0xaf5   : > { %v2673_v38 = vadd.f32 %v2672_v39, %v2671_v35 }
 0xaf7   : > { %v2675_v43 = vadd.f32 %v2674_v32, %v2673_v38 }
 0xaf9   : > { %v2677_v0 = vadd.f32 %v2676_v52, %v2675_v43 }
 0xafb   : > { %v2679_v54 = vadd.f32 %v2678_v6, %v2677_v0 }
 0xafd   : > { %v2681_v8 = vadd.f32 %v2680_v7, %v2679_v54  ;;  %v3836_v54 = vld [vmem:[%s6247_s10 + $0x1] ss:$0 sm:$0xff] }
 0xaff   : > { %v2683_v18 = vadd.f32 %v2682_v13, %v2681_v8 }
 0xb01   : > { %v2685_v23 = vadd.f32 %v2684_v26, %v2683_v18 }
 0xb03   : > { %v2687_v21 = vadd.f32 %v2686_v55, %v2685_v23 }
 0xb05   : > { %v2689_v25 = vadd.f32 %v2688_v22, %v2687_v21 }
 0xb07   : > { %v2691_v30 = vadd.f32 %v2690_v47, %v2689_v25 }
 0xb09   : > { %2692 = vadd.xlane.f32.xlu1 %v2691_v30 }
 0xb96   : > { %v2693_v49 = vpop.xlane.xlu1 %2692 }
 0xb97   : > { %v2694_v14 = vrot.slane %v2693_v49, 4 }
 0xb99   : > { %v2695_v48 = vadd.f32 %v2694_v14, %v2693_v49 }
 0xb9b   : > { %v2696_v35 = vrot.slane %v2695_v48, 2 }
 0xb9d   : > { %v2697_v12 = vadd.f32 %v2696_v35, %v2695_v48 }
 0xb9f   : > { %v2698_v39 = vrot.slane %v2697_v12, 1 }
 0xba1   : > { %v2699_v38 = vadd.f32 %v2698_v39, %v2697_v12 }
 0xba3   : > { %4370 = vpush %v2699_v38 }
 0xbd4   : > { %s4371_s29 = spop %4370 }
 0xbd5   : > { %v2701_v10 = vstv %s4371_s29 }
 0xbd6   : > { %v2702_v32 = vmul.f32 0.00012207031, %v2701_v10 }
 0xbd8   : > { %v2703_v43 = vadd.f32 1e-08, %v2702_v32 }
 0xbda   : > { %4405 = vrsqrt.f32 %v2703_v43 }
 0xbe4   : > { %v4406_v53 = vpop.eup %4405 }
 0xbe5   : > { %v2705_v52 = vmul.f32 %v4406_v53, %v5656_v63  ;;  %v2706_v0 = vmul.f32 %v4406_v53, %v5659_v59  ;;  %v2707_v4 = vmul.f32 %v4406_v53, %v5662_v2  ;;  %v2708_v6 = vmul.f32 %v4406_v53, %v5665_v41 }
 0xbe6   : > { %v2709_v46 = vmul.f32 %v4406_v53, %v5672_v24  ;;  %v2710_v7 = vmul.f32 %v4406_v53, %v5677_v61  ;;  %v2711_v8 = vmul.f32 %v4406_v53, %v5684_v15  ;;  %v2712_v3 = vmul.f32 %v4406_v53, %v5690_v16  ;;  %v3837_v61 = vld [vmem:[%s6248_s11 + $0x1] ss:$0 sm:$0xff] }
 0xbe7   : > { %v2713_v63 = vmul.f32 %v4406_v53, %v5696_v17  ;;  %v2714_v59 = vmul.f32 %v4406_v53, %v5702_v20  ;;  %v2715_v13 = vmul.f32 %v4406_v53, %v2639_v57  ;;  %v2716_v2 = vmul.f32 %v4406_v53, %v2640_v1 }
 0xbe8   : > { %v2717_v18 = vmul.f32 %v4406_v53, %v2641_v45  ;;  %v2718_v41 = vmul.f32 %v4406_v53, %v2642_v60  ;;  %v2719_v27 = vmul.f32 %v4406_v53, %v2643_v51  ;;  %v2720_v26 = vmul.f32 %v4406_v53, %v2644_v9 }
 0xbe9   : > { %v2727_v23 = vmul.f32 %v3836_v54, %v2705_v52  ;;  %v2728_v36 = vmul.f32 %v3836_v54, %v2706_v0  ;;  %v2729_v55 = vmul.f32 %v3836_v54, %v2707_v4  ;;  %v2730_v24 = vmul.f32 %v3836_v54, %v2708_v6  ;;  %v3838_v4 = vld [vmem:[%s6249_s12 + $0x4] sm:$0x7]  ;;  %v6279_v6 = vld [vmem:[#allocation4_spill] sm:$0xff] }
 0xbea   : > { %v2731_v15 = vmul.f32 %v3836_v54, %v2709_v46  ;;  %v2732_v16 = vmul.f32 %v3836_v54, %v2710_v7  ;;  %v2733_v21 = vmul.f32 %v3836_v54, %v2711_v8  ;;  %v2734_v17 = vmul.f32 %v3836_v54, %v2712_v3  ;;  %v6280_v8 = vld [vmem:[#allocation3_spill] sm:$0xff] }
 0xbeb   : > { %v2735_v22 = vmul.f32 %v3836_v54, %v2713_v63  ;;  %v2736_v20 = vmul.f32 %v3836_v54, %v2714_v59  ;;  %v2737_v57 = vmul.f32 %v3836_v54, %v2715_v13  ;;  %v2738_v1 = vmul.f32 %v3836_v54, %v2716_v2 }
 0xbec   : > { %v2739_v45 = vmul.f32 %v3836_v54, %v2717_v18  ;;  %v2740_v60 = vmul.f32 %v3836_v54, %v2718_v41  ;;  %v2741_v51 = vmul.f32 %v3836_v54, %v2719_v27  ;;  %v2742_v9 = vmul.f32 %v3836_v54, %v2720_v26 }
 0xbed   : > { %v2749_v25 = vadd.f32 %v3837_v61, %v2727_v23  ;;  %v2750_v47 = vadd.f32 %v3837_v61, %v2728_v36  ;;  %v2751_v30 = vadd.f32 %v3837_v61, %v2729_v55  ;;  %v2752_v49 = vadd.f32 %v3837_v61, %v2730_v24 }
 0xbee   : > { %v2753_v14 = vadd.f32 %v3837_v61, %v2731_v15  ;;  %v2754_v48 = vadd.f32 %v3837_v61, %v2732_v16  ;;  %v2755_v35 = vadd.f32 %v3837_v61, %v2733_v21  ;;  %v2756_v12 = vadd.f32 %v3837_v61, %v2734_v17 }
 0xbef   : > { %v2757_v39 = vadd.f32 %v3837_v61, %v2735_v22  ;;  %v2758_v38 = vadd.f32 %v3837_v61, %v2736_v20  ;;  %v2759_v10 = vadd.f32 %v3837_v61, %v2737_v57  ;;  %v2760_v32 = vadd.f32 %v3837_v61, %v2738_v1  ;;  %2765 = vst.msk [vmem:[#allocation2 + $0x8] sm:$0xff] %vm672_vm0, %v2749_v25 }
 0xbf0   : > { %2766 = vst.msk [vmem:[#allocation2 + $0x10] sm:$0xff] %vm672_vm0, %v2750_v47  ;;  %2767 = vst.msk [vmem:[#allocation2 + $0x18] sm:$0xff] %vm672_vm0, %v2751_v30  ;;  %v2761_v43 = vadd.f32 %v3837_v61, %v2739_v45  ;;  %v2762_v53 = vadd.f32 %v3837_v61, %v2740_v60  ;;  %v2763_v52 = vadd.f32 %v3837_v61, %v2741_v51  ;;  %v6281_v3 = vsub.s32 1, %v6280_v8 }
 0xbf1   : > { %2768 = vst.msk [vmem:[#allocation2 + $0x20] sm:$0xff] %vm672_vm0, %v2752_v49  ;;  %v2764_v0 = vadd.f32 %v3837_v61, %v2742_v9  ;;  %2769 = vst.msk [vmem:[#allocation2 + $0x28] sm:$0xff] %vm672_vm0, %v2753_v14  ;;  %v5763_v54 = vrot.slane %v3838_v4, %v6279_v6  ;;  %v6282_v27 = vsub.s32 2, %v6280_v8 }
 0xbf2   : > { %2770 = vst.msk [vmem:[#allocation2 + $0x30] sm:$0xff] %vm672_vm0, %v2754_v48  ;;  %2771 = vst.msk [vmem:[#allocation2 + $0x38] sm:$0xff] %vm672_vm0, %v2755_v35  ;;  %v2822_v63 = vrot.slane %v3838_v4, %v6281_v3 }
 0xbf3   : > { %2772 = vst.msk [vmem:[#allocation2 + $0x40] sm:$0xff] %vm672_vm0, %v2756_v12  ;;  %2773 = vst.msk [vmem:[#allocation2 + $0x48] sm:$0xff] %vm672_vm0, %v2757_v39  ;;  %v5771_v26 = vrot.slane %v3838_v4, %v6282_v27 }
 0xbf4   : > { %2774 = vst.msk [vmem:[#allocation2 + $0x50] sm:$0xff] %vm672_vm0, %v2758_v38  ;;  %2775 = vst.msk [vmem:[#allocation2 + $0x58] sm:$0xff] %vm672_vm0, %v2759_v10  ;;  %v2823_v41 = vmul.f32 %v2822_v63, %v2749_v25  ;;  %v2824_v36 = vmul.f32 %v2822_v63, %v2750_v47  ;;  %v2825_v55 = vmul.f32 %v2822_v63, %v2751_v30 }
 0xbf5   : > { %2776 = vst.msk [vmem:[#allocation2 + $0x60] sm:$0xff] %vm672_vm0, %v2760_v32  ;;  %2777 = vst.msk [vmem:[#allocation2 + $0x68] sm:$0xff] %vm672_vm0, %v2761_v43  ;;  %v2826_v24 = vmul.f32 %v2822_v63, %v2752_v49  ;;  %v2827_v15 = vmul.f32 %v2822_v63, %v2753_v14  ;;  %v2828_v16 = vmul.f32 %v2822_v63, %v2754_v48 }
 0xbf6   : > { %2778 = vst.msk [vmem:[#allocation2 + $0x70] sm:$0xff] %vm672_vm0, %v2762_v53  ;;  %2779 = vst.msk [vmem:[#allocation2 + $0x78] sm:$0xff] %vm672_vm0, %v2763_v52  ;;  %v2783_v46 = vld [vmem:[#allocation2 + $0x6] sm:$0xff]  ;;  %v2829_v21 = vmul.f32 %v2822_v63, %v2755_v35  ;;  %v2830_v17 = vmul.f32 %v2822_v63, %v2756_v12  ;;  %v2831_v45 = vmul.f32 %v2822_v63, %v2757_v39 }
 0xbf7   : > { %2780 = vst.msk [vmem:[#allocation2 + $0x80] sm:$0xff] %vm672_vm0, %v2764_v0  ;;  %v2784_v7 = vld [vmem:[#allocation2 + $0xe] sm:$0xff]  ;;  %v2785_v59 = vld [vmem:[#allocation2 + $0x16] sm:$0xff]  ;;  %v2803_v13 = vmul.f32 %v5763_v54, %v2783_v46  ;;  %v2832_v25 = vmul.f32 %v2822_v63, %v2758_v38  ;;  %v2833_v4 = vmul.f32 %v2822_v63, %v2759_v10  ;;  %v2834_v6 = vmul.f32 %v2822_v63, %v2760_v32 }
 0xbf8   : > { %v2804_v2 = vmul.f32 %v5763_v54, %v2784_v7  ;;  %v2786_v18 = vld [vmem:[#allocation2 + $0x1e] sm:$0xff]  ;;  %v2805_v23 = vmul.f32 %v5763_v54, %v2785_v59  ;;  %v2787_v61 = vld [vmem:[#allocation2 + $0x26] sm:$0xff]  ;;  %v2856_v20 = vld [vmem:[#allocation2 + $0x12] sm:$0xff]  ;;  %v5775_v47 = vmul.f32 %v2822_v63, %v2761_v43  ;;  %v2836_v3 = vmul.f32 %v2822_v63, %v2762_v53 }
 0xbf9   : > { %v2855_v22 = vld [vmem:[#allocation2 + $0xa] sm:$0xff]  ;;  %v2806_v1 = vmul.f32 %v5763_v54, %v2786_v18  ;;  %v2839_v60 = vadd.f32 %v2823_v41, %v2803_v13  ;;  %v2789_v9 = vld [vmem:[#allocation2 + $0x36] sm:$0xff]  ;;  %v2807_v35 = vmul.f32 %v5763_v54, %v2787_v61  ;;  %v2876_v7 = vmul.f32 %v5771_v26, %v2856_v20  ;;  %v2858_v32 = vld [vmem:[#allocation2 + $0x22] sm:$0xff] }
 0xbfa   : > { %v2788_v57 = vld [vmem:[#allocation2 + $0x2e] sm:$0xff]  ;;  %v2840_v51 = vadd.f32 %v2824_v36, %v2804_v2  ;;  %v2857_v30 = vld [vmem:[#allocation2 + $0x1a] sm:$0xff]  ;;  %v2791_v14 = vld [vmem:[#allocation2 + $0x46] sm:$0xff]  ;;  %v2841_v12 = vadd.f32 %v2825_v55, %v2805_v23  ;;  %v2875_v46 = vmul.f32 %v5771_v26, %v2855_v22  ;;  %v2837_v38 = vmul.f32 %v2822_v63, %v2763_v52 }
 0xbfb   : > { %v2790_v49 = vld [vmem:[#allocation2 + $0x3e] sm:$0xff]  ;;  %v2792_v48 = vld [vmem:[#allocation2 + $0x4e] sm:$0xff]  ;;  %v2793_v39 = vld [vmem:[#allocation2 + $0x56] sm:$0xff]  ;;  %v2808_v8 = vmul.f32 %v5763_v54, %v2788_v57  ;;  %v5781_v10 = vmul.f32 %v2822_v63, %v2764_v0  ;;  %v2842_v2 = vadd.f32 %v2826_v24, %v2806_v1  ;;  %v2877_v18 = vmul.f32 %v5771_v26, %v2857_v30 }
 0xbfc   : > { %v2794_v43 = vld [vmem:[#allocation2 + $0x5e] sm:$0xff]  ;;  %v2795_v59 = vld [vmem:[#allocation2 + $0x66] sm:$0xff]  ;;  %v2891_v41 = vadd.f32 %v2875_v46, %v2839_v60  ;;  %v2892_v27 = vadd.f32 %v2876_v7, %v2840_v51  ;;  %v2809_v23 = vmul.f32 %v5763_v54, %v2789_v9  ;;  %v2810_v36 = vmul.f32 %v5763_v54, %v2790_v49  ;;  %v2860_v30 = vld [vmem:[#allocation2 + $0x32] sm:$0xff] }
 0xbfd   : > { %v2796_v13 = vld [vmem:[#allocation2 + $0x6e] sm:$0xff]  ;;  %v2811_v55 = vmul.f32 %v5763_v54, %v2791_v14  ;;  %v2812_v53 = vmul.f32 %v5763_v54, %v2792_v48  ;;  %v5791_v0 = vld [vmem:[%s6250_s13 + $0x1] ss:$0 sm:$0xff]  ;;  %v2797_v63 = vld [vmem:[#allocation2 + $0x76] sm:$0xff]  ;;  %v2813_v61 = vmul.f32 %v5763_v54, %v2793_v39  ;;  %v2843_v22 = vadd.f32 %v2827_v15, %v2807_v35  ;;  %v5801_v15 = vpop.permute.xlu0 %2948 }
 0xbfe   : > { %v2859_v52 = vld [vmem:[#allocation2 + $0x2a] sm:$0xff]  ;;  %v2798_v24 = vld [vmem:[#allocation2 + $0x7e] sm:$0xff]  ;;  %v2878_v20 = vmul.f32 %v5771_v26, %v2858_v32  ;;  %v2893_v57 = vadd.f32 %v2877_v18, %v2841_v12  ;;  %v2814_v1 = vmul.f32 %v5763_v54, %v2794_v43  ;;  %v2815_v60 = vmul.f32 %v5763_v54, %v2795_v59 }
 0xbff   : > { %v2816_v51 = vmul.f32 %v5763_v54, %v2796_v13  ;;  %v2844_v9 = vadd.f32 %v2828_v16, %v2808_v8  ;;  %v2861_v49 = vld [vmem:[#allocation2 + $0x3a] sm:$0xff]  ;;  %v2879_v14 = vmul.f32 %v5771_v26, %v2859_v52  ;;  %v2915_v46 = vadd.f32 %v5791_v0, %v2891_v41  ;;  %v2862_v59 = vld [vmem:[#allocation2 + $0x42] sm:$0xff]  ;;  %v2863_v52 = vld [vmem:[#allocation2 + $0x4a] sm:$0xff] }
 0xc00   : > { %v2894_v48 = vadd.f32 %v2878_v20, %v2842_v2  ;;  %v2916_v7 = vadd.f32 %v5791_v0, %v2892_v27  ;;  %v2817_v35 = vmul.f32 %v5763_v54, %v2797_v63  ;;  %v2818_v12 = vmul.f32 %v5763_v54, %v2798_v24 }
 0xc01   : > { %v2845_v39 = vadd.f32 %v2829_v21, %v2809_v23  ;;  %v2846_v32 = vadd.f32 %v2830_v17, %v2810_v36  ;;  %v2847_v43 = vadd.f32 %v2831_v45, %v2811_v55  ;;  %v2880_v16 = vmul.f32 %v5771_v26, %v2860_v30 }
 0xc02   : > { %v2895_v8 = vadd.f32 %v2879_v14, %v2843_v22  ;;  %v2917_v13 = vadd.f32 %v5791_v0, %v2893_v57  ;;  %v2848_v2 = vadd.f32 %v2832_v25, %v2812_v53  ;;  %v2849_v18 = vadd.f32 %v2833_v4, %v2813_v61  ;;  %v2864_v25 = vld [vmem:[#allocation2 + $0x52] sm:$0xff]  ;;  %v2865_v4 = vld [vmem:[#allocation2 + $0x5a] sm:$0xff] }
 0xc03   : > { %v2850_v41 = vadd.f32 %v2834_v6, %v2814_v1  ;;  %v2881_v27 = vmul.f32 %v5771_v26, %v2861_v49  ;;  %v2896_v20 = vadd.f32 %v2880_v16, %v2844_v9  ;;  %v2918_v63 = vadd.f32 %v5791_v0, %v2894_v48 }
 0xc04   : > { %v2951_v54 = vmul.f32 %v5801_v15, %v2915_v46  ;;  %v2952_v21 = vmul.f32 %v5801_v15, %v2916_v7  ;;  %v2851_v17 = vadd.f32 %v5775_v47, %v2815_v60  ;;  %v2882_v45 = vmul.f32 %v5771_v26, %v2862_v59 }
 0xc05   : > { %vm2931_vm9 = vcmp.ge.f32.partialorder %v2915_v46, 0.0  ;;  %vm2932_vm10 = vcmp.ge.f32.partialorder %v2916_v7, 0.0  ;;  %v2852_v23 = vadd.f32 %v2836_v3, %v2816_v51  ;;  %v2897_v6 = vadd.f32 %v2881_v27, %v2845_v39 }
 0xc06   : > { %v2919_v36 = vadd.f32 %v5791_v0, %v2895_v8  ;;  %v2953_v55 = vmul.f32 %v5801_v15, %v2917_v13  ;;  %v2853_v53 = vadd.f32 %v2837_v38, %v2817_v35  ;;  %v2883_v24 = vmul.f32 %v5771_v26, %v2863_v52  ;;  %v2866_v38 = vld [vmem:[#allocation2 + $0x62] sm:$0xff]  ;;  %v2868_v8 = vld [vmem:[#allocation2 + $0x72] sm:$0xff] }
 0xc07   : > { %v2898_v61 = vadd.f32 %v2882_v45, %v2846_v32  ;;  %vm2933_vm11 = vcmp.ge.f32.partialorder %v2917_v13, 0.0  ;;  %v2920_v22 = vadd.f32 %v5791_v0, %v2896_v20  ;;  %v2954_v47 = vmul.f32 %v5801_v15, %v2918_v63 }
 0xc08   : > { %v5818_v57 = vsel %vm2931_vm9, %v2915_v46, %v2951_v54  ;;  %v5820_v1 = vsel %vm2932_vm10, %v2916_v7, %v2952_v21  ;;  %v2854_v3 = vadd.f32 %v5781_v10, %v2818_v12  ;;  %v2884_v60 = vmul.f32 %v5771_v26, %v2864_v25  ;;  %v2867_v7 = vld [vmem:[#allocation2 + $0x6a] sm:$0xff] }
 0xc09   : > { %v2885_v51 = vmul.f32 %v5771_v26, %v2865_v4  ;;  %vm2934_vm12 = vcmp.ge.f32.partialorder %v2918_v63, 0.0  ;;  %v2899_v9 = vadd.f32 %v2883_v24, %v2847_v43  ;;  %v2921_v30 = vadd.f32 %v5791_v0, %v2897_v6 }
 0xc0a   : > { %v2955_v49 = vmul.f32 %v5801_v15, %v2919_v36  ;;  %v5827_v14 = vsel %vm2933_vm11, %v2917_v13, %v2953_v55  ;;  %v2900_v48 = vadd.f32 %v2884_v60, %v2848_v2  ;;  %vm2935_vm13 = vcmp.ge.f32.partialorder %v2919_v36, 0.0 }
 0xc0b   : > { %v2987_v46 = vsel %vm672_vm0, %v5818_v57, 0.0  ;;  %v2988_v10 = vsel %vm672_vm0, %v5820_v1, 0.0  ;;  %v2922_v35 = vadd.f32 %v5791_v0, %v2898_v61  ;;  %v2956_v12 = vmul.f32 %v5801_v15, %v2920_v22 }
 0xc0c   : > { %v5835_v39 = vsel %vm2934_vm12, %v2918_v63, %v2954_v47  ;;  %v2989_v32 = vadd.f32 %v2988_v10, %v2987_v46  ;;  %v2886_v43 = vmul.f32 %v5771_v26, %v2866_v38  ;;  %v2901_v59 = vadd.f32 %v2885_v51, %v2849_v18  ;;  %v2869_v18 = vld [vmem:[#allocation2 + $0x7a] sm:$0xff] }
 0xc0d   : > { %vm2936_vm14 = vcmp.ge.f32.partialorder %v2920_v22, 0.0  ;;  %v2990_v16 = vsel %vm672_vm0, %v5827_v14, 0.0  ;;  %v2923_v13 = vadd.f32 %v5791_v0, %v2899_v9  ;;  %v2957_v2 = vmul.f32 %v5801_v15, %v2921_v30 }
 0xc0e   : > { %v5842_v27 = vsel %vm2935_vm13, %v2919_v36, %v2955_v49  ;;  %v2991_v52 = vadd.f32 %v2990_v16, %v2989_v32  ;;  %v2887_v20 = vmul.f32 %v5771_v26, %v2867_v7  ;;  %v2902_v63 = vadd.f32 %v2886_v43, %v2850_v41  ;;  %v2870_v41 = vld [vmem:[#allocation2 + $0x82] sm:$0xff] }
 0xc0f   : > { %vm2937_vm15 = vcmp.ge.f32.partialorder %v2921_v30, 0.0  ;;  %v2992_v54 = vsel %vm672_vm0, %v5835_v39, 0.0  ;;  %v2924_v21 = vadd.f32 %v5791_v0, %v2900_v48  ;;  %v2958_v45 = vmul.f32 %v5801_v15, %v2922_v35 }
 0xc10   : > { %v5849_v25 = vsel %vm2936_vm14, %v2920_v22, %v2956_v12  ;;  %v2993_v4 = vadd.f32 %v2992_v54, %v2991_v52  ;;  %v2888_v6 = vmul.f32 %v5771_v26, %v2868_v8  ;;  %v2903_v36 = vadd.f32 %v2887_v20, %v2851_v17 }
 0xc11   : > { %vm2938_vm1 = vcmp.ge.f32.partialorder %v2922_v35, 0.0  ;;  %v2994_v55 = vsel %vm672_vm0, %v5842_v27, 0.0  ;;  %v2925_v24 = vadd.f32 %v5791_v0, %v2901_v59  ;;  %v2959_v61 = vmul.f32 %v5801_v15, %v2923_v13 }
 0xc12   : > { %v5856_v47 = vsel %vm2937_vm15, %v2921_v30, %v2957_v2  ;;  %v2995_v60 = vadd.f32 %v2994_v55, %v2993_v4  ;;  %v2889_v51 = vmul.f32 %v5771_v26, %v2869_v18  ;;  %v2904_v22 = vadd.f32 %v2888_v6, %v2852_v23 }
 0xc13   : > { %vm2939_vm3 = vcmp.ge.f32.partialorder %v2923_v13, 0.0  ;;  %v2996_v38 = vsel %vm672_vm0, %v5849_v25, 0.0  ;;  %v2926_v17 = vadd.f32 %v5791_v0, %v2902_v63  ;;  %v2960_v9 = vmul.f32 %v5801_v15, %v2924_v21 }
 0xc14   : > { %v5863_v49 = vsel %vm2938_vm1, %v2922_v35, %v2958_v45  ;;  %v2997_v48 = vadd.f32 %v2996_v38, %v2995_v60  ;;  %v2890_v46 = vmul.f32 %v5771_v26, %v2870_v41  ;;  %v2905_v10 = vadd.f32 %v2889_v51, %v2853_v53 }
 0xc15   : > { %vm2940_vm4 = vcmp.ge.f32.partialorder %v2924_v21, 0.0  ;;  %v2998_v30 = vsel %vm672_vm0, %v5856_v47, 0.0  ;;  %v2927_v23 = vadd.f32 %v5791_v0, %v2903_v36  ;;  %v2961_v7 = vmul.f32 %v5801_v15, %v2925_v24 }
 0xc16   : > { %v5870_v12 = vsel %vm2939_vm3, %v2923_v13, %v2959_v61  ;;  %v2999_v32 = vadd.f32 %v2998_v30, %v2997_v48  ;;  %v2906_v43 = vadd.f32 %v2890_v46, %v2854_v3  ;;  %vm2941_vm5 = vcmp.ge.f32.partialorder %v2925_v24, 0.0 }
 0xc17   : > { %v3000_v35 = vsel %vm672_vm0, %v5863_v49, 0.0  ;;  %v2928_v59 = vadd.f32 %v5791_v0, %v2904_v22  ;;  %v2962_v26 = vmul.f32 %v5801_v15, %v2926_v17  ;;  %v5876_v53 = vsel %vm2940_vm4, %v2924_v21, %v2960_v9 }
 0xc18   : > { %v3001_v16 = vadd.f32 %v3000_v35, %v2999_v32  ;;  %vm2942_vm6 = vcmp.ge.f32.partialorder %v2926_v17, 0.0  ;;  %v3002_v8 = vsel %vm672_vm0, %v5870_v12, 0.0  ;;  %v2929_v13 = vadd.f32 %v5791_v0, %v2905_v10 }
 0xc19   : > { %v2963_v2 = vmul.f32 %v5801_v15, %v2927_v23  ;;  %v5882_v3 = vsel %vm2941_vm5, %v2925_v24, %v2961_v7  ;;  %vm2943_vm7 = vcmp.ge.f32.partialorder %v2927_v23, 0.0  ;;  %v3004_v20 = vsel %vm672_vm0, %v5876_v53, 0.0 }
 0xc1a   : > { %v3003_v52 = vadd.f32 %v3002_v8, %v3001_v16  ;;  %v2930_v63 = vadd.f32 %v5791_v0, %v2906_v43  ;;  %v2964_v54 = vmul.f32 %v5801_v15, %v2928_v59  ;;  %v5888_v18 = vsel %vm2942_vm6, %v2926_v17, %v2962_v26 }
 0xc1b   : > { %vm2944_vm8 = vcmp.ge.f32.partialorder %v2928_v59, 0.0  ;;  %v3006_v45 = vsel %vm672_vm0, %v5882_v3, 0.0  ;;  %v2965_v4 = vmul.f32 %v5801_v15, %v2929_v13  ;;  %v5893_v6 = vsel %vm2943_vm7, %v2927_v23, %v2963_v2 }
 0xc1c   : > { %v3005_v21 = vadd.f32 %v3004_v20, %v3003_v52  ;;  %vm2945_vm9 = vcmp.ge.f32.partialorder %v2929_v13, 0.0  ;;  %v3008_v55 = vsel %vm672_vm0, %v5888_v18, 0.0  ;;  %v2966_v0 = vmul.f32 %v5801_v15, %v2930_v63 }
 0xc1d   : > { %v5898_v41 = vsel %vm2944_vm8, %v2928_v59, %v2964_v54  ;;  %vm2946_vm10 = vcmp.ge.f32.partialorder %v2930_v63, 0.0  ;;  %v3010_v61 = vsel %vm672_vm0, %v5893_v6, 0.0  ;;  %v5902_v60 = vsel %vm2945_vm9, %v2929_v13, %v2965_v4 }
 0xc1e   : > { %v3007_v36 = vadd.f32 %v3006_v45, %v3005_v21  ;;  %v3012_v22 = vsel %vm672_vm0, %v5898_v41, 0.0  ;;  %v5906_v38 = vsel %vm2946_vm10, %v2930_v63, %v2966_v0  ;;  %v3014_v9 = vsel %vm672_vm0, %v5902_v60, 0.0 }
 0xc1f   : > { %v3016_v48 = vsel %vm672_vm0, %v5906_v38, 0.0 }
 0xc20   : > { %v3009_v24 = vadd.f32 %v3008_v55, %v3007_v36 }
 0xc22   : > { %v3011_v51 = vadd.f32 %v3010_v61, %v3009_v24 }
 0xc24   : > { %v3013_v17 = vadd.f32 %v3012_v22, %v3011_v51 }
 0xc26   : > { %v3015_v15 = vadd.f32 %v3014_v9, %v3013_v17 }
 0xc28   : > { %v3017_v46 = vadd.f32 %v3016_v48, %v3015_v15 }
 0xc2a   : > { %3018 = vadd.xlane.f32.xlu1 %v3017_v46 }
 0xcb7   : > { %v3019_v10 = vpop.xlane.xlu1 %3018 }
 0xcb8   : > { %v3020_v30 = vrot.slane %v3019_v10, 4 }
 0xcba   : > { %v3021_v23 = vadd.f32 %v3020_v30, %v3019_v10 }
 0xcbc   : > { %v3022_v7 = vrot.slane %v3021_v23, 2 }
 0xcbe   : > { %v3023_v32 = vadd.f32 %v3022_v7, %v3021_v23 }
 0xcc0   : > { %v3024_v43 = vrot.slane %v3023_v32, 1 }
 0xcc2   : > { %v3025_v35 = vadd.f32 %v3024_v43, %v3023_v32 }
 0xcc4   : > { %4372 = vpush %v3025_v35 }
 0xcf5   : > { %s4373_s3 = spop %4372 }
 0xcf6   : > { %v3027_v59 = vstv %s4373_s3 }
 0xcf7   : > { %v3028_v26 = vmul.f32 0.00012207031, %v3027_v59 }
 0xcf9   : > { %v5913_v16 = vsub.f32 %v5818_v57, %v3028_v26  ;;  %v5916_v8 = vsub.f32 %v5820_v1, %v3028_v26  ;;  %v5919_v13 = vsub.f32 %v5827_v14, %v3028_v26  ;;  %v5922_v2 = vsub.f32 %v5835_v39, %v3028_v26 }
 0xcfa   : > { %v5929_v63 = vsub.f32 %v5842_v27, %v3028_v26  ;;  %v5934_v1 = vsub.f32 %v5849_v25, %v3028_v26  ;;  %v5941_v45 = vsub.f32 %v5856_v47, %v3028_v26  ;;  %v5947_v25 = vsub.f32 %v5863_v49, %v3028_v26 }
 0xcfb   : > { %v3045_v52 = vmul.f32 %v5913_v16, %v5913_v16  ;;  %v3046_v20 = vmul.f32 %v5916_v8, %v5916_v8  ;;  %v3047_v57 = vmul.f32 %v5919_v13, %v5919_v13  ;;  %v3048_v14 = vmul.f32 %v5922_v2, %v5922_v2 }
 0xcfc   : > { %v3049_v27 = vmul.f32 %v5929_v63, %v5929_v63  ;;  %v3050_v55 = vmul.f32 %v5934_v1, %v5934_v1  ;;  %v5953_v61 = vsub.f32 %v5870_v12, %v3028_v26  ;;  %v3051_v47 = vmul.f32 %v5941_v45, %v5941_v45 }
 0xcfd   : > { %v3061_v39 = vsel %vm672_vm0, %v3045_v52, 0.0  ;;  %v3062_v54 = vsel %vm672_vm0, %v3046_v20, 0.0  ;;  %v3064_v4 = vsel %vm672_vm0, %v3047_v57, 0.0  ;;  %v3066_v0 = vsel %vm672_vm0, %v3048_v14, 0.0 }
 0xcfe   : > { %v3063_v21 = vadd.f32 %v3062_v54, %v3061_v39  ;;  %v3068_v51 = vsel %vm672_vm0, %v3049_v27, 0.0  ;;  %v5959_v17 = vsub.f32 %v5876_v53, %v3028_v26  ;;  %v3052_v49 = vmul.f32 %v5947_v25, %v5947_v25 }
 0xcff   : > { %v3070_v9 = vsel %vm672_vm0, %v3050_v55, 0.0  ;;  %v5965_v48 = vsub.f32 %v5882_v3, %v3028_v26  ;;  %v3053_v12 = vmul.f32 %v5953_v61, %v5953_v61  ;;  %v3072_v46 = vsel %vm672_vm0, %v3051_v47, 0.0 }
 0xd00   : > { %v3065_v36 = vadd.f32 %v3064_v4, %v3063_v21  ;;  %v5971_v30 = vsub.f32 %v5888_v18, %v3028_v26  ;;  %v3054_v53 = vmul.f32 %v5959_v17, %v5959_v17  ;;  %v3074_v23 = vsel %vm672_vm0, %v3052_v49, 0.0  ;;  %v3846_v49 = vld [vmem:[%s6253_s16 + $0x48] sm:$0xff] }
 0xd01   : > { %v5977_v32 = vsub.f32 %v5893_v6, %v3028_v26  ;;  %v3055_v3 = vmul.f32 %v5965_v48, %v5965_v48  ;;  %v3076_v43 = vsel %vm672_vm0, %v3053_v12, 0.0  ;;  %v5983_v59 = vsub.f32 %v5898_v41, %v3028_v26  ;;  %v3848_v12 = vld [vmem:[%s6253_s16 + $0x58] sm:$0xff] }
 0xd02   : > { %v3067_v24 = vadd.f32 %v3066_v0, %v3065_v36  ;;  %v3056_v18 = vmul.f32 %v5971_v30, %v5971_v30  ;;  %v3078_v52 = vsel %vm672_vm0, %v3054_v53, 0.0  ;;  %v5989_v57 = vsub.f32 %v5902_v60, %v3028_v26  ;;  %v3850_v53 = vld [vmem:[%s6253_s16 + $0x68] sm:$0xff] }
 0xd03   : > { %v3057_v6 = vmul.f32 %v5977_v32, %v5977_v32  ;;  %v3080_v14 = vsel %vm672_vm0, %v3055_v3, 0.0  ;;  %v5995_v54 = vsub.f32 %v5906_v38, %v3028_v26  ;;  %v3058_v41 = vmul.f32 %v5983_v59, %v5983_v59  ;;  %v3852_v3 = vld [vmem:[%s6253_s16 + $0x78] sm:$0xff] }
 0xd04   : > { %v3069_v22 = vadd.f32 %v3068_v51, %v3067_v24  ;;  %v3082_v21 = vsel %vm672_vm0, %v3056_v18, 0.0  ;;  %v3059_v4 = vmul.f32 %v5989_v57, %v5989_v57  ;;  %v3444_v18 = vld [vmem:[%s6256_s19 + $0x8] sm:$0xff] }
 0xd05   : > { %v3084_v60 = vsel %vm672_vm0, %v3057_v6, 0.0  ;;  %v3060_v55 = vmul.f32 %v5995_v54, %v5995_v54  ;;  %v3086_v0 = vsel %vm672_vm0, %v3058_v41, 0.0 }
 0xd06   : > { %v3071_v15 = vadd.f32 %v3070_v9, %v3069_v22  ;;  %v3088_v38 = vsel %vm672_vm0, %v3059_v4, 0.0  ;;  %v3845_v22 = vld [vmem:[%s6253_s16 + $0x40] sm:$0xff]  ;;  %v3847_v9 = vld [vmem:[%s6253_s16 + $0x50] sm:$0xff] }
 0xd07   : > { %v3090_v47 = vsel %vm672_vm0, %v3060_v55, 0.0 }
 0xd08   : > { %v3073_v10 = vadd.f32 %v3072_v46, %v3071_v15  ;;  %v4328_v15 = vpack.c.bf16 %v3846_v49, %v3845_v22  ;;  %v4332_v46 = vpack.c.bf16 %v3848_v12, %v3847_v9 }
 0xd0a   : > { %v3075_v7 = vadd.f32 %v3074_v23, %v3073_v10  ;;  %4329 = vmatprep.subr.bf16.mxu0 %v4328_v15  ;;  %v3849_v10 = vld [vmem:[%s6253_s16 + $0x60] sm:$0xff]  ;;  %v3851_v23 = vld [vmem:[%s6253_s16 + $0x70] sm:$0xff] }
 0xd0b   : > { %4331 = vmatpush3.bf16.msra.mxu0 %v4328_v15  ;;  %v6058_v15 = vld [vmem:[%s6252_s15 + $0x1] ss:$0 sm:$0xff] }
 0xd0c   : > { %v3077_v35 = vadd.f32 %v3076_v43, %v3075_v7  ;;  %4333 = vmatprep.subr.bf16.mxu0 %v4332_v46  ;;  %v4336_v7 = vpack.c.bf16 %v3850_v53, %v3849_v10  ;;  %v4340_v43 = vpack.c.bf16 %v3852_v3, %v3851_v23 }
 0xd0e   : > { %v3079_v20 = vadd.f32 %v3078_v52, %v3077_v35  ;;  %v3443_v35 = vld [vmem:[%s6256_s19] sm:$0xff]  ;;  %v3445_v52 = vld [vmem:[%s6256_s19 + $0x10] sm:$0xff] }
 0xd0f   : > { %4335 = vmatpush3.bf16.msra.mxu0 %v4332_v46  ;;  %v4344_v6 = vpack.c.bf16 %v3444_v18, %v3443_v35 }
 0xd10   : > { %v3081_v39 = vadd.f32 %v3080_v14, %v3079_v20  ;;  %4337 = vmatprep.subr.bf16.mxu0 %v4336_v7  ;;  %v4427_v20 = vmov 4   ;;  %v3446_v14 = vld [vmem:[%s6256_s19 + $0x18] sm:$0xff] }
 0xd11   : > { %4397 = vset.pattern.permute.xlu1 %v4427_v20  ;;  %4398 = vset.pattern.permute.xlu0 %v4427_v20  ;;  %v4348_v41 = vpack.c.bf16 %v3446_v14, %v3445_v52 }
 0xd12   : > { %v3083_v27 = vadd.f32 %v3082_v21, %v3081_v39  ;;  %v4410_v39 = vld [vmem:[%s6255_s18] ss:$0 sm:$0xff]  ;;  %4352 = vmatprep.subr.bf16.mxu1 %v4344_v6 }
 0xd13   : > { %4339 = vmatpush3.bf16.msra.mxu0 %v4336_v7  ;;  %4354 = vmatpush3.bf16.msra.mxu1 %v4344_v6 }
 0xd14   : > { %v3085_v36 = vadd.f32 %v3084_v60, %v3083_v27  ;;  %4341 = vmatprep.subr.bf16.mxu0 %v4340_v43  ;;  %4353 = vmatprep.subr.bf16.mxu1 %v4348_v41 }
 0xd16   : > { %v3087_v24 = vadd.f32 %v3086_v0, %v3085_v36 }
 0xd17   : > { %4343 = vmatpush3.bf16.msra.mxu0 %v4340_v43  ;;  %4355 = vmatpush3.bf16.msra.mxu1 %v4348_v41 }
 0xd18   : > { %v3089_v26 = vadd.f32 %v3088_v38, %v3087_v24  ;;  %4345 = vmatprep.subr.bf16.mxu0 %v4344_v6 }
 0xd1a   : > { %v3091_v51 = vadd.f32 %v3090_v47, %v3089_v26 }
 0xd1c   : > { %3092 = vadd.xlane.f32.xlu1 %v3091_v51  ;;  %v6050_v51 = vld [vmem:[%s6251_s14 + $0x1] ss:$0 sm:$0xff] }
 0xd2d   : > { %3408 = vperm.xlu1 %4397, %v4410_v39  }
 0xda9   : > { %v3093_v21 = vpop.xlane.xlu1 %3092 }
 0xdaa   : > { %v3094_v27 = vrot.slane %v3093_v21, 4 }
 0xdac   : > { %v3095_v4 = vadd.f32 %v3094_v27, %v3093_v21 }
 0xdae   : > { %v3096_v60 = vrot.slane %v3095_v4, 2 }
 0xdb0   : > { %v3097_v36 = vadd.f32 %v3096_v60, %v3095_v4 }
 0xdb2   : > { %v3098_v55 = vrot.slane %v3097_v36, 1 }
 0xdb4   : > { %v3099_v0 = vadd.f32 %v3098_v55, %v3097_v36 }
 0xdb6   : > { %4374 = vpush %v3099_v0 }
 0xde7   : > { %s4375_s30 = spop %4374 }
 0xde8   : > { %v3101_v24 = vstv %s4375_s30  ;;  %s6200_s30 = scalar_lea.vmem %s6258_s21, %s3890_s26 }
 0xde9   : > { %v3102_v38 = vmul.f32 0.00012207031, %v3101_v24 }
 0xdeb   : > { %v3103_v26 = vadd.f32 1e-08, %v3102_v38 }
 0xded   : > { %4407 = vrsqrt.f32 %v3103_v26 }
 0xdf7   : > { %v4408_v47 = vpop.eup %4407 }
 0xdf8   : > { %v3105_v22 = vmul.f32 %v4408_v47, %v5913_v16  ;;  %v3106_v49 = vmul.f32 %v4408_v47, %v5916_v8  ;;  %v3107_v9 = vmul.f32 %v4408_v47, %v5919_v13  ;;  %v3108_v12 = vmul.f32 %v4408_v47, %v5922_v2 }
 0xdf9   : > { %v3109_v23 = vmul.f32 %v4408_v47, %v5929_v63  ;;  %v3110_v7 = vmul.f32 %v4408_v47, %v5934_v1  ;;  %v3111_v43 = vmul.f32 %v4408_v47, %v5941_v45  ;;  %v3112_v18 = vmul.f32 %v4408_v47, %v5947_v25 }
 0xdfa   : > { %v3127_v46 = vmul.f32 %v6050_v51, %v3105_v22  ;;  %v3128_v10 = vmul.f32 %v6050_v51, %v3106_v49  ;;  %v3129_v53 = vmul.f32 %v6050_v51, %v3107_v9  ;;  %v3130_v13 = vmul.f32 %v6050_v51, %v3108_v12 }
 0xdfb   : > { %v3131_v3 = vmul.f32 %v6050_v51, %v3109_v23  ;;  %v3132_v35 = vmul.f32 %v6050_v51, %v3110_v7  ;;  %v3133_v52 = vmul.f32 %v6050_v51, %v3111_v43  ;;  %v3113_v20 = vmul.f32 %v4408_v47, %v5953_v61 }
 0xdfc   : > { %v3149_v16 = vadd.f32 %v6058_v15, %v3127_v46  ;;  %v3150_v8 = vadd.f32 %v6058_v15, %v3128_v10  ;;  %v3151_v2 = vadd.f32 %v6058_v15, %v3129_v53  ;;  %v3152_v63 = vadd.f32 %v6058_v15, %v3130_v13  ;;  %v6128_v53 = vpop.permute.xlu1 %3408 }
 0xdfd   : > { %v3153_v1 = vadd.f32 %v6058_v15, %v3131_v3  ;;  %v3154_v45 = vadd.f32 %v6058_v15, %v3132_v35  ;;  %v3134_v14 = vmul.f32 %v6050_v51, %v3112_v18  ;;  %v3114_v39 = vmul.f32 %v4408_v47, %v5959_v17 }
 0xdfe   : > { %4212 = vmatprep.mubr.msk.f32.mxu0 %vm672_vm0, %v3149_v16  ;;  %v3155_v25 = vadd.f32 %v6058_v15, %v3133_v52  ;;  %v3115_v21 = vmul.f32 %v4408_v47, %v5965_v48  ;;  %v3116_v4 = vmul.f32 %v4408_v47, %v5971_v30  ;;  %v3118_v55 = vmul.f32 %v4408_v47, %v5983_v59 }
 0xdff   : > { %4213 = vmatmul.mubr.msk.f32.vlgmr.msra.gmra.mrb[32].mxu0 %vm672_vm0, %v3150_v8  ;;  %v3156_v61 = vadd.f32 %v6058_v15, %v3134_v14  ;;  %v3136_v27 = vmul.f32 %v6050_v51, %v3114_v39  ;;  %v3119_v24 = vmul.f32 %v4408_v47, %v5989_v57  ;;  %v3120_v26 = vmul.f32 %v4408_v47, %v5995_v54 }
 0xe00   : > { %4215 = vmatprep.mubr.msk.f32.mxu0 %vm672_vm0, %v3151_v2  ;;  %4347 = vmatpush3.bf16.msra.mxu0 %v4344_v6  ;;  %v3135_v6 = vmul.f32 %v6050_v51, %v3113_v20  ;;  %v3137_v17 = vmul.f32 %v6050_v51, %v3115_v21  ;;  %v3138_v36 = vmul.f32 %v6050_v51, %v3116_v4 }
 0xe01   : > { %4349 = vmatprep.subr.bf16.mxu0 %v4348_v41  ;;  %v3158_v48 = vadd.f32 %v6058_v15, %v3136_v27  ;;  %v3140_v38 = vmul.f32 %v6050_v51, %v3118_v55  ;;  %v3141_v59 = vmul.f32 %v6050_v51, %v3119_v24  ;;  %v3142_v49 = vmul.f32 %v6050_v51, %v3120_v26 }
 0xe02   : > { %v3157_v60 = vadd.f32 %v6058_v15, %v3135_v6  ;;  %v3159_v0 = vadd.f32 %v6058_v15, %v3137_v17 }
 0xe03   : > { %4216 = vmatmul.mubr.msk.f32.gmra.mrb[34].mxu0 %vm672_vm0, %v3152_v63  ;;  %v3162_v57 = vadd.f32 %v6058_v15, %v3140_v38  ;;  %v3163_v9 = vadd.f32 %v6058_v15, %v3141_v59  ;;  %v3164_v54 = vadd.f32 %v6058_v15, %v3142_v49 }
 0xe04   : > { %4218 = vmatprep.mubr.msk.f32.mxu0 %vm672_vm0, %v3153_v1  ;;  %4351 = vmatpush3.bf16.msra.mxu0 %v4348_v41  ;;  %v3117_v41 = vmul.f32 %v4408_v47, %v5977_v32  ;;  %v3160_v32 = vadd.f32 %v6058_v15, %v3138_v36  ;;  %v6124_v47 = vld [vmem:[%s6254_s17 + $0x1] ss:$0 sm:$0xff] }
 0xe06   : > { %v3139_v30 = vmul.f32 %v6050_v51, %v3117_v41 }
 0xe07   : > { %4219 = vmatmul.mubr.msk.f32.gmra.mrb[36].mxu0 %vm672_vm0, %v3154_v45 }
 0xe08   : > { %4221 = vmatprep.mubr.msk.f32.mxu0 %vm672_vm0, %v3155_v25  ;;  %v3161_v22 = vadd.f32 %v6058_v15, %v3139_v30 }
 0xe0b   : > { %4222 = vmatmul.mubr.msk.f32.gmra.mrb[38].mxu0 %vm672_vm0, %v3156_v61 }
 0xe0c   : > { %4224 = vmatprep.mubr.msk.f32.mxu0 %vm672_vm0, %v3157_v60 }
 0xe0f   : > { %4225 = vmatmul.mubr.msk.f32.gmra.mrb[40].mxu0 %vm672_vm0, %v3158_v48 }
 0xe10   : > { %4227 = vmatprep.mubr.msk.f32.mxu0 %vm672_vm0, %v3159_v0 }
 0xe13   : > { %4228 = vmatmul.mubr.msk.f32.gmra.mrb[42].mxu0 %vm672_vm0, %v3160_v32 }
 0xe14   : > { %4230 = vmatprep.mubr.msk.f32.mxu0 %vm672_vm0, %v3161_v22 }
 0xe17   : > { %4231 = vmatmul.mubr.msk.f32.gmra.mrb[44].mxu0 %vm672_vm0, %v3162_v57 }
 0xe18   : > { %4233 = vmatprep.mubr.msk.f32.mxu0 %vm672_vm0, %v3163_v9 }
 0xe1b   : > { %4234 = vmatmul.mubr.msk.f32.gmra.mrb[46].mxu0 %vm672_vm0, %v3164_v54 }
 0xed2   : > { %v4214_v12 = vpop.f32.mrb[32].mxu0 }
 0xed3   : > { %v3302_v46 = vadd.f32 %v4214_v12, %v6124_v47  ;;  %v3296_v10 = vpop.f32.mrb[33].mxu0 }
 0xed4   : > { %v3297_v51 = vadd.f32 %v6124_v47, %v3296_v10 }
 0xed5   : > { %v3376_v23 = vadd.f32 %v3302_v46, %v5449_v40 }
 0xed6   : > { %v3375_v16 = vadd.f32 %v3297_v51, %v5451_v42  ;;  %v4217_v15 = vpop.f32.mrb[34].mxu0 }
 0xed7   : > { %v3312_v8 = vadd.f32 %v4217_v15, %v6124_v47  ;;  %v3306_v13 = vpop.f32.mrb[35].mxu0  ;;  %v3412_v7 = vmul.f32 %v6128_v53, %v3376_v23  ;;  %vm3392_vm11 = vcmp.ge.f32.partialorder %v3376_v23, 0.0 }
 0xed8   : > { %v3307_v2 = vadd.f32 %v6124_v47, %v3306_v13  ;;  %vm3391_vm12 = vcmp.ge.f32.partialorder %v3375_v16, 0.0  ;;  %v3411_v3 = vmul.f32 %v6128_v53, %v3375_v16 }
 0xed9   : > { %v3378_v43 = vadd.f32 %v3312_v8, %v5461_v34  ;;  %v3428_v1 = vsel %vm3392_vm11, %v3376_v23, %v3412_v7 }
 0xeda   : > { %v3377_v63 = vadd.f32 %v3307_v2, %v5457_v19  ;;  %v4220_v35 = vpop.f32.mrb[36].mxu0  ;;  %v3427_v40 = vsel %vm3391_vm12, %v3375_v16, %v3411_v3 }
 0xedb   : > { %v3322_v42 = vadd.f32 %v4220_v35, %v6124_v47  ;;  %v3316_v18 = vpop.f32.mrb[37].mxu0  ;;  %4244 = vmatprep.mubr.msk.f32.mxu0 %vm1210_vm2, %v3427_v40  ;;  %v3414_v52 = vmul.f32 %v6128_v53, %v3378_v43  ;;  %vm3394_vm13 = vcmp.ge.f32.partialorder %v3378_v43, 0.0 }
 0xedc   : > { %v3413_v20 = vmul.f32 %v6128_v53, %v3377_v63  ;;  %v3317_v45 = vadd.f32 %v6124_v47, %v3316_v18  ;;  %4245 = vmatmul.mubr.msk.f32.vlgmr.msra.gmra.mrb[48].mxu0 %vm1210_vm2, %v3428_v1  ;;  %vm3393_vm14 = vcmp.ge.f32.partialorder %v3377_v63, 0.0 }
 0xedd   : > { %v3380_v19 = vadd.f32 %v3322_v42, %v5469_v50  ;;  %v3430_v61 = vsel %vm3394_vm13, %v3378_v43, %v3414_v52 }
 0xede   : > { %v3379_v34 = vadd.f32 %v3317_v45, %v5463_v11  ;;  %v4223_v14 = vpop.f32.mrb[38].mxu0  ;;  %v3429_v39 = vsel %vm3393_vm14, %v3377_v63, %v3413_v20 }
 0xedf   : > { %v3416_v25 = vmul.f32 %v6128_v53, %v3380_v19  ;;  %v3332_v6 = vadd.f32 %v4223_v14, %v6124_v47  ;;  %v3326_v21 = vpop.f32.mrb[39].mxu0  ;;  %4247 = vmatprep.mubr.msk.f32.mxu1 %vm1210_vm2, %v3429_v39  ;;  %vm3396_vm1 = vcmp.ge.f32.partialorder %v3380_v19, 0.0 }
 0xee0   : > { %v3415_v27 = vmul.f32 %v6128_v53, %v3379_v34  ;;  %v3327_v4 = vadd.f32 %v6124_v47, %v3326_v21  ;;  %4248 = vmatmul.mubr.msk.f32.vlgmr.msra.gmra.mrb[34].mxu1 %vm1210_vm2, %v3430_v61  ;;  %vm3395_vm15 = vcmp.ge.f32.partialorder %v3379_v34, 0.0 }
 0xee1   : > { %v3382_v11 = vadd.f32 %v3332_v6, %v5477_v28  ;;  %v3432_v55 = vsel %vm3396_vm1, %v3380_v19, %v3416_v25 }
 0xee2   : > { %v3381_v50 = vadd.f32 %v3327_v4, %v5471_v5  ;;  %v4226_v60 = vpop.f32.mrb[40].mxu0  ;;  %v3431_v17 = vsel %vm3395_vm15, %v3379_v34, %v3415_v27 }
 0xee3   : > { %v3418_v41 = vmul.f32 %v6128_v53, %v3382_v11  ;;  %v3342_v48 = vadd.f32 %v4226_v60, %v6124_v47  ;;  %v3336_v36 = vpop.f32.mrb[41].mxu0  ;;  %4250 = vmatprep.mubr.msk.f32.mxu1 %vm1210_vm2, %v3431_v17  ;;  %vm3398_vm4 = vcmp.ge.f32.partialorder %v3382_v11, 0.0 }
 0xee4   : > { %v3417_v0 = vmul.f32 %v6128_v53, %v3381_v50  ;;  %v3337_v30 = vadd.f32 %v6124_v47, %v3336_v36  ;;  %4251 = vmatmul.mubr.msk.f32.gmra.mrb[36].mxu1 %vm1210_vm2, %v3432_v55  ;;  %vm3397_vm3 = vcmp.ge.f32.partialorder %v3381_v50, 0.0 }
 0xee5   : > { %v3384_v5 = vadd.f32 %v3342_v48, %v5485_v31  ;;  %v3434_v59 = vsel %vm3398_vm4, %v3382_v11, %v3418_v41 }
 0xee6   : > { %v3383_v28 = vadd.f32 %v3337_v30, %v5479_v56  ;;  %v4229_v24 = vpop.f32.mrb[42].mxu0  ;;  %v3433_v32 = vsel %vm3397_vm3, %v3381_v50, %v3417_v0 }
 0xee7   : > { %v3420_v38 = vmul.f32 %v6128_v53, %v3384_v5  ;;  %v3352_v26 = vadd.f32 %v4229_v24, %v6124_v47  ;;  %v3346_v22 = vpop.f32.mrb[43].mxu0  ;;  %4253 = vmatprep.mubr.msk.f32.mxu1 %vm1210_vm2, %v3433_v32  ;;  %vm3400_vm6 = vcmp.ge.f32.partialorder %v3384_v5, 0.0 }
 0xee8   : > { %v3419_v57 = vmul.f32 %v6128_v53, %v3383_v28  ;;  %v3347_v49 = vadd.f32 %v6124_v47, %v3346_v22  ;;  %4254 = vmatmul.mubr.msk.f32.gmra.mrb[38].mxu1 %vm1210_vm2, %v3434_v59  ;;  %vm3399_vm5 = vcmp.ge.f32.partialorder %v3383_v28, 0.0 }
 0xee9   : > { %v3386_v56 = vadd.f32 %v3352_v26, %v5493_v44  ;;  %v3436_v51 = vsel %vm3400_vm6, %v3384_v5, %v3420_v38 }
 0xeea   : > { %v3385_v31 = vadd.f32 %v3347_v49, %v5487_v29  ;;  %v4232_v9 = vpop.f32.mrb[44].mxu0  ;;  %v3435_v54 = vsel %vm3399_vm5, %v3383_v28, %v3419_v57 }
 0xeeb   : > { %v3422_v12 = vmul.f32 %v6128_v53, %v3386_v56  ;;  %v3362_v46 = vadd.f32 %v4232_v9, %v6124_v47  ;;  %v3356_v10 = vpop.f32.mrb[45].mxu0  ;;  %4256 = vmatprep.mubr.msk.f32.mxu1 %vm1210_vm2, %v3435_v54  ;;  %vm3402_vm8 = vcmp.ge.f32.partialorder %v3386_v56, 0.0 }
 0xeec   : > { %v3421_v23 = vmul.f32 %v6128_v53, %v3385_v31  ;;  %v3357_v16 = vadd.f32 %v6124_v47, %v3356_v10  ;;  %4257 = vmatmul.mubr.msk.f32.gmra.mrb[40].mxu1 %vm1210_vm2, %v3436_v51  ;;  %vm3401_vm7 = vcmp.ge.f32.partialorder %v3385_v31, 0.0 }
 0xeed   : > { %v3388_v29 = vadd.f32 %v3362_v46, %v5501_v37  ;;  %v3438_v3 = vsel %vm3402_vm8, %v3386_v56, %v3422_v12 }
 0xeee   : > { %v3387_v44 = vadd.f32 %v3357_v16, %v5495_v33  ;;  %v4235_v15 = vpop.f32.mrb[46].mxu0  ;;  %v3437_v8 = vsel %vm3401_vm7, %v3385_v31, %v3421_v23 }
 0xeef   : > { %v3424_v13 = vmul.f32 %v6128_v53, %v3388_v29  ;;  %v3372_v7 = vadd.f32 %v4235_v15, %v6124_v47  ;;  %v3366_v2 = vpop.f32.mrb[47].mxu0  ;;  %4259 = vmatprep.mubr.msk.f32.mxu1 %vm1210_vm2, %v3437_v8  ;;  %vm3404_vm10 = vcmp.ge.f32.partialorder %v3388_v29, 0.0 }
 0xef0   : > { %v3423_v43 = vmul.f32 %v6128_v53, %v3387_v44  ;;  %v3367_v63 = vadd.f32 %v6124_v47, %v3366_v2  ;;  %4260 = vmatmul.mubr.msk.f32.gmra.mrb[42].mxu1 %vm1210_vm2, %v3438_v3  ;;  %vm3403_vm9 = vcmp.ge.f32.partialorder %v3387_v44, 0.0 }
 0xef1   : > { %v3390_v33 = vadd.f32 %v3372_v7, %v5509_v62  ;;  %v3440_v42 = vsel %vm3404_vm10, %v3388_v29, %v3424_v13 }
 0xef2   : > { %v3389_v37 = vadd.f32 %v3367_v63, %v5503_v58  ;;  %v3439_v35 = vsel %vm3403_vm9, %v3387_v44, %v3423_v43  ;;  %v3871_v58 = vld [vmem:[%s6257_s20] ss:$0 sm:$0xff] }
 0xef3   : > { %v3426_v40 = vmul.f32 %v6128_v53, %v3390_v33  ;;  %4262 = vmatprep.mubr.msk.f32.mxu1 %vm1210_vm2, %v3439_v35  ;;  %vm3406_vm12 = vcmp.ge.f32.partialorder %v3390_v33, 0.0 }
 0xef4   : > { %v3425_v18 = vmul.f32 %v6128_v53, %v3389_v37  ;;  %4263 = vmatmul.mubr.msk.f32.gmra.mrb[44].mxu1 %vm1210_vm2, %v3440_v42  ;;  %vm3405_vm11 = vcmp.ge.f32.partialorder %v3389_v37, 0.0 }
 0xef5   : > { %v3442_v1 = vsel %vm3406_vm12, %v3390_v33, %v3426_v40 }
 0xef6   : > { %v3441_v47 = vsel %vm3405_vm11, %v3389_v37, %v3425_v18 }
 0xef7   : > { %4265 = vmatprep.mubr.msk.f32.mxu1 %vm1210_vm2, %v3441_v47 }
 0xef8   : > { %4266 = vmatmul.mubr.msk.f32.gmra.mrb[46].mxu1 %vm1210_vm2, %v3442_v1 }
 0xfaf   : > { %v4246_v62 = vpop.f32.mrb[48].mxu0 }
 0xfb0   : > { %v3574_v52 = vadd.f32 %v4246_v62, %v3871_v58  ;;  %v3568_v20 = vpop.f32.mrb[49].mxu0 }
 0xfb1   : > { %v3569_v53 = vadd.f32 %v3871_v58, %v3568_v20 }
 0xfb2   : > { %v3648_v45 = vmax.f32 %v3574_v52, 0.0 }
 0xfb3   : > { %v3647_v19 = vmax.f32 %v3569_v53, 0.0  ;;  %v4249_v34 = vpop.f32.mrb[34].mxu1 }
 0xfb4   : > { %3664 = vst.msk [vmem:[%s6200_s30 + $0x8] sm:$0xff] %vm672_vm0, %v3648_v45  ;;  %v3584_v14 = vadd.f32 %v4249_v34, %v3871_v58  ;;  %v3578_v39 = vpop.f32.mrb[35].mxu1 }
 0xfb5   : > { %3663 = vst.msk [vmem:[%s6200_s30] sm:$0xff] %vm672_vm0, %v3647_v19  ;;  %v3579_v25 = vadd.f32 %v3871_v58, %v3578_v39 }
 0xfb6   : > { %v3650_v6 = vmax.f32 %v3584_v14, 0.0 }
 0xfb7   : > { %v3649_v21 = vmax.f32 %v3579_v25, 0.0  ;;  %v4252_v61 = vpop.f32.mrb[36].mxu1 }
 0xfb8   : > { %3666 = vst.msk [vmem:[%s6200_s30 + $0x18] sm:$0xff] %vm672_vm0, %v3650_v6  ;;  %v3594_v27 = vadd.f32 %v4252_v61, %v3871_v58  ;;  %v3588_v4 = vpop.f32.mrb[37].mxu1 }
 0xfb9   : > { %3665 = vst.msk [vmem:[%s6200_s30 + $0x10] sm:$0xff] %vm672_vm0, %v3649_v21  ;;  %v3589_v11 = vadd.f32 %v3871_v58, %v3588_v4 }
 0xfba   : > { %v3652_v50 = vmax.f32 %v3594_v27, 0.0 }
 0xfbb   : > { %v3651_v60 = vmax.f32 %v3589_v11, 0.0  ;;  %v4255_v17 = vpop.f32.mrb[38].mxu1 }
 0xfbc   : > { %3668 = vst.msk [vmem:[%s6200_s30 + $0x28] sm:$0xff] %vm672_vm0, %v3652_v50  ;;  %v3604_v41 = vadd.f32 %v4255_v17, %v3871_v58  ;;  %v3598_v48 = vpop.f32.mrb[39].mxu1 }
 0xfbd   : > { %3667 = vst.msk [vmem:[%s6200_s30 + $0x20] sm:$0xff] %vm672_vm0, %v3651_v60  ;;  %v3599_v36 = vadd.f32 %v3871_v58, %v3598_v48 }
 0xfbe   : > { %v3654_v55 = vmax.f32 %v3604_v41, 0.0 }
 0xfbf   : > { %v3653_v0 = vmax.f32 %v3599_v36, 0.0  ;;  %v4258_v30 = vpop.f32.mrb[40].mxu1 }
 0xfc0   : > { %3670 = vst.msk [vmem:[%s6200_s30 + $0x38] sm:$0xff] %vm672_vm0, %v3654_v55  ;;  %v3614_v5 = vadd.f32 %v4258_v30, %v3871_v58  ;;  %v3608_v28 = vpop.f32.mrb[41].mxu1 }
 0xfc1   : > { %3669 = vst.msk [vmem:[%s6200_s30 + $0x30] sm:$0xff] %vm672_vm0, %v3653_v0  ;;  %v3609_v24 = vadd.f32 %v3871_v58, %v3608_v28 }
 0xfc2   : > { %v3656_v32 = vmax.f32 %v3614_v5, 0.0 }
 0xfc3   : > { %v3655_v38 = vmax.f32 %v3609_v24, 0.0  ;;  %v4261_v26 = vpop.f32.mrb[42].mxu1 }
 0xfc4   : > { %3672 = vst.msk [vmem:[%s6200_s30 + $0x48] sm:$0xff] %vm672_vm0, %v3656_v32  ;;  %v3624_v22 = vadd.f32 %v4261_v26, %v3871_v58  ;;  %v3618_v59 = vpop.f32.mrb[43].mxu1 }
 0xfc5   : > { %3671 = vst.msk [vmem:[%s6200_s30 + $0x40] sm:$0xff] %vm672_vm0, %v3655_v38  ;;  %v3619_v57 = vadd.f32 %v3871_v58, %v3618_v59 }
 0xfc6   : > { %v3658_v49 = vmax.f32 %v3624_v22, 0.0 }
 0xfc7   : > { %v3657_v56 = vmax.f32 %v3619_v57, 0.0  ;;  %v4264_v31 = vpop.f32.mrb[44].mxu1 }
 0xfc8   : > { %3674 = vst.msk [vmem:[%s6200_s30 + $0x58] sm:$0xff] %vm672_vm0, %v3658_v49  ;;  %v3634_v9 = vadd.f32 %v4264_v31, %v3871_v58  ;;  %v3628_v54 = vpop.f32.mrb[45].mxu1 }
 0xfc9   : > { %3673 = vst.msk [vmem:[%s6200_s30 + $0x50] sm:$0xff] %vm672_vm0, %v3657_v56  ;;  %v3629_v12 = vadd.f32 %v3871_v58, %v3628_v54 }
 0xfca   : > { %v3660_v46 = vmax.f32 %v3634_v9, 0.0 }
 0xfcb   : > { %v3659_v10 = vmax.f32 %v3629_v12, 0.0  ;;  %v4267_v51 = vpop.f32.mrb[46].mxu1 }
 0xfcc   : > { %3676 = vst.msk [vmem:[%s6200_s30 + $0x68] sm:$0xff] %vm672_vm0, %v3660_v46  ;;  %v3644_v23 = vadd.f32 %v4267_v51, %v3871_v58  ;;  %v3638_v16 = vpop.f32.mrb[47].mxu1 }
 0xfcd   : > { %3675 = vst.msk [vmem:[%s6200_s30 + $0x60] sm:$0xff] %vm672_vm0, %v3659_v10  ;;  %v3639_v29 = vadd.f32 %v3871_v58, %v3638_v16 }
 0xfce   : > { %v3662_v44 = vmax.f32 %v3644_v23, 0.0 }
 0xfcf   : > { %v3661_v15 = vmax.f32 %v3639_v29, 0.0 }
 0xfd0   : > { %3678 = vst.msk [vmem:[%s6200_s30 + $0x78] sm:$0xff] %vm672_vm0, %v3662_v44 }
 0xfd1   : > { %3677 = vst.msk [vmem:[%s6200_s30 + $0x70] sm:$0xff] %vm672_vm0, %v3661_v15 }
 0xfd2 PF: > { %s31_s2 = sadd.s32 1, %s4417_s2  }
 0xfd3   : > { %p28_p4 = scmp.ge.s32.totalorder %s31_s2, 6  }
 0xfd5   :  { %30 = sbr.rel (!%p28_p4) target bundleno = 7 (0x7), region = 147 }

</bundles_post_ra>
